<compile_context>
chip_gen: v5e
topology: v5e:2x2
jax: 0.10.0
libtpu: 0.0.40
codegen_flags: <defaults>
</compile_context>

<pallas_src>
import jax
import jax.numpy as jnp
from jax.experimental import pallas as pl
from jax.experimental.pallas import tpu as pltpu

_GUARD = 128  # lane guard band (multiple of 128) around the flattened activation


def _make_fused_convblock_kernel(repeat, kh, kw, pad, wp, cout, t_lanes, guard):
    # Flat-index shift of tap (ky, kx) relative to an output position, in the
    # per-image padded layout (row stride = wp).
    taps = [(ky - pad) * wp + (kx - pad) for ky in range(kh) for kx in range(kw)]

    def kernel(x_ref, w_ref, b_ref, mask_ref, o_ref, buf):
        # x_ref   : (Cin, T)                zero-padded input, channel-major, lane-dense
        # w_ref   : (R, KH*KW*Cin, Cout, 1) per-(tap,cin) weight columns
        # b_ref   : (R, Cout, 1)            f32 biases
        # mask_ref: (1, T)                  f32 interior mask (0 on halo / tail padding)
        # o_ref   : (Cout, T)               channel-major, lane-dense output (padded layout)
        # buf     : (Cmax, guard+T+guard)   VMEM scratch for shifted-window reads
        act = x_ref[...]                              # (Cin, T) f32
        interior = mask_ref[...] != 0.0               # (1, T) bool, hoisted

        for layer in range(repeat):                   # static unroll over fused layers
            c_l = act.shape[0]
            # Stage the activation once (lane-aligned store); taps read it back via
            # lane-offset slices -> no concat/roll/transpose relayouts.
            buf[0:c_l, guard:guard + t_lanes] = act
            acc = jnp.zeros((cout, t_lanes), jnp.float32)
            for t, d in enumerate(taps):
                # shifted[:, p] == act[:, p + d] for every interior output position p
                # (guard-band garbage only reaches masked halo positions).
                shifted = buf[0:c_l, guard + d:guard + d + t_lanes]   # (c_l, T)
                for ci in range(c_l):                 # VPU tap-accumulate (C is tiny -> skip MXU)
                    col = w_ref[layer, t * c_l + ci]                  # (Cout, 1)
                    acc = acc + col * shifted[ci:ci + 1, :]           # broadcast FMA -> (Cout, T)
            acc = jnp.maximum(acc + b_ref[layer], 0.0)                # bias + ReLU, f32
            # Re-zero halo/tail so the next layer sees 'same' zero padding.
            act = jnp.where(interior, acc, 0.0)

        o_ref[...] = act.astype(o_ref.dtype)          # lane-dense final store

    return kernel


def conv_block(x_nchw, weights, biases, padding=1):
    """ConvBlock.forward: `repeat` x (Conv2d(stride=1,'same') + ReLU), one pallas_call.

    x_nchw: (N, Cin, H, W); weights[i]: (Cout, Cin, KH, KW) (PyTorch OIHW); biases[i]: (Cout,).
    """
    n, cin, h, w = x_nchw.shape
    repeat = len(weights)
    cout, cin_w, kh, kw = weights[0].shape
    assert cin_w == cin
    assert repeat == 1 or cin == cout, "ConvBlock with repeat>1 implies Cin == Cout"
    assert 2 * padding == kh - 1 and 2 * padding == kw - 1, (
        "fused kernel assumes stride-1 'same' convolutions")

    hp, wp = h + 2 * padding, w + 2 * padding
    np_img = hp * wp
    np_pad = ((np_img + 127) // 128) * 128          # per-image lane stride, 128-aligned
    assert _GUARD >= padding * (wp + 1)             # guard covers the largest tap shift

    # Fold as many images as fit a small VMEM budget into one grid step.
    per_img_bytes = 4 * np_pad * (cin + cout + 2)
    bb = n
    while bb > 1 and bb * per_img_bytes > (4 << 20):
        bb -= 1
        while n % bb:
            bb -= 1
    t_lanes = bb * np_pad
    assert t_lanes % 128 == 0
    grid = (n // bb,)

    # Input: NCHW -> zero-pad spatial -> per-image flatten + 128-align tail -> channel-major.
    xp = jnp.pad(x_nchw.astype(jnp.float32),
                 ((0, 0), (0, 0), (padding, padding), (padding, padding)))
    xp = jnp.pad(xp.reshape(n, cin, np_img), ((0, 0), (0, 0), (0, np_pad - np_img)))
    x_cm = jnp.transpose(xp, (1, 0, 2)).reshape(cin, n * np_pad)

    # Weights: OIHW -> (R, KH*KW*Cin, Cout, 1) so w2[l, t*Cin+ci] is the (Cout,1)
    # column weight[:, ci, ky, kx]; biases -> (R, Cout, 1).  All f32.
    k_rows = kh * kw * cin
    w2 = jnp.stack([jnp.transpose(wt, (2, 3, 1, 0)).reshape(k_rows, cout)
                    for wt in weights]).astype(jnp.float32)[..., None]
    b2 = jnp.stack([bt.reshape(cout, 1) for bt in biases]).astype(jnp.float32)

    # Interior mask over one batch block (0 on conv halo and on per-image tail padding).
    yy = jnp.arange(hp)[:, None]
    xx = jnp.arange(wp)[None, :]
    interior = ((yy >= padding) & (yy < padding + h) &
                (xx >= padding) & (xx < padding + w)).astype(jnp.float32).reshape(np_img)
    mask = jnp.tile(jnp.pad(interior, (0, np_pad - np_img)), bb).reshape(1, t_lanes)

    kernel = _make_fused_convblock_kernel(repeat, kh, kw, padding, wp, cout,
                                          t_lanes, _GUARD)

    # VMEM limit derived from the actual working set (review: no hard-coded 32 MiB).
    c_max = max(cin, cout)
    io_bytes = 4 * (cin + cout + 1) * t_lanes                     # x + out + mask blocks
    scratch_bytes = 4 * c_max * (t_lanes + 2 * _GUARD)
    w_bytes = 4 * repeat * (k_rows + 1) * 8 * 128                 # tile-padded weights/bias
    vmem_limit = int(min(64 << 20, max(8 << 20, 4 * io_bytes + 2 * scratch_bytes + w_bytes)))

    out = pl.pallas_call(
        kernel,
        out_shape=jax.ShapeDtypeStruct((cout, n * np_pad), x_nchw.dtype),
        grid_spec=pltpu.PrefetchScalarGridSpec(
            num_scalar_prefetch=0,
            grid=grid,
            in_specs=[
                pl.BlockSpec((cin, t_lanes), lambda g: (0, g)),
                pl.BlockSpec((repeat, k_rows, cout, 1), lambda g: (0, 0, 0, 0)),
                pl.BlockSpec((repeat, cout, 1), lambda g: (0, 0, 0)),
                pl.BlockSpec((1, t_lanes), lambda g: (0, 0)),
            ],
            out_specs=pl.BlockSpec((cout, t_lanes), lambda g: (0, g)),
            scratch_shapes=[
                pltpu.VMEM((c_max, _GUARD + t_lanes + _GUARD), jnp.float32),
            ],
        ),
        compiler_params=pltpu.CompilerParams(
            dimension_semantics=("parallel",),
            vmem_limit_bytes=vmem_limit,
        ),
    )(x_cm, w2, b2, mask)

    # Un-pad: (Cout, N*np_pad) -> (N, Cout, H, W).  Reshape/slice + one transpose, all in XLA.
    out = out.reshape(cout, n, np_pad)[:, :, :np_img].reshape(cout, n, hp, wp)
    out = out[:, :, padding:padding + h, padding:padding + w]
    return jnp.transpose(out, (1, 0, 2, 3))


def _reference_conv_block(x_nchw, weights, biases, padding=1):
    # Pure-JAX reference (lax conv) for correctness check.
    x = x_nchw
    for wt, bt in zip(weights, biases):
        y = jax.lax.conv_general_dilated(
            x, wt, window_strides=(1, 1),
            padding=[(padding, padding), (padding, padding)],
            dimension_numbers=("NCHW", "OIHW", "NCHW"))
        x = jnp.maximum(y + bt.reshape(1, -1, 1, 1), 0.0)
    return x


if __name__ == "__main__":
    # ConvBlock(repeat=2, in_channels=4, out_channels=4, kernel_size=3, padding=1)
    repeat = 2
    N, C, H, W = 2, 4, 16, 16
    KH = KW = 3
    padding = 1

    key = jax.random.PRNGKey(0)
    kx, *kws = jax.random.split(key, 1 + 2 * repeat)
    x = jax.random.normal(kx, (N, C, H, W), dtype=jnp.float32)

    # Deterministic parameter init (fan-in scaled, analogous to Conv2d default); OIHW like PyTorch.
    fan_in = C * KH * KW
    scale = fan_in ** -0.5
    weights, biases = [], []
    for r in range(repeat):
        wt = jax.random.uniform(kws[2 * r], (C, C, KH, KW),
                                minval=-scale, maxval=scale, dtype=jnp.float32)
        bt = jax.random.uniform(kws[2 * r + 1], (C,),
                                minval=-scale, maxval=scale, dtype=jnp.float32)
        weights.append(wt)
        biases.append(bt)

    fused = jax.jit(conv_block, static_argnames=("padding",))
    out = fused(x, weights, biases, padding=padding)
    out = jax.block_until_ready(out)

    ref = _reference_conv_block(x, weights, biases, padding=padding)
    assert out.shape == (N, C, H, W)
    assert jnp.allclose(out, ref, atol=1e-4, rtol=1e-4), "mismatch vs reference"

    print("KERNEL_OK")
</pallas_src>

<mosaic_0001>
module attributes {stable_mosaic.version = 11 : i64} {
  func.func @kernel(%arg0: i32, %arg1: memref<4x768xf32, #tpu.memory_space<vmem>>, %arg2: memref<2x36x4x1xf32, #tpu.memory_space<vmem>>, %arg3: memref<2x4x1xf32, #tpu.memory_space<vmem>>, %arg4: memref<1x768xf32, #tpu.memory_space<vmem>>, %arg5: memref<4x768xf32, #tpu.memory_space<vmem>>, %arg6: memref<4x1024xf32, #tpu.memory_space<vmem>>) attributes {dimension_semantics = [#tpu.dimension_semantics<parallel>], iteration_bounds = array<i64: 1>, scalar_prefetch = 0 : i64, scratch_operands = 1 : i64, tpu.core_type = #tpu.core_type<tc>, window_params = [{transform_indices = @transform_0, window_bounds = array<i64: 4, 768>}, {pipeline_mode = #tpu.pipeline_mode<synchronous>, transform_indices = @transform_1, window_bounds = array<i64: 2, 36, 4, 1>}, {pipeline_mode = #tpu.pipeline_mode<synchronous>, transform_indices = @transform_2, window_bounds = array<i64: 2, 4, 1>}, {pipeline_mode = #tpu.pipeline_mode<synchronous>, transform_indices = @transform_3, window_bounds = array<i64: 1, 768>}, {transform_indices = @transform_4, window_bounds = array<i64: 4, 768>}]} {
    %c0 = arith.constant 0 : index
    %c0_0 = arith.constant 0 : index
    %0 = vector.load %arg1[%c0, %c0_0] : memref<4x768xf32, #tpu.memory_space<vmem>>, vector<4x768xf32>
    %c0_1 = arith.constant 0 : index
    %c0_2 = arith.constant 0 : index
    %1 = vector.load %arg4[%c0_1, %c0_2] : memref<1x768xf32, #tpu.memory_space<vmem>>, vector<1x768xf32>
    %cst = arith.constant 0.000000e+00 : f32
    %2 = vector.broadcast %cst : f32 to vector<1x768xf32>
    %3 = arith.cmpf one, %1, %2 : vector<1x768xf32>
    %c0_3 = arith.constant 0 : index
    %c128 = arith.constant 128 : index
    %4 = vector.load %arg6[%c0_3, %c128] : memref<4x1024xf32, #tpu.memory_space<vmem>>, vector<4x768xf32>
    tpu.vector_store %arg6[%c0_3, %c128], %0 {strides = array<i32>} : memref<4x1024xf32, #tpu.memory_space<vmem>>, vector<4x768xf32>,
    %cst_4 = arith.constant 0.000000e+00 : f32
    %5 = vector.broadcast %cst_4 : f32 to vector<4x768xf32>
    %c0_5 = arith.constant 0 : index
    %c109 = arith.constant 109 : index
    %6 = vector.load %arg6[%c0_5, %c109] : memref<4x1024xf32, #tpu.memory_space<vmem>>, vector<4x768xf32>
    %c0_6 = arith.constant 0 : index
    %c0_7 = arith.constant 0 : index
    %c0_8 = arith.constant 0 : index
    %c0_9 = arith.constant 0 : index
    %7 = vector.load %arg2[%c0_6, %c0_7, %c0_8, %c0_9] : memref<2x36x4x1xf32, #tpu.memory_space<vmem>>, vector<1x1x4x1xf32>
    %8 = vector.shape_cast %7 : vector<1x1x4x1xf32> to vector<4x1xf32>
    %9 = vector.extract_strided_slice %6 {offsets = [0, 0], sizes = [1, 768], strides = [1, 1]} : vector<4x768xf32> to vector<1x768xf32>
    %10 = vector.broadcast %8 : vector<4x1xf32> to vector<4x768xf32>
    %11 = vector.broadcast %9 : vector<1x768xf32> to vector<4x768xf32>
    %12 = arith.mulf %10, %11 : vector<4x768xf32>
    %13 = arith.addf %5, %12 : vector<4x768xf32>
    %c0_10 = arith.constant 0 : index
    %c1 = arith.constant 1 : index
    %c0_11 = arith.constant 0 : index
    %c0_12 = arith.constant 0 : index
    %14 = vector.load %arg2[%c0_10, %c1, %c0_11, %c0_12] : memref<2x36x4x1xf32, #tpu.memory_space<vmem>>, vector<1x1x4x1xf32>
    %15 = vector.shape_cast %14 : vector<1x1x4x1xf32> to vector<4x1xf32>
    %16 = vector.extract_strided_slice %6 {offsets = [1, 0], sizes = [1, 768], strides = [1, 1]} : vector<4x768xf32> to vector<1x768xf32>
    %17 = vector.broadcast %15 : vector<4x1xf32> to vector<4x768xf32>
    %18 = vector.broadcast %16 : vector<1x768xf32> to vector<4x768xf32>
    %19 = arith.mulf %17, %18 : vector<4x768xf32>
    %20 = arith.addf %13, %19 : vector<4x768xf32>
    %c0_13 = arith.constant 0 : index
    %c2 = arith.constant 2 : index
    %c0_14 = arith.constant 0 : index
    %c0_15 = arith.constant 0 : index
    %21 = vector.load %arg2[%c0_13, %c2, %c0_14, %c0_15] : memref<2x36x4x1xf32, #tpu.memory_space<vmem>>, vector<1x1x4x1xf32>
    %22 = vector.shape_cast %21 : vector<1x1x4x1xf32> to vector<4x1xf32>
    %23 = vector.extract_strided_slice %6 {offsets = [2, 0], sizes = [1, 768], strides = [1, 1]} : vector<4x768xf32> to vector<1x768xf32>
    %24 = vector.broadcast %22 : vector<4x1xf32> to vector<4x768xf32>
    %25 = vector.broadcast %23 : vector<1x768xf32> to vector<4x768xf32>
    %26 = arith.mulf %24, %25 : vector<4x768xf32>
    %27 = arith.addf %20, %26 : vector<4x768xf32>
    %c0_16 = arith.constant 0 : index
    %c3 = arith.constant 3 : index
    %c0_17 = arith.constant 0 : index
    %c0_18 = arith.constant 0 : index
    %28 = vector.load %arg2[%c0_16, %c3, %c0_17, %c0_18] : memref<2x36x4x1xf32, #tpu.memory_space<vmem>>, vector<1x1x4x1xf32>
    %29 = vector.shape_cast %28 : vector<1x1x4x1xf32> to vector<4x1xf32>
    %30 = vector.extract_strided_slice %6 {offsets = [3, 0], sizes = [1, 768], strides = [1, 1]} : vector<4x768xf32> to vector<1x768xf32>
    %31 = vector.broadcast %29 : vector<4x1xf32> to vector<4x768xf32>
    %32 = vector.broadcast %30 : vector<1x768xf32> to vector<4x768xf32>
    %33 = arith.mulf %31, %32 : vector<4x768xf32>
    %34 = arith.addf %27, %33 : vector<4x768xf32>
    %c0_19 = arith.constant 0 : index
    %c110 = arith.constant 110 : index
    %35 = vector.load %arg6[%c0_19, %c110] : memref<4x1024xf32, #tpu.memory_space<vmem>>, vector<4x768xf32>
    %c0_20 = arith.constant 0 : index
    %c4 = arith.constant 4 : index
    %c0_21 = arith.constant 0 : index
    %c0_22 = arith.constant 0 : index
    %36 = vector.load %arg2[%c0_20, %c4, %c0_21, %c0_22] : memref<2x36x4x1xf32, #tpu.memory_space<vmem>>, vector<1x1x4x1xf32>
    %37 = vector.shape_cast %36 : vector<1x1x4x1xf32> to vector<4x1xf32>
    %38 = vector.extract_strided_slice %35 {offsets = [0, 0], sizes = [1, 768], strides = [1, 1]} : vector<4x768xf32> to vector<1x768xf32>
    %39 = vector.broadcast %37 : vector<4x1xf32> to vector<4x768xf32>
    %40 = vector.broadcast %38 : vector<1x768xf32> to vector<4x768xf32>
    %41 = arith.mulf %39, %40 : vector<4x768xf32>
    %42 = arith.addf %34, %41 : vector<4x768xf32>
    %c0_23 = arith.constant 0 : index
    %c5 = arith.constant 5 : index
    %c0_24 = arith.constant 0 : index
    %c0_25 = arith.constant 0 : index
    %43 = vector.load %arg2[%c0_23, %c5, %c0_24, %c0_25] : memref<2x36x4x1xf32, #tpu.memory_space<vmem>>, vector<1x1x4x1xf32>
    %44 = vector.shape_cast %43 : vector<1x1x4x1xf32> to vector<4x1xf32>
    %45 = vector.extract_strided_slice %35 {offsets = [1, 0], sizes = [1, 768], strides = [1, 1]} : vector<4x768xf32> to vector<1x768xf32>
    %46 = vector.broadcast %44 : vector<4x1xf32> to vector<4x768xf32>
    %47 = vector.broadcast %45 : vector<1x768xf32> to vector<4x768xf32>
    %48 = arith.mulf %46, %47 : vector<4x768xf32>
    %49 = arith.addf %42, %48 : vector<4x768xf32>
    %c0_26 = arith.constant 0 : index
    %c6 = arith.constant 6 : index
    %c0_27 = arith.constant 0 : index
    %c0_28 = arith.constant 0 : index
    %50 = vector.load %arg2[%c0_26, %c6, %c0_27, %c0_28] : memref<2x36x4x1xf32, #tpu.memory_space<vmem>>, vector<1x1x4x1xf32>
    %51 = vector.shape_cast %50 : vector<1x1x4x1xf32> to vector<4x1xf32>
    %52 = vector.extract_strided_slice %35 {offsets = [2, 0], sizes = [1, 768], strides = [1, 1]} : vector<4x768xf32> to vector<1x768xf32>
    %53 = vector.broadcast %51 : vector<4x1xf32> to vector<4x768xf32>
    %54 = vector.broadcast %52 : vector<1x768xf32> to vector<4x768xf32>
    %55 = arith.mulf %53, %54 : vector<4x768xf32>
    %56 = arith.addf %49, %55 : vector<4x768xf32>
    %c0_29 = arith.constant 0 : index
    %c7 = arith.constant 7 : index
    %c0_30 = arith.constant 0 : index
    %c0_31 = arith.constant 0 : index
    %57 = vector.load %arg2[%c0_29, %c7, %c0_30, %c0_31] : memref<2x36x4x1xf32, #tpu.memory_space<vmem>>, vector<1x1x4x1xf32>
    %58 = vector.shape_cast %57 : vector<1x1x4x1xf32> to vector<4x1xf32>
    %59 = vector.extract_strided_slice %35 {offsets = [3, 0], sizes = [1, 768], strides = [1, 1]} : vector<4x768xf32> to vector<1x768xf32>
    %60 = vector.broadcast %58 : vector<4x1xf32> to vector<4x768xf32>
    %61 = vector.broadcast %59 : vector<1x768xf32> to vector<4x768xf32>
    %62 = arith.mulf %60, %61 : vector<4x768xf32>
    %63 = arith.addf %56, %62 : vector<4x768xf32>
    %c0_32 = arith.constant 0 : index
    %c111 = arith.constant 111 : index
    %64 = vector.load %arg6[%c0_32, %c111] : memref<4x1024xf32, #tpu.memory_space<vmem>>, vector<4x768xf32>
    %c0_33 = arith.constant 0 : index
    %c8 = arith.constant 8 : index
    %c0_34 = arith.constant 0 : index
    %c0_35 = arith.constant 0 : index
    %65 = vector.load %arg2[%c0_33, %c8, %c0_34, %c0_35] : memref<2x36x4x1xf32, #tpu.memory_space<vmem>>, vector<1x1x4x1xf32>
    %66 = vector.shape_cast %65 : vector<1x1x4x1xf32> to vector<4x1xf32>
    %67 = vector.extract_strided_slice %64 {offsets = [0, 0], sizes = [1, 768], strides = [1, 1]} : vector<4x768xf32> to vector<1x768xf32>
    %68 = vector.broadcast %66 : vector<4x1xf32> to vector<4x768xf32>
    %69 = vector.broadcast %67 : vector<1x768xf32> to vector<4x768xf32>
    %70 = arith.mulf %68, %69 : vector<4x768xf32>
    %71 = arith.addf %63, %70 : vector<4x768xf32>
    %c0_36 = arith.constant 0 : index
    %c9 = arith.constant 9 : index
    %c0_37 = arith.constant 0 : index
    %c0_38 = arith.constant 0 : index
    %72 = vector.load %arg2[%c0_36, %c9, %c0_37, %c0_38] : memref<2x36x4x1xf32, #tpu.memory_space<vmem>>, vector<1x1x4x1xf32>
    %73 = vector.shape_cast %72 : vector<1x1x4x1xf32> to vector<4x1xf32>
    %74 = vector.extract_strided_slice %64 {offsets = [1, 0], sizes = [1, 768], strides = [1, 1]} : vector<4x768xf32> to vector<1x768xf32>
    %75 = vector.broadcast %73 : vector<4x1xf32> to vector<4x768xf32>
    %76 = vector.broadcast %74 : vector<1x768xf32> to vector<4x768xf32>
    %77 = arith.mulf %75, %76 : vector<4x768xf32>
    %78 = arith.addf %71, %77 : vector<4x768xf32>
    %c0_39 = arith.constant 0 : index
    %c10 = arith.constant 10 : index
    %c0_40 = arith.constant 0 : index
    %c0_41 = arith.constant 0 : index
    %79 = vector.load %arg2[%c0_39, %c10, %c0_40, %c0_41] : memref<2x36x4x1xf32, #tpu.memory_space<vmem>>, vector<1x1x4x1xf32>
    %80 = vector.shape_cast %79 : vector<1x1x4x1xf32> to vector<4x1xf32>
    %81 = vector.extract_strided_slice %64 {offsets = [2, 0], sizes = [1, 768], strides = [1, 1]} : vector<4x768xf32> to vector<1x768xf32>
    %82 = vector.broadcast %80 : vector<4x1xf32> to vector<4x768xf32>
    %83 = vector.broadcast %81 : vector<1x768xf32> to vector<4x768xf32>
    %84 = arith.mulf %82, %83 : vector<4x768xf32>
    %85 = arith.addf %78, %84 : vector<4x768xf32>
    %c0_42 = arith.constant 0 : index
    %c11 = arith.constant 11 : index
    %c0_43 = arith.constant 0 : index
    %c0_44 = arith.constant 0 : index
    %86 = vector.load %arg2[%c0_42, %c11, %c0_43, %c0_44] : memref<2x36x4x1xf32, #tpu.memory_space<vmem>>, vector<1x1x4x1xf32>
    %87 = vector.shape_cast %86 : vector<1x1x4x1xf32> to vector<4x1xf32>
    %88 = vector.extract_strided_slice %64 {offsets = [3, 0], sizes = [1, 768], strides = [1, 1]} : vector<4x768xf32> to vector<1x768xf32>
    %89 = vector.broadcast %87 : vector<4x1xf32> to vector<4x768xf32>
    %90 = vector.broadcast %88 : vector<1x768xf32> to vector<4x768xf32>
    %91 = arith.mulf %89, %90 : vector<4x768xf32>
    %92 = arith.addf %85, %91 : vector<4x768xf32>
    %c0_45 = arith.constant 0 : index
    %c127 = arith.constant 127 : index
    %93 = vector.load %arg6[%c0_45, %c127] : memref<4x1024xf32, #tpu.memory_space<vmem>>, vector<4x768xf32>
    %c0_46 = arith.constant 0 : index
    %c12 = arith.constant 12 : index
    %c0_47 = arith.constant 0 : index
    %c0_48 = arith.constant 0 : index
    %94 = vector.load %arg2[%c0_46, %c12, %c0_47, %c0_48] : memref<2x36x4x1xf32, #tpu.memory_space<vmem>>, vector<1x1x4x1xf32>
    %95 = vector.shape_cast %94 : vector<1x1x4x1xf32> to vector<4x1xf32>
    %96 = vector.extract_strided_slice %93 {offsets = [0, 0], sizes = [1, 768], strides = [1, 1]} : vector<4x768xf32> to vector<1x768xf32>
    %97 = vector.broadcast %95 : vector<4x1xf32> to vector<4x768xf32>
    %98 = vector.broadcast %96 : vector<1x768xf32> to vector<4x768xf32>
    %99 = arith.mulf %97, %98 : vector<4x768xf32>
    %100 = arith.addf %92, %99 : vector<4x768xf32>
    %c0_49 = arith.constant 0 : index
    %c13 = arith.constant 13 : index
    %c0_50 = arith.constant 0 : index
    %c0_51 = arith.constant 0 : index
    %101 = vector.load %arg2[%c0_49, %c13, %c0_50, %c0_51] : memref<2x36x4x1xf32, #tpu.memory_space<vmem>>, vector<1x1x4x1xf32>
    %102 = vector.shape_cast %101 : vector<1x1x4x1xf32> to vector<4x1xf32>
    %103 = vector.extract_strided_slice %93 {offsets = [1, 0], sizes = [1, 768], strides = [1, 1]} : vector<4x768xf32> to vector<1x768xf32>
    %104 = vector.broadcast %102 : vector<4x1xf32> to vector<4x768xf32>
    %105 = vector.broadcast %103 : vector<1x768xf32> to vector<4x768xf32>
    %106 = arith.mulf %104, %105 : vector<4x768xf32>
    %107 = arith.addf %100, %106 : vector<4x768xf32>
    %c0_52 = arith.constant 0 : index
    %c14 = arith.constant 14 : index
    %c0_53 = arith.constant 0 : index
    %c0_54 = arith.constant 0 : index
    %108 = vector.load %arg2[%c0_52, %c14, %c0_53, %c0_54] : memref<2x36x4x1xf32, #tpu.memory_space<vmem>>, vector<1x1x4x1xf32>
    %109 = vector.shape_cast %108 : vector<1x1x4x1xf32> to vector<4x1xf32>
    %110 = vector.extract_strided_slice %93 {offsets = [2, 0], sizes = [1, 768], strides = [1, 1]} : vector<4x768xf32> to vector<1x768xf32>
    %111 = vector.broadcast %109 : vector<4x1xf32> to vector<4x768xf32>
    %112 = vector.broadcast %110 : vector<1x768xf32> to vector<4x768xf32>
    %113 = arith.mulf %111, %112 : vector<4x768xf32>
    %114 = arith.addf %107, %113 : vector<4x768xf32>
    %c0_55 = arith.constant 0 : index
    %c15 = arith.constant 15 : index
    %c0_56 = arith.constant 0 : index
    %c0_57 = arith.constant 0 : index
    %115 = vector.load %arg2[%c0_55, %c15, %c0_56, %c0_57] : memref<2x36x4x1xf32, #tpu.memory_space<vmem>>, vector<1x1x4x1xf32>
    %116 = vector.shape_cast %115 : vector<1x1x4x1xf32> to vector<4x1xf32>
    %117 = vector.extract_strided_slice %93 {offsets = [3, 0], sizes = [1, 768], strides = [1, 1]} : vector<4x768xf32> to vector<1x768xf32>
    %118 = vector.broadcast %116 : vector<4x1xf32> to vector<4x768xf32>
    %119 = vector.broadcast %117 : vector<1x768xf32> to vector<4x768xf32>
    %120 = arith.mulf %118, %119 : vector<4x768xf32>
    %121 = arith.addf %114, %120 : vector<4x768xf32>
    %c0_58 = arith.constant 0 : index
    %c128_59 = arith.constant 128 : index
    %122 = vector.load %arg6[%c0_58, %c128_59] : memref<4x1024xf32, #tpu.memory_space<vmem>>, vector<4x768xf32>
    %c0_60 = arith.constant 0 : index
    %c16 = arith.constant 16 : index
    %c0_61 = arith.constant 0 : index
    %c0_62 = arith.constant 0 : index
    %123 = vector.load %arg2[%c0_60, %c16, %c0_61, %c0_62] : memref<2x36x4x1xf32, #tpu.memory_space<vmem>>, vector<1x1x4x1xf32>
    %124 = vector.shape_cast %123 : vector<1x1x4x1xf32> to vector<4x1xf32>
    %125 = vector.extract_strided_slice %122 {offsets = [0, 0], sizes = [1, 768], strides = [1, 1]} : vector<4x768xf32> to vector<1x768xf32>
    %126 = vector.broadcast %124 : vector<4x1xf32> to vector<4x768xf32>
    %127 = vector.broadcast %125 : vector<1x768xf32> to vector<4x768xf32>
    %128 = arith.mulf %126, %127 : vector<4x768xf32>
    %129 = arith.addf %121, %128 : vector<4x768xf32>
    %c0_63 = arith.constant 0 : index
    %c17 = arith.constant 17 : index
    %c0_64 = arith.constant 0 : index
    %c0_65 = arith.constant 0 : index
    %130 = vector.load %arg2[%c0_63, %c17, %c0_64, %c0_65] : memref<2x36x4x1xf32, #tpu.memory_space<vmem>>, vector<1x1x4x1xf32>
    %131 = vector.shape_cast %130 : vector<1x1x4x1xf32> to vector<4x1xf32>
    %132 = vector.extract_strided_slice %122 {offsets = [1, 0], sizes = [1, 768], strides = [1, 1]} : vector<4x768xf32> to vector<1x768xf32>
    %133 = vector.broadcast %131 : vector<4x1xf32> to vector<4x768xf32>
    %134 = vector.broadcast %132 : vector<1x768xf32> to vector<4x768xf32>
    %135 = arith.mulf %133, %134 : vector<4x768xf32>
    %136 = arith.addf %129, %135 : vector<4x768xf32>
    %c0_66 = arith.constant 0 : index
    %c18 = arith.constant 18 : index
    %c0_67 = arith.constant 0 : index
    %c0_68 = arith.constant 0 : index
    %137 = vector.load %arg2[%c0_66, %c18, %c0_67, %c0_68] : memref<2x36x4x1xf32, #tpu.memory_space<vmem>>, vector<1x1x4x1xf32>
    %138 = vector.shape_cast %137 : vector<1x1x4x1xf32> to vector<4x1xf32>
    %139 = vector.extract_strided_slice %122 {offsets = [2, 0], sizes = [1, 768], strides = [1, 1]} : vector<4x768xf32> to vector<1x768xf32>
    %140 = vector.broadcast %138 : vector<4x1xf32> to vector<4x768xf32>
    %141 = vector.broadcast %139 : vector<1x768xf32> to vector<4x768xf32>
    %142 = arith.mulf %140, %141 : vector<4x768xf32>
    %143 = arith.addf %136, %142 : vector<4x768xf32>
    %c0_69 = arith.constant 0 : index
    %c19 = arith.constant 19 : index
    %c0_70 = arith.constant 0 : index
    %c0_71 = arith.constant 0 : index
    %144 = vector.load %arg2[%c0_69, %c19, %c0_70, %c0_71] : memref<2x36x4x1xf32, #tpu.memory_space<vmem>>, vector<1x1x4x1xf32>
    %145 = vector.shape_cast %144 : vector<1x1x4x1xf32> to vector<4x1xf32>
    %146 = vector.extract_strided_slice %122 {offsets = [3, 0], sizes = [1, 768], strides = [1, 1]} : vector<4x768xf32> to vector<1x768xf32>
    %147 = vector.broadcast %145 : vector<4x1xf32> to vector<4x768xf32>
    %148 = vector.broadcast %146 : vector<1x768xf32> to vector<4x768xf32>
    %149 = arith.mulf %147, %148 : vector<4x768xf32>
    %150 = arith.addf %143, %149 : vector<4x768xf32>
    %c0_72 = arith.constant 0 : index
    %c129 = arith.constant 129 : index
    %151 = vector.load %arg6[%c0_72, %c129] : memref<4x1024xf32, #tpu.memory_space<vmem>>, vector<4x768xf32>
    %c0_73 = arith.constant 0 : index
    %c20 = arith.constant 20 : index
    %c0_74 = arith.constant 0 : index
    %c0_75 = arith.constant 0 : index
    %152 = vector.load %arg2[%c0_73, %c20, %c0_74, %c0_75] : memref<2x36x4x1xf32, #tpu.memory_space<vmem>>, vector<1x1x4x1xf32>
    %153 = vector.shape_cast %152 : vector<1x1x4x1xf32> to vector<4x1xf32>
    %154 = vector.extract_strided_slice %151 {offsets = [0, 0], sizes = [1, 768], strides = [1, 1]} : vector<4x768xf32> to vector<1x768xf32>
    %155 = vector.broadcast %153 : vector<4x1xf32> to vector<4x768xf32>
    %156 = vector.broadcast %154 : vector<1x768xf32> to vector<4x768xf32>
    %157 = arith.mulf %155, %156 : vector<4x768xf32>
    %158 = arith.addf %150, %157 : vector<4x768xf32>
    %c0_76 = arith.constant 0 : index
    %c21 = arith.constant 21 : index
    %c0_77 = arith.constant 0 : index
    %c0_78 = arith.constant 0 : index
    %159 = vector.load %arg2[%c0_76, %c21, %c0_77, %c0_78] : memref<2x36x4x1xf32, #tpu.memory_space<vmem>>, vector<1x1x4x1xf32>
    %160 = vector.shape_cast %159 : vector<1x1x4x1xf32> to vector<4x1xf32>
    %161 = vector.extract_strided_slice %151 {offsets = [1, 0], sizes = [1, 768], strides = [1, 1]} : vector<4x768xf32> to vector<1x768xf32>
    %162 = vector.broadcast %160 : vector<4x1xf32> to vector<4x768xf32>
    %163 = vector.broadcast %161 : vector<1x768xf32> to vector<4x768xf32>
    %164 = arith.mulf %162, %163 : vector<4x768xf32>
    %165 = arith.addf %158, %164 : vector<4x768xf32>
    %c0_79 = arith.constant 0 : index
    %c22 = arith.constant 22 : index
    %c0_80 = arith.constant 0 : index
    %c0_81 = arith.constant 0 : index
    %166 = vector.load %arg2[%c0_79, %c22, %c0_80, %c0_81] : memref<2x36x4x1xf32, #tpu.memory_space<vmem>>, vector<1x1x4x1xf32>
    %167 = vector.shape_cast %166 : vector<1x1x4x1xf32> to vector<4x1xf32>
    %168 = vector.extract_strided_slice %151 {offsets = [2, 0], sizes = [1, 768], strides = [1, 1]} : vector<4x768xf32> to vector<1x768xf32>
    %169 = vector.broadcast %167 : vector<4x1xf32> to vector<4x768xf32>
    %170 = vector.broadcast %168 : vector<1x768xf32> to vector<4x768xf32>
    %171 = arith.mulf %169, %170 : vector<4x768xf32>
    %172 = arith.addf %165, %171 : vector<4x768xf32>
    %c0_82 = arith.constant 0 : index
    %c23 = arith.constant 23 : index
    %c0_83 = arith.constant 0 : index
    %c0_84 = arith.constant 0 : index
    %173 = vector.load %arg2[%c0_82, %c23, %c0_83, %c0_84] : memref<2x36x4x1xf32, #tpu.memory_space<vmem>>, vector<1x1x4x1xf32>
    %174 = vector.shape_cast %173 : vector<1x1x4x1xf32> to vector<4x1xf32>
    %175 = vector.extract_strided_slice %151 {offsets = [3, 0], sizes = [1, 768], strides = [1, 1]} : vector<4x768xf32> to vector<1x768xf32>
    %176 = vector.broadcast %174 : vector<4x1xf32> to vector<4x768xf32>
    %177 = vector.broadcast %175 : vector<1x768xf32> to vector<4x768xf32>
    %178 = arith.mulf %176, %177 : vector<4x768xf32>
    %179 = arith.addf %172, %178 : vector<4x768xf32>
    %c0_85 = arith.constant 0 : index
    %c145 = arith.constant 145 : index
    %180 = vector.load %arg6[%c0_85, %c145] : memref<4x1024xf32, #tpu.memory_space<vmem>>, vector<4x768xf32>
    %c0_86 = arith.constant 0 : index
    %c24 = arith.constant 24 : index
    %c0_87 = arith.constant 0 : index
    %c0_88 = arith.constant 0 : index
    %181 = vector.load %arg2[%c0_86, %c24, %c0_87, %c0_88] : memref<2x36x4x1xf32, #tpu.memory_space<vmem>>, vector<1x1x4x1xf32>
    %182 = vector.shape_cast %181 : vector<1x1x4x1xf32> to vector<4x1xf32>
    %183 = vector.extract_strided_slice %180 {offsets = [0, 0], sizes = [1, 768], strides = [1, 1]} : vector<4x768xf32> to vector<1x768xf32>
    %184 = vector.broadcast %182 : vector<4x1xf32> to vector<4x768xf32>
    %185 = vector.broadcast %183 : vector<1x768xf32> to vector<4x768xf32>
    %186 = arith.mulf %184, %185 : vector<4x768xf32>
    %187 = arith.addf %179, %186 : vector<4x768xf32>
    %c0_89 = arith.constant 0 : index
    %c25 = arith.constant 25 : index
    %c0_90 = arith.constant 0 : index
    %c0_91 = arith.constant 0 : index
    %188 = vector.load %arg2[%c0_89, %c25, %c0_90, %c0_91] : memref<2x36x4x1xf32, #tpu.memory_space<vmem>>, vector<1x1x4x1xf32>
    %189 = vector.shape_cast %188 : vector<1x1x4x1xf32> to vector<4x1xf32>
    %190 = vector.extract_strided_slice %180 {offsets = [1, 0], sizes = [1, 768], strides = [1, 1]} : vector<4x768xf32> to vector<1x768xf32>
    %191 = vector.broadcast %189 : vector<4x1xf32> to vector<4x768xf32>
    %192 = vector.broadcast %190 : vector<1x768xf32> to vector<4x768xf32>
    %193 = arith.mulf %191, %192 : vector<4x768xf32>
    %194 = arith.addf %187, %193 : vector<4x768xf32>
    %c0_92 = arith.constant 0 : index
    %c26 = arith.constant 26 : index
    %c0_93 = arith.constant 0 : index
    %c0_94 = arith.constant 0 : index
    %195 = vector.load %arg2[%c0_92, %c26, %c0_93, %c0_94] : memref<2x36x4x1xf32, #tpu.memory_space<vmem>>, vector<1x1x4x1xf32>
    %196 = vector.shape_cast %195 : vector<1x1x4x1xf32> to vector<4x1xf32>
    %197 = vector.extract_strided_slice %180 {offsets = [2, 0], sizes = [1, 768], strides = [1, 1]} : vector<4x768xf32> to vector<1x768xf32>
    %198 = vector.broadcast %196 : vector<4x1xf32> to vector<4x768xf32>
    %199 = vector.broadcast %197 : vector<1x768xf32> to vector<4x768xf32>
    %200 = arith.mulf %198, %199 : vector<4x768xf32>
    %201 = arith.addf %194, %200 : vector<4x768xf32>
    %c0_95 = arith.constant 0 : index
    %c27 = arith.constant 27 : index
    %c0_96 = arith.constant 0 : index
    %c0_97 = arith.constant 0 : index
    %202 = vector.load %arg2[%c0_95, %c27, %c0_96, %c0_97] : memref<2x36x4x1xf32, #tpu.memory_space<vmem>>, vector<1x1x4x1xf32>
    %203 = vector.shape_cast %202 : vector<1x1x4x1xf32> to vector<4x1xf32>
    %204 = vector.extract_strided_slice %180 {offsets = [3, 0], sizes = [1, 768], strides = [1, 1]} : vector<4x768xf32> to vector<1x768xf32>
    %205 = vector.broadcast %203 : vector<4x1xf32> to vector<4x768xf32>
    %206 = vector.broadcast %204 : vector<1x768xf32> to vector<4x768xf32>
    %207 = arith.mulf %205, %206 : vector<4x768xf32>
    %208 = arith.addf %201, %207 : vector<4x768xf32>
    %c0_98 = arith.constant 0 : index
    %c146 = arith.constant 146 : index
    %209 = vector.load %arg6[%c0_98, %c146] : memref<4x1024xf32, #tpu.memory_space<vmem>>, vector<4x768xf32>
    %c0_99 = arith.constant 0 : index
    %c28 = arith.constant 28 : index
    %c0_100 = arith.constant 0 : index
    %c0_101 = arith.constant 0 : index
    %210 = vector.load %arg2[%c0_99, %c28, %c0_100, %c0_101] : memref<2x36x4x1xf32, #tpu.memory_space<vmem>>, vector<1x1x4x1xf32>
    %211 = vector.shape_cast %210 : vector<1x1x4x1xf32> to vector<4x1xf32>
    %212 = vector.extract_strided_slice %209 {offsets = [0, 0], sizes = [1, 768], strides = [1, 1]} : vector<4x768xf32> to vector<1x768xf32>
    %213 = vector.broadcast %211 : vector<4x1xf32> to vector<4x768xf32>
    %214 = vector.broadcast %212 : vector<1x768xf32> to vector<4x768xf32>
    %215 = arith.mulf %213, %214 : vector<4x768xf32>
    %216 = arith.addf %208, %215 : vector<4x768xf32>
    %c0_102 = arith.constant 0 : index
    %c29 = arith.constant 29 : index
    %c0_103 = arith.constant 0 : index
    %c0_104 = arith.constant 0 : index
    %217 = vector.load %arg2[%c0_102, %c29, %c0_103, %c0_104] : memref<2x36x4x1xf32, #tpu.memory_space<vmem>>, vector<1x1x4x1xf32>
    %218 = vector.shape_cast %217 : vector<1x1x4x1xf32> to vector<4x1xf32>
    %219 = vector.extract_strided_slice %209 {offsets = [1, 0], sizes = [1, 768], strides = [1, 1]} : vector<4x768xf32> to vector<1x768xf32>
    %220 = vector.broadcast %218 : vector<4x1xf32> to vector<4x768xf32>
    %221 = vector.broadcast %219 : vector<1x768xf32> to vector<4x768xf32>
    %222 = arith.mulf %220, %221 : vector<4x768xf32>
    %223 = arith.addf %216, %222 : vector<4x768xf32>
    %c0_105 = arith.constant 0 : index
    %c30 = arith.constant 30 : index
    %c0_106 = arith.constant 0 : index
    %c0_107 = arith.constant 0 : index
    %224 = vector.load %arg2[%c0_105, %c30, %c0_106, %c0_107] : memref<2x36x4x1xf32, #tpu.memory_space<vmem>>, vector<1x1x4x1xf32>
    %225 = vector.shape_cast %224 : vector<1x1x4x1xf32> to vector<4x1xf32>
    %226 = vector.extract_strided_slice %209 {offsets = [2, 0], sizes = [1, 768], strides = [1, 1]} : vector<4x768xf32> to vector<1x768xf32>
    %227 = vector.broadcast %225 : vector<4x1xf32> to vector<4x768xf32>
    %228 = vector.broadcast %226 : vector<1x768xf32> to vector<4x768xf32>
    %229 = arith.mulf %227, %228 : vector<4x768xf32>
    %230 = arith.addf %223, %229 : vector<4x768xf32>
    %c0_108 = arith.constant 0 : index
    %c31 = arith.constant 31 : index
    %c0_109 = arith.constant 0 : index
    %c0_110 = arith.constant 0 : index
    %231 = vector.load %arg2[%c0_108, %c31, %c0_109, %c0_110] : memref<2x36x4x1xf32, #tpu.memory_space<vmem>>, vector<1x1x4x1xf32>
    %232 = vector.shape_cast %231 : vector<1x1x4x1xf32> to vector<4x1xf32>
    %233 = vector.extract_strided_slice %209 {offsets = [3, 0], sizes = [1, 768], strides = [1, 1]} : vector<4x768xf32> to vector<1x768xf32>
    %234 = vector.broadcast %232 : vector<4x1xf32> to vector<4x768xf32>
    %235 = vector.broadcast %233 : vector<1x768xf32> to vector<4x768xf32>
    %236 = arith.mulf %234, %235 : vector<4x768xf32>
    %237 = arith.addf %230, %236 : vector<4x768xf32>
    %c0_111 = arith.constant 0 : index
    %c147 = arith.constant 147 : index
    %238 = vector.load %arg6[%c0_111, %c147] : memref<4x1024xf32, #tpu.memory_space<vmem>>, vector<4x768xf32>
    %c0_112 = arith.constant 0 : index
    %c32 = arith.constant 32 : index
    %c0_113 = arith.constant 0 : index
    %c0_114 = arith.constant 0 : index
    %239 = vector.load %arg2[%c0_112, %c32, %c0_113, %c0_114] : memref<2x36x4x1xf32, #tpu.memory_space<vmem>>, vector<1x1x4x1xf32>
    %240 = vector.shape_cast %239 : vector<1x1x4x1xf32> to vector<4x1xf32>
    %241 = vector.extract_strided_slice %238 {offsets = [0, 0], sizes = [1, 768], strides = [1, 1]} : vector<4x768xf32> to vector<1x768xf32>
    %242 = vector.broadcast %240 : vector<4x1xf32> to vector<4x768xf32>
    %243 = vector.broadcast %241 : vector<1x768xf32> to vector<4x768xf32>
    %244 = arith.mulf %242, %243 : vector<4x768xf32>
    %245 = arith.addf %237, %244 : vector<4x768xf32>
    %c0_115 = arith.constant 0 : index
    %c33 = arith.constant 33 : index
    %c0_116 = arith.constant 0 : index
    %c0_117 = arith.constant 0 : index
    %246 = vector.load %arg2[%c0_115, %c33, %c0_116, %c0_117] : memref<2x36x4x1xf32, #tpu.memory_space<vmem>>, vector<1x1x4x1xf32>
    %247 = vector.shape_cast %246 : vector<1x1x4x1xf32> to vector<4x1xf32>
    %248 = vector.extract_strided_slice %238 {offsets = [1, 0], sizes = [1, 768], strides = [1, 1]} : vector<4x768xf32> to vector<1x768xf32>
    %249 = vector.broadcast %247 : vector<4x1xf32> to vector<4x768xf32>
    %250 = vector.broadcast %248 : vector<1x768xf32> to vector<4x768xf32>
    %251 = arith.mulf %249, %250 : vector<4x768xf32>
    %252 = arith.addf %245, %251 : vector<4x768xf32>
    %c0_118 = arith.constant 0 : index
    %c34 = arith.constant 34 : index
    %c0_119 = arith.constant 0 : index
    %c0_120 = arith.constant 0 : index
    %253 = vector.load %arg2[%c0_118, %c34, %c0_119, %c0_120] : memref<2x36x4x1xf32, #tpu.memory_space<vmem>>, vector<1x1x4x1xf32>
    %254 = vector.shape_cast %253 : vector<1x1x4x1xf32> to vector<4x1xf32>
    %255 = vector.extract_strided_slice %238 {offsets = [2, 0], sizes = [1, 768], strides = [1, 1]} : vector<4x768xf32> to vector<1x768xf32>
    %256 = vector.broadcast %254 : vector<4x1xf32> to vector<4x768xf32>
    %257 = vector.broadcast %255 : vector<1x768xf32> to vector<4x768xf32>
    %258 = arith.mulf %256, %257 : vector<4x768xf32>
    %259 = arith.addf %252, %258 : vector<4x768xf32>
    %c0_121 = arith.constant 0 : index
    %c35 = arith.constant 35 : index
    %c0_122 = arith.constant 0 : index
    %c0_123 = arith.constant 0 : index
    %260 = vector.load %arg2[%c0_121, %c35, %c0_122, %c0_123] : memref<2x36x4x1xf32, #tpu.memory_space<vmem>>, vector<1x1x4x1xf32>
    %261 = vector.shape_cast %260 : vector<1x1x4x1xf32> to vector<4x1xf32>
    %262 = vector.extract_strided_slice %238 {offsets = [3, 0], sizes = [1, 768], strides = [1, 1]} : vector<4x768xf32> to vector<1x768xf32>
    %263 = vector.broadcast %261 : vector<4x1xf32> to vector<4x768xf32>
    %264 = vector.broadcast %262 : vector<1x768xf32> to vector<4x768xf32>
    %265 = arith.mulf %263, %264 : vector<4x768xf32>
    %266 = arith.addf %259, %265 : vector<4x768xf32>
    %c0_124 = arith.constant 0 : index
    %c0_125 = arith.constant 0 : index
    %c0_126 = arith.constant 0 : index
    %267 = vector.load %arg3[%c0_124, %c0_125, %c0_126] : memref<2x4x1xf32, #tpu.memory_space<vmem>>, vector<1x4x1xf32>
    %268 = vector.shape_cast %267 : vector<1x4x1xf32> to vector<4x1xf32>
    %269 = vector.broadcast %268 : vector<4x1xf32> to vector<4x768xf32>
    %270 = arith.addf %266, %269 : vector<4x768xf32>
    %cst_127 = arith.constant 0.000000e+00 : f32
    %271 = vector.broadcast %cst_127 : f32 to vector<4x768xf32>
    %272 = arith.maximumf %270, %271 : vector<4x768xf32>
    %cst_128 = arith.constant 0.000000e+00 : f32
    %273 = vector.shape_cast %3 : vector<1x768xi1> to vector<1x768xi1>
    %274 = vector.broadcast %273 : vector<1x768xi1> to vector<4x768xi1>
    %275 = vector.broadcast %cst_128 : f32 to vector<4x768xf32>
    %276 = arith.select %274, %272, %275 : vector<4x768xi1>, vector<4x768xf32>
    %c0_129 = arith.constant 0 : index
    %c128_130 = arith.constant 128 : index
    %277 = vector.load %arg6[%c0_129, %c128_130] : memref<4x1024xf32, #tpu.memory_space<vmem>>, vector<4x768xf32>
    tpu.vector_store %arg6[%c0_129, %c128_130], %276 {strides = array<i32>} : memref<4x1024xf32, #tpu.memory_space<vmem>>, vector<4x768xf32>,
    %cst_131 = arith.constant 0.000000e+00 : f32
    %278 = vector.broadcast %cst_131 : f32 to vector<4x768xf32>
    %c0_132 = arith.constant 0 : index
    %c109_133 = arith.constant 109 : index
    %279 = vector.load %arg6[%c0_132, %c109_133] : memref<4x1024xf32, #tpu.memory_space<vmem>>, vector<4x768xf32>
    %c1_134 = arith.constant 1 : index
    %c0_135 = arith.constant 0 : index
    %c0_136 = arith.constant 0 : index
    %c0_137 = arith.constant 0 : index
    %280 = vector.load %arg2[%c1_134, %c0_135, %c0_136, %c0_137] : memref<2x36x4x1xf32, #tpu.memory_space<vmem>>, vector<1x1x4x1xf32>
    %281 = vector.shape_cast %280 : vector<1x1x4x1xf32> to vector<4x1xf32>
    %282 = vector.extract_strided_slice %279 {offsets = [0, 0], sizes = [1, 768], strides = [1, 1]} : vector<4x768xf32> to vector<1x768xf32>
    %283 = vector.broadcast %281 : vector<4x1xf32> to vector<4x768xf32>
    %284 = vector.broadcast %282 : vector<1x768xf32> to vector<4x768xf32>
    %285 = arith.mulf %283, %284 : vector<4x768xf32>
    %286 = arith.addf %278, %285 : vector<4x768xf32>
    %c1_138 = arith.constant 1 : index
    %c1_139 = arith.constant 1 : index
    %c0_140 = arith.constant 0 : index
    %c0_141 = arith.constant 0 : index
    %287 = vector.load %arg2[%c1_138, %c1_139, %c0_140, %c0_141] : memref<2x36x4x1xf32, #tpu.memory_space<vmem>>, vector<1x1x4x1xf32>
    %288 = vector.shape_cast %287 : vector<1x1x4x1xf32> to vector<4x1xf32>
    %289 = vector.extract_strided_slice %279 {offsets = [1, 0], sizes = [1, 768], strides = [1, 1]} : vector<4x768xf32> to vector<1x768xf32>
    %290 = vector.broadcast %288 : vector<4x1xf32> to vector<4x768xf32>
    %291 = vector.broadcast %289 : vector<1x768xf32> to vector<4x768xf32>
    %292 = arith.mulf %290, %291 : vector<4x768xf32>
    %293 = arith.addf %286, %292 : vector<4x768xf32>
    %c1_142 = arith.constant 1 : index
    %c2_143 = arith.constant 2 : index
    %c0_144 = arith.constant 0 : index
    %c0_145 = arith.constant 0 : index
    %294 = vector.load %arg2[%c1_142, %c2_143, %c0_144, %c0_145] : memref<2x36x4x1xf32, #tpu.memory_space<vmem>>, vector<1x1x4x1xf32>
    %295 = vector.shape_cast %294 : vector<1x1x4x1xf32> to vector<4x1xf32>
    %296 = vector.extract_strided_slice %279 {offsets = [2, 0], sizes = [1, 768], strides = [1, 1]} : vector<4x768xf32> to vector<1x768xf32>
    %297 = vector.broadcast %295 : vector<4x1xf32> to vector<4x768xf32>
    %298 = vector.broadcast %296 : vector<1x768xf32> to vector<4x768xf32>
    %299 = arith.mulf %297, %298 : vector<4x768xf32>
    %300 = arith.addf %293, %299 : vector<4x768xf32>
    %c1_146 = arith.constant 1 : index
    %c3_147 = arith.constant 3 : index
    %c0_148 = arith.constant 0 : index
    %c0_149 = arith.constant 0 : index
    %301 = vector.load %arg2[%c1_146, %c3_147, %c0_148, %c0_149] : memref<2x36x4x1xf32, #tpu.memory_space<vmem>>, vector<1x1x4x1xf32>
    %302 = vector.shape_cast %301 : vector<1x1x4x1xf32> to vector<4x1xf32>
    %303 = vector.extract_strided_slice %279 {offsets = [3, 0], sizes = [1, 768], strides = [1, 1]} : vector<4x768xf32> to vector<1x768xf32>
    %304 = vector.broadcast %302 : vector<4x1xf32> to vector<4x768xf32>
    %305 = vector.broadcast %303 : vector<1x768xf32> to vector<4x768xf32>
    %306 = arith.mulf %304, %305 : vector<4x768xf32>
    %307 = arith.addf %300, %306 : vector<4x768xf32>
    %c0_150 = arith.constant 0 : index
    %c110_151 = arith.constant 110 : index
    %308 = vector.load %arg6[%c0_150, %c110_151] : memref<4x1024xf32, #tpu.memory_space<vmem>>, vector<4x768xf32>
    %c1_152 = arith.constant 1 : index
    %c4_153 = arith.constant 4 : index
    %c0_154 = arith.constant 0 : index
    %c0_155 = arith.constant 0 : index
    %309 = vector.load %arg2[%c1_152, %c4_153, %c0_154, %c0_155] : memref<2x36x4x1xf32, #tpu.memory_space<vmem>>, vector<1x1x4x1xf32>
    %310 = vector.shape_cast %309 : vector<1x1x4x1xf32> to vector<4x1xf32>
    %311 = vector.extract_strided_slice %308 {offsets = [0, 0], sizes = [1, 768], strides = [1, 1]} : vector<4x768xf32> to vector<1x768xf32>
    %312 = vector.broadcast %310 : vector<4x1xf32> to vector<4x768xf32>
    %313 = vector.broadcast %311 : vector<1x768xf32> to vector<4x768xf32>
    %314 = arith.mulf %312, %313 : vector<4x768xf32>
    %315 = arith.addf %307, %314 : vector<4x768xf32>
    %c1_156 = arith.constant 1 : index
    %c5_157 = arith.constant 5 : index
    %c0_158 = arith.constant 0 : index
    %c0_159 = arith.constant 0 : index
    %316 = vector.load %arg2[%c1_156, %c5_157, %c0_158, %c0_159] : memref<2x36x4x1xf32, #tpu.memory_space<vmem>>, vector<1x1x4x1xf32>
    %317 = vector.shape_cast %316 : vector<1x1x4x1xf32> to vector<4x1xf32>
    %318 = vector.extract_strided_slice %308 {offsets = [1, 0], sizes = [1, 768], strides = [1, 1]} : vector<4x768xf32> to vector<1x768xf32>
    %319 = vector.broadcast %317 : vector<4x1xf32> to vector<4x768xf32>
    %320 = vector.broadcast %318 : vector<1x768xf32> to vector<4x768xf32>
    %321 = arith.mulf %319, %320 : vector<4x768xf32>
    %322 = arith.addf %315, %321 : vector<4x768xf32>
    %c1_160 = arith.constant 1 : index
    %c6_161 = arith.constant 6 : index
    %c0_162 = arith.constant 0 : index
    %c0_163 = arith.constant 0 : index
    %323 = vector.load %arg2[%c1_160, %c6_161, %c0_162, %c0_163] : memref<2x36x4x1xf32, #tpu.memory_space<vmem>>, vector<1x1x4x1xf32>
    %324 = vector.shape_cast %323 : vector<1x1x4x1xf32> to vector<4x1xf32>
    %325 = vector.extract_strided_slice %308 {offsets = [2, 0], sizes = [1, 768], strides = [1, 1]} : vector<4x768xf32> to vector<1x768xf32>
    %326 = vector.broadcast %324 : vector<4x1xf32> to vector<4x768xf32>
    %327 = vector.broadcast %325 : vector<1x768xf32> to vector<4x768xf32>
    %328 = arith.mulf %326, %327 : vector<4x768xf32>
    %329 = arith.addf %322, %328 : vector<4x768xf32>
    %c1_164 = arith.constant 1 : index
    %c7_165 = arith.constant 7 : index
    %c0_166 = arith.constant 0 : index
    %c0_167 = arith.constant 0 : index
    %330 = vector.load %arg2[%c1_164, %c7_165, %c0_166, %c0_167] : memref<2x36x4x1xf32, #tpu.memory_space<vmem>>, vector<1x1x4x1xf32>
    %331 = vector.shape_cast %330 : vector<1x1x4x1xf32> to vector<4x1xf32>
    %332 = vector.extract_strided_slice %308 {offsets = [3, 0], sizes = [1, 768], strides = [1, 1]} : vector<4x768xf32> to vector<1x768xf32>
    %333 = vector.broadcast %331 : vector<4x1xf32> to vector<4x768xf32>
    %334 = vector.broadcast %332 : vector<1x768xf32> to vector<4x768xf32>
    %335 = arith.mulf %333, %334 : vector<4x768xf32>
    %336 = arith.addf %329, %335 : vector<4x768xf32>
    %c0_168 = arith.constant 0 : index
    %c111_169 = arith.constant 111 : index
    %337 = vector.load %arg6[%c0_168, %c111_169] : memref<4x1024xf32, #tpu.memory_space<vmem>>, vector<4x768xf32>
    %c1_170 = arith.constant 1 : index
    %c8_171 = arith.constant 8 : index
    %c0_172 = arith.constant 0 : index
    %c0_173 = arith.constant 0 : index
    %338 = vector.load %arg2[%c1_170, %c8_171, %c0_172, %c0_173] : memref<2x36x4x1xf32, #tpu.memory_space<vmem>>, vector<1x1x4x1xf32>
    %339 = vector.shape_cast %338 : vector<1x1x4x1xf32> to vector<4x1xf32>
    %340 = vector.extract_strided_slice %337 {offsets = [0, 0], sizes = [1, 768], strides = [1, 1]} : vector<4x768xf32> to vector<1x768xf32>
    %341 = vector.broadcast %339 : vector<4x1xf32> to vector<4x768xf32>
    %342 = vector.broadcast %340 : vector<1x768xf32> to vector<4x768xf32>
    %343 = arith.mulf %341, %342 : vector<4x768xf32>
    %344 = arith.addf %336, %343 : vector<4x768xf32>
    %c1_174 = arith.constant 1 : index
    %c9_175 = arith.constant 9 : index
    %c0_176 = arith.constant 0 : index
    %c0_177 = arith.constant 0 : index
    %345 = vector.load %arg2[%c1_174, %c9_175, %c0_176, %c0_177] : memref<2x36x4x1xf32, #tpu.memory_space<vmem>>, vector<1x1x4x1xf32>
    %346 = vector.shape_cast %345 : vector<1x1x4x1xf32> to vector<4x1xf32>
    %347 = vector.extract_strided_slice %337 {offsets = [1, 0], sizes = [1, 768], strides = [1, 1]} : vector<4x768xf32> to vector<1x768xf32>
    %348 = vector.broadcast %346 : vector<4x1xf32> to vector<4x768xf32>
    %349 = vector.broadcast %347 : vector<1x768xf32> to vector<4x768xf32>
    %350 = arith.mulf %348, %349 : vector<4x768xf32>
    %351 = arith.addf %344, %350 : vector<4x768xf32>
    %c1_178 = arith.constant 1 : index
    %c10_179 = arith.constant 10 : index
    %c0_180 = arith.constant 0 : index
    %c0_181 = arith.constant 0 : index
    %352 = vector.load %arg2[%c1_178, %c10_179, %c0_180, %c0_181] : memref<2x36x4x1xf32, #tpu.memory_space<vmem>>, vector<1x1x4x1xf32>
    %353 = vector.shape_cast %352 : vector<1x1x4x1xf32> to vector<4x1xf32>
    %354 = vector.extract_strided_slice %337 {offsets = [2, 0], sizes = [1, 768], strides = [1, 1]} : vector<4x768xf32> to vector<1x768xf32>
    %355 = vector.broadcast %353 : vector<4x1xf32> to vector<4x768xf32>
    %356 = vector.broadcast %354 : vector<1x768xf32> to vector<4x768xf32>
    %357 = arith.mulf %355, %356 : vector<4x768xf32>
    %358 = arith.addf %351, %357 : vector<4x768xf32>
    %c1_182 = arith.constant 1 : index
    %c11_183 = arith.constant 11 : index
    %c0_184 = arith.constant 0 : index
    %c0_185 = arith.constant 0 : index
    %359 = vector.load %arg2[%c1_182, %c11_183, %c0_184, %c0_185] : memref<2x36x4x1xf32, #tpu.memory_space<vmem>>, vector<1x1x4x1xf32>
    %360 = vector.shape_cast %359 : vector<1x1x4x1xf32> to vector<4x1xf32>
    %361 = vector.extract_strided_slice %337 {offsets = [3, 0], sizes = [1, 768], strides = [1, 1]} : vector<4x768xf32> to vector<1x768xf32>
    %362 = vector.broadcast %360 : vector<4x1xf32> to vector<4x768xf32>
    %363 = vector.broadcast %361 : vector<1x768xf32> to vector<4x768xf32>
    %364 = arith.mulf %362, %363 : vector<4x768xf32>
    %365 = arith.addf %358, %364 : vector<4x768xf32>
    %c0_186 = arith.constant 0 : index
    %c127_187 = arith.constant 127 : index
    %366 = vector.load %arg6[%c0_186, %c127_187] : memref<4x1024xf32, #tpu.memory_space<vmem>>, vector<4x768xf32>
    %c1_188 = arith.constant 1 : index
    %c12_189 = arith.constant 12 : index
    %c0_190 = arith.constant 0 : index
    %c0_191 = arith.constant 0 : index
    %367 = vector.load %arg2[%c1_188, %c12_189, %c0_190, %c0_191] : memref<2x36x4x1xf32, #tpu.memory_space<vmem>>, vector<1x1x4x1xf32>
    %368 = vector.shape_cast %367 : vector<1x1x4x1xf32> to vector<4x1xf32>
    %369 = vector.extract_strided_slice %366 {offsets = [0, 0], sizes = [1, 768], strides = [1, 1]} : vector<4x768xf32> to vector<1x768xf32>
    %370 = vector.broadcast %368 : vector<4x1xf32> to vector<4x768xf32>
    %371 = vector.broadcast %369 : vector<1x768xf32> to vector<4x768xf32>
    %372 = arith.mulf %370, %371 : vector<4x768xf32>
    %373 = arith.addf %365, %372 : vector<4x768xf32>
    %c1_192 = arith.constant 1 : index
    %c13_193 = arith.constant 13 : index
    %c0_194 = arith.constant 0 : index
    %c0_195 = arith.constant 0 : index
    %374 = vector.load %arg2[%c1_192, %c13_193, %c0_194, %c0_195] : memref<2x36x4x1xf32, #tpu.memory_space<vmem>>, vector<1x1x4x1xf32>
    %375 = vector.shape_cast %374 : vector<1x1x4x1xf32> to vector<4x1xf32>
    %376 = vector.extract_strided_slice %366 {offsets = [1, 0], sizes = [1, 768], strides = [1, 1]} : vector<4x768xf32> to vector<1x768xf32>
    %377 = vector.broadcast %375 : vector<4x1xf32> to vector<4x768xf32>
    %378 = vector.broadcast %376 : vector<1x768xf32> to vector<4x768xf32>
    %379 = arith.mulf %377, %378 : vector<4x768xf32>
    %380 = arith.addf %373, %379 : vector<4x768xf32>
    %c1_196 = arith.constant 1 : index
    %c14_197 = arith.constant 14 : index
    %c0_198 = arith.constant 0 : index
    %c0_199 = arith.constant 0 : index
    %381 = vector.load %arg2[%c1_196, %c14_197, %c0_198, %c0_199] : memref<2x36x4x1xf32, #tpu.memory_space<vmem>>, vector<1x1x4x1xf32>
    %382 = vector.shape_cast %381 : vector<1x1x4x1xf32> to vector<4x1xf32>
    %383 = vector.extract_strided_slice %366 {offsets = [2, 0], sizes = [1, 768], strides = [1, 1]} : vector<4x768xf32> to vector<1x768xf32>
    %384 = vector.broadcast %382 : vector<4x1xf32> to vector<4x768xf32>
    %385 = vector.broadcast %383 : vector<1x768xf32> to vector<4x768xf32>
    %386 = arith.mulf %384, %385 : vector<4x768xf32>
    %387 = arith.addf %380, %386 : vector<4x768xf32>
    %c1_200 = arith.constant 1 : index
    %c15_201 = arith.constant 15 : index
    %c0_202 = arith.constant 0 : index
    %c0_203 = arith.constant 0 : index
    %388 = vector.load %arg2[%c1_200, %c15_201, %c0_202, %c0_203] : memref<2x36x4x1xf32, #tpu.memory_space<vmem>>, vector<1x1x4x1xf32>
    %389 = vector.shape_cast %388 : vector<1x1x4x1xf32> to vector<4x1xf32>
    %390 = vector.extract_strided_slice %366 {offsets = [3, 0], sizes = [1, 768], strides = [1, 1]} : vector<4x768xf32> to vector<1x768xf32>
    %391 = vector.broadcast %389 : vector<4x1xf32> to vector<4x768xf32>
    %392 = vector.broadcast %390 : vector<1x768xf32> to vector<4x768xf32>
    %393 = arith.mulf %391, %392 : vector<4x768xf32>
    %394 = arith.addf %387, %393 : vector<4x768xf32>
    %c0_204 = arith.constant 0 : index
    %c128_205 = arith.constant 128 : index
    %395 = vector.load %arg6[%c0_204, %c128_205] : memref<4x1024xf32, #tpu.memory_space<vmem>>, vector<4x768xf32>
    %c1_206 = arith.constant 1 : index
    %c16_207 = arith.constant 16 : index
    %c0_208 = arith.constant 0 : index
    %c0_209 = arith.constant 0 : index
    %396 = vector.load %arg2[%c1_206, %c16_207, %c0_208, %c0_209] : memref<2x36x4x1xf32, #tpu.memory_space<vmem>>, vector<1x1x4x1xf32>
    %397 = vector.shape_cast %396 : vector<1x1x4x1xf32> to vector<4x1xf32>
    %398 = vector.extract_strided_slice %395 {offsets = [0, 0], sizes = [1, 768], strides = [1, 1]} : vector<4x768xf32> to vector<1x768xf32>
    %399 = vector.broadcast %397 : vector<4x1xf32> to vector<4x768xf32>
    %400 = vector.broadcast %398 : vector<1x768xf32> to vector<4x768xf32>
    %401 = arith.mulf %399, %400 : vector<4x768xf32>
    %402 = arith.addf %394, %401 : vector<4x768xf32>
    %c1_210 = arith.constant 1 : index
    %c17_211 = arith.constant 17 : index
    %c0_212 = arith.constant 0 : index
    %c0_213 = arith.constant 0 : index
    %403 = vector.load %arg2[%c1_210, %c17_211, %c0_212, %c0_213] : memref<2x36x4x1xf32, #tpu.memory_space<vmem>>, vector<1x1x4x1xf32>
    %404 = vector.shape_cast %403 : vector<1x1x4x1xf32> to vector<4x1xf32>
    %405 = vector.extract_strided_slice %395 {offsets = [1, 0], sizes = [1, 768], strides = [1, 1]} : vector<4x768xf32> to vector<1x768xf32>
    %406 = vector.broadcast %404 : vector<4x1xf32> to vector<4x768xf32>
    %407 = vector.broadcast %405 : vector<1x768xf32> to vector<4x768xf32>
    %408 = arith.mulf %406, %407 : vector<4x768xf32>
    %409 = arith.addf %402, %408 : vector<4x768xf32>
    %c1_214 = arith.constant 1 : index
    %c18_215 = arith.constant 18 : index
    %c0_216 = arith.constant 0 : index
    %c0_217 = arith.constant 0 : index
    %410 = vector.load %arg2[%c1_214, %c18_215, %c0_216, %c0_217] : memref<2x36x4x1xf32, #tpu.memory_space<vmem>>, vector<1x1x4x1xf32>
    %411 = vector.shape_cast %410 : vector<1x1x4x1xf32> to vector<4x1xf32>
    %412 = vector.extract_strided_slice %395 {offsets = [2, 0], sizes = [1, 768], strides = [1, 1]} : vector<4x768xf32> to vector<1x768xf32>
    %413 = vector.broadcast %411 : vector<4x1xf32> to vector<4x768xf32>
    %414 = vector.broadcast %412 : vector<1x768xf32> to vector<4x768xf32>
    %415 = arith.mulf %413, %414 : vector<4x768xf32>
    %416 = arith.addf %409, %415 : vector<4x768xf32>
    %c1_218 = arith.constant 1 : index
    %c19_219 = arith.constant 19 : index
    %c0_220 = arith.constant 0 : index
    %c0_221 = arith.constant 0 : index
    %417 = vector.load %arg2[%c1_218, %c19_219, %c0_220, %c0_221] : memref<2x36x4x1xf32, #tpu.memory_space<vmem>>, vector<1x1x4x1xf32>
    %418 = vector.shape_cast %417 : vector<1x1x4x1xf32> to vector<4x1xf32>
    %419 = vector.extract_strided_slice %395 {offsets = [3, 0], sizes = [1, 768], strides = [1, 1]} : vector<4x768xf32> to vector<1x768xf32>
    %420 = vector.broadcast %418 : vector<4x1xf32> to vector<4x768xf32>
    %421 = vector.broadcast %419 : vector<1x768xf32> to vector<4x768xf32>
    %422 = arith.mulf %420, %421 : vector<4x768xf32>
    %423 = arith.addf %416, %422 : vector<4x768xf32>
    %c0_222 = arith.constant 0 : index
    %c129_223 = arith.constant 129 : index
    %424 = vector.load %arg6[%c0_222, %c129_223] : memref<4x1024xf32, #tpu.memory_space<vmem>>, vector<4x768xf32>
    %c1_224 = arith.constant 1 : index
    %c20_225 = arith.constant 20 : index
    %c0_226 = arith.constant 0 : index
    %c0_227 = arith.constant 0 : index
    %425 = vector.load %arg2[%c1_224, %c20_225, %c0_226, %c0_227] : memref<2x36x4x1xf32, #tpu.memory_space<vmem>>, vector<1x1x4x1xf32>
    %426 = vector.shape_cast %425 : vector<1x1x4x1xf32> to vector<4x1xf32>
    %427 = vector.extract_strided_slice %424 {offsets = [0, 0], sizes = [1, 768], strides = [1, 1]} : vector<4x768xf32> to vector<1x768xf32>
    %428 = vector.broadcast %426 : vector<4x1xf32> to vector<4x768xf32>
    %429 = vector.broadcast %427 : vector<1x768xf32> to vector<4x768xf32>
    %430 = arith.mulf %428, %429 : vector<4x768xf32>
    %431 = arith.addf %423, %430 : vector<4x768xf32>
    %c1_228 = arith.constant 1 : index
    %c21_229 = arith.constant 21 : index
    %c0_230 = arith.constant 0 : index
    %c0_231 = arith.constant 0 : index
    %432 = vector.load %arg2[%c1_228, %c21_229, %c0_230, %c0_231] : memref<2x36x4x1xf32, #tpu.memory_space<vmem>>, vector<1x1x4x1xf32>
    %433 = vector.shape_cast %432 : vector<1x1x4x1xf32> to vector<4x1xf32>
    %434 = vector.extract_strided_slice %424 {offsets = [1, 0], sizes = [1, 768], strides = [1, 1]} : vector<4x768xf32> to vector<1x768xf32>
    %435 = vector.broadcast %433 : vector<4x1xf32> to vector<4x768xf32>
    %436 = vector.broadcast %434 : vector<1x768xf32> to vector<4x768xf32>
    %437 = arith.mulf %435, %436 : vector<4x768xf32>
    %438 = arith.addf %431, %437 : vector<4x768xf32>
    %c1_232 = arith.constant 1 : index
    %c22_233 = arith.constant 22 : index
    %c0_234 = arith.constant 0 : index
    %c0_235 = arith.constant 0 : index
    %439 = vector.load %arg2[%c1_232, %c22_233, %c0_234, %c0_235] : memref<2x36x4x1xf32, #tpu.memory_space<vmem>>, vector<1x1x4x1xf32>
    %440 = vector.shape_cast %439 : vector<1x1x4x1xf32> to vector<4x1xf32>
    %441 = vector.extract_strided_slice %424 {offsets = [2, 0], sizes = [1, 768], strides = [1, 1]} : vector<4x768xf32> to vector<1x768xf32>
    %442 = vector.broadcast %440 : vector<4x1xf32> to vector<4x768xf32>
    %443 = vector.broadcast %441 : vector<1x768xf32> to vector<4x768xf32>
    %444 = arith.mulf %442, %443 : vector<4x768xf32>
    %445 = arith.addf %438, %444 : vector<4x768xf32>
    %c1_236 = arith.constant 1 : index
    %c23_237 = arith.constant 23 : index
    %c0_238 = arith.constant 0 : index
    %c0_239 = arith.constant 0 : index
    %446 = vector.load %arg2[%c1_236, %c23_237, %c0_238, %c0_239] : memref<2x36x4x1xf32, #tpu.memory_space<vmem>>, vector<1x1x4x1xf32>
    %447 = vector.shape_cast %446 : vector<1x1x4x1xf32> to vector<4x1xf32>
    %448 = vector.extract_strided_slice %424 {offsets = [3, 0], sizes = [1, 768], strides = [1, 1]} : vector<4x768xf32> to vector<1x768xf32>
    %449 = vector.broadcast %447 : vector<4x1xf32> to vector<4x768xf32>
    %450 = vector.broadcast %448 : vector<1x768xf32> to vector<4x768xf32>
    %451 = arith.mulf %449, %450 : vector<4x768xf32>
    %452 = arith.addf %445, %451 : vector<4x768xf32>
    %c0_240 = arith.constant 0 : index
    %c145_241 = arith.constant 145 : index
    %453 = vector.load %arg6[%c0_240, %c145_241] : memref<4x1024xf32, #tpu.memory_space<vmem>>, vector<4x768xf32>
    %c1_242 = arith.constant 1 : index
    %c24_243 = arith.constant 24 : index
    %c0_244 = arith.constant 0 : index
    %c0_245 = arith.constant 0 : index
    %454 = vector.load %arg2[%c1_242, %c24_243, %c0_244, %c0_245] : memref<2x36x4x1xf32, #tpu.memory_space<vmem>>, vector<1x1x4x1xf32>
    %455 = vector.shape_cast %454 : vector<1x1x4x1xf32> to vector<4x1xf32>
    %456 = vector.extract_strided_slice %453 {offsets = [0, 0], sizes = [1, 768], strides = [1, 1]} : vector<4x768xf32> to vector<1x768xf32>
    %457 = vector.broadcast %455 : vector<4x1xf32> to vector<4x768xf32>
    %458 = vector.broadcast %456 : vector<1x768xf32> to vector<4x768xf32>
    %459 = arith.mulf %457, %458 : vector<4x768xf32>
    %460 = arith.addf %452, %459 : vector<4x768xf32>
    %c1_246 = arith.constant 1 : index
    %c25_247 = arith.constant 25 : index
    %c0_248 = arith.constant 0 : index
    %c0_249 = arith.constant 0 : index
    %461 = vector.load %arg2[%c1_246, %c25_247, %c0_248, %c0_249] : memref<2x36x4x1xf32, #tpu.memory_space<vmem>>, vector<1x1x4x1xf32>
    %462 = vector.shape_cast %461 : vector<1x1x4x1xf32> to vector<4x1xf32>
    %463 = vector.extract_strided_slice %453 {offsets = [1, 0], sizes = [1, 768], strides = [1, 1]} : vector<4x768xf32> to vector<1x768xf32>
    %464 = vector.broadcast %462 : vector<4x1xf32> to vector<4x768xf32>
    %465 = vector.broadcast %463 : vector<1x768xf32> to vector<4x768xf32>
    %466 = arith.mulf %464, %465 : vector<4x768xf32>
    %467 = arith.addf %460, %466 : vector<4x768xf32>
    %c1_250 = arith.constant 1 : index
    %c26_251 = arith.constant 26 : index
    %c0_252 = arith.constant 0 : index
    %c0_253 = arith.constant 0 : index
    %468 = vector.load %arg2[%c1_250, %c26_251, %c0_252, %c0_253] : memref<2x36x4x1xf32, #tpu.memory_space<vmem>>, vector<1x1x4x1xf32>
    %469 = vector.shape_cast %468 : vector<1x1x4x1xf32> to vector<4x1xf32>
    %470 = vector.extract_strided_slice %453 {offsets = [2, 0], sizes = [1, 768], strides = [1, 1]} : vector<4x768xf32> to vector<1x768xf32>
    %471 = vector.broadcast %469 : vector<4x1xf32> to vector<4x768xf32>
    %472 = vector.broadcast %470 : vector<1x768xf32> to vector<4x768xf32>
    %473 = arith.mulf %471, %472 : vector<4x768xf32>
    %474 = arith.addf %467, %473 : vector<4x768xf32>
    %c1_254 = arith.constant 1 : index
    %c27_255 = arith.constant 27 : index
    %c0_256 = arith.constant 0 : index
    %c0_257 = arith.constant 0 : index
    %475 = vector.load %arg2[%c1_254, %c27_255, %c0_256, %c0_257] : memref<2x36x4x1xf32, #tpu.memory_space<vmem>>, vector<1x1x4x1xf32>
    %476 = vector.shape_cast %475 : vector<1x1x4x1xf32> to vector<4x1xf32>
    %477 = vector.extract_strided_slice %453 {offsets = [3, 0], sizes = [1, 768], strides = [1, 1]} : vector<4x768xf32> to vector<1x768xf32>
    %478 = vector.broadcast %476 : vector<4x1xf32> to vector<4x768xf32>
    %479 = vector.broadcast %477 : vector<1x768xf32> to vector<4x768xf32>
    %480 = arith.mulf %478, %479 : vector<4x768xf32>
    %481 = arith.addf %474, %480 : vector<4x768xf32>
    %c0_258 = arith.constant 0 : index
    %c146_259 = arith.constant 146 : index
    %482 = vector.load %arg6[%c0_258, %c146_259] : memref<4x1024xf32, #tpu.memory_space<vmem>>, vector<4x768xf32>
    %c1_260 = arith.constant 1 : index
    %c28_261 = arith.constant 28 : index
    %c0_262 = arith.constant 0 : index
    %c0_263 = arith.constant 0 : index
    %483 = vector.load %arg2[%c1_260, %c28_261, %c0_262, %c0_263] : memref<2x36x4x1xf32, #tpu.memory_space<vmem>>, vector<1x1x4x1xf32>
    %484 = vector.shape_cast %483 : vector<1x1x4x1xf32> to vector<4x1xf32>
    %485 = vector.extract_strided_slice %482 {offsets = [0, 0], sizes = [1, 768], strides = [1, 1]} : vector<4x768xf32> to vector<1x768xf32>
    %486 = vector.broadcast %484 : vector<4x1xf32> to vector<4x768xf32>
    %487 = vector.broadcast %485 : vector<1x768xf32> to vector<4x768xf32>
    %488 = arith.mulf %486, %487 : vector<4x768xf32>
    %489 = arith.addf %481, %488 : vector<4x768xf32>
    %c1_264 = arith.constant 1 : index
    %c29_265 = arith.constant 29 : index
    %c0_266 = arith.constant 0 : index
    %c0_267 = arith.constant 0 : index
    %490 = vector.load %arg2[%c1_264, %c29_265, %c0_266, %c0_267] : memref<2x36x4x1xf32, #tpu.memory_space<vmem>>, vector<1x1x4x1xf32>
    %491 = vector.shape_cast %490 : vector<1x1x4x1xf32> to vector<4x1xf32>
    %492 = vector.extract_strided_slice %482 {offsets = [1, 0], sizes = [1, 768], strides = [1, 1]} : vector<4x768xf32> to vector<1x768xf32>
    %493 = vector.broadcast %491 : vector<4x1xf32> to vector<4x768xf32>
    %494 = vector.broadcast %492 : vector<1x768xf32> to vector<4x768xf32>
    %495 = arith.mulf %493, %494 : vector<4x768xf32>
    %496 = arith.addf %489, %495 : vector<4x768xf32>
    %c1_268 = arith.constant 1 : index
    %c30_269 = arith.constant 30 : index
    %c0_270 = arith.constant 0 : index
    %c0_271 = arith.constant 0 : index
    %497 = vector.load %arg2[%c1_268, %c30_269, %c0_270, %c0_271] : memref<2x36x4x1xf32, #tpu.memory_space<vmem>>, vector<1x1x4x1xf32>
    %498 = vector.shape_cast %497 : vector<1x1x4x1xf32> to vector<4x1xf32>
    %499 = vector.extract_strided_slice %482 {offsets = [2, 0], sizes = [1, 768], strides = [1, 1]} : vector<4x768xf32> to vector<1x768xf32>
    %500 = vector.broadcast %498 : vector<4x1xf32> to vector<4x768xf32>
    %501 = vector.broadcast %499 : vector<1x768xf32> to vector<4x768xf32>
    %502 = arith.mulf %500, %501 : vector<4x768xf32>
    %503 = arith.addf %496, %502 : vector<4x768xf32>
    %c1_272 = arith.constant 1 : index
    %c31_273 = arith.constant 31 : index
    %c0_274 = arith.constant 0 : index
    %c0_275 = arith.constant 0 : index
    %504 = vector.load %arg2[%c1_272, %c31_273, %c0_274, %c0_275] : memref<2x36x4x1xf32, #tpu.memory_space<vmem>>, vector<1x1x4x1xf32>
    %505 = vector.shape_cast %504 : vector<1x1x4x1xf32> to vector<4x1xf32>
    %506 = vector.extract_strided_slice %482 {offsets = [3, 0], sizes = [1, 768], strides = [1, 1]} : vector<4x768xf32> to vector<1x768xf32>
    %507 = vector.broadcast %505 : vector<4x1xf32> to vector<4x768xf32>
    %508 = vector.broadcast %506 : vector<1x768xf32> to vector<4x768xf32>
    %509 = arith.mulf %507, %508 : vector<4x768xf32>
    %510 = arith.addf %503, %509 : vector<4x768xf32>
    %c0_276 = arith.constant 0 : index
    %c147_277 = arith.constant 147 : index
    %511 = vector.load %arg6[%c0_276, %c147_277] : memref<4x1024xf32, #tpu.memory_space<vmem>>, vector<4x768xf32>
    %c1_278 = arith.constant 1 : index
    %c32_279 = arith.constant 32 : index
    %c0_280 = arith.constant 0 : index
    %c0_281 = arith.constant 0 : index
    %512 = vector.load %arg2[%c1_278, %c32_279, %c0_280, %c0_281] : memref<2x36x4x1xf32, #tpu.memory_space<vmem>>, vector<1x1x4x1xf32>
    %513 = vector.shape_cast %512 : vector<1x1x4x1xf32> to vector<4x1xf32>
    %514 = vector.extract_strided_slice %511 {offsets = [0, 0], sizes = [1, 768], strides = [1, 1]} : vector<4x768xf32> to vector<1x768xf32>
    %515 = vector.broadcast %513 : vector<4x1xf32> to vector<4x768xf32>
    %516 = vector.broadcast %514 : vector<1x768xf32> to vector<4x768xf32>
    %517 = arith.mulf %515, %516 : vector<4x768xf32>
    %518 = arith.addf %510, %517 : vector<4x768xf32>
    %c1_282 = arith.constant 1 : index
    %c33_283 = arith.constant 33 : index
    %c0_284 = arith.constant 0 : index
    %c0_285 = arith.constant 0 : index
    %519 = vector.load %arg2[%c1_282, %c33_283, %c0_284, %c0_285] : memref<2x36x4x1xf32, #tpu.memory_space<vmem>>, vector<1x1x4x1xf32>
    %520 = vector.shape_cast %519 : vector<1x1x4x1xf32> to vector<4x1xf32>
    %521 = vector.extract_strided_slice %511 {offsets = [1, 0], sizes = [1, 768], strides = [1, 1]} : vector<4x768xf32> to vector<1x768xf32>
    %522 = vector.broadcast %520 : vector<4x1xf32> to vector<4x768xf32>
    %523 = vector.broadcast %521 : vector<1x768xf32> to vector<4x768xf32>
    %524 = arith.mulf %522, %523 : vector<4x768xf32>
    %525 = arith.addf %518, %524 : vector<4x768xf32>
    %c1_286 = arith.constant 1 : index
    %c34_287 = arith.constant 34 : index
    %c0_288 = arith.constant 0 : index
    %c0_289 = arith.constant 0 : index
    %526 = vector.load %arg2[%c1_286, %c34_287, %c0_288, %c0_289] : memref<2x36x4x1xf32, #tpu.memory_space<vmem>>, vector<1x1x4x1xf32>
    %527 = vector.shape_cast %526 : vector<1x1x4x1xf32> to vector<4x1xf32>
    %528 = vector.extract_strided_slice %511 {offsets = [2, 0], sizes = [1, 768], strides = [1, 1]} : vector<4x768xf32> to vector<1x768xf32>
    %529 = vector.broadcast %527 : vector<4x1xf32> to vector<4x768xf32>
    %530 = vector.broadcast %528 : vector<1x768xf32> to vector<4x768xf32>
    %531 = arith.mulf %529, %530 : vector<4x768xf32>
    %532 = arith.addf %525, %531 : vector<4x768xf32>
    %c1_290 = arith.constant 1 : index
    %c35_291 = arith.constant 35 : index
    %c0_292 = arith.constant 0 : index
    %c0_293 = arith.constant 0 : index
    %533 = vector.load %arg2[%c1_290, %c35_291, %c0_292, %c0_293] : memref<2x36x4x1xf32, #tpu.memory_space<vmem>>, vector<1x1x4x1xf32>
    %534 = vector.shape_cast %533 : vector<1x1x4x1xf32> to vector<4x1xf32>
    %535 = vector.extract_strided_slice %511 {offsets = [3, 0], sizes = [1, 768], strides = [1, 1]} : vector<4x768xf32> to vector<1x768xf32>
    %536 = vector.broadcast %534 : vector<4x1xf32> to vector<4x768xf32>
    %537 = vector.broadcast %535 : vector<1x768xf32> to vector<4x768xf32>
    %538 = arith.mulf %536, %537 : vector<4x768xf32>
    %539 = arith.addf %532, %538 : vector<4x768xf32>
    %c1_294 = arith.constant 1 : index
    %c0_295 = arith.constant 0 : index
    %c0_296 = arith.constant 0 : index
    %540 = vector.load %arg3[%c1_294, %c0_295, %c0_296] : memref<2x4x1xf32, #tpu.memory_space<vmem>>, vector<1x4x1xf32>
    %541 = vector.shape_cast %540 : vector<1x4x1xf32> to vector<4x1xf32>
    %542 = vector.broadcast %541 : vector<4x1xf32> to vector<4x768xf32>
    %543 = arith.addf %539, %542 : vector<4x768xf32>
    %cst_297 = arith.constant 0.000000e+00 : f32
    %544 = vector.broadcast %cst_297 : f32 to vector<4x768xf32>
    %545 = arith.maximumf %543, %544 : vector<4x768xf32>
    %cst_298 = arith.constant 0.000000e+00 : f32
    %546 = vector.shape_cast %3 : vector<1x768xi1> to vector<1x768xi1>
    %547 = vector.broadcast %546 : vector<1x768xi1> to vector<4x768xi1>
    %548 = vector.broadcast %cst_298 : f32 to vector<4x768xf32>
    %549 = arith.select %547, %545, %548 : vector<4x768xi1>, vector<4x768xf32>
    %c0_299 = arith.constant 0 : index
    %c0_300 = arith.constant 0 : index
    %550 = vector.load %arg5[%c0_299, %c0_300] : memref<4x768xf32, #tpu.memory_space<vmem>>, vector<4x768xf32>
    tpu.vector_store %arg5[%c0_299, %c0_300], %549 {strides = array<i32>} : memref<4x768xf32, #tpu.memory_space<vmem>>, vector<4x768xf32>,
    return
  }
  func.func @transform_0(%arg0: i32) -> (i32, i32) {
    %c0_i32 = arith.constant 0 : i32
    %c0_i32_0 = arith.constant 0 : i32
    return %c0_i32, %arg0 : i32, i32
  }
  func.func @transform_1(%arg0: i32) -> (i32, i32, i32, i32) {
    %c0_i32 = arith.constant 0 : i32
    %c0_i32_0 = arith.constant 0 : i32
    %c0_i32_1 = arith.constant 0 : i32
    %c0_i32_2 = arith.constant 0 : i32
    %c0_i32_3 = arith.constant 0 : i32
    return %c0_i32, %c0_i32_0, %c0_i32_1, %c0_i32_2 : i32, i32, i32, i32
  }
  func.func @transform_2(%arg0: i32) -> (i32, i32, i32) {
    %c0_i32 = arith.constant 0 : i32
    %c0_i32_0 = arith.constant 0 : i32
    %c0_i32_1 = arith.constant 0 : i32
    %c0_i32_2 = arith.constant 0 : i32
    return %c0_i32, %c0_i32_0, %c0_i32_1 : i32, i32, i32
  }
  func.func @transform_3(%arg0: i32) -> (i32, i32) {
    %c0_i32 = arith.constant 0 : i32
    %c0_i32_0 = arith.constant 0 : i32
    %c0_i32_1 = arith.constant 0 : i32
    return %c0_i32, %c0_i32_0 : i32, i32
  }
  func.func @transform_4(%arg0: i32) -> (i32, i32) {
    %c0_i32 = arith.constant 0 : i32
    %c0_i32_0 = arith.constant 0 : i32
    return %c0_i32, %arg0 : i32, i32
  }
}

</mosaic_0001>

<bundles_post_ra>
// kernel: conv_block.1
= control target key start
LH: loop header
LB: loop body
LE: loop exit
PB: predicated region body
PF: predicated region fallthrough
CT: control target
= control target key end

     0   :  { %v8010_v0 = vmov 0   ;;  %s4465_s15 = smov 126   ;;  %s4466_s22 = smov 110   ;;  %vm235_vm0 = vcmask 1039360   ;;  %vm456_vm1 = vcmask 1031168   ;;  %vm677_vm2 = vcmask 900096   ;;  %s8005_s1 = inlined_call_operand.vmem [shape: f32[2,36,4,1], index: 1, kind: input, shape index: {}]   ;;  %s8006_s0 = inlined_call_operand.vmem [shape: f32[4,768], index: 0, kind: input, shape index: {}]   ;;  %s8007_s2 = inlined_call_operand.vmem [shape: f32[2,4,1], index: 2, kind: input, shape index: {}]   ;;  %s8008_s3 = inlined_call_operand.vmem [shape: f32[1,768], index: 3, kind: input, shape index: {}]   ;;  %s8009_s4 = inlined_call_operand.vmem [shape: f32[4,768], index: 4, kind: output, shape index: {}]  }
   0x1   :  { %4462 = vset.pattern.permute.xlu2 %v8010_v0  ;;  %4460 = vset.pattern.permute.xlu0 %v8010_v0  ;;  %v4381_v1 = vld [vmem:[%s8005_s1 + $0x10] sm:$0xf]  ;;  %v29_v2 = vld [vmem:[%s8005_s1] sm:$0xf]  ;;  %v4379_v3 = vld [vmem:[%s8005_s1 + $0x8] sm:$0xf] }
   0x2   :  { %204 = vperm.xlu2 %4462, %v4381_v1   ;;  %32 = vperm.xlu0 %4460, %v29_v2   ;;  %v4378_v4 = vld [vmem:[%s8005_s1 + $0x4] sm:$0xf]  ;;  %v4383_v5 = vld [vmem:[%s8005_s1 + $0x18] sm:$0xf]  ;;  %v4380_v6 = vld [vmem:[%s8005_s1 + $0xc] sm:$0xf] }
   0x3   :  { %4461 = vset.pattern.permute.xlu1 %v8010_v0  ;;  %v4382_v7 = vld [vmem:[%s8005_s1 + $0x14] sm:$0xf]  ;;  %v4386_v8 = vld [vmem:[%s8005_s1 + $0x24] sm:$0xf]  ;;  %v4384_v9 = vld [vmem:[%s8005_s1 + $0x1c] sm:$0xf] }
   0x4   :  { %120 = vperm.xlu1 %4461, %v4379_v3   ;;  %v4385_v10 = vld [vmem:[%s8005_s1 + $0x20] sm:$0xf]  ;;  %v18_v12 = vld [vmem:[%s8006_s0 + $0x8] sm:$0xff]  ;;  %v19_v13 = vld [vmem:[%s8006_s0 + $0x10] sm:$0xff]  ;;  %s4467_s5 = smov 109   ;;  %s4468_s14 = smov 108  }
   0x5   :  { %v17_v11 = vld [vmem:[%s8006_s0] sm:$0xff]  ;;  %23 = vst [vmem:[#allocation2 + $0xc] sm:$0xff] %v18_v12  ;;  %s4464_s0 = smov 127   ;;  %s4469_s25 = smov 92   ;;  %vm918_vm3 = vcmask 891904   ;;  %vm1206_vm4 = vcmask 883712  }
   0x6   :  { %22 = vst [vmem:[#allocation2 + $0x4] sm:$0xff] %v17_v11  ;;  %s4470_s9 = smov 91   ;;  %s4471_s20 = smov 90   ;;  %vm1490_vm5 = vcmask 752640   ;;  %vm1711_vm6 = vcmask 744448   ;;  %vm1932_vm7 = vcmask 736256  }
   0x7   :  { %24 = vst [vmem:[#allocation2 + $0x14] sm:$0xff] %v19_v13  ;;  %s4472_s6 = smov 19   ;;  %vm2172_vm9 = vcmask 154624   ;;  %vm2200_vm12 = vcmask 1043456  }
   0xa   :  { %78 = vperm.xlu0 %4460, %v4378_v4   ;;  %315 = vperm.xlu2 %4462, %v4383_v5  }
   0xc   :  { %162 = vperm.xlu1 %4461, %v4380_v6  }
   0xd   :  { %v4540_v14 = vld [vmem:[#allocation2 + $0x8] sm:$0xff]  ;;  %v4542_v15 = vld [vmem:[#allocation2] sm:$0xff] }
   0xe   :  { %v41_v16 = vperm.slane %v4540_v14, 0  ;;  %v40_v17 = vperm.slane %v4542_v15, 4  ;;  %v39_v18 = vperm.slane %v4542_v15, 0  ;;  %v4547_v19 = vld [vmem:[#allocation2 + $0x10] sm:$0xff]  ;;  %v42_v26 = vperm.slane %v4540_v14, 4 }
   0xf   :  { %v44_v23 = vperm.slane %v4547_v19, 4  ;;  %v43_v24 = vperm.slane %v4547_v19, 0  ;;  %v4570_v33 = vld [vmem:[#allocation2 + $0x18] sm:$0xf]  ;;  %v81_v42 = vperm.slane %v4542_v15, 1  ;;  %v83_v43 = vperm.slane %v4540_v14, 1 }
  0x10   :  { %v4549_v20 = vperm.slane %v41_v16, 0  ;;  %v4551_v21 = vperm.slane %v40_v17, 0  ;;  %v4553_v22 = vperm.slane %v39_v18, 0  ;;  %v4568_v32 = vperm.slane %v42_v26, 0 }
  0x11   :  { %v4563_v30 = vperm.slane %v44_v23, 0  ;;  %v4565_v31 = vperm.slane %v43_v24, 0  ;;  %v45_v37 = vperm.slane %v4570_v33, 0  ;;  %v82_v44 = vperm.slane %v4542_v15, 5 }
  0x12   :  { %260 = vperm.xlu0 %4460, %v4382_v7   ;;  %481 = vperm.xlu2 %4462, %v4386_v8   ;;  %v4590_v45 = vperm.slane %v81_v42, 1  ;;  %v4592_v46 = vperm.slane %v83_v43, 1  ;;  %v84_v52 = vperm.slane %v4540_v14, 5  ;;  %v86_v53 = vperm.slane %v4547_v19, 5 }
  0x13   :  { %v4579_v38 = vperm.slane %v45_v37, 0  ;;  %v4594_v47 = vperm.slane %v82_v44, 1  ;;  %v85_v54 = vperm.slane %v4547_v19, 1  ;;  %v123_v60 = vperm.slane %v4542_v15, 2 }
  0x14   :  { %370 = vperm.xlu1 %4461, %v4384_v9   ;;  %v4605_v55 = vperm.slane %v84_v52, 1  ;;  %v4607_v56 = vperm.slane %v86_v53, 1  ;;  %v125_v62 = vperm.slane %v4540_v14, 2  ;;  %v87_v63 = vperm.slane %v4570_v33, 1 }
  0x15   :  { %v4609_v57 = vperm.slane %v85_v54, 1  ;;  %v4622_v2 = vperm.slane %v123_v60, 2  ;;  %v124_v8 = vperm.slane %v4542_v15, 6  ;;  %v126_v9 = vperm.slane %v4540_v14, 6 }
  0x16   :  { %v4624_v3 = vperm.slane %v125_v62, 2  ;;  %v4626_v4 = vperm.slane %v87_v63, 1  ;;  %v128_v11 = vperm.slane %v4547_v19, 6  ;;  %v127_v24 = vperm.slane %v4547_v19, 2 }
  0x17   :  { %v4637_v12 = vperm.slane %v124_v8, 2  ;;  %v4639_v13 = vperm.slane %v126_v9, 2  ;;  %v167_v42 = vperm.slane %v4540_v14, 3  ;;  %v166_v43 = vperm.slane %v4542_v15, 7 }
  0x18   :  { %v4641_v16 = vperm.slane %v128_v11, 2  ;;  %v168_v44 = vperm.slane %v4540_v14, 7  ;;  %v169_v14 = vperm.slane %v4547_v19, 3  ;;  %v171_v54 = vperm.slane %v4570_v33, 3 }
  0x1a   :  { %425 = vperm.xlu0 %4460, %v4385_v10   ;;  %v4688_v60 = vperm.slane %v171_v54, 3 }
  0x1c   :  { %8316 = vst [vmem:[#allocation9_spill] sm:$0xff] %v4688_v60 }
  0x5c   :  { %v205_v25 = vpop.permute.xlu2 %204 }
  0x5d   :  { %v209_v27 = vmul.f32 %v205_v25, %v4549_v20  ;;  %v208_v28 = vmul.f32 %v205_v25, %v4551_v21  ;;  %v207_v29 = vmul.f32 %v205_v25, %v4553_v22  ;;  %v212_v34 = vmul.f32 %v205_v25, %v4563_v30 }
  0x5e   :  { %v211_v35 = vmul.f32 %v205_v25, %v4565_v31  ;;  %v210_v36 = vmul.f32 %v205_v25, %v4568_v32  ;;  %v213_v39 = vmul.f32 %v205_v25, %v4579_v38  ;;  %v129_v25 = vperm.slane %v4570_v33, 2 }
  0x5f   :  { %225 = vrot.lane.b32.xlu1 %v209_v27, %s4464_s0  ;;  %223 = vrot.lane.b32.xlu0 %v208_v28, %s4464_s0  ;;  %v165_v27 = vperm.slane %v4542_v15, 3  ;;  %v4654_v28 = vperm.slane %v127_v24, 2  ;;  %v170_v15 = vperm.slane %v4547_v19, 7 }
  0x60   :  { %221 = vrot.lane.b32.xlu2 %v207_v29, %s4464_s0  ;;  %v4656_v29 = vperm.slane %v129_v25, 2 }
  0x64   :  { %v316_v5 = vpop.permute.xlu2 %315 }
  0x65   :  { %v318_v7 = vmul.f32 %v316_v5, %v4622_v2  ;;  %v320_v10 = vmul.f32 %v316_v5, %v4624_v3  ;;  %v319_v18 = vmul.f32 %v316_v5, %v4637_v12  ;;  %v321_v23 = vmul.f32 %v316_v5, %v4639_v13 }
  0x66   :  { %v323_v26 = vmul.f32 %v316_v5, %v4641_v16  ;;  %v324_v37 = vmul.f32 %v316_v5, %v4656_v29 }
  0x67   :  { %231 = vrot.lane.b32.xlu1 %v212_v34, %s4464_s0  ;;  %229 = vrot.lane.b32.xlu0 %v211_v35, %s4464_s0  ;;  %v4658_v35 = vperm.slane %v165_v27, 3 }
  0x68   :  { %227 = vrot.lane.b32.xlu2 %v210_v36, %s4464_s0  ;;  %v322_v36 = vmul.f32 %v316_v5, %v4654_v28 }
  0x69   :  { %8310 = vst [vmem:[#allocation3_spill] sm:$0xff] %v4658_v35 }
  0x70   :  { %233 = vrot.lane.b32.xlu2 %v213_v39, %s4464_s0 }
  0x74   :  { %v4583_v40 = vpop.permute.xlu0 %32 }
  0x76   :  { %v4620_v1 = vpop.permute.xlu1 %120 }
  0x7c   :  { %v4585_v41 = vpop.permute.xlu0 %78 }
  0x7e   :  { %v4643_v17 = vpop.permute.xlu1 %162 }
  0x84   :  { %v261_v48 = vpop.permute.xlu0 %260 }
  0x85   :  { %v263_v49 = vmul.f32 %v261_v48, %v4590_v45  ;;  %v265_v50 = vmul.f32 %v261_v48, %v4592_v46  ;;  %v264_v51 = vmul.f32 %v261_v48, %v4594_v47  ;;  %v266_v58 = vmul.f32 %v261_v48, %v4605_v55 }
  0x86   :  { %v268_v59 = vmul.f32 %v261_v48, %v4607_v56  ;;  %v267_v61 = vmul.f32 %v261_v48, %v4609_v57  ;;  %v269_v6 = vmul.f32 %v261_v48, %v4626_v4  ;;  %v371_v34 = vpop.permute.xlu1 %370  ;;  %v4669_v48 = vperm.slane %v167_v42, 3 }
  0x87   :  { %277 = vrot.lane.b32.xlu1 %v263_v49, %s4464_s0  ;;  %281 = vrot.lane.b32.xlu0 %v265_v50, %s4464_s0  ;;  %v373_v39 = vmul.f32 %v371_v34, %v4658_v35  ;;  %v4671_v49 = vperm.slane %v166_v43, 3  ;;  %v4673_v50 = vperm.slane %v168_v44, 3  ;;  %v379_v63 = vmul.f32 %v371_v34, %v4688_v60 }
  0x88   :  { %279 = vrot.lane.b32.xlu2 %v264_v51, %s4464_s0  ;;  %8311 = vst [vmem:[#allocation4_spill] sm:$0xff] %v4669_v48  ;;  %v375_v51 = vmul.f32 %v371_v34, %v4669_v48 }
  0x89   :  { %8312 = vst [vmem:[#allocation5_spill] sm:$0xff] %v4671_v49  ;;  %v374_v52 = vmul.f32 %v371_v34, %v4671_v49  ;;  %v376_v53 = vmul.f32 %v371_v34, %v4673_v50 }
  0x8a   :  { %8313 = vst [vmem:[#allocation6_spill] sm:$0xff] %v4673_v50 }
  0x8c   :  { %v426_v19 = vpop.permute.xlu0 %425 }
  0x8d   :  { %v430_v33 = vmul.f32 %v426_v19, %v4549_v20  ;;  %v428_v5 = vmul.f32 %v426_v19, %v4553_v22  ;;  %v431_v8 = vmul.f32 %v426_v19, %v4568_v32  ;;  %v432_v9 = vmul.f32 %v426_v19, %v4565_v31 }
  0x8f   :  { %283 = vrot.lane.b32.xlu1 %v266_v58, %s4464_s0  ;;  %287 = vrot.lane.b32.xlu0 %v268_v59, %s4464_s0  ;;  %v4684_v58 = vperm.slane %v170_v15, 3  ;;  %v4686_v59 = vperm.slane %v169_v14, 3 }
  0x90   :  { %285 = vrot.lane.b32.xlu2 %v267_v61, %s4464_s0 }
  0x91   :  { %8314 = vst [vmem:[#allocation7_spill] sm:$0xff] %v4684_v58  ;;  %v378_v61 = vmul.f32 %v371_v34, %v4684_v58  ;;  %v377_v62 = vmul.f32 %v371_v34, %v4686_v59 }
  0x92   :  { %8315 = vst [vmem:[#allocation8_spill] sm:$0xff] %v4686_v59 }
  0x97   :  { %289 = vrot.lane.b32.xlu1 %v269_v6, %s4464_s0  ;;  %332 = vrot.lane.b32.xlu0 %v318_v7, %s4464_s0  ;;  %v429_v6 = vmul.f32 %v426_v19, %v4551_v21  ;;  %v433_v7 = vmul.f32 %v426_v19, %v4563_v30 }
  0x98   :  { %336 = vrot.lane.b32.xlu2 %v320_v10, %s4464_s0  ;;  %v482_v10 = vpop.permute.xlu2 %481 }
  0x99   :  { %v484_v11 = vmul.f32 %v482_v10, %v4590_v45  ;;  %v487_v24 = vmul.f32 %v482_v10, %v4605_v55  ;;  %v485_v25 = vmul.f32 %v482_v10, %v4594_v47  ;;  %v490_v27 = vmul.f32 %v482_v10, %v4626_v4 }
  0x9a   :  { %v488_v34 = vmul.f32 %v482_v10, %v4609_v57 }
  0x9f   :  { %334 = vrot.lane.b32.xlu1 %v319_v18, %s4464_s0  ;;  %338 = vrot.lane.b32.xlu0 %v321_v23, %s4464_s0  ;;  %v434_v18 = vmul.f32 %v426_v19, %v4579_v38  ;;  %v486_v23 = vmul.f32 %v482_v10, %v4592_v46 }
  0xa0   :  { %342 = vrot.lane.b32.xlu2 %v323_v26, %s4464_s0  ;;  %v489_v26 = vmul.f32 %v482_v10, %v4607_v56 }
  0xa7   :  { %340 = vrot.lane.b32.xlu1 %v322_v36, %s4464_s0  ;;  %344 = vrot.lane.b32.xlu0 %v324_v37, %s4464_s0  ;;  %v4387_v36 = vld [vmem:[%s8005_s1 + $0x28] sm:$0xf] }
  0xa8   :  { %387 = vrot.lane.b32.xlu2 %v373_v39, %s4464_s0 }
  0xaf   :  { %391 = vrot.lane.b32.xlu1 %v375_v51, %s4464_s0  ;;  %389 = vrot.lane.b32.xlu0 %v374_v52, %s4464_s0 }
  0xb0   :  { %393 = vrot.lane.b32.xlu2 %v376_v53, %s4464_s0 }
  0xb7   :  { %397 = vrot.lane.b32.xlu1 %v378_v61, %s4464_s0  ;;  %395 = vrot.lane.b32.xlu0 %v377_v62, %s4464_s0 }
  0xb8   :  { %399 = vrot.lane.b32.xlu2 %v379_v63, %s4464_s0 }
  0xbf   :  { %446 = vrot.lane.b32.xlu0 %v430_v33, %s4465_s15  ;;  %442 = vrot.lane.b32.xlu1 %v428_v5, %s4465_s15 }
  0xc0   :  { %444 = vrot.lane.b32.xlu2 %v429_v6, %s4465_s15 }
  0xc7   :  { %452 = vrot.lane.b32.xlu0 %v433_v7, %s4465_s15  ;;  %448 = vrot.lane.b32.xlu1 %v431_v8, %s4465_s15 }
  0xc8   :  { %450 = vrot.lane.b32.xlu2 %v432_v9, %s4465_s15 }
  0xcf   :  { %498 = vrot.lane.b32.xlu0 %v484_v11, %s4465_s15  ;;  %454 = vrot.lane.b32.xlu1 %v434_v18, %s4465_s15 }
  0xd0   :  { %502 = vrot.lane.b32.xlu2 %v486_v23, %s4465_s15 }
  0xd1   :  { %v4727_v37 = vpop.permute.xlu1 %225  ;;  %v4751_v62 = vpop.permute.xlu0 %223 }
  0xd2   :  { %8317 = vst [vmem:[#allocation10_spill] sm:$0xff] %v4727_v37 }
  0xd3   :  { %8329 = vst [vmem:[#allocation22_spill] sm:$0xff] %v4751_v62 }
  0xd7   :  { %504 = vrot.lane.b32.xlu0 %v487_v24, %s4465_s15  ;;  %500 = vrot.lane.b32.xlu1 %v485_v25, %s4465_s15  ;;  %v4388_v24 = vld [vmem:[%s8005_s1 + $0x2c] sm:$0xf] }
  0xd8   :  { %508 = vrot.lane.b32.xlu2 %v489_v26, %s4465_s15 }
  0xd9   :  { %v4729_v39 = vpop.permute.xlu1 %231  ;;  %v4755_v19 = vpop.permute.xlu0 %229 }
  0xda   :  { %8318 = vst [vmem:[#allocation11_spill] sm:$0xff] %v4729_v39 }
  0xdb   :  { %8331 = vst [vmem:[#allocation24_spill] sm:$0xff] %v4755_v19 }
  0xdf   :  { %510 = vrot.lane.b32.xlu0 %v490_v27, %s4465_s15  ;;  %506 = vrot.lane.b32.xlu1 %v488_v34, %s4465_s15 }
  0xe7   :  { %536 = vperm.xlu1 %4461, %v4387_v36  }
  0xf9   :  { %v4731_v42 = vpop.permute.xlu1 %277  ;;  %v4759_v5 = vpop.permute.xlu0 %281 }
  0xfa   :  { %8319 = vst [vmem:[#allocation12_spill] sm:$0xff] %v4731_v42 }
  0xfb   :  { %8333 = vst [vmem:[#allocation26_spill] sm:$0xff] %v4759_v5 }
 0x101   :  { %v4733_v43 = vpop.permute.xlu1 %283  ;;  %v4767_v10 = vpop.permute.xlu0 %287 }
 0x102   :  { %8320 = vst [vmem:[#allocation13_spill] sm:$0xff] %v4733_v43 }
 0x103   :  { %8334 = vst [vmem:[#allocation27_spill] sm:$0xff] %v4767_v10 }
 0x109   :  { %v4735_v44 = vpop.permute.xlu1 %289  ;;  %v4779_v26 = vpop.permute.xlu0 %332 }
 0x10a   :  { %8321 = vst [vmem:[#allocation14_spill] sm:$0xff] %v4735_v44 }
 0x10b   :  { %8335 = vst [vmem:[#allocation28_spill] sm:$0xff] %v4779_v26 }
 0x111   :  { %v4737_v51 = vpop.permute.xlu1 %334  ;;  %v4782_v27 = vpop.permute.xlu0 %338 }
 0x112   :  { %8322 = vst [vmem:[#allocation15_spill] sm:$0xff] %v4737_v51 }
 0x113   :  { %8336 = vst [vmem:[#allocation29_spill] sm:$0xff] %v4782_v27 }
 0x119   :  { %v4739_v52 = vpop.permute.xlu1 %340  ;;  %v4784_v34 = vpop.permute.xlu0 %344 }
 0x11a   :  { %8323 = vst [vmem:[#allocation16_spill] sm:$0xff] %v4739_v52 }
 0x11b   :  { %8337 = vst [vmem:[#allocation30_spill] sm:$0xff] %v4784_v34 }
 0x121   :  { %v4741_v53 = vpop.permute.xlu1 %391  ;;  %v4786_v36 = vpop.permute.xlu0 %389 }
 0x122   :  { %8324 = vst [vmem:[#allocation17_spill] sm:$0xff] %v4741_v53 }
 0x123   :  { %8338 = vst [vmem:[#allocation31_spill] sm:$0xff] %v4786_v36 }
 0x129   :  { %v4743_v15 = vpop.permute.xlu1 %397 }
 0x12a   :  { %8325 = vst [vmem:[#allocation18_spill] sm:$0xff] %v4743_v15 }
 0x131   :  { %v4745_v14 = vpop.permute.xlu1 %442 }
 0x132   :  { %8326 = vst [vmem:[#allocation19_spill] sm:$0xff] %v4745_v14 }
 0x139   :  { %v4747_v54 = vpop.permute.xlu1 %448 }
 0x13a   :  { %8327 = vst [vmem:[#allocation20_spill] sm:$0xff] %v4747_v54 }
 0x141   :  { %v4749_v61 = vpop.permute.xlu1 %454 }
 0x142   :  { %8328 = vst [vmem:[#allocation21_spill] sm:$0xff] %v4749_v61 }
 0x149   :  { %v4753_v63 = vpop.permute.xlu1 %500 }
 0x14a   :  { %8330 = vst [vmem:[#allocation23_spill] sm:$0xff] %v4753_v63 }
 0x151   :  { %v4757_v33 = vpop.permute.xlu1 %506 }
 0x152   :  { %8332 = vst [vmem:[#allocation25_spill] sm:$0xff] %v4757_v33 }
 0x159   :  { %v537_v6 = vpop.permute.xlu1 %536 }
 0x15a   :  { %v541_v7 = vmul.f32 %v537_v6, %v4624_v3  ;;  %v540_v8 = vmul.f32 %v537_v6, %v4637_v12  ;;  %v539_v9 = vmul.f32 %v537_v6, %v4622_v2  ;;  %v544_v11 = vmul.f32 %v537_v6, %v4641_v16 }
 0x15b   :  { %v543_v18 = vmul.f32 %v537_v6, %v4654_v28  ;;  %v542_v23 = vmul.f32 %v537_v6, %v4639_v13  ;;  %v545_v25 = vmul.f32 %v537_v6, %v4656_v29 }
 0x15c   :  { %557 = vrot.lane.b32.xlu1 %v541_v7, %s4465_s15  ;;  %555 = vrot.lane.b32.xlu0 %v540_v8, %s4465_s15  ;;  %v4788_v7 = vpop.permute.xlu0 %395  ;;  %v4790_v8 = vpop.permute.xlu2 %221 }
 0x15d   :  { %553 = vrot.lane.b32.xlu2 %v539_v9, %s4465_s15  ;;  %8339 = vst [vmem:[#allocation32_spill] sm:$0xff] %v4788_v7 }
 0x15e   :  { %8340 = vst [vmem:[#allocation33_spill] sm:$0xff] %v4790_v8 }
 0x164   :  { %563 = vrot.lane.b32.xlu1 %v544_v11, %s4465_s15  ;;  %561 = vrot.lane.b32.xlu0 %v543_v18, %s4465_s15  ;;  %v4792_v9 = vpop.permute.xlu0 %446  ;;  %v4794_v11 = vpop.permute.xlu2 %227 }
 0x165   :  { %559 = vrot.lane.b32.xlu2 %v542_v23, %s4465_s15  ;;  %8341 = vst [vmem:[#allocation34_spill] sm:$0xff] %v4792_v9 }
 0x166   :  { %8342 = vst [vmem:[#allocation35_spill] sm:$0xff] %v4794_v11 }
 0x16c   :  { %591 = vperm.xlu0 %4460, %v4388_v24   ;;  %v4796_v6 = vpop.permute.xlu0 %452  ;;  %v4798_v18 = vpop.permute.xlu2 %233 }
 0x16d   :  { %565 = vrot.lane.b32.xlu2 %v545_v25, %s4465_s15  ;;  %8343 = vst [vmem:[#allocation36_spill] sm:$0xff] %v4796_v6 }
 0x16e   :  { %8344 = vst [vmem:[#allocation37_spill] sm:$0xff] %v4798_v18 }
 0x174   :  { %v4800_v23 = vpop.permute.xlu0 %498  ;;  %v4802_v24 = vpop.permute.xlu2 %279 }
 0x175   :  { %8345 = vst [vmem:[#allocation38_spill] sm:$0xff] %v4800_v23 }
 0x176   :  { %8346 = vst [vmem:[#allocation39_spill] sm:$0xff] %v4802_v24 }
 0x17c   :  { %v4804_v25 = vpop.permute.xlu0 %504  ;;  %v4806_v0 = vpop.permute.xlu2 %285 }
 0x17d   :  { %8347 = vst [vmem:[#allocation40_spill] sm:$0xff] %v4804_v25 }
 0x17e   :  { %8348 = vst [vmem:[#allocation41_spill] sm:$0xff] %v4806_v0 }
 0x184   :  { %v4808_v33 = vpop.permute.xlu0 %510  ;;  %v4810_v63 = vpop.permute.xlu2 %336 }
 0x185   :  { %8349 = vst [vmem:[#allocation42_spill] sm:$0xff] %v4808_v33 }
 0x186   :  { %8350 = vst [vmem:[#allocation43_spill] sm:$0xff] %v4810_v63 }
 0x18c   :  { %v4814_v54 = vpop.permute.xlu2 %342 }
 0x18d   :  { %8352 = vst [vmem:[#allocation45_spill] sm:$0xff] %v4814_v54 }
 0x194   :  { %v4818_v6 = vpop.permute.xlu2 %387 }
 0x195   :  { %8354 = vst [vmem:[#allocation47_spill] sm:$0xff] %v4818_v6 }
 0x1ce   :  { %v4812_v61 = vpop.permute.xlu0 %555 }
 0x1cf   :  { %8351 = vst [vmem:[#allocation44_spill] sm:$0xff] %v4812_v61  ;;  %v4826_v61 = vpop.permute.xlu2 %393 }
 0x1d0   :  { %8355 = vst [vmem:[#allocation48_spill] sm:$0xff] %v4826_v61 }
 0x1d6   :  { %v4816_v14 = vpop.permute.xlu0 %561 }
 0x1d7   :  { %8353 = vst [vmem:[#allocation46_spill] sm:$0xff] %v4816_v14 }
 0x1de   :  { %v592_v9 = vpop.permute.xlu0 %591 }
 0x1df   :  { %v596_v23 = vmul.f32 %v592_v9, %v4669_v48  ;;  %v594_v7 = vmul.f32 %v592_v9, %v4658_v35  ;;  %v595_v25 = vmul.f32 %v592_v9, %v4671_v49  ;;  %v599_v33 = vmul.f32 %v592_v9, %v4684_v58 }
 0x1e0   :  { %v597_v14 = vmul.f32 %v592_v9, %v4673_v50  ;;  %v598_v15 = vmul.f32 %v592_v9, %v4686_v59 }
 0x1e1   :  { %612 = vrot.lane.b32.xlu0 %v596_v23, %s4465_s15  ;;  %608 = vrot.lane.b32.xlu1 %v594_v7, %s4465_s15  ;;  %v600_v23 = vmul.f32 %v592_v9, %v4688_v60  ;;  %v4389_v7 = vld [vmem:[%s8005_s1 + $0x30] sm:$0xf] }
 0x1e2   :  { %610 = vrot.lane.b32.xlu2 %v595_v25, %s4465_s15  ;;  %v4838_v25 = vpop.permute.xlu2 %399 }
 0x1e3   :  { %8356 = vst [vmem:[#allocation49_spill] sm:$0xff] %v4838_v25 }
 0x1e9   :  { %618 = vrot.lane.b32.xlu0 %v599_v33, %s4465_s15  ;;  %614 = vrot.lane.b32.xlu1 %v597_v14, %s4465_s15 }
 0x1ea   :  { %616 = vrot.lane.b32.xlu2 %v598_v15, %s4465_s15  ;;  %v4841_v6 = vpop.permute.xlu2 %444 }
 0x1eb   :  { %8357 = vst [vmem:[#allocation50_spill] sm:$0xff] %v4841_v6 }
 0x1f1   :  { %620 = vrot.lane.b32.xlu1 %v600_v23, %s4465_s15 }
 0x1f2   :  { %646 = vperm.xlu2 %4462, %v4389_v7   ;;  %v4843_v36 = vpop.permute.xlu2 %450 }
 0x1f3   :  { %8358 = vst [vmem:[#allocation51_spill] sm:$0xff] %v4843_v36 }
 0x1fa   :  { %v4845_v33 = vpop.permute.xlu2 %502 }
 0x1fb   :  { %8359 = vst [vmem:[#allocation52_spill] sm:$0xff] %v4845_v33 }
 0x202   :  { %v4847_v14 = vpop.permute.xlu2 %508 }
 0x203   :  { %8360 = vst [vmem:[#allocation53_spill] sm:$0xff] %v4847_v14 }
 0x20a   :  { %v4849_v15 = vpop.permute.xlu2 %553 }
 0x20b   :  { %8361 = vst [vmem:[#allocation54_spill] sm:$0xff] %v4849_v15 }
 0x212   :  { %v4851_v9 = vpop.permute.xlu2 %559 }
 0x213   :  { %8362 = vst [vmem:[#allocation55_spill] sm:$0xff] %v4851_v9 }
 0x21a   :  { %v4853_v53 = vpop.permute.xlu2 %565 }
 0x21b   :  { %8363 = vst [vmem:[#allocation56_spill] sm:$0xff] %v4853_v53 }
 0x23c   :  { %v4855_v61 = vpop.permute.xlu2 %610 }
 0x23d   :  { %8364 = vst [vmem:[#allocation57_spill] sm:$0xff] %v4855_v61 }
 0x244   :  { %v4857_v25 = vpop.permute.xlu2 %616 }
 0x245   :  { %8365 = vst [vmem:[#allocation58_spill] sm:$0xff] %v4857_v25 }
 0x24c   :  { %v647_v23 = vpop.permute.xlu2 %646 }
 0x24d   :  { %v651_v7 = vmul.f32 %v647_v23, %v4549_v20  ;;  %v650_v6 = vmul.f32 %v647_v23, %v4551_v21  ;;  %v649_v36 = vmul.f32 %v647_v23, %v4553_v22  ;;  %v654_v53 = vmul.f32 %v647_v23, %v4563_v30 }
 0x24e   :  { %v653_v61 = vmul.f32 %v647_v23, %v4565_v31  ;;  %v652_v25 = vmul.f32 %v647_v23, %v4568_v32 }
 0x24f   :  { %667 = vrot.lane.b32.xlu2 %v651_v7, %s4466_s22  ;;  %665 = vrot.lane.b32.xlu1 %v650_v6, %s4466_s22  ;;  %v4390_v7 = vld [vmem:[%s8005_s1 + $0x34] sm:$0xf]  ;;  %v655_v6 = vmul.f32 %v647_v23, %v4579_v38 }
 0x250   :  { %663 = vrot.lane.b32.xlu0 %v649_v36, %s4466_s22  ;;  %v4876_v36 = vpop.permute.xlu1 %557 }
 0x251   :  { %8366 = vst [vmem:[#allocation59_spill] sm:$0xff] %v4876_v36 }
 0x257   :  { %673 = vrot.lane.b32.xlu2 %v654_v53, %s4466_s22  ;;  %671 = vrot.lane.b32.xlu1 %v653_v61, %s4466_s22 }
 0x258   :  { %669 = vrot.lane.b32.xlu0 %v652_v25, %s4466_s22  ;;  %v4878_v15 = vpop.permute.xlu1 %563 }
 0x259   :  { %8367 = vst [vmem:[#allocation60_spill] sm:$0xff] %v4878_v15 }
 0x25f   :  { %702 = vperm.xlu1 %4461, %v4390_v7  }
 0x260   :  { %675 = vrot.lane.b32.xlu0 %v655_v6, %s4466_s22  ;;  %v4880_v9 = vpop.permute.xlu1 %608 }
 0x261   :  { %8368 = vst [vmem:[#allocation61_spill] sm:$0xff] %v4880_v9 }
 0x268   :  { %v4882_v53 = vpop.permute.xlu1 %614 }
 0x269   :  { %8369 = vst [vmem:[#allocation62_spill] sm:$0xff] %v4882_v53 }
 0x270   :  { %v4884_v61 = vpop.permute.xlu1 %620 }
 0x271   :  { %8370 = vst [vmem:[#allocation63_spill] sm:$0xff] %v4884_v61 }
 0x2c1   :  { %v4886_v25 = vpop.permute.xlu1 %665 }
 0x2c2   :  { %8371 = vst [vmem:[#allocation64_spill] sm:$0xff] %v4886_v25 }
 0x2c9   :  { %v4888_v14 = vpop.permute.xlu1 %671 }
 0x2ca   :  { %8372 = vst [vmem:[#allocation65_spill] sm:$0xff] %v4888_v14 }
 0x2d1   :  { %v703_v33 = vpop.permute.xlu1 %702 }
 0x2d2   :  { %v707_v23 = vmul.f32 %v703_v33, %v4592_v46  ;;  %v705_v7 = vmul.f32 %v703_v33, %v4590_v45  ;;  %v706_v6 = vmul.f32 %v703_v33, %v4594_v47  ;;  %v710_v53 = vmul.f32 %v703_v33, %v4607_v56 }
 0x2d3   :  { %v708_v61 = vmul.f32 %v703_v33, %v4605_v55  ;;  %v709_v25 = vmul.f32 %v703_v33, %v4609_v57  ;;  %v711_v14 = vmul.f32 %v703_v33, %v4626_v4 }
 0x2d4   :  { %723 = vrot.lane.b32.xlu1 %v707_v23, %s4466_s22  ;;  %719 = vrot.lane.b32.xlu2 %v705_v7, %s4466_s22  ;;  %v4391_v23 = vld [vmem:[%s8005_s1 + $0x38] sm:$0xf]  ;;  %v4907_v7 = vpop.permute.xlu0 %612 }
 0x2d5   :  { %721 = vrot.lane.b32.xlu0 %v706_v6, %s4466_s22  ;;  %8373 = vst [vmem:[#allocation66_spill] sm:$0xff] %v4907_v7 }
 0x2dc   :  { %729 = vrot.lane.b32.xlu1 %v710_v53, %s4466_s22  ;;  %725 = vrot.lane.b32.xlu2 %v708_v61, %s4466_s22  ;;  %v4909_v6 = vpop.permute.xlu0 %618 }
 0x2dd   :  { %727 = vrot.lane.b32.xlu0 %v709_v25, %s4466_s22  ;;  %8374 = vst [vmem:[#allocation67_spill] sm:$0xff] %v4909_v6 }
 0x2e4   :  { %731 = vrot.lane.b32.xlu2 %v711_v14, %s4466_s22  ;;  %v4911_v9 = vpop.permute.xlu0 %663 }
 0x2e5   :  { %757 = vperm.xlu0 %4460, %v4391_v23   ;;  %8375 = vst [vmem:[#allocation68_spill] sm:$0xff] %v4911_v9 }
 0x2ec   :  { %v4913_v53 = vpop.permute.xlu0 %669 }
 0x2ed   :  { %8376 = vst [vmem:[#allocation69_spill] sm:$0xff] %v4913_v53 }
 0x2f4   :  { %v4915_v61 = vpop.permute.xlu0 %675 }
 0x2f5   :  { %8377 = vst [vmem:[#allocation70_spill] sm:$0xff] %v4915_v61 }
 0x347   :  { %v4917_v25 = vpop.permute.xlu0 %721 }
 0x348   :  { %8378 = vst [vmem:[#allocation71_spill] sm:$0xff] %v4917_v25 }
 0x34f   :  { %v4919_v33 = vpop.permute.xlu0 %727 }
 0x350   :  { %8379 = vst [vmem:[#allocation72_spill] sm:$0xff] %v4919_v33 }
 0x357   :  { %v758_v15 = vpop.permute.xlu0 %757 }
 0x358   :  { %v762_v36 = vmul.f32 %v758_v15, %v4624_v3  ;;  %v761_v14 = vmul.f32 %v758_v15, %v4637_v12  ;;  %v760_v23 = vmul.f32 %v758_v15, %v4622_v2  ;;  %v765_v53 = vmul.f32 %v758_v15, %v4641_v16 }
 0x359   :  { %v764_v61 = vmul.f32 %v758_v15, %v4654_v28  ;;  %v763_v25 = vmul.f32 %v758_v15, %v4639_v13 }
 0x35a   :  { %778 = vrot.lane.b32.xlu0 %v762_v36, %s4466_s22  ;;  %776 = vrot.lane.b32.xlu2 %v761_v14, %s4466_s22  ;;  %v4392_v36 = vld [vmem:[%s8005_s1 + $0x3c] sm:$0xf]  ;;  %v766_v14 = vmul.f32 %v758_v15, %v4656_v29 }
 0x35b   :  { %774 = vrot.lane.b32.xlu1 %v760_v23, %s4466_s22  ;;  %v4938_v23 = vpop.permute.xlu2 %667 }
 0x35c   :  { %8380 = vst [vmem:[#allocation73_spill] sm:$0xff] %v4938_v23 }
 0x362   :  { %784 = vrot.lane.b32.xlu0 %v765_v53, %s4466_s22  ;;  %782 = vrot.lane.b32.xlu2 %v764_v61, %s4466_s22 }
 0x363   :  { %780 = vrot.lane.b32.xlu1 %v763_v25, %s4466_s22  ;;  %v4940_v33 = vpop.permute.xlu2 %673 }
 0x364   :  { %8381 = vst [vmem:[#allocation74_spill] sm:$0xff] %v4940_v33  ;;  %v4983_v33 = vld [vmem:[#allocation2 + $0x4] sm:$0xff] }
 0x36a   :  { %812 = vperm.xlu2 %4462, %v4392_v36  }
 0x36b   :  { %786 = vrot.lane.b32.xlu1 %v766_v14, %s4466_s22  ;;  %v4942_v9 = vpop.permute.xlu2 %719 }
 0x36c   :  { %8382 = vst [vmem:[#allocation75_spill] sm:$0xff] %v4942_v9 }
 0x373   :  { %v4944_v53 = vpop.permute.xlu2 %725 }
 0x374   :  { %8383 = vst [vmem:[#allocation76_spill] sm:$0xff] %v4944_v53 }
 0x37b   :  { %v4946_v61 = vpop.permute.xlu2 %731 }
 0x37c   :  { %8384 = vst [vmem:[#allocation77_spill] sm:$0xff] %v4946_v61 }
 0x3b4   :  { %v4948_v25 = vpop.permute.xlu2 %776 }
 0x3b5   :  { %8385 = vst [vmem:[#allocation78_spill] sm:$0xff] %v4948_v25 }
 0x3bc   :  { %v4950_v6 = vpop.permute.xlu2 %782 }
 0x3bd   :  { %8386 = vst [vmem:[#allocation79_spill] sm:$0xff] %v4950_v6 }
 0x3c4   :  { %v813_v7 = vpop.permute.xlu2 %812 }
 0x3c5   :  { %v817_v15 = vmul.f32 %v813_v7, %v4669_v48  ;;  %v815_v36 = vmul.f32 %v813_v7, %v4658_v35  ;;  %v816_v14 = vmul.f32 %v813_v7, %v4671_v49  ;;  %v820_v9 = vmul.f32 %v813_v7, %v4684_v58 }
 0x3c6   :  { %v818_v61 = vmul.f32 %v813_v7, %v4673_v50  ;;  %v819_v25 = vmul.f32 %v813_v7, %v4686_v59  ;;  %v821_v6 = vmul.f32 %v813_v7, %v4688_v60  ;;  %v4981_v7 = vld [vmem:[#allocation2 + $0xc] sm:$0xff] }
 0x3c7   :  { %833 = vrot.lane.b32.xlu2 %v817_v15, %s4466_s22  ;;  %829 = vrot.lane.b32.xlu0 %v815_v36, %s4466_s22  ;;  %v4393_v15 = vld [vmem:[%s8005_s1 + $0x40] sm:$0xf]  ;;  %v4969_v36 = vpop.permute.xlu1 %723  ;;  %v948_v43 = vperm.slane %v4981_v7, 5  ;;  %v1016_v18 = vperm.slane %v4981_v7, 6  ;;  %v1084_v50 = vperm.slane %v4981_v7, 7 }
 0x3c8   :  { %831 = vrot.lane.b32.xlu1 %v816_v14, %s4466_s22  ;;  %8387 = vst [vmem:[#allocation80_spill] sm:$0xff] %v4969_v36 }
 0x3cf   :  { %839 = vrot.lane.b32.xlu2 %v820_v9, %s4466_s22  ;;  %835 = vrot.lane.b32.xlu0 %v818_v61, %s4466_s22  ;;  %v4971_v14 = vpop.permute.xlu1 %729 }
 0x3d0   :  { %837 = vrot.lane.b32.xlu1 %v819_v25, %s4466_s22  ;;  %8388 = vst [vmem:[#allocation81_spill] sm:$0xff] %v4971_v14  ;;  %v876_v14 = vperm.slane %v4983_v33, 0 }
 0x3d7   :  { %841 = vrot.lane.b32.xlu0 %v821_v6, %s4466_s22  ;;  %v4973_v53 = vpop.permute.xlu1 %774  ;;  %v878_v6 = vperm.slane %v4981_v7, 0 }
 0x3d8   :  { %870 = vperm.xlu1 %4461, %v4393_v15   ;;  %8389 = vst [vmem:[#allocation82_spill] sm:$0xff] %v4973_v53  ;;  %v877_v15 = vperm.slane %v4983_v33, 4 }
 0x3d9   :  { %v4990_v36 = vperm.slane %v878_v6, 0  ;;  %v879_v6 = vperm.slane %v4981_v7, 4 }
 0x3da   :  { %v4992_v53 = vperm.slane %v877_v15, 0 }
 0x3db   :  { %v5011_v63 = vperm.slane %v879_v6, 0 }
 0x3df   :  { %v4975_v9 = vpop.permute.xlu1 %780 }
 0x3e0   :  { %8390 = vst [vmem:[#allocation83_spill] sm:$0xff] %v4975_v9  ;;  %v4994_v9 = vperm.slane %v876_v14, 0 }
 0x3e7   :  { %v4977_v61 = vpop.permute.xlu1 %786 }
 0x3e8   :  { %8391 = vst [vmem:[#allocation84_spill] sm:$0xff] %v4977_v61  ;;  %v4996_v61 = vld [vmem:[#allocation2 + $0x14] sm:$0xff] }
 0x3e9   :  { %v881_v34 = vperm.slane %v4996_v61, 4  ;;  %v880_v27 = vperm.slane %v4996_v61, 0  ;;  %v949_v0 = vperm.slane %v4996_v61, 1  ;;  %v1017_v39 = vperm.slane %v4996_v61, 2 }
 0x3ea   :  { %v1085_v59 = vperm.slane %v4996_v61, 3 }
 0x3eb   :  { %v5007_v14 = vperm.slane %v881_v34, 0  ;;  %v5009_v15 = vperm.slane %v880_v27, 0 }
 0x43a   :  { %v4979_v25 = vpop.permute.xlu1 %831 }
 0x43b   :  { %8392 = vst [vmem:[#allocation85_spill] sm:$0xff] %v4979_v25 }
 0x442   :  { %v4985_v23 = vpop.permute.xlu1 %837 }
 0x443   :  { %8393 = vst [vmem:[#allocation86_spill] sm:$0xff] %v4985_v23 }
 0x44a   :  { %v871_v25 = vpop.permute.xlu1 %870 }
 0x44b   :  { %v896_v54 = vmul.f32 %v4990_v36, %v871_v25  ;;  %v895_v23 = vmul.f32 %v4992_v53, %v871_v25  ;;  %v894_v52 = vmul.f32 %v4994_v9, %v871_v25  ;;  %v899_v26 = vmul.f32 %v5007_v14, %v871_v25 }
 0x44c   :  { %v898_v51 = vmul.f32 %v5009_v15, %v871_v25  ;;  %v897_v44 = vmul.f32 %v5011_v63, %v871_v25  ;;  %v947_v25 = vperm.slane %v4981_v7, 1 }
 0x44d   :  { %910 = vrot.lane.b32.xlu1 %v896_v54, %s4467_s5  ;;  %908 = vrot.lane.b32.xlu0 %v895_v23, %s4467_s5  ;;  %v5022_v54 = vpop.permute.xlu2 %833 }
 0x44e   :  { %906 = vrot.lane.b32.xlu2 %v894_v52, %s4467_s5  ;;  %v4394_v52 = vld [vmem:[%s8005_s1 + $0x44] sm:$0xf]  ;;  %8394 = vst [vmem:[#allocation87_spill] sm:$0xff] %v5022_v54  ;;  %v950_v54 = vperm.slane %v4996_v61, 5 }
 0x455   :  { %916 = vrot.lane.b32.xlu1 %v899_v26, %s4467_s5  ;;  %914 = vrot.lane.b32.xlu0 %v898_v51, %s4467_s5  ;;  %v5024_v27 = vpop.permute.xlu2 %839  ;;  %v946_v26 = vperm.slane %v4983_v33, 5  ;;  %v945_v51 = vperm.slane %v4983_v33, 1 }
 0x456   :  { %912 = vrot.lane.b32.xlu2 %v897_v44, %s4467_s5  ;;  %8395 = vst [vmem:[#allocation88_spill] sm:$0xff] %v5024_v27  ;;  %v5033_v44 = vperm.slane %v947_v25, 1  ;;  %v5048_v25 = vperm.slane %v950_v54, 1  ;;  %v4395_v54 = vld [vmem:[%s8005_s1 + $0x48] sm:$0xf] }
 0x457   :  { %v5035_v6 = vperm.slane %v946_v26, 1  ;;  %v5037_v10 = vperm.slane %v945_v51, 1  ;;  %v5050_v26 = vperm.slane %v949_v0, 1  ;;  %v5052_v51 = vperm.slane %v948_v43, 1  ;;  %v5063_v0 = vpop.permute.xlu0 %778 }
 0x458   :  { %8398 = vst [vmem:[#allocation91_spill] sm:$0xff] %v5063_v0  ;;  %v1014_v0 = vperm.slane %v4983_v33, 6 }
 0x45e   :  { %942 = vperm.xlu2 %4462, %v4394_v52  }
 0x45f   :  { %v5065_v43 = vpop.permute.xlu0 %784 }
 0x460   :  { %8399 = vst [vmem:[#allocation92_spill] sm:$0xff] %v5065_v43  ;;  %v1013_v43 = vperm.slane %v4983_v33, 2 }
 0x4a8   :  { %v5026_v34 = vpop.permute.xlu2 %906 }
 0x4a9   :  { %8396 = vst [vmem:[#allocation89_spill] sm:$0xff] %v5026_v34 }
 0x4b0   :  { %v5028_v23 = vpop.permute.xlu2 %912 }
 0x4b1   :  { %8397 = vst [vmem:[#allocation90_spill] sm:$0xff] %v5028_v23 }
 0x4b8   :  { %v943_v52 = vpop.permute.xlu2 %942 }
 0x4b9   :  { %v965_v27 = vmul.f32 %v5033_v44, %v943_v52  ;;  %v964_v34 = vmul.f32 %v5035_v6, %v943_v52  ;;  %v963_v23 = vmul.f32 %v5037_v10, %v943_v52  ;;  %v968_v5 = vmul.f32 %v5048_v25, %v943_v52 }
 0x4ba   :  { %v967_v42 = vmul.f32 %v5050_v26, %v943_v52  ;;  %v966_v24 = vmul.f32 %v5052_v51, %v943_v52 }
 0x4bb   :  { %979 = vrot.lane.b32.xlu2 %v965_v27, %s4467_s5  ;;  %977 = vrot.lane.b32.xlu1 %v964_v34, %s4467_s5  ;;  %v5067_v27 = vpop.permute.xlu0 %829 }
 0x4bc   :  { %975 = vrot.lane.b32.xlu0 %v963_v23, %s4467_s5  ;;  %8400 = vst [vmem:[#allocation93_spill] sm:$0xff] %v5067_v27  ;;  %v5086_v27 = vperm.slane %v1014_v0, 2 }
 0x4c3   :  { %985 = vrot.lane.b32.xlu2 %v968_v5, %s4467_s5  ;;  %983 = vrot.lane.b32.xlu1 %v967_v42, %s4467_s5  ;;  %v5069_v34 = vpop.permute.xlu0 %835 }
 0x4c4   :  { %981 = vrot.lane.b32.xlu0 %v966_v24, %s4467_s5  ;;  %8401 = vst [vmem:[#allocation94_spill] sm:$0xff] %v5069_v34  ;;  %v5088_v34 = vperm.slane %v1013_v43, 2  ;;  %v5101_v43 = vperm.slane %v1017_v39, 2  ;;  %v5114_v39 = vpop.permute.xlu1 %910 }
 0x4c5   :  { %8407 = vst [vmem:[#allocation100_spill] sm:$0xff] %v5114_v39 }
 0x4cb   :  { %v5071_v23 = vpop.permute.xlu0 %841 }
 0x4cc   :  { %1010 = vperm.xlu0 %4460, %v4395_v54   ;;  %8402 = vst [vmem:[#allocation95_spill] sm:$0xff] %v5071_v23  ;;  %v1015_v54 = vperm.slane %v4981_v7, 2 }
 0x4ce   :  { %v5084_v19 = vperm.slane %v1015_v54, 2  ;;  %v5103_v54 = vperm.slane %v1016_v18, 2  ;;  %v5116_v18 = vpop.permute.xlu1 %916 }
 0x4cf   :  { %8408 = vst [vmem:[#allocation101_spill] sm:$0xff] %v5116_v18 }
 0x4d3   :  { %v5073_v5 = vpop.permute.xlu0 %908 }
 0x4d4   :  { %8403 = vst [vmem:[#allocation96_spill] sm:$0xff] %v5073_v5  ;;  %v1018_v5 = vperm.slane %v4996_v61, 6 }
 0x4d6   :  { %v5099_v0 = vperm.slane %v1018_v5, 2  ;;  %v4396_v5 = vld [vmem:[%s8005_s1 + $0x4c] sm:$0xf] }
 0x4db   :  { %v5075_v42 = vpop.permute.xlu0 %914 }
 0x4dc   :  { %8404 = vst [vmem:[#allocation97_spill] sm:$0xff] %v5075_v42 }
 0x52e   :  { %v5077_v24 = vpop.permute.xlu0 %975 }
 0x52f   :  { %8405 = vst [vmem:[#allocation98_spill] sm:$0xff] %v5077_v24 }
 0x536   :  { %v5079_v52 = vpop.permute.xlu0 %981 }
 0x537   :  { %8406 = vst [vmem:[#allocation99_spill] sm:$0xff] %v5079_v52 }
 0x53e   :  { %v1011_v23 = vpop.permute.xlu0 %1010 }
 0x53f   :  { %v1033_v42 = vmul.f32 %v5084_v19, %v1011_v23  ;;  %v1032_v24 = vmul.f32 %v5086_v27, %v1011_v23  ;;  %v1031_v52 = vmul.f32 %v5088_v34, %v1011_v23  ;;  %v1036_v8 = vmul.f32 %v5099_v0, %v1011_v23 }
 0x540   :  { %v1035_v62 = vmul.f32 %v5101_v43, %v1011_v23  ;;  %v1034_v37 = vmul.f32 %v5103_v54, %v1011_v23 }
 0x541   :  { %1047 = vrot.lane.b32.xlu0 %v1033_v42, %s4467_s5  ;;  %1045 = vrot.lane.b32.xlu2 %v1032_v24, %s4467_s5  ;;  %v5118_v42 = vpop.permute.xlu1 %977 }
 0x542   :  { %1043 = vrot.lane.b32.xlu1 %v1031_v52, %s4467_s5  ;;  %8409 = vst [vmem:[#allocation102_spill] sm:$0xff] %v5118_v42  ;;  %v1081_v52 = vperm.slane %v4983_v33, 3  ;;  %v1086_v42 = vperm.slane %v4996_v61, 7 }
 0x544   :  { %v5133_v39 = vperm.slane %v1081_v52, 3 }
 0x549   :  { %1053 = vrot.lane.b32.xlu0 %v1036_v8, %s4467_s5  ;;  %1051 = vrot.lane.b32.xlu2 %v1035_v62, %s4467_s5  ;;  %v5120_v24 = vpop.permute.xlu1 %983  ;;  %v1083_v62 = vperm.slane %v4981_v7, 3  ;;  %v4397_v7 = vld [vmem:[%s8005_s1 + $0x50] sm:$0xf] }
 0x54a   :  { %1049 = vrot.lane.b32.xlu1 %v1034_v37, %s4467_s5  ;;  %8410 = vst [vmem:[#allocation103_spill] sm:$0xff] %v5120_v24  ;;  %v1082_v37 = vperm.slane %v4983_v33, 7  ;;  %v5144_v33 = vperm.slane %v1086_v42, 3 }
 0x54b   :  { %v5129_v11 = vperm.slane %v1083_v62, 3  ;;  %v5146_v62 = vperm.slane %v1085_v59, 3  ;;  %v5159_v59 = vpop.permute.xlu2 %979 }
 0x54c   :  { %8413 = vst [vmem:[#allocation106_spill] sm:$0xff] %v5159_v59 }
 0x552   :  { %1078 = vperm.xlu1 %4461, %v4396_v5   ;;  %v5131_v5 = vperm.slane %v1082_v37, 3  ;;  %v5148_v37 = vperm.slane %v1084_v50, 3 }
 0x553   :  { %v5161_v50 = vpop.permute.xlu2 %985 }
 0x554   :  { %8414 = vst [vmem:[#allocation107_spill] sm:$0xff] %v5161_v50 }
 0x59b   :  { %v5163_v42 = vpop.permute.xlu2 %1045 }
 0x59c   :  { %8415 = vst [vmem:[#allocation108_spill] sm:$0xff] %v5163_v42 }
 0x5b4   :  { %v5122_v23 = vpop.permute.xlu1 %1043 }
 0x5b5   :  { %8411 = vst [vmem:[#allocation104_spill] sm:$0xff] %v5122_v23 }
 0x5bc   :  { %v5124_v8 = vpop.permute.xlu1 %1049 }
 0x5bd   :  { %8412 = vst [vmem:[#allocation105_spill] sm:$0xff] %v5124_v8 }
 0x5c4   :  { %v1079_v18 = vpop.permute.xlu1 %1078 }
 0x5c5   :  { %v1101_v24 = vmul.f32 %v5129_v11, %v1079_v18  ;;  %v1100_v23 = vmul.f32 %v5131_v5, %v1079_v18  ;;  %v1099_v8 = vmul.f32 %v5133_v39, %v1079_v18  ;;  %v1104_v52 = vmul.f32 %v5144_v33, %v1079_v18 }
 0x5c6   :  { %v1103_v58 = vmul.f32 %v5146_v62, %v1079_v18  ;;  %v1102_v61 = vmul.f32 %v5148_v37, %v1079_v18 }
 0x5c7   :  { %1115 = vrot.lane.b32.xlu1 %v1101_v24, %s4467_s5  ;;  %1113 = vrot.lane.b32.xlu0 %v1100_v23, %s4467_s5  ;;  %v5165_v24 = vpop.permute.xlu2 %1051 }
 0x5c8   :  { %1111 = vrot.lane.b32.xlu2 %v1099_v8, %s4467_s5  ;;  %8416 = vst [vmem:[#allocation109_spill] sm:$0xff] %v5165_v24 }
 0x5cf   :  { %1121 = vrot.lane.b32.xlu1 %v1104_v52, %s4467_s5  ;;  %1119 = vrot.lane.b32.xlu0 %v1103_v58, %s4467_s5 }
 0x5d0   :  { %1117 = vrot.lane.b32.xlu2 %v1102_v61, %s4467_s5 }
 0x5d8   :  { %1150 = vperm.xlu2 %4462, %v4397_v7   ;;  %v5177_v7 = vld [vmem:[#allocation2 + $0x1c] sm:$0xf] }
 0x5d9   :  { %v1163_v42 = vperm.slane %v5177_v7, 0 }
 0x622   :  { %v5167_v18 = vpop.permute.xlu2 %1111 }
 0x623   :  { %8417 = vst [vmem:[#allocation110_spill] sm:$0xff] %v5167_v18 }
 0x62a   :  { %v5169_v23 = vpop.permute.xlu2 %1117 }
 0x62b   :  { %8418 = vst [vmem:[#allocation111_spill] sm:$0xff] %v5169_v23 }
 0x632   :  { %v1151_v58 = vpop.permute.xlu2 %1150 }
 0x633   :  { %v1180_v8 = vmul.f32 %v1151_v58, %v4990_v36  ;;  %v1179_v52 = vmul.f32 %v1151_v58, %v4992_v53  ;;  %v1178_v61 = vmul.f32 %v1151_v58, %v4994_v9  ;;  %v1183_v18 = vmul.f32 %v1151_v58, %v5007_v14 }
 0x634   :  { %v1182_v23 = vmul.f32 %v1151_v58, %v5009_v15  ;;  %v1181_v24 = vmul.f32 %v1151_v58, %v5011_v63 }
 0x635   :  { %1196 = vrot.lane.b32.xlu2 %v1180_v8, %s4468_s14  ;;  %1194 = vrot.lane.b32.xlu1 %v1179_v52, %s4468_s14  ;;  %v5186_v8 = vperm.slane %v1163_v42, 0  ;;  %v4398_v52 = vld [vmem:[%s8005_s1 + $0x54] sm:$0xf] }
 0x636   :  { %1192 = vrot.lane.b32.xlu0 %v1178_v61, %s4468_s14 }
 0x637   :  { %v1184_v61 = vmul.f32 %v5186_v8, %v1151_v58 }
 0x639   :  { %v5193_v50 = vpop.permute.xlu1 %1115 }
 0x63a   :  { %8419 = vst [vmem:[#allocation112_spill] sm:$0xff] %v5193_v50 }
 0x63d   :  { %1202 = vrot.lane.b32.xlu2 %v1183_v18, %s4468_s14  ;;  %1200 = vrot.lane.b32.xlu1 %v1182_v23, %s4468_s14 }
 0x63e   :  { %1198 = vrot.lane.b32.xlu0 %v1181_v24, %s4468_s14 }
 0x641   :  { %v5195_v59 = vpop.permute.xlu1 %1121 }
 0x642   :  { %8420 = vst [vmem:[#allocation113_spill] sm:$0xff] %v5195_v59 }
 0x645   :  { %1231 = vperm.xlu1 %4461, %v4398_v52  }
 0x646   :  { %1204 = vrot.lane.b32.xlu0 %v1184_v61, %s4468_s14  ;;  %v1240_v61 = vperm.slane %v5177_v7, 1 }
 0x6a7   :  { %v5197_v18 = vpop.permute.xlu1 %1194 }
 0x6a8   :  { %8421 = vst [vmem:[#allocation114_spill] sm:$0xff] %v5197_v18  ;;  %v5214_v18 = vperm.slane %v1240_v61, 1 }
 0x6af   :  { %v5199_v23 = vpop.permute.xlu1 %1200 }
 0x6b0   :  { %8422 = vst [vmem:[#allocation115_spill] sm:$0xff] %v5199_v23 }
 0x6b7   :  { %v1232_v24 = vpop.permute.xlu1 %1231 }
 0x6b8   :  { %v1257_v42 = vmul.f32 %v1232_v24, %v5033_v44  ;;  %v1255_v49 = vmul.f32 %v1232_v24, %v5037_v10  ;;  %v1256_v35 = vmul.f32 %v1232_v24, %v5035_v6  ;;  %v1260_v58 = vmul.f32 %v1232_v24, %v5048_v25 }
 0x6b9   :  { %v1258_v52 = vmul.f32 %v1232_v24, %v5052_v51  ;;  %v1259_v23 = vmul.f32 %v1232_v24, %v5050_v26 }
 0x6ba   :  { %1273 = vrot.lane.b32.xlu1 %v1257_v42, %s4468_s14  ;;  %1269 = vrot.lane.b32.xlu2 %v1255_v49, %s4468_s14  ;;  %v1261_v49 = vmul.f32 %v5214_v18, %v1232_v24  ;;  %v5221_v42 = vpop.permute.xlu0 %1047 }
 0x6bb   :  { %1271 = vrot.lane.b32.xlu0 %v1256_v35, %s4468_s14  ;;  %v4399_v35 = vld [vmem:[%s8005_s1 + $0x58] sm:$0xf]  ;;  %8423 = vst [vmem:[#allocation116_spill] sm:$0xff] %v5221_v42 }
 0x6c2   :  { %1279 = vrot.lane.b32.xlu1 %v1260_v58, %s4468_s14  ;;  %1275 = vrot.lane.b32.xlu2 %v1258_v52, %s4468_s14  ;;  %v5223_v59 = vpop.permute.xlu0 %1053 }
 0x6c3   :  { %1277 = vrot.lane.b32.xlu0 %v1259_v23, %s4468_s14  ;;  %8424 = vst [vmem:[#allocation117_spill] sm:$0xff] %v5223_v59 }
 0x6ca   :  { %1281 = vrot.lane.b32.xlu2 %v1261_v49, %s4468_s14  ;;  %v5225_v58 = vpop.permute.xlu0 %1113 }
 0x6cb   :  { %1307 = vperm.xlu0 %4460, %v4399_v35   ;;  %8425 = vst [vmem:[#allocation118_spill] sm:$0xff] %v5225_v58 }
 0x6d2   :  { %v5227_v52 = vpop.permute.xlu0 %1119 }
 0x6d3   :  { %8426 = vst [vmem:[#allocation119_spill] sm:$0xff] %v5227_v52 }
 0x6da   :  { %v5229_v23 = vpop.permute.xlu0 %1192 }
 0x6db   :  { %8427 = vst [vmem:[#allocation120_spill] sm:$0xff] %v5229_v23 }
 0x6e2   :  { %v5231_v61 = vpop.permute.xlu0 %1198 }
 0x6e3   :  { %8428 = vst [vmem:[#allocation121_spill] sm:$0xff] %v5231_v61 }
 0x6ea   :  { %v5233_v24 = vpop.permute.xlu0 %1204 }
 0x6eb   :  { %8429 = vst [vmem:[#allocation122_spill] sm:$0xff] %v5233_v24 }
 0x72d   :  { %v5235_v50 = vpop.permute.xlu0 %1271 }
 0x72e   :  { %8430 = vst [vmem:[#allocation123_spill] sm:$0xff] %v5235_v50 }
 0x735   :  { %v5237_v48 = vpop.permute.xlu0 %1277 }
 0x736   :  { %8431 = vst [vmem:[#allocation124_spill] sm:$0xff] %v5237_v48  ;;  %v1316_v48 = vperm.slane %v5177_v7, 2 }
 0x738   :  { %v5252_v23 = vperm.slane %v1316_v48, 2 }
 0x73d   :  { %v1308_v49 = vpop.permute.xlu0 %1307 }
 0x73e   :  { %v1333_v35 = vmul.f32 %v1308_v49, %v5084_v19  ;;  %v1332_v42 = vmul.f32 %v1308_v49, %v5086_v27  ;;  %v1331_v59 = vmul.f32 %v1308_v49, %v5088_v34  ;;  %v1336_v61 = vmul.f32 %v1308_v49, %v5099_v0 }
 0x73f   :  { %v1335_v24 = vmul.f32 %v1308_v49, %v5101_v43  ;;  %v1334_v50 = vmul.f32 %v1308_v49, %v5103_v54 }
 0x740   :  { %1349 = vrot.lane.b32.xlu0 %v1333_v35, %s4468_s14  ;;  %1347 = vrot.lane.b32.xlu2 %v1332_v42, %s4468_s14  ;;  %v1337_v42 = vmul.f32 %v5252_v23, %v1308_v49  ;;  %v5259_v35 = vpop.permute.xlu2 %1196 }
 0x741   :  { %1345 = vrot.lane.b32.xlu1 %v1331_v59, %s4468_s14  ;;  %v4400_v59 = vld [vmem:[%s8005_s1 + $0x5c] sm:$0xf]  ;;  %8432 = vst [vmem:[#allocation125_spill] sm:$0xff] %v5259_v35 }
 0x748   :  { %1355 = vrot.lane.b32.xlu0 %v1336_v61, %s4468_s14  ;;  %1353 = vrot.lane.b32.xlu2 %v1335_v24, %s4468_s14  ;;  %v5261_v52 = vpop.permute.xlu2 %1202 }
 0x749   :  { %1351 = vrot.lane.b32.xlu1 %v1334_v50, %s4468_s14  ;;  %8433 = vst [vmem:[#allocation126_spill] sm:$0xff] %v5261_v52 }
 0x750   :  { %1383 = vperm.xlu2 %4462, %v4400_v59   ;;  %v5263_v61 = vpop.permute.xlu2 %1269 }
 0x751   :  { %1357 = vrot.lane.b32.xlu1 %v1337_v42, %s4468_s14  ;;  %8434 = vst [vmem:[#allocation127_spill] sm:$0xff] %v5263_v61 }
 0x758   :  { %v5265_v24 = vpop.permute.xlu2 %1275 }
 0x759   :  { %8435 = vst [vmem:[#allocation128_spill] sm:$0xff] %v5265_v24 }
 0x760   :  { %v5267_v50 = vpop.permute.xlu2 %1281 }
 0x761   :  { %8436 = vst [vmem:[#allocation129_spill] sm:$0xff] %v5267_v50 }
 0x79a   :  { %v5269_v48 = vpop.permute.xlu2 %1347 }
 0x79b   :  { %8437 = vst [vmem:[#allocation130_spill] sm:$0xff] %v5269_v48  ;;  %v1392_v48 = vperm.slane %v5177_v7, 3  ;;  %v5293_v7 = vpop.permute.xlu1 %1273 }
 0x79c   :  { %8439 = vst [vmem:[#allocation132_spill] sm:$0xff] %v5293_v7 }
 0x79d   :  { %v5286_v24 = vperm.slane %v1392_v48, 3 }
 0x7a2   :  { %v5271_v58 = vpop.permute.xlu2 %1353 }
 0x7a3   :  { %8438 = vst [vmem:[#allocation131_spill] sm:$0xff] %v5271_v58 }
 0x7aa   :  { %v1384_v60 = vpop.permute.xlu2 %1383 }
 0x7ab   :  { %v1409_v49 = vmul.f32 %v1384_v60, %v5129_v11  ;;  %v1407_v59 = vmul.f32 %v1384_v60, %v5133_v39  ;;  %v1408_v42 = vmul.f32 %v1384_v60, %v5131_v5  ;;  %v1412_v61 = vmul.f32 %v1384_v60, %v5144_v33 }
 0x7ac   :  { %v1410_v50 = vmul.f32 %v1384_v60, %v5148_v37  ;;  %v1411_v58 = vmul.f32 %v1384_v60, %v5146_v62 }
 0x7ad   :  { %1425 = vrot.lane.b32.xlu2 %v1409_v49, %s4468_s14  ;;  %1421 = vrot.lane.b32.xlu0 %v1407_v59, %s4468_s14  ;;  %v1413_v49 = vmul.f32 %v5286_v24, %v1384_v60  ;;  %v4401_v59 = vld [vmem:[%s8005_s1 + $0x60] sm:$0xf] }
 0x7ae   :  { %1423 = vrot.lane.b32.xlu1 %v1408_v42, %s4468_s14  ;;  %v5295_v42 = vpop.permute.xlu1 %1279 }
 0x7af   :  { %8440 = vst [vmem:[#allocation133_spill] sm:$0xff] %v5295_v42 }
 0x7b5   :  { %1431 = vrot.lane.b32.xlu2 %v1412_v61, %s4468_s14  ;;  %1427 = vrot.lane.b32.xlu0 %v1410_v50, %s4468_s14 }
 0x7b6   :  { %1429 = vrot.lane.b32.xlu1 %v1411_v58, %s4468_s14  ;;  %v5297_v61 = vpop.permute.xlu1 %1345 }
 0x7b7   :  { %8441 = vst [vmem:[#allocation134_spill] sm:$0xff] %v5297_v61 }
 0x7bd   :  { %1433 = vrot.lane.b32.xlu0 %v1413_v49, %s4468_s14 }
 0x7be   :  { %1459 = vperm.xlu1 %4461, %v4401_v59   ;;  %v5299_v50 = vpop.permute.xlu1 %1351 }
 0x7bf   :  { %8442 = vst [vmem:[#allocation135_spill] sm:$0xff] %v5299_v50 }
 0x7c6   :  { %v5301_v58 = vpop.permute.xlu1 %1357 }
 0x7c7   :  { %8443 = vst [vmem:[#allocation136_spill] sm:$0xff] %v5301_v58 }
 0x820   :  { %v5303_v48 = vpop.permute.xlu1 %1423 }
 0x821   :  { %8444 = vst [vmem:[#allocation137_spill] sm:$0xff] %v5303_v48 }
 0x828   :  { %v5305_v60 = vpop.permute.xlu1 %1429 }
 0x829   :  { %8445 = vst [vmem:[#allocation138_spill] sm:$0xff] %v5305_v60 }
 0x830   :  { %v1460_v52 = vpop.permute.xlu1 %1459 }
 0x831   :  { %v1464_v35 = vmul.f32 %v1460_v52, %v4990_v36  ;;  %v1463_v49 = vmul.f32 %v1460_v52, %v4992_v53  ;;  %v1462_v59 = vmul.f32 %v1460_v52, %v4994_v9  ;;  %v1467_v58 = vmul.f32 %v1460_v52, %v5007_v14 }
 0x832   :  { %v1466_v48 = vmul.f32 %v1460_v52, %v5009_v15  ;;  %v1465_v60 = vmul.f32 %v1460_v52, %v5011_v63 }
 0x833   :  { %1480 = vrot.lane.b32.xlu1 %v1464_v35, %s4469_s25  ;;  %1478 = vrot.lane.b32.xlu0 %v1463_v49, %s4469_s25  ;;  %v4402_v35 = vld [vmem:[%s8005_s1 + $0x64] sm:$0xf]  ;;  %v1468_v49 = vmul.f32 %v1460_v52, %v5186_v8 }
 0x834   :  { %1476 = vrot.lane.b32.xlu2 %v1462_v59, %s4469_s25  ;;  %v5324_v59 = vpop.permute.xlu0 %1349 }
 0x835   :  { %8446 = vst [vmem:[#allocation139_spill] sm:$0xff] %v5324_v59 }
 0x83b   :  { %1486 = vrot.lane.b32.xlu1 %v1467_v58, %s4469_s25  ;;  %1484 = vrot.lane.b32.xlu0 %v1466_v48, %s4469_s25 }
 0x83c   :  { %1482 = vrot.lane.b32.xlu2 %v1465_v60, %s4469_s25  ;;  %v5326_v50 = vpop.permute.xlu0 %1355 }
 0x83d   :  { %8447 = vst [vmem:[#allocation140_spill] sm:$0xff] %v5326_v50 }
 0x843   :  { %1515 = vperm.xlu0 %4460, %v4402_v35  }
 0x844   :  { %1488 = vrot.lane.b32.xlu2 %v1468_v49, %s4469_s25  ;;  %v5328_v61 = vpop.permute.xlu0 %1421 }
 0x845   :  { %8448 = vst [vmem:[#allocation141_spill] sm:$0xff] %v5328_v61 }
 0x84c   :  { %v5330_v58 = vpop.permute.xlu0 %1427 }
 0x84d   :  { %8449 = vst [vmem:[#allocation142_spill] sm:$0xff] %v5330_v58 }
 0x854   :  { %v5332_v48 = vpop.permute.xlu0 %1433 }
 0x855   :  { %8450 = vst [vmem:[#allocation143_spill] sm:$0xff] %v5332_v48 }
 0x8a5   :  { %v5334_v60 = vpop.permute.xlu0 %1478 }
 0x8a6   :  { %8451 = vst [vmem:[#allocation144_spill] sm:$0xff] %v5334_v60 }
 0x8ad   :  { %v5336_v42 = vpop.permute.xlu0 %1484 }
 0x8ae   :  { %8452 = vst [vmem:[#allocation145_spill] sm:$0xff] %v5336_v42 }
 0x8b5   :  { %v1516_v7 = vpop.permute.xlu0 %1515 }
 0x8b6   :  { %v1520_v52 = vmul.f32 %v1516_v7, %v5033_v44  ;;  %v1518_v35 = vmul.f32 %v1516_v7, %v5037_v10  ;;  %v1519_v49 = vmul.f32 %v1516_v7, %v5035_v6  ;;  %v1523_v58 = vmul.f32 %v1516_v7, %v5048_v25 }
 0x8b7   :  { %v1521_v48 = vmul.f32 %v1516_v7, %v5052_v51  ;;  %v1522_v60 = vmul.f32 %v1516_v7, %v5050_v26  ;;  %v1524_v42 = vmul.f32 %v1516_v7, %v5214_v18 }
 0x8b8   :  { %1536 = vrot.lane.b32.xlu0 %v1520_v52, %s4469_s25  ;;  %1532 = vrot.lane.b32.xlu1 %v1518_v35, %s4469_s25  ;;  %v4403_v52 = vld [vmem:[%s8005_s1 + $0x68] sm:$0xf]  ;;  %v5355_v35 = vpop.permute.xlu2 %1425 }
 0x8b9   :  { %1534 = vrot.lane.b32.xlu2 %v1519_v49, %s4469_s25  ;;  %8453 = vst [vmem:[#allocation146_spill] sm:$0xff] %v5355_v35 }
 0x8c0   :  { %1542 = vrot.lane.b32.xlu0 %v1523_v58, %s4469_s25  ;;  %1538 = vrot.lane.b32.xlu1 %v1521_v48, %s4469_s25  ;;  %v5357_v49 = vpop.permute.xlu2 %1431 }
 0x8c1   :  { %1540 = vrot.lane.b32.xlu2 %v1522_v60, %s4469_s25  ;;  %8454 = vst [vmem:[#allocation147_spill] sm:$0xff] %v5357_v49 }
 0x8c8   :  { %1544 = vrot.lane.b32.xlu1 %v1524_v42, %s4469_s25  ;;  %v5359_v61 = vpop.permute.xlu2 %1476 }
 0x8c9   :  { %1570 = vperm.xlu2 %4462, %v4403_v52   ;;  %8455 = vst [vmem:[#allocation148_spill] sm:$0xff] %v5359_v61 }
 0x8d0   :  { %v5361_v58 = vpop.permute.xlu2 %1482 }
 0x8d1   :  { %8456 = vst [vmem:[#allocation149_spill] sm:$0xff] %v5361_v58 }
 0x8d8   :  { %v5363_v48 = vpop.permute.xlu2 %1488 }
 0x8d9   :  { %8457 = vst [vmem:[#allocation150_spill] sm:$0xff] %v5363_v48 }
 0x913   :  { %v5365_v60 = vpop.permute.xlu2 %1534 }
 0x914   :  { %8458 = vst [vmem:[#allocation151_spill] sm:$0xff] %v5365_v60 }
 0x91b   :  { %v5367_v7 = vpop.permute.xlu2 %1540 }
 0x91c   :  { %8459 = vst [vmem:[#allocation152_spill] sm:$0xff] %v5367_v7 }
 0x923   :  { %v1571_v50 = vpop.permute.xlu2 %1570 }
 0x924   :  { %v1575_v59 = vmul.f32 %v1571_v50, %v5084_v19  ;;  %v1574_v42 = vmul.f32 %v1571_v50, %v5086_v27  ;;  %v1573_v52 = vmul.f32 %v1571_v50, %v5088_v34  ;;  %v1578_v61 = vmul.f32 %v1571_v50, %v5099_v0 }
 0x925   :  { %v1577_v48 = vmul.f32 %v1571_v50, %v5101_v43  ;;  %v1576_v60 = vmul.f32 %v1571_v50, %v5103_v54 }
 0x926   :  { %1591 = vrot.lane.b32.xlu2 %v1575_v59, %s4469_s25  ;;  %1589 = vrot.lane.b32.xlu1 %v1574_v42, %s4469_s25  ;;  %v4404_v59 = vld [vmem:[%s8005_s1 + $0x6c] sm:$0xf]  ;;  %v1579_v42 = vmul.f32 %v1571_v50, %v5252_v23 }
 0x927   :  { %1587 = vrot.lane.b32.xlu0 %v1573_v52, %s4469_s25  ;;  %v5386_v52 = vpop.permute.xlu1 %1480 }
 0x928   :  { %8460 = vst [vmem:[#allocation153_spill] sm:$0xff] %v5386_v52 }
 0x92e   :  { %1597 = vrot.lane.b32.xlu2 %v1578_v61, %s4469_s25  ;;  %1595 = vrot.lane.b32.xlu1 %v1577_v48, %s4469_s25 }
 0x92f   :  { %1593 = vrot.lane.b32.xlu0 %v1576_v60, %s4469_s25  ;;  %v5388_v7 = vpop.permute.xlu1 %1486 }
 0x930   :  { %8461 = vst [vmem:[#allocation154_spill] sm:$0xff] %v5388_v7 }
 0x936   :  { %1625 = vperm.xlu1 %4461, %v4404_v59  }
 0x937   :  { %1599 = vrot.lane.b32.xlu0 %v1579_v42, %s4469_s25  ;;  %v5390_v58 = vpop.permute.xlu1 %1532 }
 0x938   :  { %8462 = vst [vmem:[#allocation155_spill] sm:$0xff] %v5390_v58 }
 0x93f   :  { %v5392_v61 = vpop.permute.xlu1 %1538 }
 0x940   :  { %8463 = vst [vmem:[#allocation156_spill] sm:$0xff] %v5392_v61 }
 0x947   :  { %v5394_v48 = vpop.permute.xlu1 %1544 }
 0x948   :  { %8464 = vst [vmem:[#allocation157_spill] sm:$0xff] %v5394_v48 }
 0x998   :  { %v5396_v60 = vpop.permute.xlu1 %1589 }
 0x999   :  { %8465 = vst [vmem:[#allocation158_spill] sm:$0xff] %v5396_v60 }
 0x9a0   :  { %v5398_v49 = vpop.permute.xlu1 %1595 }
 0x9a1   :  { %8466 = vst [vmem:[#allocation159_spill] sm:$0xff] %v5398_v49 }
 0x9a8   :  { %v1626_v35 = vpop.permute.xlu1 %1625 }
 0x9a9   :  { %v1630_v50 = vmul.f32 %v1626_v35, %v5129_v11  ;;  %v1628_v59 = vmul.f32 %v1626_v35, %v5133_v39  ;;  %v1629_v42 = vmul.f32 %v1626_v35, %v5131_v5  ;;  %v1633_v61 = vmul.f32 %v1626_v35, %v5144_v33 }
 0x9aa   :  { %v1631_v48 = vmul.f32 %v1626_v35, %v5148_v37  ;;  %v1632_v60 = vmul.f32 %v1626_v35, %v5146_v62  ;;  %v1634_v49 = vmul.f32 %v1626_v35, %v5286_v24 }
 0x9ab   :  { %1646 = vrot.lane.b32.xlu1 %v1630_v50, %s4469_s25  ;;  %1642 = vrot.lane.b32.xlu2 %v1628_v59, %s4469_s25  ;;  %v4405_v50 = vld [vmem:[%s8005_s1 + $0x70] sm:$0xf]  ;;  %v5417_v59 = vpop.permute.xlu0 %1536 }
 0x9ac   :  { %1644 = vrot.lane.b32.xlu0 %v1629_v42, %s4469_s25  ;;  %8467 = vst [vmem:[#allocation160_spill] sm:$0xff] %v5417_v59 }
 0x9b3   :  { %1652 = vrot.lane.b32.xlu1 %v1633_v61, %s4469_s25  ;;  %1648 = vrot.lane.b32.xlu2 %v1631_v48, %s4469_s25  ;;  %v5419_v42 = vpop.permute.xlu0 %1542 }
 0x9b4   :  { %1650 = vrot.lane.b32.xlu0 %v1632_v60, %s4469_s25  ;;  %8468 = vst [vmem:[#allocation161_spill] sm:$0xff] %v5419_v42 }
 0x9bb   :  { %1654 = vrot.lane.b32.xlu2 %v1634_v49, %s4469_s25  ;;  %v5421_v58 = vpop.permute.xlu0 %1587 }
 0x9bc   :  { %1680 = vperm.xlu0 %4460, %v4405_v50   ;;  %8469 = vst [vmem:[#allocation162_spill] sm:$0xff] %v5421_v58 }
 0x9c3   :  { %v5423_v61 = vpop.permute.xlu0 %1593 }
 0x9c4   :  { %8470 = vst [vmem:[#allocation163_spill] sm:$0xff] %v5423_v61 }
 0x9cb   :  { %v5425_v48 = vpop.permute.xlu0 %1599 }
 0x9cc   :  { %8471 = vst [vmem:[#allocation164_spill] sm:$0xff] %v5425_v48 }
 0xa1e   :  { %v5427_v60 = vpop.permute.xlu0 %1644 }
 0xa1f   :  { %8472 = vst [vmem:[#allocation165_spill] sm:$0xff] %v5427_v60 }
 0xa26   :  { %v5429_v35 = vpop.permute.xlu0 %1650 }
 0xa27   :  { %8473 = vst [vmem:[#allocation166_spill] sm:$0xff] %v5429_v35 }
 0xa2e   :  { %v1681_v7 = vpop.permute.xlu0 %1680 }
 0xa2f   :  { %v1685_v52 = vmul.f32 %v1681_v7, %v4990_v36  ;;  %v1684_v49 = vmul.f32 %v1681_v7, %v4992_v53  ;;  %v1683_v50 = vmul.f32 %v1681_v7, %v4994_v9  ;;  %v1688_v48 = vmul.f32 %v1681_v7, %v5007_v14 }
 0xa30   :  { %v1687_v60 = vmul.f32 %v1681_v7, %v5009_v15  ;;  %v1686_v35 = vmul.f32 %v1681_v7, %v5011_v63 }
 0xa31   :  { %1701 = vrot.lane.b32.xlu0 %v1685_v52, %s4470_s9  ;;  %1699 = vrot.lane.b32.xlu2 %v1684_v49, %s4470_s9  ;;  %v4406_v52 = vld [vmem:[%s8005_s1 + $0x74] sm:$0xf]  ;;  %v1689_v49 = vmul.f32 %v1681_v7, %v5186_v8 }
 0xa32   :  { %1697 = vrot.lane.b32.xlu1 %v1683_v50, %s4470_s9  ;;  %v5448_v50 = vpop.permute.xlu2 %1591 }
 0xa33   :  { %8474 = vst [vmem:[#allocation167_spill] sm:$0xff] %v5448_v50 }
 0xa39   :  { %1707 = vrot.lane.b32.xlu0 %v1688_v48, %s4470_s9  ;;  %1705 = vrot.lane.b32.xlu2 %v1687_v60, %s4470_s9 }
 0xa3a   :  { %1703 = vrot.lane.b32.xlu1 %v1686_v35, %s4470_s9  ;;  %v5450_v61 = vpop.permute.xlu2 %1597 }
 0xa3b   :  { %8475 = vst [vmem:[#allocation168_spill] sm:$0xff] %v5450_v61 }
 0xa41   :  { %1736 = vperm.xlu2 %4462, %v4406_v52  }
 0xa42   :  { %1709 = vrot.lane.b32.xlu1 %v1689_v49, %s4470_s9  ;;  %v5452_v58 = vpop.permute.xlu2 %1642 }
 0xa43   :  { %8476 = vst [vmem:[#allocation169_spill] sm:$0xff] %v5452_v58 }
 0xa4a   :  { %v5454_v48 = vpop.permute.xlu2 %1648 }
 0xa4b   :  { %8477 = vst [vmem:[#allocation170_spill] sm:$0xff] %v5454_v48 }
 0xa52   :  { %v5456_v60 = vpop.permute.xlu2 %1654 }
 0xa53   :  { %8478 = vst [vmem:[#allocation171_spill] sm:$0xff] %v5456_v60 }
 0xa8b   :  { %v5458_v35 = vpop.permute.xlu2 %1699 }
 0xa8c   :  { %8479 = vst [vmem:[#allocation172_spill] sm:$0xff] %v5458_v35 }
 0xa93   :  { %v5460_v42 = vpop.permute.xlu2 %1705 }
 0xa94   :  { %8480 = vst [vmem:[#allocation173_spill] sm:$0xff] %v5460_v42 }
 0xa9b   :  { %v1737_v59 = vpop.permute.xlu2 %1736 }
 0xa9c   :  { %v1741_v7 = vmul.f32 %v1737_v59, %v5033_v44  ;;  %v1739_v52 = vmul.f32 %v1737_v59, %v5037_v10  ;;  %v1740_v49 = vmul.f32 %v1737_v59, %v5035_v6  ;;  %v1744_v58 = vmul.f32 %v1737_v59, %v5048_v25 }
 0xa9d   :  { %v1742_v60 = vmul.f32 %v1737_v59, %v5052_v51  ;;  %v1743_v35 = vmul.f32 %v1737_v59, %v5050_v26  ;;  %v1745_v42 = vmul.f32 %v1737_v59, %v5214_v18 }
 0xa9e   :  { %1757 = vrot.lane.b32.xlu2 %v1741_v7, %s4470_s9  ;;  %1753 = vrot.lane.b32.xlu0 %v1739_v52, %s4470_s9  ;;  %v4407_v7 = vld [vmem:[%s8005_s1 + $0x78] sm:$0xf]  ;;  %v5479_v52 = vpop.permute.xlu1 %1646 }
 0xa9f   :  { %1755 = vrot.lane.b32.xlu1 %v1740_v49, %s4470_s9  ;;  %8481 = vst [vmem:[#allocation174_spill] sm:$0xff] %v5479_v52 }
 0xaa6   :  { %1763 = vrot.lane.b32.xlu2 %v1744_v58, %s4470_s9  ;;  %1759 = vrot.lane.b32.xlu0 %v1742_v60, %s4470_s9  ;;  %v5481_v49 = vpop.permute.xlu1 %1652 }
 0xaa7   :  { %1761 = vrot.lane.b32.xlu1 %v1743_v35, %s4470_s9  ;;  %8482 = vst [vmem:[#allocation175_spill] sm:$0xff] %v5481_v49 }
 0xaae   :  { %1765 = vrot.lane.b32.xlu0 %v1745_v42, %s4470_s9  ;;  %v5483_v48 = vpop.permute.xlu1 %1697 }
 0xaaf   :  { %1791 = vperm.xlu1 %4461, %v4407_v7   ;;  %8483 = vst [vmem:[#allocation176_spill] sm:$0xff] %v5483_v48 }
 0xab6   :  { %v5485_v58 = vpop.permute.xlu1 %1703 }
 0xab7   :  { %8484 = vst [vmem:[#allocation177_spill] sm:$0xff] %v5485_v58 }
 0xabe   :  { %v5487_v60 = vpop.permute.xlu1 %1709 }
 0xabf   :  { %8485 = vst [vmem:[#allocation178_spill] sm:$0xff] %v5487_v60 }
 0xb11   :  { %v5489_v35 = vpop.permute.xlu1 %1755 }
 0xb12   :  { %8486 = vst [vmem:[#allocation179_spill] sm:$0xff] %v5489_v35 }
 0xb19   :  { %v5491_v59 = vpop.permute.xlu1 %1761 }
 0xb1a   :  { %8487 = vst [vmem:[#allocation180_spill] sm:$0xff] %v5491_v59 }
 0xb21   :  { %v1792_v61 = vpop.permute.xlu1 %1791 }
 0xb22   :  { %v1796_v50 = vmul.f32 %v1792_v61, %v5084_v19  ;;  %v1795_v42 = vmul.f32 %v1792_v61, %v5086_v27  ;;  %v1794_v7 = vmul.f32 %v1792_v61, %v5088_v34  ;;  %v1799_v58 = vmul.f32 %v1792_v61, %v5099_v0 }
 0xb23   :  { %v1798_v60 = vmul.f32 %v1792_v61, %v5101_v43  ;;  %v1797_v35 = vmul.f32 %v1792_v61, %v5103_v54 }
 0xb24   :  { %1812 = vrot.lane.b32.xlu1 %v1796_v50, %s4470_s9  ;;  %1810 = vrot.lane.b32.xlu0 %v1795_v42, %s4470_s9  ;;  %v4408_v50 = vld [vmem:[%s8005_s1 + $0x7c] sm:$0xf]  ;;  %v1800_v42 = vmul.f32 %v1792_v61, %v5252_v23 }
 0xb25   :  { %1808 = vrot.lane.b32.xlu2 %v1794_v7, %s4470_s9  ;;  %v5510_v7 = vpop.permute.xlu0 %1701 }
 0xb26   :  { %8488 = vst [vmem:[#allocation181_spill] sm:$0xff] %v5510_v7 }
 0xb2c   :  { %1818 = vrot.lane.b32.xlu1 %v1799_v58, %s4470_s9  ;;  %1816 = vrot.lane.b32.xlu0 %v1798_v60, %s4470_s9 }
 0xb2d   :  { %1814 = vrot.lane.b32.xlu2 %v1797_v35, %s4470_s9  ;;  %v5512_v59 = vpop.permute.xlu0 %1707 }
 0xb2e   :  { %8489 = vst [vmem:[#allocation182_spill] sm:$0xff] %v5512_v59 }
 0xb34   :  { %1846 = vperm.xlu0 %4460, %v4408_v50  }
 0xb35   :  { %1820 = vrot.lane.b32.xlu2 %v1800_v42, %s4470_s9  ;;  %v5514_v48 = vpop.permute.xlu0 %1753 }
 0xb36   :  { %8490 = vst [vmem:[#allocation183_spill] sm:$0xff] %v5514_v48 }
 0xb3d   :  { %v5516_v58 = vpop.permute.xlu0 %1759 }
 0xb3e   :  { %8491 = vst [vmem:[#allocation184_spill] sm:$0xff] %v5516_v58 }
 0xb45   :  { %v5518_v60 = vpop.permute.xlu0 %1765 }
 0xb46   :  { %8492 = vst [vmem:[#allocation185_spill] sm:$0xff] %v5518_v60 }
 0xb96   :  { %v5520_v35 = vpop.permute.xlu0 %1810 }
 0xb97   :  { %8493 = vst [vmem:[#allocation186_spill] sm:$0xff] %v5520_v35 }
 0xb9e   :  { %v5522_v49 = vpop.permute.xlu0 %1816 }
 0xb9f   :  { %8494 = vst [vmem:[#allocation187_spill] sm:$0xff] %v5522_v49 }
 0xba6   :  { %v1847_v52 = vpop.permute.xlu0 %1846 }
 0xba7   :  { %v1851_v61 = vmul.f32 %v1847_v52, %v5129_v11  ;;  %v1849_v50 = vmul.f32 %v1847_v52, %v5133_v39  ;;  %v1850_v42 = vmul.f32 %v1847_v52, %v5131_v5  ;;  %v1854_v58 = vmul.f32 %v1847_v52, %v5144_v33 }
 0xba8   :  { %v1852_v60 = vmul.f32 %v1847_v52, %v5148_v37  ;;  %v1853_v35 = vmul.f32 %v1847_v52, %v5146_v62  ;;  %v1855_v49 = vmul.f32 %v1847_v52, %v5286_v24 }
 0xba9   :  { %1867 = vrot.lane.b32.xlu0 %v1851_v61, %s4470_s9  ;;  %1863 = vrot.lane.b32.xlu1 %v1849_v50, %s4470_s9  ;;  %v4409_v61 = vld [vmem:[%s8005_s1 + $0x80] sm:$0xf]  ;;  %v5541_v50 = vpop.permute.xlu2 %1757 }
 0xbaa   :  { %1865 = vrot.lane.b32.xlu2 %v1850_v42, %s4470_s9 }
 0xbb1   :  { %1873 = vrot.lane.b32.xlu0 %v1854_v58, %s4470_s9  ;;  %1869 = vrot.lane.b32.xlu1 %v1852_v60, %s4470_s9  ;;  %v5543_v42 = vpop.permute.xlu2 %1763 }
 0xbb2   :  { %1871 = vrot.lane.b32.xlu2 %v1853_v35, %s4470_s9 }
 0xbb9   :  { %1875 = vrot.lane.b32.xlu1 %v1855_v49, %s4470_s9  ;;  %v5545_v48 = vpop.permute.xlu2 %1808 }
 0xbba   :  { %1901 = vperm.xlu2 %4462, %v4409_v61  }
 0xbc1   :  { %v5547_v58 = vpop.permute.xlu2 %1814 }
 0xbc9   :  { %v5549_v60 = vpop.permute.xlu2 %1820 }
 0xbca   :  { %8495 = vst [vmem:[#allocation188_spill] sm:$0xff] %v5549_v60 }
 0xc04   :  { %v5551_v35 = vpop.permute.xlu2 %1865 }
 0xc05   :  { %8496 = vst [vmem:[#allocation189_spill] sm:$0xff] %v5551_v35 }
 0xc0c   :  { %v5553_v52 = vpop.permute.xlu2 %1871 }
 0xc0d   :  { %8497 = vst [vmem:[#allocation190_spill] sm:$0xff] %v5553_v52 }
 0xc14   :  { %v1902_v59 = vpop.permute.xlu2 %1901 }
 0xc15   :  { %v1906_v7 = vmul.f32 %v1902_v59, %v4990_v36  ;;  %v1905_v49 = vmul.f32 %v1902_v59, %v4992_v53  ;;  %v1904_v61 = vmul.f32 %v1902_v59, %v4994_v9  ;;  %v1909_v60 = vmul.f32 %v1902_v59, %v5007_v14  ;;  %v4410_v53 = vld [vmem:[%s8005_s1 + $0x84] sm:$0xf]  ;;  %v5572_v9 = vpop.permute.xlu1 %1812 }
 0xc16   :  { %v1908_v35 = vmul.f32 %v1902_v59, %v5009_v15  ;;  %v1907_v52 = vmul.f32 %v1902_v59, %v5011_v63  ;;  %v1910_v36 = vmul.f32 %v1902_v59, %v5186_v8 }
 0xc17   :  { %1922 = vrot.lane.b32.xlu2 %v1906_v7, %s4471_s20  ;;  %1920 = vrot.lane.b32.xlu1 %v1905_v49, %s4471_s20 }
 0xc18   :  { %1918 = vrot.lane.b32.xlu0 %v1904_v61, %s4471_s20 }
 0xc1d   :  { %v5574_v14 = vpop.permute.xlu1 %1818 }
 0xc1f   :  { %1928 = vrot.lane.b32.xlu2 %v1909_v60, %s4471_s20  ;;  %1926 = vrot.lane.b32.xlu1 %v1908_v35, %s4471_s20 }
 0xc20   :  { %1924 = vrot.lane.b32.xlu0 %v1907_v52, %s4471_s20 }
 0xc25   :  { %v5576_v63 = vpop.permute.xlu1 %1863 }
 0xc27   :  { %1957 = vperm.xlu1 %4461, %v4410_v53  }
 0xc28   :  { %1930 = vrot.lane.b32.xlu0 %v1910_v36, %s4471_s20 }
 0xc2d   :  { %v5578_v15 = vpop.permute.xlu1 %1869 }
 0xc35   :  { %v5580_v7 = vpop.permute.xlu1 %1875 }
 0xc89   :  { %v5582_v60 = vpop.permute.xlu1 %1920 }
 0xc91   :  { %v5584_v35 = vpop.permute.xlu1 %1926 }
 0xc99   :  { %v1958_v52 = vpop.permute.xlu1 %1957 }
 0xc9a   :  { %v1962_v8 = vmul.f32 %v1958_v52, %v5033_v44  ;;  %v1960_v59 = vmul.f32 %v1958_v52, %v5037_v10  ;;  %v1961_v49 = vmul.f32 %v1958_v52, %v5035_v6  ;;  %v1965_v61 = vmul.f32 %v1958_v52, %v5048_v25  ;;  %v4411_v44 = vld [vmem:[%s8005_s1 + $0x88] sm:$0xf]  ;;  %v5603_v6 = vpop.permute.xlu0 %1867 }
 0xc9b   :  { %v1963_v53 = vmul.f32 %v1958_v52, %v5052_v51  ;;  %v1964_v36 = vmul.f32 %v1958_v52, %v5050_v26  ;;  %v1966_v10 = vmul.f32 %v1958_v52, %v5214_v18 }
 0xc9c   :  { %1978 = vrot.lane.b32.xlu1 %v1962_v8, %s4471_s20  ;;  %1974 = vrot.lane.b32.xlu2 %v1960_v59, %s4471_s20 }
 0xc9d   :  { %1976 = vrot.lane.b32.xlu0 %v1961_v49, %s4471_s20 }
 0xca2   :  { %v5605_v25 = vpop.permute.xlu0 %1873 }
 0xca4   :  { %1984 = vrot.lane.b32.xlu1 %v1965_v61, %s4471_s20  ;;  %1980 = vrot.lane.b32.xlu2 %v1963_v53, %s4471_s20 }
 0xca5   :  { %1982 = vrot.lane.b32.xlu0 %v1964_v36, %s4471_s20 }
 0xcaa   :  { %v5607_v26 = vpop.permute.xlu0 %1918 }
 0xcac   :  { %1986 = vrot.lane.b32.xlu2 %v1966_v10, %s4471_s20 }
 0xcad   :  { %2012 = vperm.xlu0 %4460, %v4411_v44  }
 0xcb2   :  { %v5609_v51 = vpop.permute.xlu0 %1924 }
 0xcba   :  { %v5611_v8 = vpop.permute.xlu0 %1930 }
 0xd0f   :  { %v5613_v59 = vpop.permute.xlu0 %1976 }
 0xd17   :  { %v5615_v18 = vpop.permute.xlu0 %1982 }
 0xd1f   :  { %v2013_v52 = vpop.permute.xlu0 %2012 }
 0xd20   :  { %v2017_v49 = vmul.f32 %v2013_v52, %v5084_v19  ;;  %v2016_v61 = vmul.f32 %v2013_v52, %v5086_v27  ;;  %v2015_v53 = vmul.f32 %v2013_v52, %v5088_v34  ;;  %v2020_v36 = vmul.f32 %v2013_v52, %v5099_v0  ;;  %v4412_v19 = vld [vmem:[%s8005_s1 + $0x8c] sm:$0xf]  ;;  %v5634_v34 = vpop.permute.xlu2 %1922 }
 0xd21   :  { %v2019_v10 = vmul.f32 %v2013_v52, %v5101_v43  ;;  %v2018_v44 = vmul.f32 %v2013_v52, %v5103_v54  ;;  %v2021_v27 = vmul.f32 %v2013_v52, %v5252_v23 }
 0xd22   :  { %2033 = vrot.lane.b32.xlu0 %v2017_v49, %s4471_s20  ;;  %2031 = vrot.lane.b32.xlu2 %v2016_v61, %s4471_s20 }
 0xd23   :  { %2029 = vrot.lane.b32.xlu1 %v2015_v53, %s4471_s20 }
 0xd28   :  { %v5636_v0 = vpop.permute.xlu2 %1928 }
 0xd2a   :  { %2039 = vrot.lane.b32.xlu0 %v2020_v36, %s4471_s20  ;;  %2037 = vrot.lane.b32.xlu2 %v2019_v10, %s4471_s20 }
 0xd2b   :  { %2035 = vrot.lane.b32.xlu1 %v2018_v44, %s4471_s20 }
 0xd30   :  { %v5638_v43 = vpop.permute.xlu2 %1974 }
 0xd32   :  { %2067 = vperm.xlu2 %4462, %v4412_v19  }
 0xd33   :  { %2041 = vrot.lane.b32.xlu1 %v2021_v27, %s4471_s20 }
 0xd38   :  { %v5640_v54 = vpop.permute.xlu2 %1980 }
 0xd40   :  { %v5642_v49 = vpop.permute.xlu2 %1986 }
 0xd7c   :  { %v5644_v61 = vpop.permute.xlu2 %2031 }
 0xd84   :  { %v5646_v53 = vpop.permute.xlu2 %2037 }
 0xd8c   :  { %v2068_v36 = vpop.permute.xlu2 %2067 }
 0xd8d   :  { %v2072_v23 = vmul.f32 %v2068_v36, %v5129_v11  ;;  %v2070_v52 = vmul.f32 %v2068_v36, %v5133_v39  ;;  %v2071_v10 = vmul.f32 %v2068_v36, %v5131_v5  ;;  %v2075_v44 = vmul.f32 %v2068_v36, %v5144_v33  ;;  %v2118_v39 = vld [vmem:[%s8007_s2] sm:$0xf] }
 0xd8e   :  { %v2073_v19 = vmul.f32 %v2068_v36, %v5148_v37  ;;  %v2074_v27 = vmul.f32 %v2068_v36, %v5146_v62  ;;  %v2076_v11 = vmul.f32 %v2068_v36, %v5286_v24  ;;  %v66_v5 = vmul.f32 %v4579_v38, %v4583_v40 }
 0xd8f   :  { %2088 = vrot.lane.b32.xlu2 %v2072_v23, %s4471_s20  ;;  %2084 = vrot.lane.b32.xlu0 %v2070_v52, %s4471_s20  ;;  %v62_v33 = vmul.f32 %v4549_v20, %v4583_v40  ;;  %v108_v62 = vmul.f32 %v4626_v4, %v4585_v41  ;;  %v104_v37 = vmul.f32 %v4592_v46, %v4585_v41 }
 0xd90   :  { %2086 = vrot.lane.b32.xlu1 %v2071_v10, %s4471_s20  ;;  %v102_v24 = vmul.f32 %v4590_v45, %v4585_v41  ;;  %v103_v36 = vmul.f32 %v4594_v47, %v4585_v41  ;;  %v60_v23 = vmul.f32 %v4553_v22, %v4583_v40  ;;  %v61_v38 = vmul.f32 %v4551_v21, %v4583_v40 }
 0xd91   :  { %v65_v20 = vmul.f32 %v4563_v30, %v4583_v40  ;;  %v107_v4 = vmul.f32 %v4607_v56, %v4585_v41  ;;  %v63_v46 = vmul.f32 %v4568_v32, %v4583_v40  ;;  %v64_v45 = vmul.f32 %v4565_v31, %v4583_v40 }
 0xd92   :  { %v105_v47 = vmul.f32 %v4605_v55, %v4585_v41  ;;  %v106_v22 = vmul.f32 %v4609_v57, %v4585_v41  ;;  %v150_v21 = vmul.f32 %v4656_v29, %v4620_v1  ;;  %v146_v30 = vmul.f32 %v4624_v3, %v4620_v1 }
 0xd93   :  { %v144_v56 = vmul.f32 %v4622_v2, %v4620_v1  ;;  %v145_v32 = vmul.f32 %v4637_v12, %v4620_v1  ;;  %v115_v52 = vadd.f32 %v108_v62, %v66_v5  ;;  %v111_v31 = vadd.f32 %v104_v37, %v62_v33  ;;  %v8498_v2 = vld [vmem:[#allocation9_spill] sm:$0xff]  ;;  %v8499_v12 = vld [vmem:[#allocation4_spill] sm:$0xff] }
 0xd94   :  { %v109_v40 = vadd.f32 %v102_v24, %v60_v23  ;;  %v110_v10 = vadd.f32 %v103_v36, %v61_v38  ;;  %v114_v55 = vadd.f32 %v107_v4, %v65_v20  ;;  %v149_v41 = vmul.f32 %v4641_v16, %v4620_v1  ;;  %v8501_v5 = vld [vmem:[#allocation5_spill] sm:$0xff]  ;;  %v8502_v36 = vld [vmem:[#allocation7_spill] sm:$0xff]  ;;  %v8504_v4 = vld [vmem:[#allocation8_spill] sm:$0xff] }
 0xd95   :  { %v112_v57 = vadd.f32 %v105_v47, %v63_v46  ;;  %v147_v29 = vmul.f32 %v4639_v13, %v4620_v1  ;;  %v148_v3 = vmul.f32 %v4654_v28, %v4620_v1  ;;  %v187_v16 = vmul.f32 %v8501_v5, %v4643_v17  ;;  %v8503_v28 = vld [vmem:[#allocation6_spill] sm:$0xff] }
 0xd96   :  { %v157_v33 = vadd.f32 %v150_v21, %v115_v52  ;;  %v153_v62 = vadd.f32 %v146_v30, %v111_v31  ;;  %v151_v37 = vadd.f32 %v144_v56, %v109_v40  ;;  %v152_v24 = vadd.f32 %v145_v32, %v110_v10  ;;  %v8505_v30 = vld [vmem:[#allocation35_spill] sm:$0xff]  ;;  %v8506_v56 = vld [vmem:[#allocation10_spill] sm:$0xff]  ;;  %v8508_v31 = vld [vmem:[#allocation33_spill] sm:$0xff] }
 0xd97   :  { %2094 = vrot.lane.b32.xlu2 %v2075_v44, %s4471_s20  ;;  %2090 = vrot.lane.b32.xlu0 %v2073_v19, %s4471_s20  ;;  %v113_v44 = vadd.f32 %v106_v22, %v64_v45  ;;  %v192_v19 = vmul.f32 %v8498_v2, %v4643_v17  ;;  %v156_v13 = vadd.f32 %v149_v41, %v114_v55  ;;  %v8507_v52 = vld [vmem:[#allocation22_spill] sm:$0xff]  ;;  %v8509_v41 = vld [vmem:[#allocation37_spill] sm:$0xff] }
 0xd98   :  { %2092 = vrot.lane.b32.xlu1 %v2074_v27, %s4471_s20  ;;  %v188_v27 = vmul.f32 %v8499_v12, %v4643_v17  ;;  %v191_v1 = vmul.f32 %v8502_v36, %v4643_v17  ;;  %v189_v23 = vmul.f32 %v8503_v28, %v4643_v17  ;;  %v154_v38 = vadd.f32 %v147_v29, %v112_v57  ;;  %v8510_v57 = vld [vmem:[#allocation11_spill] sm:$0xff]  ;;  %v8514_v5 = vld [vmem:[#allocation26_spill] sm:$0xff]  ;;  %v8516_v28 = vld [vmem:[#allocation41_spill] sm:$0xff] }
 0xd99   :  { %v155_v20 = vadd.f32 %v148_v3, %v113_v44  ;;  %v190_v46 = vmul.f32 %v8504_v4, %v4643_v17  ;;  %v199_v45 = vadd.f32 %v192_v19, %v157_v33  ;;  %v194_v21 = vadd.f32 %v187_v16, %v152_v24  ;;  %v8511_v3 = vld [vmem:[#allocation24_spill] sm:$0xff]  ;;  %v8515_v24 = vld [vmem:[#allocation13_spill] sm:$0xff] }
 0xd9a   :  { %v195_v47 = vadd.f32 %v188_v27, %v153_v62  ;;  %v238_v32 = vsel %vm235_vm0, %v8506_v56, %v8505_v30  ;;  %v236_v40 = vsel %vm235_vm0, %v8508_v31, %v8507_v52  ;;  %v237_v10 = vsel %vm235_vm0, %v8507_v52, %v8506_v56  ;;  %v8512_v27 = vld [vmem:[#allocation39_spill] sm:$0xff] }
 0xd9b   :  { %v198_v55 = vadd.f32 %v191_v1, %v156_v13  ;;  %v196_v44 = vadd.f32 %v189_v23, %v154_v38  ;;  %v197_v29 = vadd.f32 %v190_v46, %v155_v20  ;;  %v239_v2 = vsel %vm235_vm0, %v8505_v30, %v8511_v3  ;;  %v8517_v38 = vld [vmem:[#allocation27_spill] sm:$0xff] }
 0xd9c   :  { %v255_v19 = vadd.f32 %v8509_v41, %v199_v45  ;;  %v240_v12 = vsel %vm235_vm0, %v8511_v3, %v8510_v57  ;;  %v292_v16 = vsel %vm235_vm0, %v8512_v27, %v8514_v5  ;;  %v251_v33 = vadd.f32 %v238_v32, %v195_v47  ;;  %v8518_v47 = vld [vmem:[#allocation14_spill] sm:$0xff]  ;;  %v8519_v56 = vld [vmem:[#allocation15_spill] sm:$0xff]  ;;  %v8520_v32 = vld [vmem:[#allocation28_spill] sm:$0xff] }
 0xd9d   :  { %v293_v13 = vsel %vm235_vm0, %v8514_v5, %v8515_v24  ;;  %v252_v1 = vadd.f32 %v239_v2, %v196_v44  ;;  %v294_v23 = vsel %vm235_vm0, %v8515_v24, %v8516_v28  ;;  %v295_v20 = vsel %vm235_vm0, %v8516_v28, %v8517_v38  ;;  %v8521_v31 = vld [vmem:[#allocation43_spill] sm:$0xff]  ;;  %v8524_v3 = vld [vmem:[#allocation45_spill] sm:$0xff]  ;;  %v8526_v5 = vld [vmem:[#allocation48_spill] sm:$0xff] }
 0xd9e   :  { %v253_v4 = vadd.f32 %v240_v12, %v197_v29  ;;  %v310_v30 = vadd.f32 %v8518_v47, %v255_v19  ;;  %v346_v52 = vsel %vm235_vm0, %v8520_v32, %v8519_v56  ;;  %v8525_v19 = vld [vmem:[#allocation30_spill] sm:$0xff]  ;;  %v8528_v24 = vld [vmem:[#allocation31_spill] sm:$0xff] }
 0xd9f   :  { %2096 = vrot.lane.b32.xlu0 %v2076_v11, %s4471_s20  ;;  %v8500_v11 = vld [vmem:[#allocation3_spill] sm:$0xff]  ;;  %v351_v12 = vsel %vm235_vm0, %v8524_v3, %v8525_v19 }
 0xda0   :  { %2121 = vperm.xlu1 %4461, %v2118_v39   ;;  %v186_v39 = vmul.f32 %v8500_v11, %v4643_v17  ;;  %v241_v17 = vsel %vm235_vm0, %v8510_v57, %v8509_v41  ;;  %v8513_v11 = vld [vmem:[#allocation12_spill] sm:$0xff]  ;;  %v8522_v41 = vld [vmem:[#allocation29_spill] sm:$0xff] }
 0xda1   :  { %v254_v36 = vadd.f32 %v241_v17, %v198_v55  ;;  %v308_v55 = vadd.f32 %v295_v20, %v253_v4  ;;  %v348_v57 = vsel %vm235_vm0, %v8521_v31, %v8522_v41  ;;  %v8523_v17 = vld [vmem:[#allocation16_spill] sm:$0xff]  ;;  %v8531_v20 = vld [vmem:[#allocation18_spill] sm:$0xff] }
 0xda2   :  { %v193_v22 = vadd.f32 %v186_v39, %v151_v37  ;;  %v291_v39 = vsel %vm235_vm0, %v8513_v11, %v8512_v27  ;;  %v250_v37 = vadd.f32 %v237_v10, %v194_v21  ;;  %v306_v21 = vadd.f32 %v293_v13, %v251_v33  ;;  %v8529_v13 = vld [vmem:[#allocation47_spill] sm:$0xff] }
 0xda3   :  { %v307_v10 = vadd.f32 %v294_v23, %v252_v1  ;;  %v349_v44 = vsel %vm235_vm0, %v8522_v41, %v8523_v17  ;;  %v350_v2 = vsel %vm235_vm0, %v8523_v17, %v8524_v3  ;;  %v365_v27 = vadd.f32 %v8525_v19, %v310_v30  ;;  %v8534_v30 = vld [vmem:[#allocation50_spill] sm:$0xff] }
 0xda4   :  { %v249_v62 = vadd.f32 %v236_v40, %v193_v22  ;;  %v305_v45 = vadd.f32 %v292_v16, %v250_v37  ;;  %v296_v22 = vsel %vm235_vm0, %v8517_v38, %v8518_v47  ;;  %v347_v40 = vsel %vm235_vm0, %v8519_v56, %v8521_v31  ;;  %v8527_v16 = vld [vmem:[#allocation17_spill] sm:$0xff] }
 0xda5   :  { %v309_v29 = vadd.f32 %v296_v22, %v254_v36  ;;  %v403_v33 = vsel %vm235_vm0, %v8527_v16, %v8526_v5  ;;  %v362_v37 = vadd.f32 %v349_v44, %v307_v10  ;;  %v401_v36 = vsel %vm235_vm0, %v8529_v13, %v8528_v24  ;;  %v8530_v38 = vld [vmem:[#allocation49_spill] sm:$0xff]  ;;  %v8537_v44 = vld [vmem:[#allocation36_spill] sm:$0xff] }
 0xda6   :  { %v304_v46 = vadd.f32 %v291_v39, %v249_v62  ;;  %v360_v39 = vadd.f32 %v347_v40, %v305_v45  ;;  %v361_v62 = vadd.f32 %v348_v57, %v306_v21  ;;  %v402_v1 = vsel %vm235_vm0, %v8528_v24, %v8527_v16  ;;  %v8533_v21 = vld [vmem:[#allocation34_spill] sm:$0xff]  ;;  %v8535_v40 = vld [vmem:[#allocation19_spill] sm:$0xff] }
 0xda7   :  { %v363_v28 = vadd.f32 %v350_v2, %v308_v55  ;;  %v364_v23 = vadd.f32 %v351_v12, %v309_v29  ;;  %v406_v4 = vsel %vm235_vm0, %v8531_v20, %v8530_v38  ;;  %v458_v56 = vsel %vm456_vm1, %v8534_v30, %v8533_v21  ;;  %v8536_v55 = vld [vmem:[#allocation20_spill] sm:$0xff]  ;;  %v8538_v29 = vld [vmem:[#allocation51_spill] sm:$0xff]  ;;  %v8543_v24 = vld [vmem:[#allocation38_spill] sm:$0xff] }
 0xda8   :  { %v359_v11 = vadd.f32 %v346_v52, %v304_v46  ;;  %v8532_v46 = vld [vmem:[#allocation32_spill] sm:$0xff]  ;;  %v416_v47 = vadd.f32 %v403_v33, %v361_v62  ;;  %v420_v32 = vadd.f32 %v8530_v38, %v365_v27  ;;  %v415_v31 = vadd.f32 %v402_v1, %v360_v39  ;;  %v8539_v27 = vld [vmem:[#allocation21_spill] sm:$0xff]  ;;  %v8544_v38 = vld [vmem:[#allocation42_spill] sm:$0xff] }
 0xda9   :  { %v404_v45 = vsel %vm235_vm0, %v8526_v5, %v8532_v46  ;;  %v405_v22 = vsel %vm235_vm0, %v8532_v46, %v8531_v20  ;;  %v457_v10 = vsel %vm456_vm1, %v8535_v40, %v8534_v30  ;;  %v459_v41 = vsel %vm456_vm1, %v8533_v21, %v8536_v55  ;;  %v8540_v39 = vld [vmem:[#allocation40_spill] sm:$0xff]  ;;  %v8545_v20 = vld [vmem:[#allocation53_spill] sm:$0xff] }
 0xdaa   :  { %v414_v52 = vadd.f32 %v401_v36, %v359_v11  ;;  %v419_v57 = vadd.f32 %v406_v4, %v364_v23  ;;  %v417_v17 = vadd.f32 %v404_v45, %v362_v37  ;;  %v461_v3 = vsel %vm456_vm1, %v8538_v29, %v8537_v44  ;;  %v8541_v5 = vld [vmem:[#allocation52_spill] sm:$0xff]  ;;  %v8542_v37 = vld [vmem:[#allocation23_spill] sm:$0xff] }
 0xdab   :  { %v460_v2 = vsel %vm456_vm1, %v8536_v55, %v8538_v29  ;;  %v418_v19 = vadd.f32 %v405_v22, %v363_v28  ;;  %v471_v12 = vadd.f32 %v458_v56, %v415_v31  ;;  %v462_v11 = vsel %vm456_vm1, %v8537_v44, %v8539_v27  ;;  %v8546_v22 = vld [vmem:[#allocation25_spill] sm:$0xff]  ;;  %v8547_v31 = vld [vmem:[#allocation55_spill] sm:$0xff]  ;;  %v8549_v55 = vld [vmem:[#allocation44_spill] sm:$0xff] }
 0xdac   :  { %v514_v16 = vsel %vm456_vm1, %v8541_v5, %v8540_v39  ;;  %v470_v33 = vadd.f32 %v457_v10, %v414_v52  ;;  %v472_v62 = vadd.f32 %v459_v41, %v416_v47  ;;  %v512_v13 = vsel %vm456_vm1, %v8543_v24, %v8542_v37  ;;  %v8550_v41 = vld [vmem:[#allocation54_spill] sm:$0xff]  ;;  %v8551_v44 = vld [vmem:[#allocation56_spill] sm:$0xff] }
 0xdad   :  { %v513_v36 = vsel %vm456_vm1, %v8542_v37, %v8541_v5  ;;  %v474_v1 = vadd.f32 %v461_v3, %v418_v19  ;;  %v473_v28 = vadd.f32 %v460_v2, %v417_v17  ;;  %v476_v23 = vadd.f32 %v8539_v27, %v420_v32  ;;  %v8548_v32 = vld [vmem:[#allocation59_spill] sm:$0xff]  ;;  %v8552_v29 = vld [vmem:[#allocation60_spill] sm:$0xff]  ;;  %v8553_v27 = vld [vmem:[#allocation46_spill] sm:$0xff] }
 0xdae   :  { %v517_v4 = vsel %vm456_vm1, %v8545_v20, %v8544_v38  ;;  %v475_v46 = vadd.f32 %v462_v11, %v419_v57  ;;  %v527_v45 = vadd.f32 %v514_v16, %v472_v62  ;;  %v515_v47 = vsel %vm456_vm1, %v8540_v39, %v8546_v22  ;;  %v8554_v16 = vld [vmem:[#allocation66_spill] sm:$0xff] }
 0xdaf   :  { %v516_v21 = vsel %vm456_vm1, %v8546_v22, %v8545_v20  ;;  %v525_v30 = vadd.f32 %v512_v13, %v470_v33  ;;  %v526_v56 = vadd.f32 %v513_v36, %v471_v12  ;;  %v531_v52 = vadd.f32 %v8544_v38, %v476_v23  ;;  %v8555_v33 = vld [vmem:[#allocation57_spill] sm:$0xff]  ;;  %v8557_v23 = vld [vmem:[#allocation67_spill] sm:$0xff]  ;;  %v8558_v38 = vld [vmem:[#allocation58_spill] sm:$0xff] }
 0xdb0   :  { %v569_v40 = vsel %vm456_vm1, %v8548_v32, %v8547_v31  ;;  %v530_v10 = vadd.f32 %v517_v4, %v475_v46  ;;  %v567_v57 = vsel %vm456_vm1, %v8550_v41, %v8549_v55  ;;  %v568_v17 = vsel %vm456_vm1, %v8549_v55, %v8548_v32  ;;  %v8556_v36 = vld [vmem:[#allocation61_spill] sm:$0xff]  ;;  %v8559_v4 = vld [vmem:[#allocation62_spill] sm:$0xff] }
 0xdb1   :  { %v572_v3 = vsel %vm456_vm1, %v8552_v29, %v8551_v44  ;;  %v528_v2 = vadd.f32 %v515_v47, %v473_v28  ;;  %v529_v19 = vadd.f32 %v516_v21, %v474_v1  ;;  %v586_v12 = vadd.f32 %v8551_v44, %v531_v52  ;;  %v8560_v21 = vld [vmem:[#allocation63_spill] sm:$0xff]  ;;  %v8562_v52 = vld [vmem:[#allocation64_spill] sm:$0xff]  ;;  %v8564_v55 = vld [vmem:[#allocation74_spill] sm:$0xff] }
 0xdb2   :  { %v570_v11 = vsel %vm456_vm1, %v8547_v31, %v8553_v27  ;;  %v582_v39 = vadd.f32 %v569_v40, %v527_v45  ;;  %v571_v5 = vsel %vm456_vm1, %v8553_v27, %v8552_v29  ;;  %v623_v62 = vsel %vm456_vm1, %v8555_v33, %v8554_v16  ;;  %v8563_v40 = vld [vmem:[#allocation68_spill] sm:$0xff]  ;;  %v8565_v41 = vld [vmem:[#allocation65_spill] sm:$0xff] }
 0xdb3   :  { %v580_v37 = vadd.f32 %v567_v57, %v525_v30  ;;  %v581_v24 = vadd.f32 %v568_v17, %v526_v56  ;;  %v585_v13 = vadd.f32 %v572_v3, %v530_v10  ;;  %v622_v1 = vsel %vm456_vm1, %v8556_v36, %v8555_v33  ;;  %v8561_v56 = vld [vmem:[#allocation73_spill] sm:$0xff]  ;;  %v8568_v36 = vld [vmem:[#allocation76_spill] sm:$0xff] }
 0xdb4   :  { %v583_v28 = vadd.f32 %v570_v11, %v528_v2  ;;  %v626_v20 = vsel %vm456_vm1, %v8558_v38, %v8557_v23  ;;  %v624_v46 = vsel %vm456_vm1, %v8554_v16, %v8559_v4  ;;  %v625_v45 = vsel %vm456_vm1, %v8559_v4, %v8558_v38  ;;  %v8566_v17 = vld [vmem:[#allocation69_spill] sm:$0xff]  ;;  %v8567_v16 = vld [vmem:[#allocation70_spill] sm:$0xff]  ;;  %v8570_v38 = vld [vmem:[#allocation71_spill] sm:$0xff] }
 0xdb5   :  { %v584_v22 = vadd.f32 %v571_v5, %v529_v19  ;;  %v636_v47 = vadd.f32 %v623_v62, %v581_v24  ;;  %v627_v30 = vsel %vm456_vm1, %v8557_v23, %v8560_v21  ;;  %v679_v31 = vsel %vm677_vm2, %v8562_v52, %v8561_v56 }
 0xdb6   :  { %v635_v32 = vadd.f32 %v622_v1, %v580_v37  ;;  %v678_v10 = vsel %vm677_vm2, %v8563_v40, %v8562_v52  ;;  %v682_v57 = vsel %vm677_vm2, %v8565_v41, %v8564_v55  ;;  %v680_v44 = vsel %vm677_vm2, %v8561_v56, %v8566_v17  ;;  %v8569_v1 = vld [vmem:[#allocation80_spill] sm:$0xff] }
 0xdb7   :  { %v639_v29 = vadd.f32 %v626_v20, %v584_v22  ;;  %v637_v3 = vadd.f32 %v624_v46, %v582_v39  ;;  %v638_v2 = vadd.f32 %v625_v45, %v583_v28  ;;  %v681_v19 = vsel %vm677_vm2, %v8566_v17, %v8565_v41  ;;  %v8571_v20 = vld [vmem:[#allocation75_spill] sm:$0xff]  ;;  %v8572_v46 = vld [vmem:[#allocation77_spill] sm:$0xff]  ;;  %v8578_v17 = vld [vmem:[#allocation92_spill] sm:$0xff] }
 0xdb8   :  { %v640_v27 = vadd.f32 %v627_v30, %v585_v13  ;;  %v641_v11 = vadd.f32 %v8560_v21, %v586_v12  ;;  %v692_v5 = vadd.f32 %v679_v31, %v636_v47  ;;  %v683_v33 = vsel %vm677_vm2, %v8564_v55, %v8567_v16  ;;  %v8573_v45 = vld [vmem:[#allocation81_spill] sm:$0xff]  ;;  %v8574_v47 = vld [vmem:[#allocation72_spill] sm:$0xff]  ;;  %v8575_v31 = vld [vmem:[#allocation91_spill] sm:$0xff] }
 0xdb9   :  { %v691_v62 = vadd.f32 %v678_v10, %v635_v32  ;;  %v695_v37 = vadd.f32 %v682_v57, %v639_v29  ;;  %v693_v24 = vadd.f32 %v680_v44, %v637_v3  ;;  %v735_v39 = vsel %vm677_vm2, %v8569_v1, %v8568_v36  ;;  %v8576_v32 = vld [vmem:[#allocation78_spill] sm:$0xff]  ;;  %v8579_v44 = vld [vmem:[#allocation79_spill] sm:$0xff] }
 0xdba   :  { %v694_v28 = vadd.f32 %v681_v19, %v638_v2  ;;  %v697_v23 = vadd.f32 %v8567_v16, %v641_v11  ;;  %v733_v13 = vsel %vm677_vm2, %v8571_v20, %v8570_v38  ;;  %v734_v12 = vsel %vm677_vm2, %v8570_v38, %v8569_v1  ;;  %v8577_v10 = vld [vmem:[#allocation82_spill] sm:$0xff]  ;;  %v8580_v3 = vld [vmem:[#allocation83_spill] sm:$0xff]  ;;  %v8583_v1 = vld [vmem:[#allocation93_spill] sm:$0xff] }
 0xdbb   :  { %v696_v4 = vadd.f32 %v683_v33, %v640_v27  ;;  %v738_v22 = vsel %vm677_vm2, %v8573_v45, %v8572_v46  ;;  %v736_v21 = vsel %vm677_vm2, %v8568_v36, %v8574_v47  ;;  %v737_v30 = vsel %vm677_vm2, %v8574_v47, %v8573_v45  ;;  %v8581_v36 = vld [vmem:[#allocation84_spill] sm:$0xff]  ;;  %v8584_v20 = vld [vmem:[#allocation87_spill] sm:$0xff] }
 0xdbc   :  { %v752_v56 = vadd.f32 %v8572_v46, %v697_v23  ;;  %v748_v52 = vadd.f32 %v735_v39, %v693_v24  ;;  %v789_v40 = vsel %vm677_vm2, %v8576_v32, %v8575_v31  ;;  %v788_v55 = vsel %vm677_vm2, %v8577_v10, %v8576_v32  ;;  %v8587_v45 = vld [vmem:[#allocation88_spill] sm:$0xff]  ;;  %v5948_v32 = vpop.permute.xlu1 %1978  ;;  %v8589_v10 = vld [vmem:[#allocation90_spill] sm:$0xff] }
 0xdbd   :  { %v746_v41 = vadd.f32 %v733_v13, %v691_v62  ;;  %v747_v57 = vadd.f32 %v734_v12, %v692_v5  ;;  %v792_v29 = vsel %vm677_vm2, %v8579_v44, %v8578_v17  ;;  %v790_v2 = vsel %vm677_vm2, %v8575_v31, %v8580_v3  ;;  %v8582_v62 = vld [vmem:[#allocation85_spill] sm:$0xff]  ;;  %v8585_v13 = vld [vmem:[#allocation94_spill] sm:$0xff] }
 0xdbe   :  { %v751_v19 = vadd.f32 %v738_v22, %v696_v4  ;;  %v749_v27 = vadd.f32 %v736_v21, %v694_v28  ;;  %v750_v11 = vadd.f32 %v737_v30, %v695_v37  ;;  %v791_v16 = vsel %vm677_vm2, %v8580_v3, %v8579_v44  ;;  %v8586_v4 = vld [vmem:[#allocation86_spill] sm:$0xff] }
 0xdbf   :  { %v802_v33 = vadd.f32 %v789_v40, %v747_v57  ;;  %v801_v24 = vadd.f32 %v788_v55, %v746_v41  ;;  %v793_v5 = vsel %vm677_vm2, %v8578_v17, %v8581_v36  ;;  %v843_v39 = vsel %vm677_vm2, %v8583_v1, %v8582_v62  ;;  %v8590_v55 = vld [vmem:[#allocation100_spill] sm:$0xff]  ;;  %v8592_v17 = vld [vmem:[#allocation89_spill] sm:$0xff] }
 0xdc0   :  { %v805_v23 = vadd.f32 %v792_v29, %v750_v11  ;;  %v803_v38 = vadd.f32 %v790_v2, %v748_v52  ;;  %v844_v37 = vsel %vm677_vm2, %v8582_v62, %v8584_v20  ;;  %v804_v28 = vadd.f32 %v791_v16, %v749_v27  ;;  %v8588_v52 = vld [vmem:[#allocation95_spill] sm:$0xff]  ;;  %v8591_v57 = vld [vmem:[#allocation96_spill] sm:$0xff]  ;;  %v8593_v16 = vld [vmem:[#allocation97_spill] sm:$0xff] }
 0xdc1   :  { %v845_v12 = vsel %vm677_vm2, %v8584_v20, %v8585_v13  ;;  %v846_v46 = vsel %vm677_vm2, %v8585_v13, %v8586_v4  ;;  %v847_v22 = vsel %vm677_vm2, %v8586_v4, %v8587_v45  ;;  %v806_v47 = vadd.f32 %v793_v5, %v751_v19  ;;  %v8598_v13 = vld [vmem:[#allocation107_spill] sm:$0xff] }
 0xdc2   :  { %v807_v21 = vadd.f32 %v8581_v36, %v752_v56  ;;  %v856_v30 = vadd.f32 %v843_v39, %v801_v24  ;;  %v848_v31 = vsel %vm677_vm2, %v8587_v45, %v8588_v52  ;;  %v857_v40 = vadd.f32 %v844_v37, %v802_v33  ;;  %v8594_v24 = vld [vmem:[#allocation101_spill] sm:$0xff]  ;;  %v8595_v39 = vld [vmem:[#allocation106_spill] sm:$0xff] }
 0xdc3   :  { %v921_v41 = vsel %vm918_vm3, %v8590_v55, %v8589_v10  ;;  %v919_v44 = vsel %vm918_vm3, %v8592_v17, %v8591_v57  ;;  %v920_v56 = vsel %vm918_vm3, %v8591_v57, %v8590_v55  ;;  %v858_v29 = vadd.f32 %v845_v12, %v803_v38  ;;  %v8596_v38 = vld [vmem:[#allocation102_spill] sm:$0xff]  ;;  %v8599_v12 = vld [vmem:[#allocation103_spill] sm:$0xff] }
 0xdc4   :  { %v859_v3 = vadd.f32 %v846_v46, %v804_v28  ;;  %v860_v2 = vadd.f32 %v847_v22, %v805_v23  ;;  %v862_v19 = vadd.f32 %v8588_v52, %v807_v21  ;;  %v861_v27 = vadd.f32 %v848_v31, %v806_v47  ;;  %v8597_v37 = vld [vmem:[#allocation98_spill] sm:$0xff]  ;;  %v8600_v46 = vld [vmem:[#allocation99_spill] sm:$0xff]  ;;  %v8602_v52 = vld [vmem:[#allocation108_spill] sm:$0xff] }
 0xdc5   :  { %v931_v11 = vadd.f32 %v8592_v17, %v856_v30  ;;  %v922_v33 = vsel %vm918_vm3, %v8589_v10, %v8593_v16  ;;  %v923_v36 = vsel %vm918_vm3, %v8593_v16, %v8594_v24  ;;  %v932_v62 = vadd.f32 %v919_v44, %v857_v40  ;;  %v8601_v30 = vld [vmem:[#allocation116_spill] sm:$0xff]  ;;  %v8606_v16 = vld [vmem:[#allocation109_spill] sm:$0xff] }
 0xdc6   :  { %v934_v5 = vadd.f32 %v921_v41, %v859_v3  ;;  %v933_v1 = vadd.f32 %v920_v56, %v858_v29  ;;  %v988_v23 = vsel %vm918_vm3, %v8596_v38, %v8595_v39  ;;  %v937_v20 = vadd.f32 %v8594_v24, %v862_v19  ;;  %v8603_v41 = vld [vmem:[#allocation104_spill] sm:$0xff]  ;;  %v8604_v29 = vld [vmem:[#allocation105_spill] sm:$0xff] }
 0xdc7   :  { %v987_v28 = vsel %vm918_vm3, %v8597_v37, %v8596_v38  ;;  %v991_v4 = vsel %vm918_vm3, %v8599_v12, %v8598_v13  ;;  %v989_v45 = vsel %vm918_vm3, %v8595_v39, %v8600_v46  ;;  %v935_v22 = vadd.f32 %v922_v33, %v860_v2  ;;  %v6004_v39 = vpop.permute.xlu1 %1984 }
 0xdc8   :  { %v936_v47 = vadd.f32 %v923_v36, %v861_v27  ;;  %v990_v21 = vsel %vm918_vm3, %v8600_v46, %v8599_v12  ;;  %v1056_v31 = vsel %vm918_vm3, %v8602_v52, %v8601_v30  ;;  %v1005_v40 = vadd.f32 %v8598_v13, %v937_v20  ;;  %v8605_v27 = vld [vmem:[#allocation117_spill] sm:$0xff]  ;;  %v8609_v20 = vld [vmem:[#allocation118_spill] sm:$0xff]  ;;  %v8611_v46 = vld [vmem:[#allocation119_spill] sm:$0xff] }
 0xdc9   :  { %v1001_v10 = vadd.f32 %v988_v23, %v933_v1  ;;  %v999_v55 = vadd.f32 %v8597_v37, %v931_v11  ;;  %v1055_v57 = vsel %vm918_vm3, %v8603_v41, %v8602_v52  ;;  %v1000_v17 = vadd.f32 %v987_v28, %v932_v62  ;;  %v8607_v62 = vld [vmem:[#allocation111_spill] sm:$0xff]  ;;  %v8608_v1 = vld [vmem:[#allocation112_spill] sm:$0xff]  ;;  %v8610_v37 = vld [vmem:[#allocation110_spill] sm:$0xff] }
 0xdca   :  { %v1004_v44 = vadd.f32 %v991_v4, %v936_v47  ;;  %v1002_v56 = vadd.f32 %v989_v45, %v934_v5  ;;  %v1057_v3 = vsel %vm918_vm3, %v8601_v30, %v8604_v29  ;;  %v1003_v2 = vadd.f32 %v990_v21, %v935_v22  ;;  %v8612_v22 = vld [vmem:[#allocation113_spill] sm:$0xff] }
 0xdcb   :  { %v1069_v19 = vadd.f32 %v1056_v31, %v1001_v10  ;;  %v1059_v33 = vsel %vm918_vm3, %v8606_v16, %v8605_v27  ;;  %v1058_v11 = vsel %vm918_vm3, %v8604_v29, %v8606_v16  ;;  %v1067_v24 = vadd.f32 %v8603_v41, %v999_v55  ;;  %v8613_v52 = vld [vmem:[#allocation125_spill] sm:$0xff]  ;;  %v8614_v31 = vld [vmem:[#allocation114_spill] sm:$0xff]  ;;  %v8615_v10 = vld [vmem:[#allocation120_spill] sm:$0xff] }
 0xdcc   :  { %v1068_v36 = vadd.f32 %v1055_v57, %v1000_v17  ;;  %v1125_v5 = vsel %vm918_vm3, %v8608_v1, %v8607_v62  ;;  %v1073_v38 = vadd.f32 %v8605_v27, %v1005_v40  ;;  %v1070_v23 = vadd.f32 %v1057_v3, %v1002_v56  ;;  %v8617_v56 = vld [vmem:[#allocation115_spill] sm:$0xff]  ;;  %v8618_v27 = vld [vmem:[#allocation121_spill] sm:$0xff] }
 0xdcd   :  { %v1123_v28 = vsel %vm918_vm3, %v8610_v37, %v8609_v20  ;;  %v1124_v13 = vsel %vm918_vm3, %v8609_v20, %v8608_v1  ;;  %v1072_v12 = vadd.f32 %v1059_v33, %v1004_v44  ;;  %v1071_v4 = vadd.f32 %v1058_v11, %v1003_v2  ;;  %v8616_v44 = vld [vmem:[#allocation126_spill] sm:$0xff]  ;;  %v8622_v20 = vld [vmem:[#allocation123_spill] sm:$0xff] }
 0xdce   :  { %v1126_v45 = vsel %vm918_vm3, %v8607_v62, %v8611_v46  ;;  %v1127_v47 = vsel %vm918_vm3, %v8611_v46, %v8612_v22  ;;  %v1135_v21 = vadd.f32 %v8610_v37, %v1067_v24  ;;  %v1138_v30 = vadd.f32 %v1125_v5, %v1070_v23  ;;  %v8620_v5 = vld [vmem:[#allocation128_spill] sm:$0xff]  ;;  %v8623_v37 = vld [vmem:[#allocation127_spill] sm:$0xff]  ;;  %v8624_v46 = vld [vmem:[#allocation129_spill] sm:$0xff] }
 0xdcf   :  { %v1208_v40 = vsel %vm1206_vm4, %v8614_v31, %v8613_v52  ;;  %v1207_v55 = vsel %vm1206_vm4, %v8615_v10, %v8614_v31  ;;  %v1136_v41 = vadd.f32 %v1123_v28, %v1068_v36  ;;  %v1137_v57 = vadd.f32 %v1124_v13, %v1069_v19  ;;  %v8619_v36 = vld [vmem:[#allocation122_spill] sm:$0xff] }
 0xdd0   :  { %v1141_v17 = vadd.f32 %v8612_v22, %v1073_v38  ;;  %v1211_v29 = vsel %vm1206_vm4, %v8617_v56, %v8616_v44  ;;  %v1139_v3 = vadd.f32 %v1126_v45, %v1071_v4  ;;  %v1140_v2 = vadd.f32 %v1127_v47, %v1072_v12  ;;  %v8621_v38 = vld [vmem:[#allocation132_spill] sm:$0xff]  ;;  %v8625_v45 = vld [vmem:[#allocation133_spill] sm:$0xff] }
 0xdd1   :  { %v1209_v16 = vsel %vm1206_vm4, %v8613_v52, %v8618_v27  ;;  %v1210_v33 = vsel %vm1206_vm4, %v8618_v27, %v8617_v56  ;;  %v1222_v11 = vadd.f32 %v1208_v40, %v1137_v57  ;;  %v1220_v24 = vadd.f32 %v8615_v10, %v1135_v21  ;;  %v8626_v47 = vld [vmem:[#allocation124_spill] sm:$0xff]  ;;  %v6055_v52 = vpop.permute.xlu1 %2029 }
 0xdd2   :  { %v1221_v19 = vadd.f32 %v1207_v55, %v1136_v41  ;;  %v1212_v62 = vsel %vm1206_vm4, %v8616_v44, %v8619_v36  ;;  %v1225_v1 = vadd.f32 %v1211_v29, %v1140_v2  ;;  %v1285_v23 = vsel %vm1206_vm4, %v8621_v38, %v8620_v5  ;;  %v8627_v55 = vld [vmem:[#allocation139_spill] sm:$0xff]  ;;  %v8629_v29 = vld [vmem:[#allocation134_spill] sm:$0xff] }
 0xdd3   :  { %v1283_v28 = vsel %vm1206_vm4, %v8623_v37, %v8622_v20  ;;  %v1284_v13 = vsel %vm1206_vm4, %v8622_v20, %v8621_v38  ;;  %v1223_v12 = vadd.f32 %v1209_v16, %v1138_v30  ;;  %v1224_v4 = vadd.f32 %v1210_v33, %v1139_v3  ;;  %v8628_v30 = vld [vmem:[#allocation130_spill] sm:$0xff]  ;;  %v8631_v16 = vld [vmem:[#allocation131_spill] sm:$0xff] }
 0xdd4   :  { %v1288_v22 = vsel %vm1206_vm4, %v8625_v45, %v8624_v46  ;;  %v1286_v21 = vsel %vm1206_vm4, %v8620_v5, %v8626_v47  ;;  %v1226_v31 = vadd.f32 %v1212_v62, %v1141_v17  ;;  %v1296_v40 = vadd.f32 %v8623_v37, %v1220_v24  ;;  %v8630_v17 = vld [vmem:[#allocation140_spill] sm:$0xff]  ;;  %v8632_v24 = vld [vmem:[#allocation135_spill] sm:$0xff]  ;;  %v8634_v37 = vld [vmem:[#allocation137_spill] sm:$0xff] }
 0xdd5   :  { %v1287_v10 = vsel %vm1206_vm4, %v8626_v47, %v8625_v45  ;;  %v1360_v41 = vsel %vm1206_vm4, %v8628_v30, %v8627_v55  ;;  %v1299_v57 = vadd.f32 %v1285_v23, %v1223_v12  ;;  %v1297_v44 = vadd.f32 %v1283_v28, %v1221_v19  ;;  %v8633_v23 = vld [vmem:[#allocation136_spill] sm:$0xff]  ;;  %v8635_v28 = vld [vmem:[#allocation141_spill] sm:$0xff]  ;;  %v8637_v45 = vld [vmem:[#allocation142_spill] sm:$0xff] }
 0xdd6   :  { %v1298_v56 = vadd.f32 %v1284_v13, %v1222_v11  ;;  %v1359_v3 = vsel %vm1206_vm4, %v8629_v29, %v8628_v30  ;;  %v1302_v2 = vadd.f32 %v1288_v22, %v1226_v31  ;;  %v1300_v27 = vadd.f32 %v1286_v21, %v1224_v4  ;;  %v8638_v21 = vld [vmem:[#allocation138_spill] sm:$0xff] }
 0xdd7   :  { %v1363_v33 = vsel %vm1206_vm4, %v8631_v16, %v8630_v17  ;;  %v1361_v36 = vsel %vm1206_vm4, %v8627_v55, %v8632_v24  ;;  %v1301_v62 = vadd.f32 %v1287_v10, %v1225_v1  ;;  %v1372_v38 = vadd.f32 %v8629_v29, %v1296_v40  ;;  %v8636_v1 = vld [vmem:[#allocation146_spill] sm:$0xff]  ;;  %v8639_v40 = vld [vmem:[#allocation147_spill] sm:$0xff]  ;;  %v8642_v29 = vld [vmem:[#allocation153_spill] sm:$0xff] }
 0xdd8   :  { %v1374_v5 = vadd.f32 %v1360_v41, %v1298_v56  ;;  %v1362_v11 = vsel %vm1206_vm4, %v8632_v24, %v8631_v16  ;;  %v1373_v19 = vadd.f32 %v1359_v3, %v1297_v44  ;;  %v1364_v20 = vsel %vm1206_vm4, %v8630_v17, %v8633_v23  ;;  %v8640_v55 = vld [vmem:[#allocation143_spill] sm:$0xff]  ;;  %v8641_v56 = vld [vmem:[#allocation149_spill] sm:$0xff]  ;;  %v8643_v16 = vld [vmem:[#allocation144_spill] sm:$0xff] }
 0xdd9   :  { %v1435_v13 = vsel %vm1206_vm4, %v8635_v28, %v8634_v37  ;;  %v1377_v12 = vadd.f32 %v1363_v33, %v1301_v62  ;;  %v1375_v4 = vadd.f32 %v1361_v36, %v1299_v57  ;;  %v1436_v46 = vsel %vm1206_vm4, %v8634_v37, %v8636_v1  ;;  %v8644_v33 = vld [vmem:[#allocation148_spill] sm:$0xff]  ;;  %v8645_v23 = vld [vmem:[#allocation150_spill] sm:$0xff] }
 0xdda   :  { %v1437_v22 = vsel %vm1206_vm4, %v8636_v1, %v8637_v45  ;;  %v1376_v47 = vadd.f32 %v1362_v11, %v1300_v27  ;;  %v1438_v31 = vsel %vm1206_vm4, %v8637_v45, %v8638_v21  ;;  %v1439_v10 = vsel %vm1206_vm4, %v8638_v21, %v8639_v40  ;;  %v8649_v45 = vld [vmem:[#allocation151_spill] sm:$0xff] }
 0xddb   :  { %v1440_v30 = vsel %vm1206_vm4, %v8639_v40, %v8640_v55  ;;  %v1378_v41 = vadd.f32 %v1364_v20, %v1302_v2  ;;  %v1448_v57 = vadd.f32 %v8635_v28, %v1372_v38  ;;  %v1449_v44 = vadd.f32 %v1435_v13, %v1373_v19  ;;  %v8646_v38 = vld [vmem:[#allocation154_spill] sm:$0xff]  ;;  %v6111_v20 = vpop.permute.xlu1 %2035  ;;  %v8647_v28 = vld [vmem:[#allocation145_spill] sm:$0xff]  ;;  %v8652_v55 = vld [vmem:[#allocation152_spill] sm:$0xff] }
 0xddc   :  { %v1493_v3 = vsel %vm1490_vm5, %v8642_v29, %v8641_v56  ;;  %v1450_v27 = vadd.f32 %v1436_v46, %v1374_v5  ;;  %v1451_v17 = vadd.f32 %v1437_v22, %v1375_v4  ;;  %v1491_v24 = vsel %vm1490_vm5, %v8644_v33, %v8643_v16  ;;  %v8648_v46 = vld [vmem:[#allocation160_spill] sm:$0xff] }
 0xddd   :  { %v1492_v36 = vsel %vm1490_vm5, %v8643_v16, %v8642_v29  ;;  %v1452_v62 = vadd.f32 %v1438_v31, %v1376_v47  ;;  %v1453_v11 = vadd.f32 %v1439_v10, %v1377_v12  ;;  %v1454_v2 = vadd.f32 %v1440_v30, %v1378_v41  ;;  %v8650_v47 = vld [vmem:[#allocation155_spill] sm:$0xff]  ;;  %v6126_v31 = vpop.permute.xlu0 %2033  ;;  %v8651_v10 = vld [vmem:[#allocation161_spill] sm:$0xff]  ;;  %v8653_v41 = vld [vmem:[#allocation156_spill] sm:$0xff] }
 0xdde   :  { %v1496_v19 = vsel %vm1490_vm5, %v8646_v38, %v8645_v23  ;;  %v1504_v5 = vadd.f32 %v8644_v33, %v1448_v57  ;;  %v1507_v37 = vadd.f32 %v1493_v3, %v1451_v17  ;;  %v1494_v13 = vsel %vm1490_vm5, %v8641_v56, %v8647_v28  ;;  %v8654_v3 = vld [vmem:[#allocation157_spill] sm:$0xff]  ;;  %v8655_v17 = vld [vmem:[#allocation167_spill] sm:$0xff]  ;;  %v8656_v16 = vld [vmem:[#allocation158_spill] sm:$0xff] }
 0xddf   :  { %v1495_v4 = vsel %vm1490_vm5, %v8647_v28, %v8646_v38  ;;  %v1505_v1 = vadd.f32 %v1491_v24, %v1449_v44  ;;  %v1506_v12 = vadd.f32 %v1492_v36, %v1450_v27  ;;  %v1547_v22 = vsel %vm1490_vm5, %v8649_v45, %v8648_v46  ;;  %v8657_v23 = vld [vmem:[#allocation162_spill] sm:$0xff] }
 0xde0   :  { %v1546_v21 = vsel %vm1490_vm5, %v8650_v47, %v8649_v45  ;;  %v1510_v40 = vadd.f32 %v1496_v19, %v1454_v2  ;;  %v1550_v30 = vsel %vm1490_vm5, %v8652_v55, %v8651_v10  ;;  %v1548_v57 = vsel %vm1490_vm5, %v8648_v46, %v8653_v41 }
 0xde1   :  { %v1549_v44 = vsel %vm1490_vm5, %v8653_v41, %v8652_v55  ;;  %v1508_v56 = vadd.f32 %v1494_v13, %v1452_v62  ;;  %v1509_v29 = vadd.f32 %v1495_v4, %v1453_v11  ;;  %v1551_v27 = vsel %vm1490_vm5, %v8651_v10, %v8654_v3  ;;  %v8658_v11 = vld [vmem:[#allocation168_spill] sm:$0xff]  ;;  %v8659_v13 = vld [vmem:[#allocation159_spill] sm:$0xff]  ;;  %v8664_v41 = vld [vmem:[#allocation165_spill] sm:$0xff] }
 0xde2   :  { %v1602_v33 = vsel %vm1490_vm5, %v8656_v16, %v8655_v17  ;;  %v1561_v24 = vadd.f32 %v1547_v22, %v1506_v12  ;;  %v1559_v36 = vadd.f32 %v8650_v47, %v1504_v5  ;;  %v1560_v2 = vadd.f32 %v1546_v21, %v1505_v1  ;;  %v8660_v55 = vld [vmem:[#allocation163_spill] sm:$0xff]  ;;  %v8661_v22 = vld [vmem:[#allocation164_spill] sm:$0xff]  ;;  %v8662_v21 = vld [vmem:[#allocation170_spill] sm:$0xff] }
 0xde3   :  { %v1601_v38 = vsel %vm1490_vm5, %v8657_v23, %v8656_v16  ;;  %v1564_v19 = vadd.f32 %v1550_v30, %v1509_v29  ;;  %v1562_v28 = vadd.f32 %v1548_v57, %v1507_v37  ;;  %v1563_v62 = vadd.f32 %v1549_v44, %v1508_v56  ;;  %v8665_v57 = vld [vmem:[#allocation169_spill] sm:$0xff]  ;;  %v8666_v3 = vld [vmem:[#allocation171_spill] sm:$0xff]  ;;  %v8668_v16 = vld [vmem:[#allocation166_spill] sm:$0xff] }
 0xde4   :  { %v1605_v4 = vsel %vm1490_vm5, %v8659_v13, %v8658_v11  ;;  %v1565_v46 = vadd.f32 %v1551_v27, %v1510_v40  ;;  %v1616_v45 = vadd.f32 %v1602_v33, %v1561_v24  ;;  %v1614_v10 = vadd.f32 %v8657_v23, %v1559_v36  ;;  %v8663_v40 = vld [vmem:[#allocation174_spill] sm:$0xff]  ;;  %v8667_v27 = vld [vmem:[#allocation175_spill] sm:$0xff]  ;;  %v6178_v36 = vpop.permute.xlu1 %2041 }
 0xde5   :  { %v1603_v5 = vsel %vm1490_vm5, %v8655_v17, %v8660_v55  ;;  %v1615_v1 = vadd.f32 %v1601_v38, %v1560_v2  ;;  %v1604_v12 = vsel %vm1490_vm5, %v8660_v55, %v8659_v13  ;;  %v1606_v37 = vsel %vm1490_vm5, %v8658_v11, %v8661_v22 }
 0xde6   :  { %v1619_v47 = vadd.f32 %v1605_v4, %v1564_v19  ;;  %v1658_v30 = vsel %vm1490_vm5, %v8663_v40, %v8662_v21  ;;  %v1656_v44 = vsel %vm1490_vm5, %v8665_v57, %v8664_v41  ;;  %v1657_v56 = vsel %vm1490_vm5, %v8664_v41, %v8663_v40  ;;  %v8669_v19 = vld [vmem:[#allocation181_spill] sm:$0xff] }
 0xde7   :  { %v1617_v29 = vadd.f32 %v1603_v5, %v1562_v28  ;;  %v1661_v17 = vsel %vm1490_vm5, %v8667_v27, %v8666_v3  ;;  %v1659_v33 = vsel %vm1490_vm5, %v8662_v21, %v8668_v16  ;;  %v1660_v24 = vsel %vm1490_vm5, %v8668_v16, %v8667_v27  ;;  %v8670_v28 = vld [vmem:[#allocation172_spill] sm:$0xff]  ;;  %v6187_v21 = vpop.permute.xlu0 %2039 }
 0xde8   :  { %v1618_v2 = vadd.f32 %v1604_v12, %v1563_v62  ;;  %v1620_v23 = vadd.f32 %v1606_v37, %v1565_v46  ;;  %v1669_v38 = vadd.f32 %v8665_v57, %v1614_v10  ;;  %v1713_v11 = vsel %vm1711_vm6, %v8670_v28, %v8669_v19  ;;  %v8671_v5 = vld [vmem:[#allocation176_spill] sm:$0xff]  ;;  %v8672_v62 = vld [vmem:[#allocation182_spill] sm:$0xff]  ;;  %v8673_v46 = vld [vmem:[#allocation173_spill] sm:$0xff] }
 0xde9   :  { %v1672_v13 = vadd.f32 %v1658_v30, %v1617_v29  ;;  %v1670_v4 = vadd.f32 %v1656_v44, %v1615_v1  ;;  %v1671_v55 = vadd.f32 %v1657_v56, %v1616_v45  ;;  %v1712_v22 = vsel %vm1711_vm6, %v8671_v5, %v8670_v28  ;;  %v8674_v37 = vld [vmem:[#allocation177_spill] sm:$0xff]  ;;  %v8675_v1 = vld [vmem:[#allocation178_spill] sm:$0xff]  ;;  %v8676_v56 = vld [vmem:[#allocation179_spill] sm:$0xff] }
 0xdea   :  { %v1675_v40 = vadd.f32 %v1661_v17, %v1620_v23  ;;  %v1673_v41 = vadd.f32 %v1659_v33, %v1618_v2  ;;  %v1674_v3 = vadd.f32 %v1660_v24, %v1619_v47  ;;  %v1716_v10 = vsel %vm1711_vm6, %v8673_v46, %v8672_v62  ;;  %v8677_v29 = vld [vmem:[#allocation183_spill] sm:$0xff]  ;;  %v8678_v33 = vld [vmem:[#allocation184_spill] sm:$0xff] }
 0xdeb   :  { %v1727_v12 = vadd.f32 %v1713_v11, %v1671_v55  ;;  %v1714_v30 = vsel %vm1711_vm6, %v8669_v19, %v8674_v37  ;;  %v1715_v45 = vsel %vm1711_vm6, %v8674_v37, %v8673_v46  ;;  %v1717_v57 = vsel %vm1711_vm6, %v8672_v62, %v8675_v1  ;;  %v8679_v2 = vld [vmem:[#allocation180_spill] sm:$0xff]  ;;  %v8681_v1 = vld [vmem:[#allocation186_spill] sm:$0xff] }
 0xdec   :  { %v1725_v44 = vadd.f32 %v8671_v5, %v1669_v38  ;;  %v1726_v47 = vadd.f32 %v1712_v22, %v1670_v4  ;;  %v1767_v27 = vsel %vm1711_vm6, %v8677_v29, %v8676_v56  ;;  %v1768_v17 = vsel %vm1711_vm6, %v8676_v56, %v5541_v50  ;;  %v8680_v4 = vld [vmem:[#allocation185_spill] sm:$0xff] }
 0xded   :  { %v1730_v16 = vadd.f32 %v1716_v10, %v1674_v3  ;;  %v1769_v24 = vsel %vm1711_vm6, %v5541_v50, %v8678_v33  ;;  %v1770_v23 = vsel %vm1711_vm6, %v8678_v33, %v8679_v2  ;;  %v1771_v38 = vsel %vm1711_vm6, %v8679_v2, %v5543_v42 }
 0xdee   :  { %v1728_v19 = vadd.f32 %v1714_v30, %v1672_v13  ;;  %v1729_v28 = vadd.f32 %v1715_v45, %v1673_v41  ;;  %v1731_v11 = vadd.f32 %v1717_v57, %v1675_v40  ;;  %v1772_v55 = vsel %vm1711_vm6, %v5543_v42, %v8680_v4 }
 0xdef   :  { %v1780_v5 = vadd.f32 %v8677_v29, %v1725_v44  ;;  %v1781_v22 = vadd.f32 %v1767_v27, %v1726_v47  ;;  %v1782_v3 = vadd.f32 %v1768_v17, %v1727_v12  ;;  %v1824_v50 = vsel %vm1711_vm6, %v5572_v9, %v5547_v58  ;;  %v8682_v12 = vld [vmem:[#allocation187_spill] sm:$0xff]  ;;  %v8683_v44 = vld [vmem:[#allocation188_spill] sm:$0xff]  ;;  %v8684_v29 = vld [vmem:[#allocation189_spill] sm:$0xff] }
 0xdf0   :  { %v1783_v46 = vadd.f32 %v1769_v24, %v1728_v19  ;;  %v1784_v10 = vadd.f32 %v1770_v23, %v1729_v28  ;;  %v1785_v37 = vadd.f32 %v1771_v38, %v1730_v16  ;;  %v1822_v13 = vsel %vm1711_vm6, %v5545_v48, %v8681_v1  ;;  %v8685_v17 = vld [vmem:[#allocation190_spill] sm:$0xff] }
 0xdf1   :  { %v1786_v40 = vadd.f32 %v1772_v55, %v1731_v11  ;;  %v1835_v41 = vadd.f32 %v5545_v48, %v1780_v5  ;;  %v1823_v42 = vsel %vm1711_vm6, %v8681_v1, %v5572_v9  ;;  %v1826_v30 = vsel %vm1711_vm6, %v8682_v12, %v5574_v14 }
 0xdf2   :  { %v1838_v57 = vadd.f32 %v1824_v50, %v1783_v46  ;;  %v1827_v47 = vsel %vm1711_vm6, %v5574_v14, %v8683_v44  ;;  %v1825_v56 = vsel %vm1711_vm6, %v5547_v58, %v8682_v12  ;;  %v1836_v48 = vadd.f32 %v1822_v13, %v1781_v22 }
 0xdf3   :  { %v1878_v9 = vsel %vm1711_vm6, %v8684_v29, %v5603_v6  ;;  %v1877_v27 = vsel %vm1711_vm6, %v5576_v63, %v8684_v29  ;;  %v1881_v16 = vsel %vm1711_vm6, %v8685_v17, %v5605_v25  ;;  %v1837_v33 = vadd.f32 %v1823_v42, %v1782_v3 }
 0xdf4   :  { %v1840_v14 = vadd.f32 %v1826_v30, %v1785_v37  ;;  %v1879_v58 = vsel %vm1711_vm6, %v5603_v6, %v5578_v15  ;;  %v1880_v24 = vsel %vm1711_vm6, %v5578_v15, %v8685_v17  ;;  %v1841_v2 = vadd.f32 %v1827_v47, %v1786_v40  ;;  %v2089_v6 = vpop.permute.xlu2 %2088 }
 0xdf5   :  { %v1839_v23 = vadd.f32 %v1825_v56, %v1784_v10  ;;  %v1934_v38 = vsel %vm1932_vm7, %v5582_v60, %v5634_v34  ;;  %v1933_v19 = vsel %vm1932_vm7, %v5607_v26, %v5582_v60  ;;  %v1892_v28 = vadd.f32 %v1878_v9, %v1837_v33 }
 0xdf6   :  { %v1890_v11 = vadd.f32 %v5576_v63, %v1835_v41  ;;  %v1891_v4 = vadd.f32 %v1877_v27, %v1836_v48  ;;  %v1895_v55 = vadd.f32 %v1881_v16, %v1840_v14  ;;  %v1893_v5 = vadd.f32 %v1879_v58, %v1838_v57 }
 0xdf7   :  { %v1894_v22 = vadd.f32 %v1880_v24, %v1839_v23  ;;  %v1988_v15 = vsel %vm1932_vm7, %v5638_v43, %v5613_v59  ;;  %v1989_v3 = vsel %vm1932_vm7, %v5613_v59, %v5948_v32  ;;  %v1882_v60 = vsel %vm1711_vm6, %v5605_v25, %v5580_v7 }
 0xdf8   :  { %v1948_v46 = vadd.f32 %v1934_v38, %v1892_v28  ;;  %v1946_v63 = vadd.f32 %v5607_v26, %v1890_v11  ;;  %v1947_v10 = vadd.f32 %v1933_v19, %v1891_v4  ;;  %v1937_v37 = vsel %vm1932_vm7, %v5584_v35, %v5636_v0 }
 0xdf9   :  { %v1935_v1 = vsel %vm1932_vm7, %v5634_v34, %v5609_v51  ;;  %v2044_v59 = vsel %vm1932_vm7, %v5644_v61, %v6126_v31  ;;  %v2043_v7 = vsel %vm1932_vm7, %v6055_v52, %v5644_v61  ;;  %v1936_v25 = vsel %vm1932_vm7, %v5609_v51, %v5584_v35 }
 0xdfa   :  { %v2001_v26 = vadd.f32 %v5638_v43, %v1946_v63  ;;  %v2002_v13 = vadd.f32 %v1988_v15, %v1947_v10  ;;  %v2003_v40 = vadd.f32 %v1989_v3, %v1948_v46  ;;  %v1990_v34 = vsel %vm1932_vm7, %v5948_v32, %v5640_v54 }
 0xdfb   :  { %v1991_v41 = vsel %vm1932_vm7, %v5640_v54, %v5615_v18  ;;  %v1992_v35 = vsel %vm1932_vm7, %v5615_v18, %v6004_v39  ;;  %v1951_v57 = vadd.f32 %v1937_v37, %v1895_v55  ;;  %v1949_v44 = vadd.f32 %v1935_v1, %v1893_v5 }
 0xdfc   :  { %v2058_v51 = vadd.f32 %v2044_v59, %v2003_v40  ;;  %v2056_v43 = vadd.f32 %v6055_v52, %v2001_v26  ;;  %v2057_v30 = vadd.f32 %v2043_v7, %v2002_v13  ;;  %v1950_v32 = vadd.f32 %v1936_v25, %v1894_v22  ;;  %v2095_v16 = vpop.permute.xlu2 %2094  ;;  %v4417_v59 = vld [vmem:[%s8005_s1 + $0xa0] sm:$0xf]  ;;  %v4416_v7 = vld [vmem:[%s8005_s1 + $0x9c] sm:$0xf]  ;;  %v4415_v25 = vld [vmem:[%s8005_s1 + $0x98] sm:$0xf] }
 0xdfd   :  { %v2047_v54 = vsel %vm1932_vm7, %v5646_v53, %v6187_v21  ;;  %v1938_v18 = vsel %vm1932_vm7, %v5636_v0, %v5611_v8  ;;  %v2004_v52 = vadd.f32 %v1990_v34, %v1949_v44  ;;  %v2006_v9 = vadd.f32 %v1992_v35, %v1951_v57  ;;  %v20_v26 = vld [vmem:[%s8008_s3] sm:$0x3f] }
 0xdfe   :  { %v2005_v29 = vadd.f32 %v1991_v41, %v1950_v32  ;;  %v2045_v17 = vsel %vm1932_vm7, %v6126_v31, %v6111_v20  ;;  %v1896_v28 = vadd.f32 %v1882_v60, %v1841_v2  ;;  %v2048_v2 = vsel %vm1932_vm7, %v6187_v21, %v6178_v36  ;;  %v4414_v36 = vld [vmem:[%s8005_s1 + $0x94] sm:$0xf]  ;;  %v4413_v21 = vld [vmem:[%s8005_s1 + $0x90] sm:$0xf] }
 0xdff   :  { %v2059_v11 = vadd.f32 %v2045_v17, %v2004_v52  ;;  %vm21_vm8 = vcmp.ne.f32.partialorder %v20_v26, 0.0  ;;  %v8686_v40 = vmov 0  }
 0xe00   :  { %v1952_v55 = vadd.f32 %v1938_v18, %v1896_v28  ;;  %v2138_v34 = vsel %vm21_vm8, 1, %v8686_v40  ;;  %v4418_v40 = vld [vmem:[%s8005_s1 + $0xa4] sm:$0xf] }
 0xe01   :  { %v2085_v45 = vpop.permute.xlu0 %2084  ;;  %v2140_v41 = vperm.slane %v2138_v34, 1 }
 0xe02   :  { %v2087_v62 = vpop.permute.xlu1 %2086  ;;  %v2111_v47 = vadd.f32 %v2085_v45, %v2056_v43  ;;  %v8690_v43 = vmov 0 }
 0xe03   :  { %v2098_v42 = vsel %vm1932_vm7, %v2085_v45, %v2087_v62  ;;  %v2099_v61 = vsel %vm1932_vm7, %v2087_v62, %v2089_v6  ;;  %v2046_v62 = vsel %vm1932_vm7, %v6111_v20, %v5646_v53  ;;  %v2061_v53 = vadd.f32 %v2047_v54, %v2006_v9 }
 0xe04   :  { %v2112_v56 = vadd.f32 %v2098_v42, %v2057_v30  ;;  %v2113_v48 = vadd.f32 %v2099_v61, %v2058_v51  ;;  %v2060_v45 = vadd.f32 %v2046_v62, %v2005_v29  ;;  %v1993_v20 = vsel %vm1932_vm7, %v6004_v39, %v5642_v49 }
 0xe05   :  { %v2007_v3 = vadd.f32 %v1993_v20, %v1952_v55  ;;  %v2139_v61 = vperm.slane %v2138_v34, 0  ;;  %vm6348_vm10 = vcmp.eq.s32.totalorder %v2140_v41, 1  ;;  %v2144_v54 = vperm.slane %v2138_v34, 5 }
 0xe06   :  { %v2142_v62 = vperm.slane %v2138_v34, 3  ;;  %v8693_v29 = vmov 0  ;;  %v8696_v9 = vmov 0 }
 0xe07   :  { %vm6352_vm11 = vcmp.eq.s32.totalorder %v2139_v61, 1  ;;  %vm6363_vm13 = vcmp.eq.s32.totalorder %v2144_v54, 1 }
 0xe08   :  { %v8691_v43 = vsel %vm6352_vm11, 4294967295, %v8690_v43  ;;  %v8694_v29 = vsel %vm6363_vm13, 4294967295, %v8693_v29  ;;  %vm6367_vm14 = vcmp.eq.s32.totalorder %v2142_v62, 1 }
 0xe09   :  { %v2091_v12 = vpop.permute.xlu0 %2090  ;;  %8692 = vst [vmem:[#allocation4_spill] sm:$0xff] %v8691_v43  ;;  %v8697_v9 = vsel %vm6367_vm14, 4294967295, %v8696_v9 }
 0xe0a   :  { %v2093_v50 = vpop.permute.xlu1 %2092  ;;  %v2100_v8 = vsel %vm1932_vm7, %v2089_v6, %v2091_v12  ;;  %8695 = vst [vmem:[#allocation3_spill] sm:$0xff] %v8694_v29 }
 0xe0b   :  { %v2101_v24 = vsel %vm1932_vm7, %v2091_v12, %v2093_v50  ;;  %v2102_v23 = vsel %vm1932_vm7, %v2093_v50, %v2095_v16  ;;  %v2114_v5 = vadd.f32 %v2100_v8, %v2059_v11  ;;  %v2062_v50 = vadd.f32 %v2048_v2, %v2007_v3  ;;  %8698 = vst [vmem:[#allocation5_spill] sm:$0xff] %v8697_v9 }
 0xe0c   :  { %v2115_v31 = vadd.f32 %v2101_v24, %v2060_v45  ;;  %v2116_v4 = vadd.f32 %v2102_v23, %v2061_v53  ;;  %v8687_v12 = vmov 0 }
 0xe0d   :  { %v8688_v12 = vsel %vm6348_vm10, 4294967295, %v8687_v12 }
 0xe0e   :  { %8689 = vst [vmem:[#allocation9_spill] sm:$0xff] %v8688_v12 }
 0xe11   :  { %v2097_v22 = vpop.permute.xlu0 %2096 }
 0xe12   :  { %v2122_v27 = vpop.permute.xlu1 %2121  ;;  %v2103_v39 = vsel %vm1932_vm7, %v2095_v16, %v2097_v22  ;;  %v8702_v16 = vmov 0 }
 0xe13   :  { %v2126_v33 = vadd.f32 %v2122_v27, %v2113_v48  ;;  %v2125_v14 = vadd.f32 %v2122_v27, %v2112_v56  ;;  %v2124_v58 = vadd.f32 %v2122_v27, %v2111_v47  ;;  %v2129_v6 = vadd.f32 %v2122_v27, %v2116_v4 }
 0xe14   :  { %v2128_v15 = vadd.f32 %v2122_v27, %v2115_v31  ;;  %v2127_v49 = vadd.f32 %v2122_v27, %v2114_v5  ;;  %v2117_v63 = vadd.f32 %v2103_v39, %v2062_v50  ;;  %v2141_v47 = vperm.slane %v2138_v34, 2 }
 0xe15   :  { %v2133_v0 = vmax.f32 %v2126_v33, 0.0  ;;  %v2132_v38 = vmax.f32 %v2125_v14, 0.0  ;;  %v2131_v19 = vmax.f32 %v2124_v58, 0.0  ;;  %v2136_v60 = vmax.f32 %v2129_v6, 0.0 }
 0xe16   :  { %v2135_v46 = vmax.f32 %v2128_v15, 0.0  ;;  %v2134_v10 = vmax.f32 %v2127_v49, 0.0  ;;  %v2130_v37 = vadd.f32 %v2122_v27, %v2117_v63  ;;  %v2143_v48 = vperm.slane %v2138_v34, 4 }
 0xe17   :  { %2162 = vrot.lane.b32.xlu1 %v2133_v0, %s4472_s6  ;;  %2160 = vrot.lane.b32.xlu0 %v2132_v38, %s4472_s6  ;;  %vm6371_vm15 = vcmp.eq.s32.totalorder %v2141_v47, 1  ;;  %v8699_v27 = vmov 0 }
 0xe18   :  { %2158 = vrot.lane.b32.xlu2 %v2131_v19, %s4472_s6  ;;  %v2137_v1 = vmax.f32 %v2130_v37, 0.0  ;;  %v8700_v27 = vsel %vm6371_vm15, 4294967295, %v8699_v27  ;;  %vm6375_vm8 = vcmp.eq.s32.totalorder %v2143_v48, 1 }
 0xe19   :  { %8701 = vst [vmem:[#allocation7_spill] sm:$0xff] %v8700_v27  ;;  %v8703_v16 = vsel %vm6375_vm8, 4294967295, %v8702_v16 }
 0xe1a   :  { %8704 = vst [vmem:[#allocation6_spill] sm:$0xff] %v8703_v16 }
 0xe1f   :  { %2168 = vrot.lane.b32.xlu1 %v2136_v60, %s4472_s6  ;;  %2166 = vrot.lane.b32.xlu0 %v2135_v46, %s4472_s6 }
 0xe20   :  { %2164 = vrot.lane.b32.xlu2 %v2134_v10, %s4472_s6 }
 0xe27   :  { %2264 = vperm.xlu1 %4461, %v4414_v36   ;;  %2218 = vperm.xlu0 %4460, %v4413_v21  }
 0xe28   :  { %2170 = vrot.lane.b32.xlu2 %v2137_v1, %s4472_s6 }
 0xe2f   :  { %2390 = vperm.xlu1 %4461, %v4417_v59   ;;  %2348 = vperm.xlu0 %4460, %v4416_v7  }
 0xe30   :  { %2306 = vperm.xlu2 %4462, %v4415_v25  }
 0xe72   :  { %v2159_v13 = vpop.permute.xlu2 %2158 }
 0xe7a   :  { %v2165_v42 = vpop.permute.xlu2 %2164 }
 0xe82   :  { %v2171_v52 = vpop.permute.xlu2 %2170 }
 0xe89   :  { %v2163_v35 = vpop.permute.xlu1 %2162  ;;  %v2161_v51 = vpop.permute.xlu0 %2160 }
 0xe8a   :  { %v2173_v30 = vsel %vm2172_vm9, %v2159_v13, %v2161_v51  ;;  %v2174_v57 = vsel %vm2172_vm9, %v2161_v51, %v2163_v35  ;;  %v2175_v14 = vsel %vm2172_vm9, %v2163_v35, %v2165_v42 }
 0xe8b   :  { %v2186_v44 = vsel %vm6348_vm10, %v2174_v57, 0.0  ;;  %v2185_v56 = vsel %vm6352_vm11, %v2173_v30, 0.0  ;;  %v2187_v38 = vsel %vm6371_vm15, %v2175_v14, 0.0 }
 0xe8c   :  { %v2197_v32 = vrot.slane %v2186_v44, 4 }
 0xe8e   :  { %v2201_v18 = vsel %vm2200_vm12, %v2185_v56, %v2197_v32 }
 0xe8f   :  { %2207 = vst [vmem:[#allocation2 + $0x4] sm:$0xff] %v2201_v18 }
 0xe91   :  { %v2169_v17 = vpop.permute.xlu1 %2168  ;;  %v2167_v33 = vpop.permute.xlu0 %2166 }
 0xe92   :  { %v2178_v58 = vsel %vm2172_vm9, %v2169_v17, %v2171_v52  ;;  %v2176_v53 = vsel %vm2172_vm9, %v2165_v42, %v2167_v33  ;;  %v2177_v45 = vsel %vm2172_vm9, %v2167_v33, %v2169_v17 }
 0xe93   :  { %v2190_v24 = vsel %vm6363_vm13, %v2178_v58, 0.0  ;;  %v2188_v23 = vsel %vm6367_vm14, %v2176_v53, 0.0  ;;  %v2189_v19 = vsel %vm6375_vm8, %v2177_v45, 0.0 }
 0xe94   :  { %v2199_v8 = vrot.slane %v2190_v24, 4  ;;  %v2198_v0 = vrot.slane %v2188_v23, 4 }
 0xe96   :  { %v2202_v28 = vsel %vm2200_vm12, %v2187_v38, %v2198_v0  ;;  %v2203_v11 = vsel %vm2200_vm12, %v2189_v19, %v2199_v8  ;;  %v6395_v31 = vld [vmem:[#allocation2] sm:$0xff]  ;;  %v4419_v0 = vld [vmem:[%s8005_s1 + $0xa8] sm:$0xf]  ;;  %v6487_v19 = vpop.permute.xlu2 %2306 }
 0xe97   :  { %2208 = vst [vmem:[#allocation2 + $0xc] sm:$0xff] %v2202_v28  ;;  %v2226_v4 = vperm.slane %v6395_v31, 4  ;;  %v2225_v55 = vperm.slane %v6395_v31, 0  ;;  %v2267_v51 = vperm.slane %v6395_v31, 1  ;;  %v2268_v30 = vperm.slane %v6395_v31, 5 }
 0xe98   :  { %2209 = vst [vmem:[#allocation2 + $0x14] sm:$0xff] %v2203_v11 }
 0xe99   :  { %v6393_v20 = vpop.permute.xlu1 %2264  ;;  %v6404_v6 = vperm.slane %v2226_v4, 0  ;;  %v6406_v15 = vperm.slane %v2225_v55, 0  ;;  %v6441_v41 = vpop.permute.xlu0 %2218  ;;  %v6452_v44 = vperm.slane %v2267_v51, 1  ;;  %v6454_v32 = vperm.slane %v2268_v30, 1 }
 0xe9b   :  { %8705 = vst [vmem:[#allocation8_spill] sm:$0xff] %v6404_v6 }
 0xe9c   :  { %8706 = vst [vmem:[#allocation35_spill] sm:$0xff] %v6406_v15 }
 0xe9d   :  { %8710 = vst [vmem:[#allocation37_spill] sm:$0xff] %v6452_v44 }
 0xe9e   :  { %v6399_v5 = vld [vmem:[#allocation2 + $0x8] sm:$0xff]  ;;  %8711 = vst [vmem:[#allocation11_spill] sm:$0xff] %v6454_v32 }
 0xe9f   :  { %v2227_v22 = vperm.slane %v6399_v5, 0  ;;  %v6402_v2 = vld [vmem:[#allocation2 + $0x10] sm:$0xff]  ;;  %v2228_v60 = vperm.slane %v6399_v5, 4  ;;  %v6425_v1 = vld [vmem:[#allocation2 + $0x18] sm:$0xf]  ;;  %v2269_v57 = vperm.slane %v6399_v5, 1 }
 0xea0   :  { %v2229_v46 = vperm.slane %v6402_v2, 0  ;;  %v2230_v10 = vperm.slane %v6402_v2, 4  ;;  %v2231_v25 = vperm.slane %v6425_v1, 0  ;;  %v2271_v18 = vperm.slane %v6402_v2, 1 }
 0xea1   :  { %v2391_v3 = vpop.permute.xlu1 %2390  ;;  %v6408_v49 = vperm.slane %v2227_v22, 0  ;;  %v6419_v37 = vperm.slane %v2228_v60, 0  ;;  %v6443_v42 = vpop.permute.xlu0 %2348  ;;  %v6456_v54 = vperm.slane %v2269_v57, 1  ;;  %v2272_v52 = vperm.slane %v6402_v2, 5 }
 0xea2   :  { %v2394_v39 = vmul.f32 %v2391_v3, %v6404_v6  ;;  %v2393_v50 = vmul.f32 %v2391_v3, %v6406_v15  ;;  %v6421_v36 = vperm.slane %v2229_v46, 0  ;;  %v6423_v21 = vperm.slane %v2230_v10, 0 }
 0xea3   :  { %v2395_v63 = vmul.f32 %v2391_v3, %v6408_v49  ;;  %v2396_v59 = vmul.f32 %v2391_v3, %v6419_v37  ;;  %v6434_v13 = vperm.slane %v2231_v25, 0  ;;  %v2270_v17 = vperm.slane %v6399_v5, 5 }
 0xea4   :  { %2409 = vrot.lane.b32.xlu0 %v2394_v39, %s4464_s0  ;;  %2407 = vrot.lane.b32.xlu2 %v2393_v50, %s4464_s0  ;;  %8707 = vst [vmem:[#allocation10_spill] sm:$0xff] %v6423_v21  ;;  %v2397_v7 = vmul.f32 %v2391_v3, %v6421_v36  ;;  %v2398_v26 = vmul.f32 %v2391_v3, %v6423_v21  ;;  %v6467_v33 = vperm.slane %v2271_v18, 1  ;;  %v6469_v14 = vperm.slane %v2272_v52, 1  ;;  %v4420_v52 = vld [vmem:[%s8005_s1 + $0xac] sm:$0xf] }
 0xea5   :  { %2411 = vrot.lane.b32.xlu1 %v2395_v63, %s4464_s0  ;;  %8708 = vst [vmem:[#allocation22_spill] sm:$0xff] %v6434_v13  ;;  %v2399_v34 = vmul.f32 %v2391_v3, %v6434_v13  ;;  %v6471_v58 = vperm.slane %v2270_v17, 1  ;;  %v2273_v23 = vperm.slane %v6425_v1, 1  ;;  %v2309_v3 = vperm.slane %v6395_v31, 2 }
 0xea6   :  { %8712 = vst [vmem:[#allocation24_spill] sm:$0xff] %v6469_v14  ;;  %v2310_v39 = vperm.slane %v6395_v31, 6  ;;  %v2311_v50 = vperm.slane %v6399_v5, 2 }
 0xea7   :  { %v6480_v8 = vperm.slane %v2273_v23, 1  ;;  %v6502_v60 = vperm.slane %v2309_v3, 2 }
 0xea8   :  { %v6504_v46 = vperm.slane %v2310_v39, 2  ;;  %v6506_v63 = vperm.slane %v2311_v50, 2  ;;  %v2351_v39 = vperm.slane %v6395_v31, 3  ;;  %v2352_v50 = vperm.slane %v6395_v31, 7 }
 0xea9   :  { %8713 = vst [vmem:[#allocation39_spill] sm:$0xff] %v6480_v8  ;;  %v2355_v31 = vperm.slane %v6402_v2, 3 }
 0xeaa   :  { %8717 = vst [vmem:[#allocation41_spill] sm:$0xff] %v6502_v60 }
 0xeab   :  { %8718 = vst [vmem:[#allocation27_spill] sm:$0xff] %v6504_v46 }
 0xeac   :  { %2413 = vrot.lane.b32.xlu2 %v2396_v59, %s4464_s0  ;;  %2415 = vrot.lane.b32.xlu0 %v2397_v7, %s4464_s0 }
 0xead   :  { %2417 = vrot.lane.b32.xlu1 %v2398_v26, %s4464_s0  ;;  %v2313_v26 = vperm.slane %v6402_v2, 2 }
 0xeaf   :  { %v6517_v51 = vperm.slane %v2313_v26, 2 }
 0xeb4   :  { %2419 = vrot.lane.b32.xlu2 %v2399_v34, %s4464_s0  ;;  %2445 = vperm.xlu0 %4460, %v4418_v40   ;;  %v2314_v40 = vperm.slane %v6402_v2, 6  ;;  %v2312_v34 = vperm.slane %v6399_v5, 6 }
 0xeb6   :  { %v6519_v30 = vperm.slane %v2314_v40, 2  ;;  %v6521_v57 = vperm.slane %v2312_v34, 2 }
 0xeb8   :  { %8719 = vst [vmem:[#allocation14_spill] sm:$0xff] %v6519_v30 }
 0xefe   :  { %v6489_v28 = vpop.permute.xlu2 %2407 }
 0xeff   :  { %8714 = vst [vmem:[#allocation12_spill] sm:$0xff] %v6489_v28 }
 0xf06   :  { %v6491_v11 = vpop.permute.xlu2 %2413 }
 0xf0e   :  { %v6493_v4 = vpop.permute.xlu2 %2419 }
 0xf0f   :  { %8715 = vst [vmem:[#allocation26_spill] sm:$0xff] %v6493_v4 }
 0xf16   :  { %v6445_v61 = vpop.permute.xlu0 %2409 }
 0xf17   :  { %8709 = vst [vmem:[#allocation33_spill] sm:$0xff] %v6445_v61 }
 0xf1e   :  { %v6447_v35 = vpop.permute.xlu0 %2415 }
 0xf26   :  { %v2446_v62 = vpop.permute.xlu0 %2445 }
 0xf27   :  { %v2450_v47 = vmul.f32 %v2446_v62, %v6456_v54  ;;  %v2449_v56 = vmul.f32 %v2446_v62, %v6454_v32  ;;  %v2448_v48 = vmul.f32 %v2446_v62, %v6452_v44  ;;  %v2453_v53 = vmul.f32 %v2446_v62, %v6469_v14 }
 0xf28   :  { %v2452_v45 = vmul.f32 %v2446_v62, %v6467_v33  ;;  %v2451_v24 = vmul.f32 %v2446_v62, %v6471_v58  ;;  %v2454_v38 = vmul.f32 %v2446_v62, %v6480_v8 }
 0xf29   :  { %2466 = vrot.lane.b32.xlu0 %v2450_v47, %s4464_s0  ;;  %2464 = vrot.lane.b32.xlu2 %v2449_v56, %s4464_s0 }
 0xf2a   :  { %2462 = vrot.lane.b32.xlu1 %v2448_v48, %s4464_s0  ;;  %v2315_v48 = vperm.slane %v6425_v1, 2 }
 0xf2c   :  { %v6530_v18 = vperm.slane %v2315_v48, 2 }
 0xf2e   :  { %8720 = vst [vmem:[#allocation15_spill] sm:$0xff] %v6530_v18 }
 0xf31   :  { %2472 = vrot.lane.b32.xlu0 %v2453_v53, %s4464_s0  ;;  %2470 = vrot.lane.b32.xlu2 %v2452_v45, %s4464_s0  ;;  %v6537_v53 = vpop.permute.xlu1 %2411 }
 0xf32   :  { %2468 = vrot.lane.b32.xlu1 %v2451_v24, %s4464_s0 }
 0xf39   :  { %2500 = vperm.xlu2 %4462, %v4419_v0   ;;  %v6539_v45 = vpop.permute.xlu1 %2417 }
 0xf3a   :  { %2474 = vrot.lane.b32.xlu1 %v2454_v38, %s4464_s0 }
 0xf83   :  { %v6495_v55 = vpop.permute.xlu2 %2464 }
 0xf84   :  { %8716 = vst [vmem:[#allocation13_spill] sm:$0xff] %v6495_v55 }
 0xf8b   :  { %v6497_v22 = vpop.permute.xlu2 %2470 }
 0xf93   :  { %v2501_v10 = vpop.permute.xlu2 %2500 }
 0xf94   :  { %v2505_v59 = vmul.f32 %v2501_v10, %v6506_v63  ;;  %v2504_v7 = vmul.f32 %v2501_v10, %v6504_v46  ;;  %v2503_v25 = vmul.f32 %v2501_v10, %v6502_v60  ;;  %v2508_v62 = vmul.f32 %v2501_v10, %v6519_v30 }
 0xf95   :  { %v2507_v47 = vmul.f32 %v2501_v10, %v6517_v51  ;;  %v2506_v56 = vmul.f32 %v2501_v10, %v6521_v57  ;;  %v2509_v17 = vmul.f32 %v2501_v10, %v6530_v18  ;;  %v2353_v10 = vperm.slane %v6399_v5, 3 }
 0xf96   :  { %2521 = vrot.lane.b32.xlu2 %v2505_v59, %s4464_s0  ;;  %2519 = vrot.lane.b32.xlu1 %v2504_v7, %s4464_s0  ;;  %v6554_v59 = vperm.slane %v2351_v39, 3  ;;  %v6556_v7 = vperm.slane %v2352_v50, 3 }
 0xf97   :  { %2517 = vrot.lane.b32.xlu0 %v2503_v25, %s4464_s0  ;;  %v6558_v25 = vperm.slane %v2353_v10, 3  ;;  %v2357_v10 = vperm.slane %v6425_v1, 3 }
 0xf98   :  { %8724 = vst [vmem:[#allocation16_spill] sm:$0xff] %v6554_v59 }
 0xf99   :  { %8725 = vst [vmem:[#allocation45_spill] sm:$0xff] %v6556_v7 }
 0xf9c   :  { %v6541_v24 = vpop.permute.xlu1 %2462 }
 0xf9d   :  { %8721 = vst [vmem:[#allocation28_spill] sm:$0xff] %v6541_v24 }
 0xf9e   :  { %2527 = vrot.lane.b32.xlu2 %v2508_v62, %s4464_s0  ;;  %2525 = vrot.lane.b32.xlu1 %v2507_v47, %s4464_s0  ;;  %v2354_v47 = vperm.slane %v6399_v5, 7 }
 0xf9f   :  { %2523 = vrot.lane.b32.xlu0 %v2506_v56, %s4464_s0  ;;  %v2356_v56 = vperm.slane %v6402_v2, 7  ;;  %v6582_v2 = vperm.slane %v2357_v10, 3 }
 0xfa0   :  { %v6569_v48 = vperm.slane %v2354_v47, 3 }
 0xfa1   :  { %8727 = vst [vmem:[#allocation48_spill] sm:$0xff] %v6582_v2 }
 0xfa4   :  { %v6543_v23 = vpop.permute.xlu1 %2468 }
 0xfa6   :  { %2555 = vperm.xlu1 %4461, %v4420_v52   ;;  %v6571_v52 = vperm.slane %v2356_v56, 3 }
 0xfa7   :  { %2529 = vrot.lane.b32.xlu0 %v2509_v17, %s4464_s0  ;;  %v6573_v17 = vperm.slane %v2355_v31, 3 }
 0xfa8   :  { %8726 = vst [vmem:[#allocation30_spill] sm:$0xff] %v6571_v52 }
 0xfac   :  { %v6545_v0 = vpop.permute.xlu1 %2474 }
 0xfad   :  { %8722 = vst [vmem:[#allocation43_spill] sm:$0xff] %v6545_v0 }
0x1008   :  { %v6547_v38 = vpop.permute.xlu1 %2519 }
0x1009   :  { %8723 = vst [vmem:[#allocation29_spill] sm:$0xff] %v6547_v38 }
0x1010   :  { %v6549_v3 = vpop.permute.xlu1 %2525 }
0x1018   :  { %v2556_v26 = vpop.permute.xlu1 %2555 }
0x1019   :  { %v2560_v40 = vmul.f32 %v2556_v26, %v6558_v25  ;;  %v2558_v34 = vmul.f32 %v2556_v26, %v6554_v59  ;;  %v2559_v62 = vmul.f32 %v2556_v26, %v6556_v7  ;;  %v2563_v39 = vmul.f32 %v2556_v26, %v6571_v52 }
0x101a   :  { %v2561_v5 = vmul.f32 %v2556_v26, %v6569_v48  ;;  %v2562_v50 = vmul.f32 %v2556_v26, %v6573_v17 }
0x101b   :  { %2576 = vrot.lane.b32.xlu1 %v2560_v40, %s4464_s0  ;;  %2572 = vrot.lane.b32.xlu2 %v2558_v34, %s4464_s0  ;;  %v2564_v40 = vmul.f32 %v2556_v26, %v6582_v2  ;;  %v4421_v34 = vld [vmem:[%s8005_s1 + $0xb0] sm:$0xf] }
0x101c   :  { %2574 = vrot.lane.b32.xlu0 %v2559_v62, %s4464_s0  ;;  %v6589_v62 = vpop.permute.xlu0 %2466 }
0x1023   :  { %2582 = vrot.lane.b32.xlu1 %v2563_v39, %s4464_s0  ;;  %2578 = vrot.lane.b32.xlu2 %v2561_v5, %s4464_s0 }
0x1024   :  { %2580 = vrot.lane.b32.xlu0 %v2562_v50, %s4464_s0  ;;  %v6591_v1 = vpop.permute.xlu0 %2472 }
0x102b   :  { %2584 = vrot.lane.b32.xlu2 %v2564_v40, %s4464_s0 }
0x102c   :  { %2610 = vperm.xlu0 %4460, %v4421_v34   ;;  %v6593_v47 = vpop.permute.xlu0 %2517 }
0x102d   :  { %8728 = vst [vmem:[#allocation17_spill] sm:$0xff] %v6593_v47 }
0x1034   :  { %v6595_v56 = vpop.permute.xlu0 %2523 }
0x103c   :  { %v6597_v31 = vpop.permute.xlu0 %2529 }
0x103d   :  { %8729 = vst [vmem:[#allocation31_spill] sm:$0xff] %v6597_v31 }
0x108e   :  { %v6599_v39 = vpop.permute.xlu0 %2574 }
0x108f   :  { %8730 = vst [vmem:[#allocation47_spill] sm:$0xff] %v6599_v39 }
0x1096   :  { %v6601_v26 = vpop.permute.xlu0 %2580 }
0x109e   :  { %v2611_v5 = vpop.permute.xlu0 %2610 }
0x109f   :  { %v2615_v50 = vmul.f32 %v2611_v5, %v6408_v49  ;;  %v2614_v10 = vmul.f32 %v2611_v5, %v6404_v6  ;;  %v2613_v40 = vmul.f32 %v2611_v5, %v6406_v15  ;;  %v2618_v34 = vmul.f32 %v2611_v5, %v6423_v21 }
0x10a0   :  { %v2617_v16 = vmul.f32 %v2611_v5, %v6421_v36  ;;  %v2616_v29 = vmul.f32 %v2611_v5, %v6419_v37 }
0x10a1   :  { %2631 = vrot.lane.b32.xlu0 %v2615_v50, %s4465_s15  ;;  %2629 = vrot.lane.b32.xlu2 %v2614_v10, %s4465_s15  ;;  %v4422_v50 = vld [vmem:[%s8005_s1 + $0xb4] sm:$0xf]  ;;  %v2619_v10 = vmul.f32 %v2611_v5, %v6434_v13 }
0x10a2   :  { %2627 = vrot.lane.b32.xlu1 %v2613_v40, %s4465_s15  ;;  %v6620_v40 = vpop.permute.xlu2 %2521 }
0x10a9   :  { %2637 = vrot.lane.b32.xlu0 %v2618_v34, %s4465_s15  ;;  %2635 = vrot.lane.b32.xlu2 %v2617_v16, %s4465_s15 }
0x10aa   :  { %2633 = vrot.lane.b32.xlu1 %v2616_v29, %s4465_s15  ;;  %v6622_v43 = vpop.permute.xlu2 %2527 }
0x10b1   :  { %2665 = vperm.xlu2 %4462, %v4422_v50  }
0x10b2   :  { %2639 = vrot.lane.b32.xlu1 %v2619_v10, %s4465_s15  ;;  %v6624_v27 = vpop.permute.xlu2 %2572 }
0x10b3   :  { %8731 = vst [vmem:[#allocation49_spill] sm:$0xff] %v6624_v27 }
0x10ba   :  { %v6626_v34 = vpop.permute.xlu2 %2578 }
0x10c2   :  { %v6628_v16 = vpop.permute.xlu2 %2584 }
0x10c3   :  { %8732 = vst [vmem:[#allocation18_spill] sm:$0xff] %v6628_v16 }
0x10fb   :  { %v6630_v29 = vpop.permute.xlu2 %2629 }
0x10fc   :  { %8733 = vst [vmem:[#allocation32_spill] sm:$0xff] %v6630_v29 }
0x1103   :  { %v6632_v12 = vpop.permute.xlu2 %2635 }
0x110b   :  { %v2666_v9 = vpop.permute.xlu2 %2665 }
0x110c   :  { %v2670_v5 = vmul.f32 %v2666_v9, %v6456_v54  ;;  %v2668_v50 = vmul.f32 %v2666_v9, %v6452_v44  ;;  %v2669_v10 = vmul.f32 %v2666_v9, %v6454_v32  ;;  %v2673_v31 = vmul.f32 %v2666_v9, %v6469_v14 }
0x110d   :  { %v2671_v16 = vmul.f32 %v2666_v9, %v6471_v58  ;;  %v2672_v0 = vmul.f32 %v2666_v9, %v6467_v33  ;;  %v2674_v4 = vmul.f32 %v2666_v9, %v6480_v8 }
0x110e   :  { %2686 = vrot.lane.b32.xlu2 %v2670_v5, %s4465_s15  ;;  %2682 = vrot.lane.b32.xlu0 %v2668_v50, %s4465_s15  ;;  %v4423_v5 = vld [vmem:[%s8005_s1 + $0xb8] sm:$0xf]  ;;  %v6651_v50 = vpop.permute.xlu1 %2576 }
0x110f   :  { %2684 = vrot.lane.b32.xlu1 %v2669_v10, %s4465_s15 }
0x1116   :  { %2692 = vrot.lane.b32.xlu2 %v2673_v31, %s4465_s15  ;;  %2688 = vrot.lane.b32.xlu0 %v2671_v16, %s4465_s15  ;;  %v6653_v10 = vpop.permute.xlu1 %2582 }
0x1117   :  { %2690 = vrot.lane.b32.xlu1 %v2672_v0, %s4465_s15 }
0x111e   :  { %2694 = vrot.lane.b32.xlu0 %v2674_v4, %s4465_s15  ;;  %v6655_v29 = vpop.permute.xlu1 %2627 }
0x111f   :  { %2720 = vperm.xlu1 %4461, %v4423_v5   ;;  %8734 = vst [vmem:[#allocation34_spill] sm:$0xff] %v6655_v29 }
0x1126   :  { %v6657_v31 = vpop.permute.xlu1 %2633 }
0x112e   :  { %v6659_v16 = vpop.permute.xlu1 %2639 }
0x112f   :  { %8735 = vst [vmem:[#allocation50_spill] sm:$0xff] %v6659_v16 }
0x1181   :  { %v6661_v0 = vpop.permute.xlu1 %2684 }
0x1182   :  { %8736 = vst [vmem:[#allocation19_spill] sm:$0xff] %v6661_v0 }
0x1189   :  { %v6663_v9 = vpop.permute.xlu1 %2690 }
0x1191   :  { %v2721_v27 = vpop.permute.xlu1 %2720 }
0x1192   :  { %v2725_v39 = vmul.f32 %v2721_v27, %v6506_v63  ;;  %v2724_v4 = vmul.f32 %v2721_v27, %v6504_v46  ;;  %v2723_v5 = vmul.f32 %v2721_v27, %v6502_v60  ;;  %v2728_v29 = vmul.f32 %v2721_v27, %v6519_v30 }
0x1193   :  { %v2727_v16 = vmul.f32 %v2721_v27, %v6517_v51  ;;  %v2726_v0 = vmul.f32 %v2721_v27, %v6521_v57 }
0x1194   :  { %2741 = vrot.lane.b32.xlu1 %v2725_v39, %s4465_s15  ;;  %2739 = vrot.lane.b32.xlu0 %v2724_v4, %s4465_s15  ;;  %v4424_v39 = vld [vmem:[%s8005_s1 + $0xbc] sm:$0xf]  ;;  %v2729_v4 = vmul.f32 %v2721_v27, %v6530_v18 }
0x1195   :  { %2737 = vrot.lane.b32.xlu2 %v2723_v5, %s4465_s15  ;;  %v6682_v5 = vpop.permute.xlu0 %2631 }
0x119c   :  { %2747 = vrot.lane.b32.xlu1 %v2728_v29, %s4465_s15  ;;  %2745 = vrot.lane.b32.xlu0 %v2727_v16, %s4465_s15 }
0x119d   :  { %2743 = vrot.lane.b32.xlu2 %v2726_v0, %s4465_s15  ;;  %v6684_v47 = vpop.permute.xlu0 %2637 }
0x119e   :  { %8737 = vst [vmem:[#allocation20_spill] sm:$0xff] %v6684_v47 }
0x11a4   :  { %2775 = vperm.xlu0 %4460, %v4424_v39  }
0x11a5   :  { %2749 = vrot.lane.b32.xlu2 %v2729_v4, %s4465_s15  ;;  %v6686_v38 = vpop.permute.xlu0 %2682 }
0x11a6   :  { %8738 = vst [vmem:[#allocation36_spill] sm:$0xff] %v6686_v38 }
0x11ad   :  { %v6688_v29 = vpop.permute.xlu0 %2688 }
0x11b5   :  { %v6690_v16 = vpop.permute.xlu0 %2694 }
0x11b6   :  { %8739 = vst [vmem:[#allocation51_spill] sm:$0xff] %v6690_v16 }
0x1206   :  { %v6692_v0 = vpop.permute.xlu0 %2739 }
0x1207   :  { %8740 = vst [vmem:[#allocation21_spill] sm:$0xff] %v6692_v0 }
0x120e   :  { %v6694_v24 = vpop.permute.xlu0 %2745 }
0x120f   :  { %8741 = vst [vmem:[#allocation40_spill] sm:$0xff] %v6694_v24 }
0x1216   :  { %v2776_v55 = vpop.permute.xlu0 %2775 }
0x1217   :  { %v2780_v27 = vmul.f32 %v2776_v55, %v6558_v25  ;;  %v2778_v39 = vmul.f32 %v2776_v55, %v6554_v59  ;;  %v2779_v4 = vmul.f32 %v2776_v55, %v6556_v7  ;;  %v2783_v38 = vmul.f32 %v2776_v55, %v6571_v52 }
0x1218   :  { %v2781_v16 = vmul.f32 %v2776_v55, %v6569_v48  ;;  %v2782_v0 = vmul.f32 %v2776_v55, %v6573_v17  ;;  %v2784_v28 = vmul.f32 %v2776_v55, %v6582_v2 }
0x1219   :  { %2796 = vrot.lane.b32.xlu0 %v2780_v27, %s4465_s15  ;;  %2792 = vrot.lane.b32.xlu1 %v2778_v39, %s4465_s15  ;;  %v4425_v27 = vld [vmem:[%s8005_s1 + $0xc0] sm:$0xf]  ;;  %v6713_v39 = vpop.permute.xlu2 %2686 }
0x121a   :  { %2794 = vrot.lane.b32.xlu2 %v2779_v4, %s4465_s15 }
0x1221   :  { %2802 = vrot.lane.b32.xlu0 %v2783_v38, %s4465_s15  ;;  %2798 = vrot.lane.b32.xlu1 %v2781_v16, %s4465_s15  ;;  %v6715_v4 = vpop.permute.xlu2 %2692 }
0x1222   :  { %2800 = vrot.lane.b32.xlu2 %v2782_v0, %s4465_s15 }
0x1229   :  { %2804 = vrot.lane.b32.xlu1 %v2784_v28, %s4465_s15  ;;  %v6717_v61 = vpop.permute.xlu2 %2737 }
0x122a   :  { %2830 = vperm.xlu2 %4462, %v4425_v27   ;;  %8742 = vst [vmem:[#allocation52_spill] sm:$0xff] %v6717_v61 }
0x1231   :  { %v6719_v38 = vpop.permute.xlu2 %2743 }
0x1239   :  { %v6721_v16 = vpop.permute.xlu2 %2749 }
0x123a   :  { %8743 = vst [vmem:[#allocation23_spill] sm:$0xff] %v6721_v16 }
0x1274   :  { %v6723_v0 = vpop.permute.xlu2 %2794 }
0x1275   :  { %8744 = vst [vmem:[#allocation38_spill] sm:$0xff] %v6723_v0 }
0x127c   :  { %v6725_v55 = vpop.permute.xlu2 %2800 }
0x127d   :  { %8745 = vst [vmem:[#allocation42_spill] sm:$0xff] %v6725_v55 }
0x1284   :  { %v2831_v24 = vpop.permute.xlu2 %2830 }
0x1285   :  { %v2835_v47 = vmul.f32 %v2831_v24, %v6408_v49  ;;  %v2834_v28 = vmul.f32 %v2831_v24, %v6404_v6  ;;  %v2833_v27 = vmul.f32 %v2831_v24, %v6406_v15  ;;  %v2838_v61 = vmul.f32 %v2831_v24, %v6423_v21 }
0x1286   :  { %v2837_v16 = vmul.f32 %v2831_v24, %v6421_v36  ;;  %v2836_v0 = vmul.f32 %v2831_v24, %v6419_v37 }
0x1287   :  { %2851 = vrot.lane.b32.xlu2 %v2835_v47, %s4466_s22  ;;  %2849 = vrot.lane.b32.xlu1 %v2834_v28, %s4466_s22  ;;  %v4426_v47 = vld [vmem:[%s8005_s1 + $0xc4] sm:$0xf]  ;;  %v2839_v28 = vmul.f32 %v2831_v24, %v6434_v13 }
0x1288   :  { %2847 = vrot.lane.b32.xlu0 %v2833_v27, %s4466_s22  ;;  %v6744_v27 = vpop.permute.xlu1 %2741 }
0x128f   :  { %2857 = vrot.lane.b32.xlu2 %v2838_v61, %s4466_s22  ;;  %2855 = vrot.lane.b32.xlu1 %v2837_v16, %s4466_s22 }
0x1290   :  { %2853 = vrot.lane.b32.xlu0 %v2836_v0, %s4466_s22  ;;  %v6746_v21 = vpop.permute.xlu1 %2747 }
0x1297   :  { %2885 = vperm.xlu1 %4461, %v4426_v47  }
0x1298   :  { %2859 = vrot.lane.b32.xlu0 %v2839_v28, %s4466_s22  ;;  %v6748_v6 = vpop.permute.xlu1 %2792 }
0x1299   :  { %8746 = vst [vmem:[#allocation53_spill] sm:$0xff] %v6748_v6 }
0x12a0   :  { %v6750_v61 = vpop.permute.xlu1 %2798 }
0x12a8   :  { %v6752_v16 = vpop.permute.xlu1 %2804 }
0x12a9   :  { %8747 = vst [vmem:[#allocation25_spill] sm:$0xff] %v6752_v16 }
0x12f9   :  { %v6754_v0 = vpop.permute.xlu1 %2849 }
0x12fa   :  { %8748 = vst [vmem:[#allocation55_spill] sm:$0xff] %v6754_v0 }
0x1301   :  { %v6756_v15 = vpop.permute.xlu1 %2855 }
0x1309   :  { %v2886_v55 = vpop.permute.xlu1 %2885 }
0x130a   :  { %v2890_v24 = vmul.f32 %v2886_v55, %v6456_v54  ;;  %v2888_v47 = vmul.f32 %v2886_v55, %v6452_v44  ;;  %v2889_v28 = vmul.f32 %v2886_v55, %v6454_v32  ;;  %v2893_v13 = vmul.f32 %v2886_v55, %v6469_v14 }
0x130b   :  { %v2891_v16 = vmul.f32 %v2886_v55, %v6471_v58  ;;  %v2892_v0 = vmul.f32 %v2886_v55, %v6467_v33  ;;  %v2894_v6 = vmul.f32 %v2886_v55, %v6480_v8 }
0x130c   :  { %2906 = vrot.lane.b32.xlu1 %v2890_v24, %s4466_s22  ;;  %2902 = vrot.lane.b32.xlu2 %v2888_v47, %s4466_s22  ;;  %v4427_v24 = vld [vmem:[%s8005_s1 + $0xc8] sm:$0xf]  ;;  %v6775_v47 = vpop.permute.xlu0 %2796 }
0x130d   :  { %2904 = vrot.lane.b32.xlu0 %v2889_v28, %s4466_s22 }
0x1314   :  { %2912 = vrot.lane.b32.xlu1 %v2893_v13, %s4466_s22  ;;  %2908 = vrot.lane.b32.xlu2 %v2891_v16, %s4466_s22  ;;  %v6777_v28 = vpop.permute.xlu0 %2802 }
0x1315   :  { %2910 = vrot.lane.b32.xlu0 %v2892_v0, %s4466_s22  ;;  %8749 = vst [vmem:[#allocation59_spill] sm:$0xff] %v6777_v28 }
0x131c   :  { %2914 = vrot.lane.b32.xlu2 %v2894_v6, %s4466_s22  ;;  %v6779_v14 = vpop.permute.xlu0 %2847 }
0x131d   :  { %2940 = vperm.xlu0 %4460, %v4427_v24   ;;  %8750 = vst [vmem:[#allocation44_spill] sm:$0xff] %v6779_v14 }
0x1324   :  { %v6781_v13 = vpop.permute.xlu0 %2853 }
0x132c   :  { %v6783_v16 = vpop.permute.xlu0 %2859 }
0x132d   :  { %8751 = vst [vmem:[#allocation54_spill] sm:$0xff] %v6783_v16 }
0x137f   :  { %v6785_v0 = vpop.permute.xlu0 %2904 }
0x1380   :  { %8752 = vst [vmem:[#allocation56_spill] sm:$0xff] %v6785_v0 }
0x1387   :  { %v6787_v55 = vpop.permute.xlu0 %2910 }
0x1388   :  { %8753 = vst [vmem:[#allocation60_spill] sm:$0xff] %v6787_v55 }
0x138f   :  { %v2941_v8 = vpop.permute.xlu0 %2940 }
0x1390   :  { %v2945_v32 = vmul.f32 %v2941_v8, %v6506_v63  ;;  %v2944_v6 = vmul.f32 %v2941_v8, %v6504_v46  ;;  %v2943_v24 = vmul.f32 %v2941_v8, %v6502_v60  ;;  %v2948_v14 = vmul.f32 %v2941_v8, %v6519_v30 }
0x1391   :  { %v2947_v16 = vmul.f32 %v2941_v8, %v6517_v51  ;;  %v2946_v0 = vmul.f32 %v2941_v8, %v6521_v57 }
0x1392   :  { %2961 = vrot.lane.b32.xlu0 %v2945_v32, %s4466_s22  ;;  %2959 = vrot.lane.b32.xlu2 %v2944_v6, %s4466_s22  ;;  %v4428_v32 = vld [vmem:[%s8005_s1 + $0xcc] sm:$0xf]  ;;  %v2949_v6 = vmul.f32 %v2941_v8, %v6530_v18 }
0x1393   :  { %2957 = vrot.lane.b32.xlu1 %v2943_v24, %s4466_s22  ;;  %v6806_v24 = vpop.permute.xlu2 %2851 }
0x139a   :  { %2967 = vrot.lane.b32.xlu0 %v2948_v14, %s4466_s22  ;;  %2965 = vrot.lane.b32.xlu2 %v2947_v16, %s4466_s22 }
0x139b   :  { %2963 = vrot.lane.b32.xlu1 %v2946_v0, %s4466_s22  ;;  %v6808_v30 = vpop.permute.xlu2 %2857 }
0x139c   :  { %8754 = vst [vmem:[#allocation46_spill] sm:$0xff] %v6808_v30 }
0x13a2   :  { %2995 = vperm.xlu2 %4462, %v4428_v32  }
0x13a3   :  { %2969 = vrot.lane.b32.xlu1 %v2949_v6, %s4466_s22  ;;  %v6810_v46 = vpop.permute.xlu2 %2902 }
0x13a4   :  { %8755 = vst [vmem:[#allocation66_spill] sm:$0xff] %v6810_v46 }
0x13ab   :  { %v6812_v14 = vpop.permute.xlu2 %2908 }
0x13b3   :  { %v6814_v16 = vpop.permute.xlu2 %2914 }
0x13b4   :  { %8756 = vst [vmem:[#allocation57_spill] sm:$0xff] %v6814_v16 }
0x13ec   :  { %v6816_v0 = vpop.permute.xlu2 %2959 }
0x13ed   :  { %8757 = vst [vmem:[#allocation61_spill] sm:$0xff] %v6816_v0 }
0x13f4   :  { %v6818_v60 = vpop.permute.xlu2 %2965 }
0x13f5   :  { %8758 = vst [vmem:[#allocation67_spill] sm:$0xff] %v6818_v60 }
0x13fc   :  { %v2996_v44 = vpop.permute.xlu2 %2995 }
0x13fd   :  { %v3000_v8 = vmul.f32 %v2996_v44, %v6558_v25  ;;  %v2998_v32 = vmul.f32 %v2996_v44, %v6554_v59  ;;  %v2999_v6 = vmul.f32 %v2996_v44, %v6556_v7  ;;  %v3003_v18 = vmul.f32 %v2996_v44, %v6571_v52  ;;  %v6853_v7 = vld [vmem:[#allocation2 + $0x4] sm:$0xff] }
0x13fe   :  { %v3001_v16 = vmul.f32 %v2996_v44, %v6569_v48  ;;  %v3002_v0 = vmul.f32 %v2996_v44, %v6573_v17  ;;  %v3004_v46 = vmul.f32 %v2996_v44, %v6582_v2  ;;  %v6851_v2 = vld [vmem:[#allocation2 + $0xc] sm:$0xff]  ;;  %v3059_v59 = vperm.slane %v6853_v7, 0 }
0x13ff   :  { %3016 = vrot.lane.b32.xlu2 %v3000_v8, %s4466_s22  ;;  %3012 = vrot.lane.b32.xlu0 %v2998_v32, %s4466_s22  ;;  %v4429_v8 = vld [vmem:[%s8005_s1 + $0xd0] sm:$0xf]  ;;  %v6837_v32 = vpop.permute.xlu1 %2906 }
0x1400   :  { %3014 = vrot.lane.b32.xlu1 %v2999_v6, %s4466_s22  ;;  %v6862_v60 = vperm.slane %v3059_v59, 0  ;;  %v3062_v59 = vperm.slane %v6851_v2, 4 }
0x1402   :  { %8767 = vst [vmem:[#allocation69_spill] sm:$0xff] %v6862_v60 }
0x1407   :  { %3022 = vrot.lane.b32.xlu2 %v3003_v18, %s4466_s22  ;;  %3018 = vrot.lane.b32.xlu0 %v3001_v16, %s4466_s22  ;;  %v6839_v6 = vpop.permute.xlu1 %2912 }
0x1408   :  { %3020 = vrot.lane.b32.xlu1 %v3002_v0, %s4466_s22  ;;  %8759 = vst [vmem:[#allocation58_spill] sm:$0xff] %v6839_v6 }
0x140f   :  { %3024 = vrot.lane.b32.xlu0 %v3004_v46, %s4466_s22  ;;  %v6841_v52 = vpop.permute.xlu1 %2957  ;;  %v3061_v46 = vperm.slane %v6851_v2, 0 }
0x1410   :  { %3053 = vperm.xlu1 %4461, %v4429_v8   ;;  %8760 = vst [vmem:[#allocation62_spill] sm:$0xff] %v6841_v52  ;;  %v3060_v8 = vperm.slane %v6853_v7, 4 }
0x1411   :  { %v6858_v6 = vperm.slane %v3061_v46, 0 }
0x1412   :  { %v6860_v52 = vperm.slane %v3060_v8, 0 }
0x1413   :  { %8765 = vst [vmem:[#allocation74_spill] sm:$0xff] %v6858_v6 }
0x1414   :  { %8766 = vst [vmem:[#allocation65_spill] sm:$0xff] %v6860_v52 }
0x1417   :  { %v6843_v18 = vpop.permute.xlu1 %2963 }
0x1418   :  { %8761 = vst [vmem:[#allocation63_spill] sm:$0xff] %v6843_v18 }
0x141f   :  { %v6845_v16 = vpop.permute.xlu1 %2969 }
0x1420   :  { %8762 = vst [vmem:[#allocation73_spill] sm:$0xff] %v6845_v16 }
0x1472   :  { %v6847_v0 = vpop.permute.xlu1 %3014 }
0x1473   :  { %8763 = vst [vmem:[#allocation64_spill] sm:$0xff] %v6847_v0  ;;  %v6864_v0 = vld [vmem:[#allocation2 + $0x14] sm:$0xff] }
0x1474   :  { %v3064_v46 = vperm.slane %v6864_v0, 4  ;;  %v3063_v8 = vperm.slane %v6864_v0, 0 }
0x1476   :  { %v6875_v55 = vperm.slane %v3064_v46, 0  ;;  %v6877_v28 = vperm.slane %v3063_v8, 0  ;;  %v6890_v46 = vpop.permute.xlu2 %3016 }
0x1477   :  { %8771 = vst [vmem:[#allocation71_spill] sm:$0xff] %v6890_v46 }
0x1478   :  { %8768 = vst [vmem:[#allocation70_spill] sm:$0xff] %v6875_v55 }
0x1479   :  { %8769 = vst [vmem:[#allocation76_spill] sm:$0xff] %v6877_v28 }
0x147a   :  { %v6849_v44 = vpop.permute.xlu1 %3020 }
0x147b   :  { %8764 = vst [vmem:[#allocation68_spill] sm:$0xff] %v6849_v44 }
0x147e   :  { %v6892_v8 = vpop.permute.xlu2 %3022 }
0x147f   :  { %8772 = vst [vmem:[#allocation75_spill] sm:$0xff] %v6892_v8 }
0x1482   :  { %v3054_v16 = vpop.permute.xlu1 %3053 }
0x1483   :  { %v3079_v44 = vmul.f32 %v6858_v6, %v3054_v16  ;;  %v3078_v30 = vmul.f32 %v6860_v52, %v3054_v16  ;;  %v3077_v18 = vmul.f32 %v6862_v60, %v3054_v16  ;;  %v6879_v6 = vperm.slane %v3062_v59, 0 }
0x1484   :  { %v3082_v60 = vmul.f32 %v6875_v55, %v3054_v16 }
0x1485   :  { %3093 = vrot.lane.b32.xlu1 %v3079_v44, %s4467_s5  ;;  %3091 = vrot.lane.b32.xlu0 %v3078_v30, %s4467_s5  ;;  %8770 = vst [vmem:[#allocation80_spill] sm:$0xff] %v6879_v6  ;;  %v3081_v44 = vmul.f32 %v6877_v28, %v3054_v16  ;;  %v3080_v30 = vmul.f32 %v6879_v6, %v3054_v16  ;;  %v3129_v16 = vperm.slane %v6851_v2, 1 }
0x1486   :  { %3089 = vrot.lane.b32.xlu2 %v3077_v18, %s4467_s5  ;;  %v4430_v18 = vld [vmem:[%s8005_s1 + $0xd4] sm:$0xf] }
0x148d   :  { %3099 = vrot.lane.b32.xlu1 %v3082_v60, %s4467_s5  ;;  %3097 = vrot.lane.b32.xlu0 %v3081_v44, %s4467_s5  ;;  %v3128_v60 = vperm.slane %v6853_v7, 5  ;;  %v3127_v44 = vperm.slane %v6853_v7, 1 }
0x148e   :  { %3095 = vrot.lane.b32.xlu2 %v3080_v30, %s4467_s5  ;;  %v6901_v30 = vperm.slane %v3129_v16, 1  ;;  %v3131_v16 = vperm.slane %v6864_v0, 1 }
0x148f   :  { %v6903_v6 = vperm.slane %v3128_v60, 1  ;;  %v6905_v55 = vperm.slane %v3127_v44, 1  ;;  %v3130_v60 = vperm.slane %v6851_v2, 5 }
0x1490   :  { %8775 = vst [vmem:[#allocation72_spill] sm:$0xff] %v6901_v30  ;;  %v6918_v46 = vperm.slane %v3131_v16, 1 }
0x1491   :  { %8776 = vst [vmem:[#allocation91_spill] sm:$0xff] %v6903_v6 }
0x1492   :  { %8777 = vst [vmem:[#allocation78_spill] sm:$0xff] %v6905_v55 }
0x1493   :  { %8779 = vst [vmem:[#allocation92_spill] sm:$0xff] %v6918_v46 }
0x1496   :  { %3124 = vperm.xlu2 %4462, %v4430_v18  }
0x14e0   :  { %v6894_v59 = vpop.permute.xlu2 %3089 }
0x14e1   :  { %8773 = vst [vmem:[#allocation77_spill] sm:$0xff] %v6894_v59 }
0x14e8   :  { %v6896_v28 = vpop.permute.xlu2 %3095 }
0x14e9   :  { %8774 = vst [vmem:[#allocation81_spill] sm:$0xff] %v6896_v28  ;;  %v3132_v28 = vperm.slane %v6864_v0, 5 }
0x14eb   :  { %v6916_v44 = vperm.slane %v3132_v28, 1  ;;  %v4431_v28 = vld [vmem:[%s8005_s1 + $0xd8] sm:$0xf] }
0x14ed   :  { %8778 = vst [vmem:[#allocation82_spill] sm:$0xff] %v6916_v44 }
0x14f0   :  { %v3125_v18 = vpop.permute.xlu2 %3124 }
0x14f1   :  { %v3147_v52 = vmul.f32 %v6901_v30, %v3125_v18  ;;  %v3146_v8 = vmul.f32 %v6903_v6, %v3125_v18  ;;  %v3145_v59 = vmul.f32 %v6905_v55, %v3125_v18  ;;  %v6920_v30 = vperm.slane %v3130_v60, 1 }
0x14f2   :  { %v3150_v6 = vmul.f32 %v6916_v44, %v3125_v18  ;;  %v3196_v44 = vperm.slane %v6853_v7, 6  ;;  %v3195_v55 = vperm.slane %v6853_v7, 2 }
0x14f3   :  { %3161 = vrot.lane.b32.xlu2 %v3147_v52, %s4467_s5  ;;  %3159 = vrot.lane.b32.xlu1 %v3146_v8, %s4467_s5  ;;  %8780 = vst [vmem:[#allocation79_spill] sm:$0xff] %v6920_v30  ;;  %v3149_v52 = vmul.f32 %v6918_v46, %v3125_v18  ;;  %v3148_v8 = vmul.f32 %v6920_v30, %v3125_v18 }
0x14f4   :  { %3157 = vrot.lane.b32.xlu0 %v3145_v59, %s4467_s5  ;;  %v6931_v59 = vpop.permute.xlu0 %2961 }
0x14f5   :  { %8781 = vst [vmem:[#allocation83_spill] sm:$0xff] %v6931_v59 }
0x14fb   :  { %3167 = vrot.lane.b32.xlu2 %v3150_v6, %s4467_s5  ;;  %3165 = vrot.lane.b32.xlu1 %v3149_v52, %s4467_s5 }
0x14fc   :  { %3163 = vrot.lane.b32.xlu0 %v3148_v8, %s4467_s5  ;;  %v6933_v16 = vpop.permute.xlu0 %2967 }
0x14fd   :  { %8782 = vst [vmem:[#allocation84_spill] sm:$0xff] %v6933_v16 }
0x1504   :  { %3192 = vperm.xlu0 %4460, %v4431_v28   ;;  %v6935_v60 = vpop.permute.xlu0 %3012  ;;  %v3197_v28 = vperm.slane %v6851_v2, 2 }
0x1505   :  { %8783 = vst [vmem:[#allocation85_spill] sm:$0xff] %v6935_v60  ;;  %v6954_v60 = vperm.slane %v3196_v44, 2 }
0x1506   :  { %v6952_v16 = vperm.slane %v3197_v28, 2  ;;  %v3199_v28 = vperm.slane %v6864_v0, 2 }
0x1507   :  { %8791 = vst [vmem:[#allocation100_spill] sm:$0xff] %v6954_v60 }
0x1508   :  { %8790 = vst [vmem:[#allocation90_spill] sm:$0xff] %v6952_v16  ;;  %v6969_v59 = vperm.slane %v3199_v28, 2 }
0x150a   :  { %8794 = vst [vmem:[#allocation97_spill] sm:$0xff] %v6969_v59 }
0x150c   :  { %v6937_v46 = vpop.permute.xlu0 %3018 }
0x150d   :  { %8784 = vst [vmem:[#allocation93_spill] sm:$0xff] %v6937_v46  ;;  %v6956_v46 = vperm.slane %v3195_v55, 2  ;;  %v3198_v55 = vperm.slane %v6851_v2, 6 }
0x150f   :  { %8792 = vst [vmem:[#allocation96_spill] sm:$0xff] %v6956_v46 }
0x1514   :  { %v6939_v18 = vpop.permute.xlu0 %3024 }
0x1515   :  { %8785 = vst [vmem:[#allocation87_spill] sm:$0xff] %v6939_v18 }
0x151c   :  { %v6941_v6 = vpop.permute.xlu0 %3091 }
0x151d   :  { %8786 = vst [vmem:[#allocation94_spill] sm:$0xff] %v6941_v6 }
0x1524   :  { %v6943_v52 = vpop.permute.xlu0 %3097 }
0x1525   :  { %8787 = vst [vmem:[#allocation86_spill] sm:$0xff] %v6943_v52 }
0x1566   :  { %v6945_v8 = vpop.permute.xlu0 %3157 }
0x1567   :  { %8788 = vst [vmem:[#allocation88_spill] sm:$0xff] %v6945_v8 }
0x156e   :  { %v6947_v30 = vpop.permute.xlu0 %3163 }
0x156f   :  { %8789 = vst [vmem:[#allocation95_spill] sm:$0xff] %v6947_v30  ;;  %v3200_v30 = vperm.slane %v6864_v0, 6 }
0x1571   :  { %v6967_v44 = vperm.slane %v3200_v30, 2  ;;  %v4432_v30 = vld [vmem:[%s8005_s1 + $0xdc] sm:$0xf] }
0x1573   :  { %8793 = vst [vmem:[#allocation89_spill] sm:$0xff] %v6967_v44 }
0x1576   :  { %v3193_v18 = vpop.permute.xlu0 %3192 }
0x1577   :  { %v3215_v6 = vmul.f32 %v6952_v16, %v3193_v18  ;;  %v3214_v52 = vmul.f32 %v6954_v60, %v3193_v18  ;;  %v3213_v8 = vmul.f32 %v6956_v46, %v3193_v18  ;;  %v6971_v16 = vperm.slane %v3198_v55, 2 }
0x1578   :  { %v3218_v46 = vmul.f32 %v6967_v44, %v3193_v18  ;;  %v3263_v44 = vperm.slane %v6853_v7, 3 }
0x1579   :  { %3229 = vrot.lane.b32.xlu0 %v3215_v6, %s4467_s5  ;;  %3227 = vrot.lane.b32.xlu2 %v3214_v52, %s4467_s5  ;;  %8795 = vst [vmem:[#allocation101_spill] sm:$0xff] %v6971_v16  ;;  %v3217_v6 = vmul.f32 %v6969_v59, %v3193_v18  ;;  %v3216_v52 = vmul.f32 %v6971_v16, %v3193_v18  ;;  %v3264_v16 = vperm.slane %v6853_v7, 7  ;;  %v3267_v7 = vperm.slane %v6864_v0, 3 }
0x157a   :  { %3225 = vrot.lane.b32.xlu1 %v3213_v8, %s4467_s5  ;;  %v6982_v8 = vpop.permute.xlu1 %3093 }
0x157b   :  { %8796 = vst [vmem:[#allocation106_spill] sm:$0xff] %v6982_v8 }
0x1581   :  { %3235 = vrot.lane.b32.xlu0 %v3218_v46, %s4467_s5  ;;  %3233 = vrot.lane.b32.xlu2 %v3217_v6, %s4467_s5 }
0x1582   :  { %3231 = vrot.lane.b32.xlu1 %v3216_v52, %s4467_s5  ;;  %v6984_v28 = vpop.permute.xlu1 %3099 }
0x1583   :  { %8797 = vst [vmem:[#allocation102_spill] sm:$0xff] %v6984_v28  ;;  %v7006_v28 = vperm.slane %v3264_v16, 3  ;;  %v3266_v16 = vperm.slane %v6851_v2, 7 }
0x1585   :  { %8804 = vst [vmem:[#allocation104_spill] sm:$0xff] %v7006_v28 }
0x158a   :  { %3260 = vperm.xlu1 %4461, %v4432_v30   ;;  %v6986_v55 = vpop.permute.xlu1 %3159  ;;  %v3265_v30 = vperm.slane %v6851_v2, 3  ;;  %v4433_v2 = vld [vmem:[%s8005_s1 + $0xe0] sm:$0xf] }
0x158b   :  { %8798 = vst [vmem:[#allocation98_spill] sm:$0xff] %v6986_v55 }
0x158c   :  { %v7004_v60 = vperm.slane %v3265_v30, 3  ;;  %v7021_v30 = vperm.slane %v3267_v7, 3  ;;  %v2291_v7 = vmul.f32 %v6471_v58, %v6393_v20  ;;  %v2374_v58 = vmul.f32 %v6558_v25, %v6443_v42 }
0x158d   :  { %v2478_v25 = vsel %vm235_vm0, %v6589_v62, %v6543_v23 }
0x158e   :  { %8803 = vst [vmem:[#allocation108_spill] sm:$0xff] %v7004_v60 }
0x158f   :  { %8806 = vst [vmem:[#allocation117_spill] sm:$0xff] %v7021_v30 }
0x1592   :  { %v6988_v59 = vpop.permute.xlu1 %3165 }
0x1593   :  { %8799 = vst [vmem:[#allocation107_spill] sm:$0xff] %v6988_v59 }
0x15eb   :  { %v6992_v46 = vpop.permute.xlu0 %3229 }
0x15ec   :  { %v6990_v18 = vpop.permute.xlu1 %3225 }
0x15ed   :  { %8800 = vst [vmem:[#allocation103_spill] sm:$0xff] %v6990_v18  ;;  %v7008_v18 = vperm.slane %v3263_v44, 3 }
0x15f4   :  { %v6994_v6 = vpop.permute.xlu1 %3231 }
0x15f5   :  { %8801 = vst [vmem:[#allocation99_spill] sm:$0xff] %v6994_v6  ;;  %v6999_v52 = vsel %vm918_vm3, %v6992_v46, %v6994_v6 }
0x15f6   :  { %8802 = vst [vmem:[#allocation116_spill] sm:$0xff] %v6999_v52  ;;  %v3268_v52 = vperm.slane %v6864_v0, 7  ;;  %v7034_v0 = vpop.permute.xlu2 %3161 }
0x15f8   :  { %v7019_v44 = vperm.slane %v3268_v52, 3  ;;  %v2290_v52 = vmul.f32 %v6456_v54, %v6393_v20  ;;  %v2332_v54 = vmul.f32 %v6506_v63, %v6487_v19 }
0x15fa   :  { %8805 = vst [vmem:[#allocation105_spill] sm:$0xff] %v7019_v44 }
0x15fc   :  { %v3261_v59 = vpop.permute.xlu1 %3260 }
0x15fd   :  { %v3283_v55 = vmul.f32 %v7004_v60, %v3261_v59  ;;  %v3282_v8 = vmul.f32 %v7006_v28, %v3261_v59  ;;  %v3281_v6 = vmul.f32 %v7008_v18, %v3261_v59  ;;  %v7023_v60 = vperm.slane %v3266_v16, 3 }
0x15fe   :  { %v3286_v28 = vmul.f32 %v7019_v44, %v3261_v59 }
0x15ff   :  { %3297 = vrot.lane.b32.xlu1 %v3283_v55, %s4467_s5  ;;  %3295 = vrot.lane.b32.xlu0 %v3282_v8, %s4467_s5  ;;  %8807 = vst [vmem:[#allocation109_spill] sm:$0xff] %v7023_v60  ;;  %v3285_v55 = vmul.f32 %v7021_v30, %v3261_v59  ;;  %v3284_v8 = vmul.f32 %v7023_v60, %v3261_v59 }
0x1600   :  { %3293 = vrot.lane.b32.xlu2 %v3281_v6, %s4467_s5  ;;  %v7036_v6 = vpop.permute.xlu2 %3167  ;;  %v2248_v59 = vmul.f32 %v6408_v49, %v6441_v41  ;;  %v2250_v30 = vmul.f32 %v6421_v36, %v6441_v41  ;;  %v2333_v49 = vmul.f32 %v6521_v57, %v6487_v19  ;;  %v2334_v36 = vmul.f32 %v6517_v51, %v6487_v19 }
0x1601   :  { %8808 = vst [vmem:[#allocation111_spill] sm:$0xff] %v7036_v6  ;;  %v2424_v57 = vsel %vm235_vm0, %v6491_v11, %v6447_v35  ;;  %v2376_v51 = vmul.f32 %v6573_v17, %v6443_v42  ;;  %v2480_v17 = vsel %vm235_vm0, %v6497_v22, %v6591_v1 }
0x1607   :  { %3303 = vrot.lane.b32.xlu1 %v3286_v28, %s4467_s5  ;;  %3301 = vrot.lane.b32.xlu0 %v3285_v55, %s4467_s5  ;;  %v2249_v28 = vmul.f32 %v6419_v37, %v6441_v41  ;;  %v2297_v55 = vadd.f32 %v2290_v52, %v2248_v59  ;;  %v2423_v52 = vsel %vm235_vm0, %v6537_v53, %v6491_v11 }
0x1608   :  { %3299 = vrot.lane.b32.xlu2 %v3284_v8, %s4467_s5  ;;  %v7046_v16 = vpop.permute.xlu2 %3227  ;;  %v2533_v11 = vsel %vm235_vm0, %v6620_v40, %v6595_v56 }
0x1609   :  { %v2298_v8 = vadd.f32 %v2291_v7, %v2249_v28  ;;  %v2339_v37 = vadd.f32 %v2332_v54, %v2297_v55 }
0x160b   :  { %v2340_v60 = vadd.f32 %v2333_v49, %v2298_v8  ;;  %v2381_v63 = vadd.f32 %v2374_v58, %v2339_v37  ;;  %v2534_v8 = vsel %vm235_vm0, %v6595_v56, %v6549_v3  ;;  %v2643_v56 = vsel %vm456_vm1, %v6682_v5, %v6657_v31 }
0x160d   :  { %v2436_v7 = vadd.f32 %v2423_v52, %v2381_v63  ;;  %v2535_v52 = vsel %vm235_vm0, %v6549_v3, %v6622_v43  ;;  %v2699_v3 = vsel %vm456_vm1, %v6688_v29, %v6663_v9 }
0x1610   :  { %3332 = vperm.xlu2 %4462, %v4433_v2   ;;  %v2292_v2 = vmul.f32 %v6467_v33, %v6393_v20  ;;  %v2375_v33 = vmul.f32 %v6569_v48, %v6443_v42  ;;  %v7068_v59 = vpop.permute.xlu2 %3233  ;;  %v2479_v48 = vsel %vm235_vm0, %v6543_v23, %v6497_v22  ;;  %v2588_v23 = vsel %vm235_vm0, %v6651_v50, %v6626_v34 }
0x1611   :  { %v2644_v22 = vsel %vm456_vm1, %v6657_v31, %v6632_v12  ;;  %v2753_v31 = vsel %vm456_vm1, %v6744_v27, %v6719_v38 }
0x1612   :  { %v2299_v44 = vadd.f32 %v2292_v2, %v2250_v30  ;;  %v2382_v30 = vadd.f32 %v2375_v33, %v2340_v60  ;;  %v2425_v60 = vsel %vm235_vm0, %v6447_v35, %v6539_v45  ;;  %v2589_v35 = vsel %vm235_vm0, %v6626_v34, %v6601_v26 }
0x1613   :  { %v2698_v34 = vsel %vm456_vm1, %v6713_v39, %v6688_v29  ;;  %v2808_v29 = vsel %vm456_vm1, %v6775_v47, %v6750_v61 }
0x1614   :  { %v2341_v28 = vadd.f32 %v2334_v36, %v2299_v44  ;;  %v2437_v55 = vadd.f32 %v2424_v57, %v2382_v30  ;;  %v2491_v44 = vadd.f32 %v2478_v25, %v2436_v7  ;;  %v2590_v30 = vsel %vm235_vm0, %v6601_v26, %v6653_v10 }
0x1616   :  { %v2383_v2 = vadd.f32 %v2376_v51, %v2341_v28  ;;  %v2492_v54 = vadd.f32 %v2479_v48, %v2437_v55  ;;  %v2546_v49 = vadd.f32 %v2533_v11, %v2491_v44  ;;  %v8809_v48 = vld [vmem:[#allocation20_spill] sm:$0xff] }
0x1617   :  { %v2645_v55 = vsel %vm456_vm1, %v6632_v12, %v8809_v48  ;;  %v8810_v11 = vld [vmem:[#allocation40_spill] sm:$0xff] }
0x1618   :  { %v2438_v37 = vadd.f32 %v2425_v60, %v2383_v2  ;;  %v2547_v58 = vadd.f32 %v2534_v8, %v2492_v54  ;;  %v2601_v33 = vadd.f32 %v2588_v23, %v2546_v49  ;;  %v2754_v26 = vsel %vm456_vm1, %v6719_v38, %v8810_v11  ;;  %v8811_v54 = vld [vmem:[#allocation42_spill] sm:$0xff] }
0x1619   :  { %v2700_v8 = vsel %vm456_vm1, %v6663_v9, %v6715_v4  ;;  %v2809_v12 = vsel %vm456_vm1, %v6750_v61, %v8811_v54  ;;  %v2863_v38 = vsel %vm677_vm2, %v6806_v24, %v6781_v13  ;;  %v2755_v49 = vsel %vm456_vm1, %v8810_v11, %v6746_v21 }
0x161a   :  { %v2493_v63 = vadd.f32 %v2480_v17, %v2438_v37  ;;  %v2602_v57 = vadd.f32 %v2589_v35, %v2547_v58  ;;  %v2656_v28 = vadd.f32 %v2643_v56, %v2601_v33  ;;  %v2864_v9 = vsel %vm677_vm2, %v6781_v13, %v6756_v15  ;;  %v8814_v13 = vld [vmem:[#allocation63_spill] sm:$0xff] }
0x161b   :  { %v2918_v61 = vsel %vm677_vm2, %v6837_v32, %v6812_v14 }
0x161c   :  { %v2548_v25 = vadd.f32 %v2535_v52, %v2493_v63  ;;  %v2657_v7 = vadd.f32 %v2644_v22, %v2602_v57  ;;  %v2711_v51 = vadd.f32 %v2698_v34, %v2656_v28  ;;  %v8812_v52 = vld [vmem:[#allocation59_spill] sm:$0xff]  ;;  %v8813_v63 = vld [vmem:[#allocation60_spill] sm:$0xff] }
0x161d   :  { %v2810_v33 = vsel %vm456_vm1, %v8811_v54, %v8812_v52  ;;  %v2919_v57 = vsel %vm677_vm2, %v6812_v14, %v8813_v63  ;;  %v8815_v28 = vld [vmem:[#allocation83_spill] sm:$0xff] }
0x161e   :  { %v2603_v60 = vadd.f32 %v2590_v30, %v2548_v25  ;;  %v2712_v44 = vadd.f32 %v2699_v3, %v2657_v7  ;;  %v2766_v2 = vadd.f32 %v2753_v31, %v2711_v51  ;;  %v2973_v3 = vsel %vm677_vm2, %v8815_v28, %v8814_v13  ;;  %v8816_v25 = vld [vmem:[#allocation46_spill] sm:$0xff] }
0x161f   :  { %v2865_v7 = vsel %vm677_vm2, %v6756_v15, %v8816_v25  ;;  %v8822_v15 = vld [vmem:[#allocation58_spill] sm:$0xff] }
0x1620   :  { %v2658_v23 = vadd.f32 %v2645_v55, %v2603_v60  ;;  %v2767_v17 = vadd.f32 %v2754_v26, %v2712_v44  ;;  %v2821_v35 = vadd.f32 %v2808_v29, %v2766_v2  ;;  %v8817_v55 = vld [vmem:[#allocation67_spill] sm:$0xff]  ;;  %v8818_v60 = vld [vmem:[#allocation93_spill] sm:$0xff] }
0x1621   :  { %v2974_v51 = vsel %vm677_vm2, %v8814_v13, %v8817_v55  ;;  %v8819_v44 = vld [vmem:[#allocation71_spill] sm:$0xff]  ;;  %v8828_v13 = vld [vmem:[#allocation69_spill] sm:$0xff] }
0x1622   :  { %v2713_v58 = vadd.f32 %v2700_v8, %v2658_v23  ;;  %v2822_v56 = vadd.f32 %v2809_v12, %v2767_v17  ;;  %v2876_v22 = vadd.f32 %v2863_v38, %v2821_v35  ;;  %v3028_v14 = vsel %vm677_vm2, %v8819_v44, %v8818_v60  ;;  %v8820_v8 = vld [vmem:[#allocation68_spill] sm:$0xff]  ;;  %v7169_v23 = vpop.permute.xlu0 %3235  ;;  %v8824_v35 = vld [vmem:[#allocation106_spill] sm:$0xff] }
0x1623   :  { %v3029_v2 = vsel %vm677_vm2, %v8818_v60, %v8820_v8  ;;  %8821 = vst [vmem:[#allocation112_spill] sm:$0xff] %v7169_v23  ;;  %v2920_v17 = vsel %vm677_vm2, %v8813_v63, %v8822_v15 }
0x1624   :  { %v2768_v34 = vadd.f32 %v2755_v49, %v2713_v58  ;;  %v2877_v30 = vadd.f32 %v2864_v9, %v2822_v56  ;;  %v2931_v31 = vadd.f32 %v2918_v61, %v2876_v22  ;;  %v8823_v49 = vld [vmem:[#allocation81_spill] sm:$0xff]  ;;  %v8825_v58 = vld [vmem:[#allocation94_spill] sm:$0xff] }
0x1625   :  { %v3103_v9 = vsel %vm918_vm3, %v8824_v35, %v8823_v49  ;;  %v3102_v56 = vsel %vm918_vm3, %v8825_v58, %v8824_v35  ;;  %v8826_v22 = vld [vmem:[#allocation74_spill] sm:$0xff] }
0x1626   :  { %v2823_v11 = vadd.f32 %v2810_v33, %v2768_v34  ;;  %v2932_v26 = vadd.f32 %v2919_v57, %v2877_v30  ;;  %v2986_v29 = vadd.f32 %v2973_v3, %v2931_v31  ;;  %v8827_v34 = vld [vmem:[#allocation65_spill] sm:$0xff]  ;;  %v8830_v31 = vld [vmem:[#allocation98_spill] sm:$0xff] }
0x1628   :  { %v2878_v54 = vadd.f32 %v2865_v7, %v2823_v11  ;;  %v2987_v12 = vadd.f32 %v2974_v51, %v2932_v26  ;;  %v3041_v38 = vadd.f32 %v3028_v14, %v2986_v29  ;;  %v8829_v7 = vld [vmem:[#allocation84_spill] sm:$0xff]  ;;  %v3170_v51 = vsel %vm918_vm3, %v8830_v31, %v7034_v0  ;;  %v8831_v11 = vld [vmem:[#allocation95_spill] sm:$0xff] }
0x1629   :  { %v2975_v63 = vsel %vm677_vm2, %v8817_v55, %v8829_v7  ;;  %v3171_v26 = vsel %vm918_vm3, %v7034_v0, %v8831_v11  ;;  %v3238_v55 = vsel %vm918_vm3, %v7046_v16, %v6992_v46 }
0x162a   :  { %v3042_v33 = vadd.f32 %v3029_v2, %v2987_v12  ;;  %v2933_v60 = vadd.f32 %v2920_v17, %v2878_v54  ;;  %v3115_v29 = vadd.f32 %v3102_v56, %v3041_v38  ;;  %v8832_v2 = vld [vmem:[#allocation75_spill] sm:$0xff]  ;;  %v8833_v38 = vld [vmem:[#allocation116_spill] sm:$0xff] }
0x162b   :  { %v3030_v12 = vsel %vm677_vm2, %v8820_v8, %v8832_v2 }
0x162c   :  { %v3116_v14 = vadd.f32 %v3103_v9, %v3042_v33  ;;  %v2988_v35 = vadd.f32 %v2975_v63, %v2933_v60 }
0x162e   :  { %v3184_v0 = vadd.f32 %v3171_v26, %v3116_v14  ;;  %v3043_v54 = vadd.f32 %v3030_v12, %v2988_v35  ;;  %v8835_v26 = vld [vmem:[#allocation70_spill] sm:$0xff]  ;;  %v8836_v14 = vld [vmem:[#allocation76_spill] sm:$0xff]  ;;  %v8837_v12 = vld [vmem:[#allocation107_spill] sm:$0xff] }
0x1630   :  { %v3252_v9 = vadd.f32 %v8833_v38, %v3184_v0 }
0x165a   :  { %v7105_v36 = vpop.permute.xlu2 %3293 }
0x1662   :  { %v7143_v37 = vpop.permute.xlu2 %3299 }
0x166a   :  { %v3333_v61 = vpop.permute.xlu2 %3332 }
0x166b   :  { %v3362_v57 = vmul.f32 %v3333_v61, %v8826_v22  ;;  %v3361_v30 = vmul.f32 %v3333_v61, %v8827_v34  ;;  %v3360_v3 = vmul.f32 %v3333_v61, %v8828_v13  ;;  %v3183_v13 = vadd.f32 %v3170_v51, %v3115_v29  ;;  %v8854_v22 = vld [vmem:[#allocation17_spill] sm:$0xff] }
0x166c   :  { %v3365_v60 = vmul.f32 %v3333_v61, %v8835_v26  ;;  %v3364_v29 = vmul.f32 %v3333_v61, %v8836_v14  ;;  %v8849_v26 = vld [vmem:[#allocation33_spill] sm:$0xff] }
0x166d   :  { %3378 = vrot.lane.b32.xlu2 %v3362_v57, %s4468_s14  ;;  %3376 = vrot.lane.b32.xlu1 %v3361_v30, %s4468_s14  ;;  %v3251_v17 = vadd.f32 %v3238_v55, %v3183_v13  ;;  %v7202_v57 = vld [vmem:[#allocation2 + $0x1c] sm:$0xf]  ;;  %v8838_v55 = vld [vmem:[#allocation80_spill] sm:$0xff] }
0x166e   :  { %3374 = vrot.lane.b32.xlu0 %v3360_v3, %s4468_s14  ;;  %v8834_v30 = vld [vmem:[#allocation86_spill] sm:$0xff]  ;;  %v3363_v35 = vmul.f32 %v3333_v61, %v8838_v55  ;;  %v3345_v0 = vperm.slane %v7202_v57, 0  ;;  %v8848_v55 = vld [vmem:[#allocation27_spill] sm:$0xff] }
0x166f   :  { %v3104_v8 = vsel %vm918_vm3, %v8823_v49, %v8834_v30  ;;  %v3172_v49 = vsel %vm918_vm3, %v8831_v11, %v8837_v12 }
0x1670   :  { %v3117_v38 = vadd.f32 %v3104_v8, %v3043_v54  ;;  %v4434_v8 = vld [vmem:[%s8005_s1 + $0xe4] sm:$0xf] }
0x1671   :  { %v3298_v56 = vpop.permute.xlu1 %3297  ;;  %v3296_v33 = vpop.permute.xlu0 %3295 }
0x1672   :  { %v3307_v46 = vsel %vm918_vm3, %v3298_v56, %v7143_v37  ;;  %v7211_v3 = vsel %vm918_vm3, %v7105_v36, %v3296_v33  ;;  %v3306_v63 = vsel %vm918_vm3, %v3296_v33, %v3298_v56  ;;  %v3185_v56 = vadd.f32 %v3172_v49, %v3117_v38  ;;  %v8843_v38 = vld [vmem:[#allocation8_spill] sm:$0xff] }
0x1673   :  { %v7214_v13 = vadd.f32 %v3307_v46, %v3252_v9  ;;  %v7216_v51 = vadd.f32 %v3306_v63, %v3251_v17  ;;  %v8839_v17 = vld [vmem:[#allocation99_spill] sm:$0xff]  ;;  %v7231_v33 = vperm.slane %v3345_v0, 0 }
0x1674   :  { %v3240_v9 = vsel %vm918_vm3, %v8839_v17, %v7068_v59  ;;  %v8844_v17 = vld [vmem:[#allocation11_spill] sm:$0xff] }
0x1675   :  { %3384 = vrot.lane.b32.xlu2 %v3365_v60, %s4468_s14  ;;  %3382 = vrot.lane.b32.xlu1 %v3364_v29, %s4468_s14  ;;  %8840 = vst [vmem:[#allocation118_spill] sm:$0xff] %v7231_v33  ;;  %v3253_v46 = vadd.f32 %v3240_v9, %v3185_v56  ;;  %v3366_v60 = vmul.f32 %v7231_v33, %v3333_v61  ;;  %v8841_v29 = vld [vmem:[#allocation37_spill] sm:$0xff] }
0x1676   :  { %3380 = vrot.lane.b32.xlu0 %v3363_v35, %s4468_s14  ;;  %v2288_v49 = vmul.f32 %v8841_v29, %v6393_v20  ;;  %v8842_v35 = vld [vmem:[#allocation35_spill] sm:$0xff]  ;;  %v2289_v9 = vmul.f32 %v8844_v17, %v6393_v20  ;;  %v8847_v33 = vld [vmem:[#allocation45_spill] sm:$0xff] }
0x1677   :  { %v2246_v0 = vmul.f32 %v8842_v35, %v6441_v41  ;;  %v2373_v29 = vmul.f32 %v8847_v33, %v6443_v42  ;;  %v2331_v35 = vmul.f32 %v8848_v55, %v6487_v19 }
0x1679   :  { %v7233_v11 = vpop.permute.xlu0 %3301  ;;  %v2295_v56 = vadd.f32 %v2288_v49, %v2246_v0  ;;  %v2422_v0 = vsel %vm235_vm0, %v8849_v26, %v6537_v53 }
0x167a   :  { %v3308_v54 = vsel %vm918_vm3, %v7143_v37, %v7233_v11  ;;  %v2247_v37 = vmul.f32 %v8843_v38, %v6441_v41  ;;  %v8850_v38 = vld [vmem:[#allocation12_spill] sm:$0xff] }
0x167b   :  { %v7241_v63 = vadd.f32 %v3308_v54, %v3253_v46  ;;  %v8845_v54 = vld [vmem:[#allocation16_spill] sm:$0xff]  ;;  %v2421_v34 = vsel %vm235_vm0, %v8850_v38, %v8849_v26 }
0x167c   :  { %v2296_v46 = vadd.f32 %v2289_v9, %v2247_v37  ;;  %v2372_v61 = vmul.f32 %v8845_v54, %v6443_v42  ;;  %v8851_v9 = vld [vmem:[#allocation13_spill] sm:$0xff]  ;;  %v8852_v54 = vld [vmem:[#allocation28_spill] sm:$0xff] }
0x167d   :  { %3412 = vperm.xlu1 %4461, %v4434_v8   ;;  %v8846_v8 = vld [vmem:[#allocation41_spill] sm:$0xff]  ;;  %v2477_v55 = vsel %vm235_vm0, %v8851_v9, %v6589_v62 }
0x167e   :  { %3386 = vrot.lane.b32.xlu0 %v3366_v60, %s4468_s14  ;;  %v2330_v60 = vmul.f32 %v8846_v8, %v6487_v19  ;;  %v2338_v17 = vadd.f32 %v2331_v35, %v2296_v46  ;;  %v2476_v8 = vsel %vm235_vm0, %v8852_v54, %v8851_v9  ;;  %v8859_v9 = vld [vmem:[#allocation19_spill] sm:$0xff]  ;;  %v8860_v54 = vld [vmem:[#allocation36_spill] sm:$0xff] }
0x1680   :  { %v2337_v14 = vadd.f32 %v2330_v60, %v2295_v56  ;;  %v2380_v37 = vadd.f32 %v2373_v29, %v2338_v17  ;;  %v8853_v60 = vld [vmem:[#allocation29_spill] sm:$0xff]  ;;  %v8857_v17 = vld [vmem:[#allocation32_spill] sm:$0xff] }
0x1681   :  { %v2531_v46 = vsel %vm235_vm0, %v8854_v22, %v8853_v60  ;;  %v2532_v53 = vsel %vm235_vm0, %v8853_v60, %v6620_v40  ;;  %v8856_v29 = vld [vmem:[#allocation49_spill] sm:$0xff]  ;;  %v2642_v40 = vsel %vm456_vm1, %v8857_v17, %v6682_v5  ;;  %v8862_v60 = vld [vmem:[#allocation52_spill] sm:$0xff] }
0x1682   :  { %v2379_v49 = vadd.f32 %v2372_v61, %v2337_v14  ;;  %v2435_v56 = vadd.f32 %v2422_v0, %v2380_v37  ;;  %v8855_v61 = vld [vmem:[#allocation47_spill] sm:$0xff] }
0x1683   :  { %v2586_v35 = vsel %vm235_vm0, %v8856_v29, %v8855_v61  ;;  %v2587_v62 = vsel %vm235_vm0, %v8855_v61, %v6651_v50  ;;  %v2697_v50 = vsel %vm456_vm1, %v8859_v9, %v6713_v39  ;;  %v8864_v61 = vld [vmem:[#allocation53_spill] sm:$0xff] }
0x1684   :  { %v2434_v33 = vadd.f32 %v2421_v34, %v2379_v49  ;;  %v2490_v26 = vadd.f32 %v2477_v55, %v2435_v56  ;;  %v8858_v49 = vld [vmem:[#allocation34_spill] sm:$0xff]  ;;  %v8861_v56 = vld [vmem:[#allocation21_spill] sm:$0xff] }
0x1685   :  { %v2641_v22 = vsel %vm456_vm1, %v8858_v49, %v8857_v17  ;;  %v2752_v5 = vsel %vm456_vm1, %v8861_v56, %v6744_v27 }
0x1686   :  { %v2489_v14 = vadd.f32 %v2476_v8, %v2434_v33  ;;  %v2545_v38 = vadd.f32 %v2532_v53, %v2490_v26  ;;  %v2696_v8 = vsel %vm456_vm1, %v8860_v54, %v8859_v9  ;;  %v8863_v26 = vld [vmem:[#allocation38_spill] sm:$0xff] }
0x1687   :  { %v2806_v29 = vsel %vm456_vm1, %v8864_v61, %v8863_v26  ;;  %v2807_v39 = vsel %vm456_vm1, %v8863_v26, %v6775_v47  ;;  %v8873_v61 = vld [vmem:[#allocation77_spill] sm:$0xff] }
0x1688   :  { %v2544_v34 = vadd.f32 %v2531_v46, %v2489_v14  ;;  %v2600_v37 = vadd.f32 %v2587_v62, %v2545_v38  ;;  %v2751_v46 = vsel %vm456_vm1, %v8862_v60, %v8861_v56  ;;  %v8865_v62 = vld [vmem:[#allocation55_spill] sm:$0xff]  ;;  %v8866_v38 = vld [vmem:[#allocation44_spill] sm:$0xff] }
0x1689   :  { %v2861_v17 = vsel %vm677_vm2, %v8866_v38, %v8865_v62  ;;  %v2862_v27 = vsel %vm677_vm2, %v8865_v62, %v6806_v24  ;;  %v8871_v60 = vld [vmem:[#allocation64_spill] sm:$0xff] }
0x168a   :  { %v2599_v0 = vadd.f32 %v2586_v35, %v2544_v34  ;;  %v2655_v55 = vadd.f32 %v2642_v40, %v2600_v37  ;;  %v8868_v40 = vld [vmem:[#allocation66_spill] sm:$0xff] }
0x168c   :  { %v2654_v33 = vadd.f32 %v2641_v22, %v2599_v0  ;;  %v2710_v53 = vadd.f32 %v2697_v50, %v2655_v55  ;;  %v8867_v0 = vld [vmem:[#allocation56_spill] sm:$0xff] }
0x168d   :  { %v2916_v37 = vsel %vm677_vm2, %v8868_v40, %v8867_v0  ;;  %v2917_v47 = vsel %vm677_vm2, %v8867_v0, %v6837_v32  ;;  %v3027_v32 = vsel %vm677_vm2, %v8871_v60, %v8819_v44  ;;  %v8876_v44 = vld [vmem:[#allocation103_spill] sm:$0xff] }
0x168e   :  { %v2709_v14 = vadd.f32 %v2696_v8, %v2654_v33  ;;  %v2765_v34 = vadd.f32 %v2752_v5, %v2710_v53  ;;  %v8869_v8 = vld [vmem:[#allocation61_spill] sm:$0xff]  ;;  %v8870_v33 = vld [vmem:[#allocation62_spill] sm:$0xff] }
0x168f   :  { %v2971_v50 = vsel %vm677_vm2, %v8870_v33, %v8869_v8  ;;  %v2972_v24 = vsel %vm677_vm2, %v8869_v8, %v8815_v28 }
0x1690   :  { %v2764_v35 = vadd.f32 %v2751_v46, %v2709_v14  ;;  %v2820_v22 = vadd.f32 %v2807_v39, %v2765_v34  ;;  %v8872_v46 = vld [vmem:[#allocation85_spill] sm:$0xff]  ;;  %v8875_v34 = vld [vmem:[#allocation88_spill] sm:$0xff] }
0x1691   :  { %v3026_v14 = vsel %vm677_vm2, %v8872_v46, %v8871_v60  ;;  %v3169_v62 = vsel %vm918_vm3, %v8875_v34, %v8830_v31  ;;  %v8877_v60 = vld [vmem:[#allocation72_spill] sm:$0xff] }
0x1692   :  { %v2819_v49 = vadd.f32 %v2806_v29, %v2764_v35  ;;  %v2875_v54 = vadd.f32 %v2862_v27, %v2820_v22  ;;  %v3101_v29 = vsel %vm918_vm3, %v8873_v61, %v8825_v58  ;;  %v7336_v35 = vpop.permute.xlu1 %3303 }
0x1693   :  { %8874 = vst [vmem:[#allocation110_spill] sm:$0xff] %v7336_v35 }
0x1694   :  { %v2874_v9 = vadd.f32 %v2861_v17, %v2819_v49  ;;  %v2930_v56 = vadd.f32 %v2917_v47, %v2875_v54  ;;  %v3237_v49 = vsel %vm918_vm3, %v8876_v44, %v7046_v16 }
0x1696   :  { %v2929_v55 = vadd.f32 %v2916_v37, %v2874_v9  ;;  %v2985_v53 = vadd.f32 %v2972_v24, %v2930_v56 }
0x1698   :  { %v2984_v5 = vadd.f32 %v2971_v50, %v2929_v55  ;;  %v3040_v39 = vadd.f32 %v3027_v32, %v2985_v53  ;;  %v8879_v32 = vld [vmem:[#allocation91_spill] sm:$0xff] }
0x169a   :  { %v3039_v26 = vadd.f32 %v3026_v14, %v2984_v5  ;;  %v3114_v38 = vadd.f32 %v3101_v29, %v3040_v39  ;;  %v8878_v14 = vld [vmem:[#allocation78_spill] sm:$0xff]  ;;  %v8882_v39 = vld [vmem:[#allocation92_spill] sm:$0xff] }
0x169c   :  { %v3113_v28 = vadd.f32 %v8873_v61, %v3039_v26  ;;  %v3182_v27 = vadd.f32 %v3169_v62, %v3114_v38  ;;  %v8880_v26 = vld [vmem:[#allocation82_spill] sm:$0xff]  ;;  %v4435_v38 = vld [vmem:[%s8005_s1 + $0xe8] sm:$0xf] }
0x169e   :  { %v3181_v17 = vadd.f32 %v8875_v34, %v3113_v28  ;;  %v3250_v58 = vadd.f32 %v3237_v49, %v3182_v27  ;;  %v8884_v49 = vld [vmem:[#allocation10_spill] sm:$0xff] }
0x169f   :  { %v2251_v27 = vmul.f32 %v8884_v49, %v6441_v41  ;;  %v8894_v49 = vld [vmem:[#allocation23_spill] sm:$0xff] }
0x16a0   :  { %v3249_v22 = vadd.f32 %v8876_v44, %v3181_v17  ;;  %v3318_v9 = vadd.f32 %v7211_v3, %v3250_v58  ;;  %v8883_v17 = vld [vmem:[#allocation24_spill] sm:$0xff] }
0x16a1   :  { %v2293_v44 = vmul.f32 %v8883_v17, %v6393_v20 }
0x16a2   :  { %v3317_v0 = vadd.f32 %v7105_v36, %v3249_v22 }
0x16a3   :  { %v2300_v22 = vadd.f32 %v2293_v44, %v2251_v27 }
0x16c7   :  { %v3379_v40 = vpop.permute.xlu2 %3378 }
0x16cf   :  { %v7391_v58 = vpop.permute.xlu2 %3384 }
0x16d0   :  { %8885 = vst [vmem:[#allocation119_spill] sm:$0xff] %v7391_v58 }
0x16df   :  { %v3377_v37 = vpop.permute.xlu1 %3376 }
0x16e0   :  { %v3389_v47 = vsel %vm1206_vm4, %v3377_v37, %v3379_v40  ;;  %v3375_v31 = vpop.permute.xlu0 %3374 }
0x16e1   :  { %v7351_v54 = vadd.f32 %v3389_v47, %v7216_v51  ;;  %v3388_v8 = vsel %vm1206_vm4, %v3375_v31, %v3377_v37  ;;  %v3401_v33 = vadd.f32 %v3375_v31, %v3317_v0  ;;  %v8886_v0 = vld [vmem:[#allocation14_spill] sm:$0xff] }
0x16e2   :  { %v7354_v16 = vadd.f32 %v3388_v8, %v3318_v9  ;;  %v8887_v9 = vld [vmem:[#allocation30_spill] sm:$0xff] }
0x16e3   :  { %v2377_v47 = vmul.f32 %v8887_v9, %v6443_v42  ;;  %v8888_v31 = vld [vmem:[#allocation26_spill] sm:$0xff]  ;;  %v8897_v9 = vld [vmem:[#allocation57_spill] sm:$0xff] }
0x16e4   :  { %v2426_v8 = vsel %vm235_vm0, %v6539_v45, %v8888_v31  ;;  %v8892_v45 = vld [vmem:[#allocation50_spill] sm:$0xff] }
0x16e7   :  { %v7356_v50 = vpop.permute.xlu1 %3382 }
0x16e8   :  { %v3381_v55 = vpop.permute.xlu0 %3380 }
0x16e9   :  { %v3390_v36 = vsel %vm1206_vm4, %v3379_v40, %v3381_v55  ;;  %v3391_v24 = vsel %vm1206_vm4, %v3381_v55, %v7356_v50  ;;  %v2335_v40 = vmul.f32 %v8886_v0, %v6487_v19 }
0x16ea   :  { %v7362_v3 = vadd.f32 %v3390_v36, %v7214_v13  ;;  %v7365_v56 = vadd.f32 %v3391_v24, %v7241_v63  ;;  %v8881_v13 = vld [vmem:[#allocation79_spill] sm:$0xff]  ;;  %v3421_v63 = vperm.slane %v7202_v57, 1 }
0x16eb   :  { %v2342_v37 = vadd.f32 %v2335_v40, %v2300_v22  ;;  %v8889_v36 = vld [vmem:[#allocation43_spill] sm:$0xff]  ;;  %v8895_v22 = vld [vmem:[#allocation25_spill] sm:$0xff]  ;;  %v8896_v40 = vld [vmem:[#allocation54_spill] sm:$0xff] }
0x16ec   :  { %v7380_v34 = vperm.slane %v3421_v63, 1  ;;  %v2481_v24 = vsel %vm235_vm0, %v6591_v1, %v8889_v36  ;;  %v8891_v63 = vld [vmem:[#allocation18_spill] sm:$0xff]  ;;  %v8893_v1 = vld [vmem:[#allocation51_spill] sm:$0xff] }
0x16ed   :  { %v2384_v55 = vadd.f32 %v2377_v47, %v2342_v37 }
0x16ef   :  { %v3413_v51 = vpop.permute.xlu1 %3412 }
0x16f0   :  { %v3438_v46 = vmul.f32 %v3413_v51, %v8877_v60  ;;  %v3436_v5 = vmul.f32 %v3413_v51, %v8878_v14  ;;  %v3437_v53 = vmul.f32 %v3413_v51, %v8879_v32  ;;  %v3441_v61 = vmul.f32 %v3413_v51, %v8880_v26 }
0x16f1   :  { %v3439_v29 = vmul.f32 %v3413_v51, %v8881_v13  ;;  %v3440_v28 = vmul.f32 %v3413_v51, %v8882_v39  ;;  %v3442_v62 = vmul.f32 %v7380_v34, %v3413_v51 }
0x16f2   :  { %3454 = vrot.lane.b32.xlu1 %v3438_v46, %s4468_s14  ;;  %3450 = vrot.lane.b32.xlu2 %v3436_v5, %s4468_s14  ;;  %v2439_v46 = vadd.f32 %v2426_v8, %v2384_v55  ;;  %v7429_v8 = vpop.permute.xlu0 %3386  ;;  %v8899_v55 = vld [vmem:[#allocation73_spill] sm:$0xff] }
0x16f3   :  { %3452 = vrot.lane.b32.xlu0 %v3437_v53, %s4468_s14  ;;  %v8890_v53 = vld [vmem:[#allocation31_spill] sm:$0xff]  ;;  %8898 = vst [vmem:[#allocation113_spill] sm:$0xff] %v7429_v8 }
0x16fa   :  { %3460 = vrot.lane.b32.xlu1 %v3441_v61, %s4468_s14  ;;  %3456 = vrot.lane.b32.xlu2 %v3439_v29, %s4468_s14  ;;  %v2536_v61 = vsel %vm235_vm0, %v6622_v43, %v8890_v53  ;;  %v2494_v29 = vadd.f32 %v2481_v24, %v2439_v46  ;;  %v2756_v43 = vsel %vm456_vm1, %v6746_v21, %v8894_v49  ;;  %v8900_v46 = vld [vmem:[#allocation87_spill] sm:$0xff] }
0x16fb   :  { %3458 = vrot.lane.b32.xlu0 %v3440_v28, %s4468_s14  ;;  %v2591_v28 = vsel %vm235_vm0, %v6653_v10, %v8891_v63  ;;  %v2811_v10 = vsel %vm456_vm1, %v8812_v52, %v8895_v22  ;;  %v2976_v21 = vsel %vm677_vm2, %v8829_v7, %v8899_v55  ;;  %v3031_v52 = vsel %vm677_vm2, %v8832_v2, %v8900_v46 }
0x16fc   :  { %v3241_v2 = vsel %vm918_vm3, %v7068_v59, %v7169_v23  ;;  %v3392_v59 = vsel %vm1206_vm4, %v7356_v50, %v7391_v58 }
0x1702   :  { %3462 = vrot.lane.b32.xlu2 %v3442_v62, %s4468_s14  ;;  %v2549_v62 = vadd.f32 %v2536_v61, %v2494_v29  ;;  %v8901_v29 = vld [vmem:[#allocation102_spill] sm:$0xff] }
0x1703   :  { %3488 = vperm.xlu0 %4460, %v4435_v38   ;;  %v2646_v38 = vsel %vm456_vm1, %v8809_v48, %v8892_v45  ;;  %v2866_v48 = vsel %vm677_vm2, %v8816_v25, %v8896_v40  ;;  %v3105_v25 = vsel %vm918_vm3, %v8834_v30, %v8901_v29 }
0x1704   :  { %v2604_v17 = vadd.f32 %v2591_v28, %v2549_v62 }
0x1706   :  { %v2659_v44 = vadd.f32 %v2646_v38, %v2604_v17 }
0x174c   :  { %v3451_v51 = vpop.permute.xlu2 %3450 }
0x174d   :  { %v7403_v5 = vadd.f32 %v3451_v51, %v3401_v33  ;;  %v2701_v33 = vsel %vm456_vm1, %v6715_v4, %v8893_v1  ;;  %v2921_v4 = vsel %vm677_vm2, %v8822_v15, %v8897_v9  ;;  %v3173_v15 = vsel %vm918_vm3, %v8837_v12, %v7036_v6 }
0x174e   :  { %v2714_v27 = vadd.f32 %v2701_v33, %v2659_v44 }
0x1750   :  { %v2769_v0 = vadd.f32 %v2756_v43, %v2714_v27 }
0x1752   :  { %v2824_v37 = vadd.f32 %v2811_v10, %v2769_v0  ;;  %v3309_v0 = vsel %vm918_vm3, %v7233_v11, %v7336_v35  ;;  %v8903_v11 = vld [vmem:[#allocation90_spill] sm:$0xff] }
0x1754   :  { %v2879_v47 = vadd.f32 %v2866_v48, %v2824_v37  ;;  %v3457_v62 = vpop.permute.xlu2 %3456 }
0x1756   :  { %v2934_v24 = vadd.f32 %v2921_v4, %v2879_v47 }
0x1758   :  { %v2989_v61 = vadd.f32 %v2976_v21, %v2934_v24 }
0x175a   :  { %v3044_v28 = vadd.f32 %v3031_v52, %v2989_v61  ;;  %v8904_v61 = vld [vmem:[#allocation100_spill] sm:$0xff] }
0x175c   :  { %v3118_v17 = vadd.f32 %v3105_v25, %v3044_v28  ;;  %v8905_v28 = vld [vmem:[#allocation96_spill] sm:$0xff] }
0x175e   :  { %v3186_v27 = vadd.f32 %v3173_v15, %v3118_v17  ;;  %v8906_v15 = vld [vmem:[#allocation89_spill] sm:$0xff] }
0x1760   :  { %v3254_v48 = vadd.f32 %v3241_v2, %v3186_v27  ;;  %v7486_v27 = vpop.permute.xlu2 %3462 }
0x1761   :  { %8909 = vst [vmem:[#allocation114_spill] sm:$0xff] %v7486_v27 }
0x1764   :  { %v3455_v38 = vpop.permute.xlu1 %3454 }
0x1765   :  { %v3466_v7 = vsel %vm1206_vm4, %v3455_v38, %v3457_v62  ;;  %v3453_v33 = vpop.permute.xlu0 %3452 }
0x1766   :  { %v7448_v44 = vadd.f32 %v3466_v7, %v7362_v3  ;;  %v3464_v30 = vsel %vm1206_vm4, %v3451_v51, %v3453_v33  ;;  %v3465_v43 = vsel %vm1206_vm4, %v3453_v33, %v3455_v38  ;;  %v3322_v3 = vadd.f32 %v3309_v0, %v3254_v48  ;;  %v8907_v38 = vld [vmem:[#allocation97_spill] sm:$0xff] }
0x1767   :  { %v3478_v12 = vadd.f32 %v3464_v30, %v7354_v16  ;;  %v3479_v10 = vadd.f32 %v3465_v43, %v7351_v54  ;;  %v8908_v7 = vld [vmem:[#allocation101_spill] sm:$0xff]  ;;  %v3497_v33 = vperm.slane %v7202_v57, 2  ;;  %v4436_v30 = vld [vmem:[%s8005_s1 + $0xec] sm:$0xf] }
0x1768   :  { %v3406_v51 = vadd.f32 %v3392_v59, %v3322_v3  ;;  %v8910_v3 = vld [vmem:[#allocation108_spill] sm:$0xff] }
0x1769   :  { %v7479_v2 = vperm.slane %v3497_v33, 2  ;;  %v3573_v33 = vperm.slane %v7202_v57, 3 }
0x176c   :  { %v7460_v37 = vpop.permute.xlu1 %3460 }
0x176d   :  { %8902 = vst [vmem:[#allocation125_spill] sm:$0xff] %v7460_v37  ;;  %v3459_v4 = vpop.permute.xlu0 %3458 }
0x176e   :  { %v3467_v47 = vsel %vm1206_vm4, %v3457_v62, %v3459_v4  ;;  %v3468_v16 = vsel %vm1206_vm4, %v3459_v4, %v7460_v37 }
0x176f   :  { %v3481_v54 = vadd.f32 %v3467_v47, %v7365_v56  ;;  %v3482_v21 = vadd.f32 %v3468_v16, %v3406_v51  ;;  %v8911_v47 = vld [vmem:[#allocation104_spill] sm:$0xff] }
0x1775   :  { %v3489_v24 = vpop.permute.xlu0 %3488 }
0x1776   :  { %v3514_v52 = vmul.f32 %v3489_v24, %v8903_v11  ;;  %v3513_v25 = vmul.f32 %v3489_v24, %v8904_v61  ;;  %v3512_v50 = vmul.f32 %v3489_v24, %v8905_v28  ;;  %v3517_v62 = vmul.f32 %v3489_v24, %v8906_v15 }
0x1777   :  { %v3516_v17 = vmul.f32 %v3489_v24, %v8907_v38  ;;  %v3515_v56 = vmul.f32 %v3489_v24, %v8908_v7  ;;  %v3518_v43 = vmul.f32 %v7479_v2, %v3489_v24 }
0x1778   :  { %3530 = vrot.lane.b32.xlu0 %v3514_v52, %s4468_s14  ;;  %3528 = vrot.lane.b32.xlu2 %v3513_v25, %s4468_s14 }
0x1779   :  { %3526 = vrot.lane.b32.xlu1 %v3512_v50, %s4468_s14  ;;  %v8912_v50 = vld [vmem:[#allocation105_spill] sm:$0xff] }
0x1780   :  { %3536 = vrot.lane.b32.xlu0 %v3517_v62, %s4468_s14  ;;  %3534 = vrot.lane.b32.xlu2 %v3516_v17, %s4468_s14  ;;  %v8913_v17 = vld [vmem:[#allocation109_spill] sm:$0xff] }
0x1781   :  { %3532 = vrot.lane.b32.xlu1 %v3515_v56, %s4468_s14 }
0x1788   :  { %3564 = vperm.xlu2 %4462, %v4436_v30  }
0x1789   :  { %3538 = vrot.lane.b32.xlu1 %v3518_v43, %s4468_s14 }
0x17d2   :  { %v3529_v0 = vpop.permute.xlu2 %3528 }
0x17da   :  { %v3535_v48 = vpop.permute.xlu2 %3534 }
0x17e2   :  { %v3565_v59 = vpop.permute.xlu2 %3564 }
0x17e3   :  { %v3590_v51 = vmul.f32 %v3565_v59, %v8910_v3  ;;  %v3588_v4 = vmul.f32 %v3565_v59, %v7008_v18  ;;  %v3589_v16 = vmul.f32 %v3565_v59, %v8911_v47  ;;  %v3593_v62 = vmul.f32 %v3565_v59, %v8912_v50 }
0x17e4   :  { %v3591_v56 = vmul.f32 %v3565_v59, %v8913_v17 }
0x17e5   :  { %3606 = vrot.lane.b32.xlu2 %v3590_v51, %s4468_s14  ;;  %3602 = vrot.lane.b32.xlu0 %v3588_v4, %s4468_s14  ;;  %v8914_v51 = vld [vmem:[#allocation117_spill] sm:$0xff] }
0x17e6   :  { %3604 = vrot.lane.b32.xlu1 %v3589_v16, %s4468_s14  ;;  %v3592_v27 = vmul.f32 %v3565_v59, %v8914_v51  ;;  %v7504_v16 = vperm.slane %v3573_v33, 3 }
0x17ea   :  { %v3531_v24 = vpop.permute.xlu0 %3530 }
0x17eb   :  { %v3541_v52 = vsel %vm1206_vm4, %v3529_v0, %v3531_v24  ;;  %v3527_v25 = vpop.permute.xlu1 %3526 }
0x17ec   :  { %v3555_v30 = vadd.f32 %v3541_v52, %v3479_v10  ;;  %v3540_v43 = vsel %vm1206_vm4, %v3527_v25, %v3529_v0  ;;  %v3553_v37 = vadd.f32 %v3527_v25, %v7403_v5  ;;  %v3594_v0 = vmul.f32 %v7504_v16, %v3565_v59  ;;  %v4437_v5 = vld [vmem:[%s8005_s1 + $0xf0] sm:$0xf] }
0x17ed   :  { %v3554_v4 = vadd.f32 %v3540_v43, %v3478_v12  ;;  %3612 = vrot.lane.b32.xlu2 %v3593_v62, %s4468_s14  ;;  %3608 = vrot.lane.b32.xlu0 %v3591_v56, %s4468_s14 }
0x17ee   :  { %3610 = vrot.lane.b32.xlu1 %v3592_v27, %s4468_s14 }
0x17f2   :  { %v7506_v35 = vpop.permute.xlu0 %3536 }
0x17f3   :  { %8915 = vst [vmem:[#allocation120_spill] sm:$0xff] %v7506_v35  ;;  %v3544_v57 = vsel %vm1206_vm4, %v3535_v48, %v7506_v35  ;;  %v3533_v10 = vpop.permute.xlu1 %3532 }
0x17f4   :  { %v3558_v12 = vadd.f32 %v3544_v57, %v3482_v21  ;;  %v3542_v52 = vsel %vm1206_vm4, %v3531_v24, %v3533_v10  ;;  %v3543_v25 = vsel %vm1206_vm4, %v3533_v10, %v3535_v48 }
0x17f5   :  { %v3556_v27 = vadd.f32 %v3542_v52, %v7448_v44  ;;  %v3557_v62 = vadd.f32 %v3543_v25, %v3481_v54  ;;  %3614 = vrot.lane.b32.xlu0 %v3594_v0, %s4468_s14 }
0x17f6   :  { %3640 = vperm.xlu1 %4461, %v4437_v5  }
0x17fb   :  { %v7518_v56 = vpop.permute.xlu1 %3538 }
0x17fc   :  { %8916 = vst [vmem:[#allocation126_spill] sm:$0xff] %v7518_v56 }
0x183f   :  { %v3607_v33 = vpop.permute.xlu2 %3606 }
0x1847   :  { %v7522_v48 = vpop.permute.xlu2 %3612 }
0x1848   :  { %8917 = vst [vmem:[#allocation115_spill] sm:$0xff] %v7522_v48 }
0x1857   :  { %v3603_v43 = vpop.permute.xlu0 %3602 }
0x1858   :  { %v3629_v59 = vadd.f32 %v3603_v43, %v3553_v37  ;;  %v3605_v35 = vpop.permute.xlu1 %3604 }
0x1859   :  { %v3616_v58 = vsel %vm1206_vm4, %v3603_v43, %v3605_v35  ;;  %v3617_v21 = vsel %vm1206_vm4, %v3605_v35, %v3607_v33  ;;  %v8918_v43 = vld [vmem:[#allocation74_spill] sm:$0xff]  ;;  %v8919_v35 = vld [vmem:[#allocation65_spill] sm:$0xff] }
0x185a   :  { %v3630_v57 = vadd.f32 %v3616_v58, %v3554_v4  ;;  %v3631_v24 = vadd.f32 %v3617_v21, %v3555_v30  ;;  %v8920_v30 = vld [vmem:[#allocation69_spill] sm:$0xff] }
0x185f   :  { %v3609_v8 = vpop.permute.xlu0 %3608 }
0x1860   :  { %v3618_v44 = vsel %vm1206_vm4, %v3607_v33, %v3609_v8  ;;  %v3611_v54 = vpop.permute.xlu1 %3610  ;;  %v8922_v33 = vld [vmem:[#allocation76_spill] sm:$0xff] }
0x1861   :  { %v3632_v10 = vadd.f32 %v3618_v44, %v3556_v27  ;;  %v3619_v0 = vsel %vm1206_vm4, %v3609_v8, %v3611_v54  ;;  %v3620_v5 = vsel %vm1206_vm4, %v3611_v54, %v7522_v48  ;;  %v8921_v27 = vld [vmem:[#allocation70_spill] sm:$0xff]  ;;  %v8923_v44 = vld [vmem:[#allocation80_spill] sm:$0xff] }
0x1862   :  { %v3633_v37 = vadd.f32 %v3619_v0, %v3557_v62  ;;  %v3634_v52 = vadd.f32 %v3620_v5, %v3558_v12  ;;  %v4438_v12 = vld [vmem:[%s8005_s1 + $0xf4] sm:$0xf] }
0x1868   :  { %v3641_v25 = vpop.permute.xlu1 %3640 }
0x1869   :  { %v3645_v56 = vmul.f32 %v3641_v25, %v8918_v43  ;;  %v3644_v58 = vmul.f32 %v3641_v25, %v8919_v35  ;;  %v3643_v4 = vmul.f32 %v3641_v25, %v8920_v30  ;;  %v3648_v8 = vmul.f32 %v3641_v25, %v8921_v27 }
0x186a   :  { %v3647_v21 = vmul.f32 %v3641_v25, %v8922_v33  ;;  %v3646_v62 = vmul.f32 %v3641_v25, %v8923_v44 }
0x186b   :  { %3661 = vrot.lane.b32.xlu1 %v3645_v56, %s4469_s25  ;;  %3659 = vrot.lane.b32.xlu0 %v3644_v58, %s4469_s25  ;;  %v8924_v56 = vld [vmem:[#allocation118_spill] sm:$0xff]  ;;  %v7545_v58 = vpop.permute.xlu0 %3614 }
0x186c   :  { %3657 = vrot.lane.b32.xlu2 %v3643_v4, %s4469_s25  ;;  %v3649_v54 = vmul.f32 %v3641_v25, %v8924_v56  ;;  %8925 = vst [vmem:[#allocation121_spill] sm:$0xff] %v7545_v58 }
0x1873   :  { %3667 = vrot.lane.b32.xlu1 %v3648_v8, %s4469_s25  ;;  %3665 = vrot.lane.b32.xlu0 %v3647_v21, %s4469_s25 }
0x1874   :  { %3663 = vrot.lane.b32.xlu2 %v3646_v62, %s4469_s25 }
0x187b   :  { %3695 = vperm.xlu0 %4460, %v4438_v12  }
0x187c   :  { %3669 = vrot.lane.b32.xlu2 %v3649_v54, %s4469_s25 }
0x18c6   :  { %v3658_v0 = vpop.permute.xlu2 %3657 }
0x18c7   :  { %v3684_v5 = vadd.f32 %v3658_v0, %v3629_v59 }
0x18ce   :  { %v3664_v4 = vpop.permute.xlu2 %3663 }
0x18dd   :  { %v3662_v48 = vpop.permute.xlu1 %3661  ;;  %v3660_v8 = vpop.permute.xlu0 %3659 }
0x18de   :  { %v3673_v21 = vsel %vm1490_vm5, %v3662_v48, %v3664_v4  ;;  %v3671_v62 = vsel %vm1490_vm5, %v3658_v0, %v3660_v8  ;;  %v3672_v23 = vsel %vm1490_vm5, %v3660_v8, %v3662_v48 }
0x18df   :  { %v3687_v6 = vadd.f32 %v3673_v21, %v3632_v10  ;;  %v3685_v29 = vadd.f32 %v3671_v62, %v3630_v57  ;;  %v3686_v46 = vadd.f32 %v3672_v23, %v3631_v24 }
0x18e5   :  { %v7550_v25 = vpop.permute.xlu1 %3667  ;;  %v3666_v12 = vpop.permute.xlu0 %3665 }
0x18e6   :  { %8926 = vst [vmem:[#allocation122_spill] sm:$0xff] %v7550_v25  ;;  %v3674_v54 = vsel %vm1490_vm5, %v3664_v4, %v3666_v12  ;;  %v3675_v59 = vsel %vm1490_vm5, %v3666_v12, %v7550_v25 }
0x18e7   :  { %v3688_v58 = vadd.f32 %v3674_v54, %v3633_v37  ;;  %v3689_v55 = vadd.f32 %v3675_v59, %v3634_v52  ;;  %v7572_v37 = vpop.permute.xlu2 %3669 }
0x18e8   :  { %8927 = vst [vmem:[#allocation128_spill] sm:$0xff] %v7572_v37 }
0x18ed   :  { %v3696_v9 = vpop.permute.xlu0 %3695 }
0x18ee   :  { %v3700_v40 = vmul.f32 %v3696_v9, %v8877_v60  ;;  %v3698_v0 = vmul.f32 %v3696_v9, %v8878_v14  ;;  %v3699_v48 = vmul.f32 %v3696_v9, %v8879_v32  ;;  %v3703_v23 = vmul.f32 %v3696_v9, %v8880_v26 }
0x18ef   :  { %v3701_v57 = vmul.f32 %v3696_v9, %v8881_v13  ;;  %v3702_v24 = vmul.f32 %v3696_v9, %v8882_v39  ;;  %v3704_v10 = vmul.f32 %v3696_v9, %v7380_v34 }
0x18f0   :  { %3716 = vrot.lane.b32.xlu0 %v3700_v40, %s4469_s25  ;;  %3712 = vrot.lane.b32.xlu1 %v3698_v0, %s4469_s25  ;;  %v4439_v40 = vld [vmem:[%s8005_s1 + $0xf8] sm:$0xf] }
0x18f1   :  { %3714 = vrot.lane.b32.xlu2 %v3699_v48, %s4469_s25 }
0x18f8   :  { %3722 = vrot.lane.b32.xlu0 %v3703_v23, %s4469_s25  ;;  %3718 = vrot.lane.b32.xlu1 %v3701_v57, %s4469_s25 }
0x18f9   :  { %3720 = vrot.lane.b32.xlu2 %v3702_v24, %s4469_s25 }
0x1900   :  { %3724 = vrot.lane.b32.xlu1 %v3704_v10, %s4469_s25 }
0x1901   :  { %3750 = vperm.xlu2 %4462, %v4439_v40  }
0x194b   :  { %v3715_v52 = vpop.permute.xlu2 %3714 }
0x1953   :  { %v3721_v4 = vpop.permute.xlu2 %3720 }
0x195b   :  { %v3751_v8 = vpop.permute.xlu2 %3750 }
0x195c   :  { %v3755_v21 = vmul.f32 %v3751_v8, %v8903_v11  ;;  %v3754_v62 = vmul.f32 %v3751_v8, %v8904_v61  ;;  %v3753_v12 = vmul.f32 %v3751_v8, %v8905_v28  ;;  %v3758_v24 = vmul.f32 %v3751_v8, %v8906_v15 }
0x195d   :  { %v3757_v10 = vmul.f32 %v3751_v8, %v8907_v38  ;;  %v3756_v40 = vmul.f32 %v3751_v8, %v8908_v7 }
0x195e   :  { %3771 = vrot.lane.b32.xlu2 %v3755_v21, %s4469_s25  ;;  %3769 = vrot.lane.b32.xlu1 %v3754_v62, %s4469_s25 }
0x195f   :  { %3767 = vrot.lane.b32.xlu0 %v3753_v12, %s4469_s25 }
0x1962   :  { %v3717_v9 = vpop.permute.xlu0 %3716  ;;  %v3713_v54 = vpop.permute.xlu1 %3712 }
0x1963   :  { %v3727_v59 = vsel %vm1490_vm5, %v3715_v52, %v3717_v9  ;;  %v3726_v0 = vsel %vm1490_vm5, %v3713_v54, %v3715_v52  ;;  %v3739_v48 = vadd.f32 %v3713_v54, %v3684_v5  ;;  %v4440_v52 = vld [vmem:[%s8005_s1 + $0xfc] sm:$0xf] }
0x1964   :  { %v3741_v23 = vadd.f32 %v3727_v59, %v3686_v46  ;;  %v3740_v57 = vadd.f32 %v3726_v0, %v3685_v29  ;;  %v3759_v0 = vmul.f32 %v3751_v8, %v7479_v2 }
0x1966   :  { %3777 = vrot.lane.b32.xlu2 %v3758_v24, %s4469_s25  ;;  %3775 = vrot.lane.b32.xlu1 %v3757_v10, %s4469_s25 }
0x1967   :  { %3773 = vrot.lane.b32.xlu0 %v3756_v40, %s4469_s25 }
0x196a   :  { %v7588_v21 = vpop.permute.xlu0 %3722  ;;  %v3719_v62 = vpop.permute.xlu1 %3718 }
0x196b   :  { %8928 = vst [vmem:[#allocation132_spill] sm:$0xff] %v7588_v21  ;;  %v3730_v5 = vsel %vm1490_vm5, %v3721_v4, %v7588_v21  ;;  %v3728_v46 = vsel %vm1490_vm5, %v3717_v9, %v3719_v62  ;;  %v3729_v29 = vsel %vm1490_vm5, %v3719_v62, %v3721_v4 }
0x196c   :  { %v3744_v12 = vadd.f32 %v3730_v5, %v3689_v55  ;;  %v3742_v54 = vadd.f32 %v3728_v46, %v3687_v6  ;;  %v3743_v59 = vadd.f32 %v3729_v29, %v3688_v58 }
0x196e   :  { %3805 = vperm.xlu1 %4461, %v4440_v52  }
0x196f   :  { %3779 = vrot.lane.b32.xlu0 %v3759_v0, %s4469_s25 }
0x1972   :  { %v7599_v24 = vpop.permute.xlu1 %3724 }
0x1973   :  { %8929 = vst [vmem:[#allocation123_spill] sm:$0xff] %v7599_v24 }
0x19b8   :  { %v3772_v10 = vpop.permute.xlu2 %3771 }
0x19c0   :  { %v7603_v55 = vpop.permute.xlu2 %3777 }
0x19c1   :  { %8930 = vst [vmem:[#allocation127_spill] sm:$0xff] %v7603_v55 }
0x19d0   :  { %v3770_v40 = vpop.permute.xlu1 %3769 }
0x19d1   :  { %v3782_v9 = vsel %vm1490_vm5, %v3770_v40, %v3772_v10  ;;  %v3768_v21 = vpop.permute.xlu0 %3767 }
0x19d2   :  { %v3796_v4 = vadd.f32 %v3782_v9, %v3741_v23  ;;  %v3781_v62 = vsel %vm1490_vm5, %v3768_v21, %v3770_v40  ;;  %v3794_v25 = vadd.f32 %v3768_v21, %v3739_v48 }
0x19d3   :  { %v3795_v37 = vadd.f32 %v3781_v62, %v3740_v57 }
0x19d8   :  { %v3776_v6 = vpop.permute.xlu1 %3775 }
0x19d9   :  { %v3785_v58 = vsel %vm1490_vm5, %v3776_v6, %v7603_v55  ;;  %v3774_v8 = vpop.permute.xlu0 %3773 }
0x19da   :  { %v3799_v5 = vadd.f32 %v3785_v58, %v3744_v12  ;;  %v3783_v46 = vsel %vm1490_vm5, %v3772_v10, %v3774_v8  ;;  %v3784_v29 = vsel %vm1490_vm5, %v3774_v8, %v3776_v6  ;;  %v4441_v10 = vld [vmem:[%s8005_s1 + $0x100] sm:$0xf] }
0x19db   :  { %v3797_v52 = vadd.f32 %v3783_v46, %v3742_v54  ;;  %v3798_v0 = vadd.f32 %v3784_v29, %v3743_v59 }
0x19e0   :  { %v3806_v24 = vpop.permute.xlu1 %3805 }
0x19e1   :  { %v3810_v23 = vmul.f32 %v3806_v24, %v8910_v3  ;;  %v3808_v48 = vmul.f32 %v3806_v24, %v7008_v18  ;;  %v3809_v57 = vmul.f32 %v3806_v24, %v8911_v47  ;;  %v3813_v21 = vmul.f32 %v3806_v24, %v8912_v50  ;;  %v7626_v62 = vpop.permute.xlu0 %3779 }
0x19e2   :  { %v3811_v12 = vmul.f32 %v3806_v24, %v8913_v17  ;;  %v3812_v54 = vmul.f32 %v3806_v24, %v8914_v51  ;;  %v3814_v59 = vmul.f32 %v3806_v24, %v7504_v16  ;;  %8931 = vst [vmem:[#allocation129_spill] sm:$0xff] %v7626_v62 }
0x19e3   :  { %3826 = vrot.lane.b32.xlu1 %v3810_v23, %s4469_s25  ;;  %3822 = vrot.lane.b32.xlu2 %v3808_v48, %s4469_s25 }
0x19e4   :  { %3824 = vrot.lane.b32.xlu0 %v3809_v57, %s4469_s25 }
0x19eb   :  { %3832 = vrot.lane.b32.xlu1 %v3813_v21, %s4469_s25  ;;  %3828 = vrot.lane.b32.xlu2 %v3811_v12, %s4469_s25 }
0x19ec   :  { %3830 = vrot.lane.b32.xlu0 %v3812_v54, %s4469_s25 }
0x19f3   :  { %3834 = vrot.lane.b32.xlu2 %v3814_v59, %s4469_s25 }
0x19f4   :  { %3860 = vperm.xlu0 %4460, %v4441_v10  }
0x1a3d   :  { %v3823_v40 = vpop.permute.xlu2 %3822 }
0x1a3e   :  { %v3849_v9 = vadd.f32 %v3823_v40, %v3794_v25 }
0x1a45   :  { %v3829_v6 = vpop.permute.xlu2 %3828 }
0x1a55   :  { %v3827_v58 = vpop.permute.xlu1 %3826 }
0x1a56   :  { %v3838_v8 = vsel %vm1490_vm5, %v3827_v58, %v3829_v6  ;;  %v3825_v46 = vpop.permute.xlu0 %3824 }
0x1a57   :  { %v3852_v29 = vadd.f32 %v3838_v8, %v3797_v52  ;;  %v3836_v23 = vsel %vm1490_vm5, %v3823_v40, %v3825_v46  ;;  %v3837_v24 = vsel %vm1490_vm5, %v3825_v46, %v3827_v58 }
0x1a58   :  { %v3850_v48 = vadd.f32 %v3836_v23, %v3795_v37  ;;  %v3851_v57 = vadd.f32 %v3837_v24, %v3796_v4 }
0x1a5d   :  { %v7631_v21 = vpop.permute.xlu1 %3832 }
0x1a5e   :  { %8932 = vst [vmem:[#allocation133_spill] sm:$0xff] %v7631_v21  ;;  %v3831_v12 = vpop.permute.xlu0 %3830 }
0x1a5f   :  { %v3839_v54 = vsel %vm1490_vm5, %v3829_v6, %v3831_v12  ;;  %v3840_v25 = vsel %vm1490_vm5, %v3831_v12, %v7631_v21  ;;  %v7653_v6 = vpop.permute.xlu2 %3834 }
0x1a60   :  { %v3853_v59 = vadd.f32 %v3839_v54, %v3798_v0  ;;  %v3854_v10 = vadd.f32 %v3840_v25, %v3799_v5  ;;  %v4442_v5 = vld [vmem:[%s8005_s1 + $0x104] sm:$0xf]  ;;  %8933 = vst [vmem:[#allocation124_spill] sm:$0xff] %v7653_v6 }
0x1a66   :  { %v3861_v55 = vpop.permute.xlu0 %3860 }
0x1a67   :  { %v3865_v62 = vmul.f32 %v3861_v55, %v8918_v43  ;;  %v3864_v52 = vmul.f32 %v3861_v55, %v8919_v35  ;;  %v3863_v40 = vmul.f32 %v3861_v55, %v8920_v30  ;;  %v3868_v37 = vmul.f32 %v3861_v55, %v8921_v27 }
0x1a68   :  { %v3867_v4 = vmul.f32 %v3861_v55, %v8922_v33  ;;  %v3866_v0 = vmul.f32 %v3861_v55, %v8923_v44 }
0x1a69   :  { %3881 = vrot.lane.b32.xlu0 %v3865_v62, %s4470_s9  ;;  %3879 = vrot.lane.b32.xlu2 %v3864_v52, %s4470_s9  ;;  %v3869_v62 = vmul.f32 %v3861_v55, %v8924_v56 }
0x1a6a   :  { %3877 = vrot.lane.b32.xlu1 %v3863_v40, %s4470_s9 }
0x1a71   :  { %3887 = vrot.lane.b32.xlu0 %v3868_v37, %s4470_s9  ;;  %3885 = vrot.lane.b32.xlu2 %v3867_v4, %s4470_s9 }
0x1a72   :  { %3883 = vrot.lane.b32.xlu1 %v3866_v0, %s4470_s9 }
0x1a79   :  { %3915 = vperm.xlu2 %4462, %v4442_v5  }
0x1a7a   :  { %3889 = vrot.lane.b32.xlu1 %v3869_v62, %s4470_s9 }
0x1ac3   :  { %v3880_v58 = vpop.permute.xlu2 %3879 }
0x1acb   :  { %v3886_v8 = vpop.permute.xlu2 %3885 }
0x1ad3   :  { %v3916_v46 = vpop.permute.xlu2 %3915 }
0x1ad4   :  { %v3920_v23 = vmul.f32 %v3916_v46, %v8877_v60  ;;  %v3918_v24 = vmul.f32 %v3916_v46, %v8878_v14  ;;  %v3919_v12 = vmul.f32 %v3916_v46, %v8879_v32  ;;  %v3923_v52 = vmul.f32 %v3916_v46, %v8880_v26 }
0x1ad5   :  { %v3921_v40 = vmul.f32 %v3916_v46, %v8881_v13  ;;  %v3922_v5 = vmul.f32 %v3916_v46, %v8882_v39 }
0x1ad6   :  { %3936 = vrot.lane.b32.xlu2 %v3920_v23, %s4470_s9  ;;  %3932 = vrot.lane.b32.xlu0 %v3918_v24, %s4470_s9 }
0x1ad7   :  { %3934 = vrot.lane.b32.xlu1 %v3919_v12, %s4470_s9 }
0x1adb   :  { %v3882_v55 = vpop.permute.xlu0 %3881 }
0x1adc   :  { %v3892_v54 = vsel %vm1711_vm6, %v3880_v58, %v3882_v55  ;;  %v3878_v25 = vpop.permute.xlu1 %3877 }
0x1add   :  { %v3906_v37 = vadd.f32 %v3892_v54, %v3851_v57  ;;  %v3891_v4 = vsel %vm1711_vm6, %v3878_v25, %v3880_v58  ;;  %v3904_v0 = vadd.f32 %v3878_v25, %v3849_v9  ;;  %v3924_v57 = vmul.f32 %v3916_v46, %v7380_v34  ;;  %v4443_v9 = vld [vmem:[%s8005_s1 + $0x108] sm:$0xf] }
0x1ade   :  { %v3905_v62 = vadd.f32 %v3891_v4, %v3850_v48  ;;  %3942 = vrot.lane.b32.xlu2 %v3923_v52, %s4470_s9  ;;  %3938 = vrot.lane.b32.xlu0 %v3921_v40, %s4470_s9 }
0x1adf   :  { %3940 = vrot.lane.b32.xlu1 %v3922_v5, %s4470_s9 }
0x1ae3   :  { %v7669_v23 = vpop.permute.xlu0 %3887 }
0x1ae4   :  { %8934 = vst [vmem:[#allocation139_spill] sm:$0xff] %v7669_v23  ;;  %v3895_v24 = vsel %vm1711_vm6, %v3886_v8, %v7669_v23  ;;  %v3884_v12 = vpop.permute.xlu1 %3883 }
0x1ae5   :  { %v3909_v58 = vadd.f32 %v3895_v24, %v3854_v10  ;;  %v3893_v48 = vsel %vm1711_vm6, %v3882_v55, %v3884_v12  ;;  %v3894_v54 = vsel %vm1711_vm6, %v3884_v12, %v3886_v8 }
0x1ae6   :  { %v3907_v25 = vadd.f32 %v3893_v48, %v3852_v29  ;;  %v3908_v52 = vadd.f32 %v3894_v54, %v3853_v59  ;;  %3944 = vrot.lane.b32.xlu0 %v3924_v57, %s4470_s9 }
0x1ae7   :  { %3970 = vperm.xlu1 %4461, %v4443_v9  }
0x1aec   :  { %v7680_v40 = vpop.permute.xlu1 %3889 }
0x1b30   :  { %v3937_v4 = vpop.permute.xlu2 %3936 }
0x1b38   :  { %v7684_v22 = vpop.permute.xlu2 %3942 }
0x1b39   :  { %8935 = vst [vmem:[#allocation130_spill] sm:$0xff] %v7684_v22 }
0x1b48   :  { %v3933_v5 = vpop.permute.xlu0 %3932 }
0x1b49   :  { %v3959_v23 = vadd.f32 %v3933_v5, %v3904_v0  ;;  %v3935_v46 = vpop.permute.xlu1 %3934 }
0x1b4a   :  { %v3946_v21 = vsel %vm1711_vm6, %v3933_v5, %v3935_v46  ;;  %v3947_v6 = vsel %vm1711_vm6, %v3935_v46, %v3937_v4 }
0x1b4b   :  { %v3960_v10 = vadd.f32 %v3946_v21, %v3905_v62  ;;  %v3961_v24 = vadd.f32 %v3947_v6, %v3906_v37 }
0x1b50   :  { %v3939_v55 = vpop.permute.xlu0 %3938 }
0x1b51   :  { %v3948_v29 = vsel %vm1711_vm6, %v3937_v4, %v3939_v55  ;;  %v3941_v59 = vpop.permute.xlu1 %3940 }
0x1b52   :  { %v3962_v8 = vadd.f32 %v3948_v29, %v3907_v25  ;;  %v3949_v12 = vsel %vm1711_vm6, %v3939_v55, %v3941_v59  ;;  %v3950_v57 = vsel %vm1711_vm6, %v3941_v59, %v7684_v22 }
0x1b53   :  { %v3963_v0 = vadd.f32 %v3949_v12, %v3908_v52  ;;  %v3964_v9 = vadd.f32 %v3950_v57, %v3909_v58  ;;  %v4444_v58 = vld [vmem:[%s8005_s1 + $0x10c] sm:$0xf] }
0x1b58   :  { %v7707_v46 = vpop.permute.xlu0 %3944 }
0x1b59   :  { %v3971_v48 = vpop.permute.xlu1 %3970  ;;  %8936 = vst [vmem:[#allocation134_spill] sm:$0xff] %v7707_v46 }
0x1b5a   :  { %v3975_v54 = vmul.f32 %v3971_v48, %v8903_v11  ;;  %v3974_v21 = vmul.f32 %v3971_v48, %v8904_v61  ;;  %v3973_v6 = vmul.f32 %v3971_v48, %v8905_v28  ;;  %v3978_v37 = vmul.f32 %v3971_v48, %v8906_v15 }
0x1b5b   :  { %v3977_v62 = vmul.f32 %v3971_v48, %v8907_v38  ;;  %v3976_v25 = vmul.f32 %v3971_v48, %v8908_v7  ;;  %v3979_v52 = vmul.f32 %v3971_v48, %v7479_v2 }
0x1b5c   :  { %3991 = vrot.lane.b32.xlu1 %v3975_v54, %s4470_s9  ;;  %3989 = vrot.lane.b32.xlu0 %v3974_v21, %s4470_s9 }
0x1b5d   :  { %3987 = vrot.lane.b32.xlu2 %v3973_v6, %s4470_s9 }
0x1b64   :  { %3997 = vrot.lane.b32.xlu1 %v3978_v37, %s4470_s9  ;;  %3995 = vrot.lane.b32.xlu0 %v3977_v62, %s4470_s9 }
0x1b65   :  { %3993 = vrot.lane.b32.xlu2 %v3976_v25, %s4470_s9 }
0x1b6c   :  { %4025 = vperm.xlu0 %4460, %v4444_v58  }
0x1b6d   :  { %3999 = vrot.lane.b32.xlu2 %v3979_v52, %s4470_s9 }
0x1bb7   :  { %v3988_v4 = vpop.permute.xlu2 %3987 }
0x1bb8   :  { %v4014_v5 = vadd.f32 %v3988_v4, %v3959_v23 }
0x1bbf   :  { %v3994_v55 = vpop.permute.xlu2 %3993 }
0x1bce   :  { %v3992_v29 = vpop.permute.xlu1 %3991  ;;  %v3990_v59 = vpop.permute.xlu0 %3989 }
0x1bcf   :  { %v4003_v12 = vsel %vm1711_vm6, %v3992_v29, %v3994_v55  ;;  %v4001_v57 = vsel %vm1711_vm6, %v3988_v4, %v3990_v59  ;;  %v4002_v54 = vsel %vm1711_vm6, %v3990_v59, %v3992_v29  ;;  %v4448_v59 = vld [vmem:[%s8005_s1 + $0x11c] sm:$0xf] }
0x1bd0   :  { %v4017_v21 = vadd.f32 %v4003_v12, %v3962_v8  ;;  %v4015_v6 = vadd.f32 %v4001_v57, %v3960_v10  ;;  %v4016_v37 = vadd.f32 %v4002_v54, %v3961_v24  ;;  %v7743_v12 = vpop.permute.xlu2 %3999 }
0x1bd6   :  { %v7712_v48 = vpop.permute.xlu1 %3997  ;;  %v3996_v62 = vpop.permute.xlu0 %3995 }
0x1bd7   :  { %v4004_v25 = vsel %vm1711_vm6, %v3994_v55, %v3996_v62  ;;  %v4005_v23 = vsel %vm1711_vm6, %v3996_v62, %v7712_v48  ;;  %v4447_v55 = vld [vmem:[%s8005_s1 + $0x118] sm:$0xf] }
0x1bd8   :  { %v4018_v58 = vadd.f32 %v4004_v25, %v3963_v0  ;;  %v4019_v52 = vadd.f32 %v4005_v23, %v3964_v9  ;;  %v4446_v0 = vld [vmem:[%s8005_s1 + $0x114] sm:$0xf] }
0x1bde   :  { %v4026_v22 = vpop.permute.xlu0 %4025 }
0x1bdf   :  { %v4030_v46 = vmul.f32 %v4026_v22, %v8910_v3  ;;  %v4028_v4 = vmul.f32 %v4026_v22, %v7008_v18  ;;  %v4029_v29 = vmul.f32 %v4026_v22, %v8911_v47  ;;  %v4033_v10 = vmul.f32 %v4026_v22, %v8912_v50 }
0x1be0   :  { %v4031_v24 = vmul.f32 %v4026_v22, %v8913_v17  ;;  %v4032_v8 = vmul.f32 %v4026_v22, %v8914_v51  ;;  %v4034_v9 = vmul.f32 %v4026_v22, %v7504_v16 }
0x1be1   :  { %4046 = vrot.lane.b32.xlu0 %v4030_v46, %s4470_s9  ;;  %4042 = vrot.lane.b32.xlu1 %v4028_v4, %s4470_s9  ;;  %v4445_v46 = vld [vmem:[%s8005_s1 + $0x110] sm:$0xf] }
0x1be2   :  { %4044 = vrot.lane.b32.xlu2 %v4029_v29, %s4470_s9 }
0x1be9   :  { %4052 = vrot.lane.b32.xlu0 %v4033_v10, %s4470_s9  ;;  %4048 = vrot.lane.b32.xlu1 %v4031_v24, %s4470_s9 }
0x1bea   :  { %4050 = vrot.lane.b32.xlu2 %v4032_v8, %s4470_s9 }
0x1bf1   :  { %4135 = vperm.xlu0 %4460, %v4446_v0   ;;  %4054 = vrot.lane.b32.xlu1 %v4034_v9, %s4470_s9 }
0x1bf2   :  { %4080 = vperm.xlu2 %4462, %v4445_v46  }
0x1bf9   :  { %4190 = vperm.xlu1 %4461, %v4447_v55  }
0x1bfa   :  { %4245 = vperm.xlu2 %4462, %v4448_v59  }
0x1c3c   :  { %v4045_v22 = vpop.permute.xlu2 %4044 }
0x1c44   :  { %v4051_v57 = vpop.permute.xlu2 %4050 }
0x1c4c   :  { %v4081_v54 = vpop.permute.xlu2 %4080 }
0x1c4d   :  { %v4085_v62 = vmul.f32 %v4081_v54, %v8918_v43  ;;  %v4084_v25 = vmul.f32 %v4081_v54, %v8919_v35  ;;  %v4083_v23 = vmul.f32 %v4081_v54, %v8920_v30  ;;  %v4088_v35 = vmul.f32 %v4081_v54, %v8921_v27 }
0x1c4e   :  { %v4087_v30 = vmul.f32 %v4081_v54, %v8922_v33  ;;  %v4086_v9 = vmul.f32 %v4081_v54, %v8923_v44  ;;  %v4089_v44 = vmul.f32 %v4081_v54, %v8924_v56 }
0x1c4f   :  { %4101 = vrot.lane.b32.xlu2 %v4085_v62, %s4471_s20  ;;  %4099 = vrot.lane.b32.xlu1 %v4084_v25, %s4471_s20 }
0x1c50   :  { %4097 = vrot.lane.b32.xlu0 %v4083_v23, %s4471_s20 }
0x1c53   :  { %v4047_v4 = vpop.permute.xlu0 %4046  ;;  %v4043_v29 = vpop.permute.xlu1 %4042 }
0x1c54   :  { %v4057_v10 = vsel %vm1711_vm6, %v4045_v22, %v4047_v4  ;;  %v4056_v24 = vsel %vm1711_vm6, %v4043_v29, %v4045_v22  ;;  %v7753_v8 = vadd.f32 %v4043_v29, %v4014_v5 }
0x1c55   :  { %v7755_v0 = vadd.f32 %v4057_v10, %v4016_v37  ;;  %v7757_v43 = vadd.f32 %v4056_v24, %v4015_v6  ;;  %v8937_v10 = vld [vmem:[#allocation22_spill] sm:$0xff] }
0x1c56   :  { %v2252_v24 = vmul.f32 %v8937_v10, %v6441_v41 }
0x1c57   :  { %4107 = vrot.lane.b32.xlu2 %v4088_v35, %s4471_s20  ;;  %4105 = vrot.lane.b32.xlu1 %v4087_v30, %s4471_s20  ;;  %v8938_v35 = vld [vmem:[#allocation39_spill] sm:$0xff] }
0x1c58   :  { %4103 = vrot.lane.b32.xlu0 %v4086_v9, %s4471_s20  ;;  %v2294_v30 = vmul.f32 %v8938_v35, %v6393_v20  ;;  %v8940_v20 = vld [vmem:[#allocation48_spill] sm:$0xff] }
0x1c5a   :  { %v2301_v9 = vadd.f32 %v2294_v30, %v2252_v24  ;;  %v8951_v24 = vld [vmem:[#allocation110_spill] sm:$0xff] }
0x1c5b   :  { %v4053_v46 = vpop.permute.xlu0 %4052  ;;  %v4049_v55 = vpop.permute.xlu1 %4048  ;;  %v8952_v30 = vld [vmem:[#allocation114_spill] sm:$0xff] }
0x1c5c   :  { %v4060_v5 = vsel %vm1711_vm6, %v4051_v57, %v4053_v46  ;;  %v4058_v37 = vsel %vm1711_vm6, %v4047_v4, %v4049_v55  ;;  %v4059_v6 = vsel %vm1711_vm6, %v4049_v55, %v4051_v57 }
0x1c5d   :  { %v7768_v59 = vadd.f32 %v4060_v5, %v4019_v52  ;;  %v7770_v27 = vadd.f32 %v4058_v37, %v4017_v21  ;;  %v7772_v33 = vadd.f32 %v4059_v6, %v4018_v58  ;;  %v8939_v37 = vld [vmem:[#allocation15_spill] sm:$0xff] }
0x1c60   :  { %4109 = vrot.lane.b32.xlu0 %v4089_v44, %s4471_s20  ;;  %v2378_v44 = vmul.f32 %v8940_v20, %v6443_v42  ;;  %v8954_v20 = vld [vmem:[#allocation126_spill] sm:$0xff] }
0x1c63   :  { %v4136_v22 = vpop.permute.xlu0 %4135  ;;  %v4055_v62 = vpop.permute.xlu1 %4054 }
0x1c64   :  { %v7777_v25 = vsel %vm1711_vm6, %v4053_v46, %v4055_v62  ;;  %v4139_v23 = vmul.f32 %v4136_v22, %v8879_v32  ;;  %v4138_v4 = vmul.f32 %v4136_v22, %v8878_v14  ;;  %v4140_v52 = vmul.f32 %v4136_v22, %v8877_v60 }
0x1c65   :  { %v4142_v56 = vmul.f32 %v4136_v22, %v8882_v39  ;;  %v4141_v21 = vmul.f32 %v4136_v22, %v8881_v13  ;;  %v4143_v32 = vmul.f32 %v4136_v22, %v8880_v26  ;;  %v4144_v58 = vmul.f32 %v4136_v22, %v7380_v34  ;;  %v4246_v34 = vpop.permute.xlu2 %4245 }
0x1c66   :  { %4154 = vrot.lane.b32.xlu2 %v4139_v23, %s4471_s20  ;;  %4152 = vrot.lane.b32.xlu1 %v4138_v4, %s4471_s20 }
0x1c68   :  { %4156 = vrot.lane.b32.xlu0 %v4140_v52, %s4471_s20 }
0x1c6b   :  { %v4191_v14 = vpop.permute.xlu1 %4190 }
0x1c6c   :  { %v4193_v60 = vmul.f32 %v4191_v14, %v8905_v28  ;;  %v4194_v39 = vmul.f32 %v4191_v14, %v8904_v61  ;;  %v4196_v13 = vmul.f32 %v4191_v14, %v8908_v7  ;;  %v4195_v57 = vmul.f32 %v4191_v14, %v8903_v11 }
0x1c6d   :  { %v4197_v26 = vmul.f32 %v4191_v14, %v8907_v38  ;;  %v4199_v28 = vmul.f32 %v4191_v14, %v7479_v2  ;;  %v4198_v54 = vmul.f32 %v4191_v14, %v8906_v15  ;;  %v4248_v61 = vmul.f32 %v4246_v34, %v7008_v18 }
0x1c6e   :  { %4160 = vrot.lane.b32.xlu2 %v4142_v56, %s4471_s20  ;;  %4158 = vrot.lane.b32.xlu1 %v4141_v21, %s4471_s20  ;;  %v4250_v11 = vmul.f32 %v4246_v34, %v8910_v3  ;;  %v4249_v7 = vmul.f32 %v4246_v34, %v8911_v47  ;;  %v4251_v38 = vmul.f32 %v4246_v34, %v8913_v17  ;;  %v4449_v3 = vld [vmem:[%s8007_s2 + $0x4] sm:$0xf] }
0x1c6f   :  { %v4253_v15 = vmul.f32 %v4246_v34, %v8912_v50  ;;  %v4252_v2 = vmul.f32 %v4246_v34, %v8914_v51  ;;  %v4254_v18 = vmul.f32 %v4246_v34, %v7504_v16  ;;  %v8944_v34 = vld [vmem:[#allocation73_spill] sm:$0xff] }
0x1c70   :  { %4162 = vrot.lane.b32.xlu0 %v4143_v32, %s4471_s20 }
0x1c76   :  { %4207 = vrot.lane.b32.xlu2 %v4193_v60, %s4471_s20  ;;  %4164 = vrot.lane.b32.xlu1 %v4144_v58, %s4471_s20 }
0x1c78   :  { %4209 = vrot.lane.b32.xlu0 %v4194_v39, %s4471_s20  ;;  %v8941_v39 = vld [vmem:[#allocation25_spill] sm:$0xff] }
0x1c7e   :  { %4213 = vrot.lane.b32.xlu2 %v4196_v13, %s4471_s20  ;;  %4211 = vrot.lane.b32.xlu1 %v4195_v57, %s4471_s20 }
0x1c80   :  { %4215 = vrot.lane.b32.xlu0 %v4197_v26, %s4471_s20  ;;  %v8943_v26 = vld [vmem:[#allocation57_spill] sm:$0xff] }
0x1c86   :  { %4219 = vrot.lane.b32.xlu2 %v4199_v28, %s4471_s20  ;;  %4217 = vrot.lane.b32.xlu1 %v4198_v54, %s4471_s20 }
0x1c88   :  { %4262 = vrot.lane.b32.xlu0 %v4248_v61, %s4471_s20  ;;  %v8945_v61 = vld [vmem:[#allocation87_spill] sm:$0xff] }
0x1c8e   :  { %4266 = vrot.lane.b32.xlu2 %v4250_v11, %s4471_s20  ;;  %4264 = vrot.lane.b32.xlu1 %v4249_v7, %s4471_s20 }
0x1c90   :  { %4268 = vrot.lane.b32.xlu0 %v4251_v38, %s4471_s20  ;;  %v8947_v38 = vld [vmem:[#allocation111_spill] sm:$0xff] }
0x1c96   :  { %4272 = vrot.lane.b32.xlu2 %v4253_v15, %s4471_s20  ;;  %4270 = vrot.lane.b32.xlu1 %v4252_v2, %s4471_s20  ;;  %v8948_v2 = vld [vmem:[#allocation112_spill] sm:$0xff] }
0x1c98   :  { %4274 = vrot.lane.b32.xlu0 %v4254_v18, %s4471_s20 }
0x1c9e   :  { %4300 = vperm.xlu1 %4461, %v4449_v3   ;;  %v8949_v3 = vld [vmem:[#allocation113_spill] sm:$0xff] }
0x1ca9   :  { %v7824_v47 = vpop.permute.xlu2 %4101 }
0x1cb1   :  { %v7842_v46 = vpop.permute.xlu2 %4107 }
0x1cc0   :  { %v4155_v52 = vpop.permute.xlu2 %4154 }
0x1cc1   :  { %v7826_v17 = vpop.permute.xlu1 %4099 }
0x1cc2   :  { %v4112_v50 = vsel %vm1932_vm7, %v7826_v17, %v7824_v47  ;;  %v7831_v51 = vpop.permute.xlu0 %4097 }
0x1cc3   :  { %v7834_v29 = vadd.f32 %v4112_v50, %v7755_v0  ;;  %v4124_v16 = vadd.f32 %v7831_v51, %v7753_v8  ;;  %v2336_v8 = vmul.f32 %v8939_v37, %v6487_v19  ;;  %v8950_v50 = vld [vmem:[#allocation119_spill] sm:$0xff] }
0x1cc5   :  { %v2343_v41 = vadd.f32 %v2336_v8, %v2301_v9  ;;  %v8953_v9 = vld [vmem:[#allocation125_spill] sm:$0xff] }
0x1cc7   :  { %v2385_v22 = vadd.f32 %v2378_v44, %v2343_v41  ;;  %v8955_v44 = vld [vmem:[#allocation120_spill] sm:$0xff] }
0x1cc8   :  { %v7869_v58 = vpop.permute.xlu2 %4160 }
0x1cc9   :  { %v7844_v55 = vpop.permute.xlu1 %4105  ;;  %v2440_v23 = vadd.f32 %v8888_v31, %v2385_v22  ;;  %v3545_v22 = vsel %vm1206_vm4, %v8955_v44, %v8954_v20  ;;  %v4006_v20 = vsel %vm1711_vm6, %v7712_v48, %v7743_v12 }
0x1cca   :  { %v4115_v5 = vsel %vm1932_vm7, %v7844_v55, %v7842_v46  ;;  %v7849_v0 = vpop.permute.xlu0 %4103 }
0x1ccb   :  { %v7854_v6 = vadd.f32 %v4115_v5, %v7768_v59  ;;  %v2495_v4 = vadd.f32 %v8889_v36, %v2440_v23  ;;  %v3469_v5 = vsel %vm1206_vm4, %v8953_v9, %v8952_v30  ;;  %v8967_v30 = vld [vmem:[#allocation134_spill] sm:$0xff] }
0x1ccc   :  { %v8968_v9 = vld [vmem:[#allocation130_spill] sm:$0xff] }
0x1ccd   :  { %v2550_v56 = vadd.f32 %v8890_v53, %v2495_v4  ;;  %v8942_v53 = vld [vmem:[#allocation54_spill] sm:$0xff]  ;;  %v8956_v4 = vld [vmem:[#allocation121_spill] sm:$0xff] }
0x1ccf   :  { %v2605_v19 = vadd.f32 %v8891_v63, %v2550_v56  ;;  %v8957_v56 = vld [vmem:[#allocation115_spill] sm:$0xff] }
0x1cd0   :  { %v7878_v11 = vpop.permute.xlu2 %4207 }
0x1cd1   :  { %v2660_v14 = vadd.f32 %v8892_v45, %v2605_v19  ;;  %v3621_v19 = vsel %vm1206_vm4, %v8957_v56, %v8956_v4 }
0x1cd2   :  { %v7858_v62 = vpop.permute.xlu0 %4109 }
0x1cd3   :  { %v2715_v42 = vadd.f32 %v8893_v1, %v2660_v14 }
0x1cd5   :  { %v2770_v60 = vadd.f32 %v8894_v49, %v2715_v42  ;;  %v8946_v49 = vld [vmem:[#allocation102_spill] sm:$0xff]  ;;  %v8958_v42 = vld [vmem:[#allocation128_spill] sm:$0xff] }
0x1cd7   :  { %v2825_v36 = vadd.f32 %v8941_v39, %v2770_v60  ;;  %v8959_v60 = vld [vmem:[#allocation122_spill] sm:$0xff] }
0x1cd8   :  { %v4153_v21 = vpop.permute.xlu1 %4152  ;;  %v4214_v41 = vpop.permute.xlu2 %4213  ;;  %v3676_v39 = vsel %vm1490_vm5, %v8959_v60, %v8958_v42 }
0x1cd9   :  { %v7864_v32 = vadd.f32 %v4153_v21, %v4124_v16  ;;  %v2880_v57 = vadd.f32 %v8942_v53, %v2825_v36  ;;  %v3393_v16 = vsel %vm1206_vm4, %v8950_v50, %v8949_v3  ;;  %v8966_v50 = vld [vmem:[#allocation139_spill] sm:$0xff] }
0x1cda   :  { %v4157_v59 = vpop.permute.xlu0 %4156 }
0x1cdb   :  { %v2935_v63 = vadd.f32 %v8943_v26, %v2880_v57  ;;  %v8960_v57 = vld [vmem:[#allocation123_spill] sm:$0xff]  ;;  %v8961_v26 = vld [vmem:[#allocation132_spill] sm:$0xff] }
0x1cdd   :  { %v2990_v28 = vadd.f32 %v8944_v34, %v2935_v63  ;;  %v3731_v63 = vsel %vm1490_vm5, %v8961_v26, %v8960_v57 }
0x1cdf   :  { %v3045_v45 = vadd.f32 %v8945_v61, %v2990_v28  ;;  %v8962_v61 = vld [vmem:[#allocation129_spill] sm:$0xff] }
0x1ce0   :  { %v4159_v31 = vpop.permute.xlu1 %4158 }
0x1ce1   :  { %v3119_v7 = vadd.f32 %v8946_v49, %v3045_v45  ;;  %v8963_v45 = vld [vmem:[#allocation127_spill] sm:$0xff]  ;;  %v4168_v42 = vsel %vm1932_vm7, %v4157_v59, %v4159_v31 }
0x1ce2   :  { %v7872_v13 = vpop.permute.xlu0 %4162  ;;  %v3786_v49 = vsel %vm1490_vm5, %v8963_v45, %v8962_v61 }
0x1ce3   :  { %v3187_v15 = vadd.f32 %v8947_v38, %v3119_v7  ;;  %v4220_v38 = vpop.permute.xlu2 %4219 }
0x1ce5   :  { %v3255_v18 = vadd.f32 %v8948_v2, %v3187_v15  ;;  %v8964_v15 = vld [vmem:[#allocation124_spill] sm:$0xff]  ;;  %v8965_v2 = vld [vmem:[#allocation133_spill] sm:$0xff] }
0x1ce7   :  { %v3323_v35 = vadd.f32 %v8951_v24, %v3255_v18  ;;  %v3841_v18 = vsel %vm1490_vm5, %v8965_v2, %v8964_v15 }
0x1ce8   :  { %v4165_v54 = vpop.permute.xlu1 %4164 }
0x1ce9   :  { %v3407_v8 = vadd.f32 %v3393_v16, %v3323_v35  ;;  %v3896_v16 = vsel %vm1711_vm6, %v8966_v50, %v7680_v40  ;;  %v4113_v40 = vsel %vm1932_vm7, %v7824_v47, %v7849_v0  ;;  %v4116_v47 = vsel %vm1932_vm7, %v7842_v46, %v7858_v62 }
0x1cea   :  { %v4210_v1 = vpop.permute.xlu0 %4209 }
0x1ceb   :  { %v3483_v23 = vadd.f32 %v3469_v5, %v3407_v8  ;;  %v3951_v5 = vsel %vm1711_vm6, %v8968_v9, %v8967_v30  ;;  %v4267_v56 = vpop.permute.xlu2 %4266 }
0x1ced   :  { %v3559_v14 = vadd.f32 %v3545_v22, %v3483_v23  ;;  %v4111_v23 = vsel %vm1932_vm7, %v7831_v51, %v7826_v17  ;;  %v4114_v17 = vsel %vm1932_vm7, %v7849_v0, %v7844_v55  ;;  %v4127_v51 = vadd.f32 %v4113_v40, %v7770_v27 }
0x1cee   :  { %v4125_v12 = vadd.f32 %v4111_v23, %v7757_v43  ;;  %v4170_v27 = vsel %vm1932_vm7, %v7869_v58, %v7872_v13 }
0x1cef   :  { %v3635_v53 = vadd.f32 %v3621_v19, %v3559_v14  ;;  %v4166_v19 = vsel %vm1932_vm7, %v4153_v21, %v4155_v52  ;;  %v4167_v14 = vsel %vm1932_vm7, %v4155_v52, %v4157_v59  ;;  %v4221_v52 = vsel %vm1932_vm7, %v7878_v11, %v4210_v1 }
0x1cf0   :  { %v4212_v10 = vpop.permute.xlu1 %4211  ;;  %v4181_v43 = vadd.f32 %v4167_v14, %v7834_v29  ;;  %v4182_v55 = vadd.f32 %v4168_v42, %v4127_v51 }
0x1cf1   :  { %v3690_v34 = vadd.f32 %v3676_v39, %v3635_v53  ;;  %v4222_v21 = vsel %vm1932_vm7, %v4210_v1, %v4212_v10  ;;  %v4223_v59 = vsel %vm1932_vm7, %v4212_v10, %v4214_v41  ;;  %v4169_v39 = vsel %vm1932_vm7, %v4159_v31, %v7869_v58 }
0x1cf2   :  { %v7890_v37 = vpop.permute.xlu0 %4215  ;;  %v4171_v1 = vsel %vm1932_vm7, %v7872_v13, %v4165_v54  ;;  %v4236_v29 = vadd.f32 %v4222_v21, %v4181_v43  ;;  %v4237_v53 = vadd.f32 %v4223_v59, %v4182_v55  ;;  %v4128_v31 = vadd.f32 %v4114_v17, %v7772_v33 }
0x1cf3   :  { %v3745_v7 = vadd.f32 %v3731_v63, %v3690_v34  ;;  %v4224_v26 = vsel %vm1932_vm7, %v4214_v41, %v7890_v37  ;;  %v4273_v54 = vpop.permute.xlu2 %4272 }
0x1cf5   :  { %v3800_v3 = vadd.f32 %v3786_v49, %v3745_v7  ;;  %v4183_v49 = vadd.f32 %v4169_v39, %v4128_v31  ;;  %v4184_v7 = vadd.f32 %v4170_v27, %v7854_v6 }
0x1cf7   :  { %v3855_v35 = vadd.f32 %v3841_v18, %v3800_v3  ;;  %v4238_v50 = vadd.f32 %v4224_v26, %v4183_v49 }
0x1cf8   :  { %v4218_v36 = vpop.permute.xlu1 %4217 }
0x1cf9   :  { %v3910_v8 = vadd.f32 %v3896_v16, %v3855_v35  ;;  %v4226_v58 = vsel %vm1932_vm7, %v4218_v36, %v4220_v38  ;;  %v4225_v2 = vsel %vm1932_vm7, %v7890_v37, %v4218_v36 }
0x1cfa   :  { %v7904_v28 = vpop.permute.xlu0 %4262  ;;  %v4239_v9 = vadd.f32 %v4225_v2, %v4184_v7 }
0x1cfb   :  { %v3965_v44 = vadd.f32 %v3951_v5, %v3910_v8 }
0x1cfd   :  { %v4020_v4 = vadd.f32 %v4006_v20, %v3965_v44 }
0x1cff   :  { %v4075_v48 = vadd.f32 %v7777_v25, %v4020_v4  ;;  %v4180_v25 = vadd.f32 %v4166_v19, %v4125_v12 }
0x1d00   :  { %v4265_v24 = vpop.permute.xlu1 %4264 }
0x1d01   :  { %v4276_v46 = vsel %vm1932_vm7, %v7904_v28, %v4265_v24  ;;  %v4277_v0 = vsel %vm1932_vm7, %v4265_v24, %v4267_v56  ;;  %v4235_v10 = vadd.f32 %v4221_v52, %v4180_v25  ;;  %v4130_v57 = vadd.f32 %v4116_v47, %v4075_v48 }
0x1d02   :  { %v4269_v22 = vpop.permute.xlu0 %4268  ;;  %v4291_v34 = vadd.f32 %v4277_v0, %v4236_v29 }
0x1d03   :  { %v4278_v62 = vsel %vm1932_vm7, %v4267_v56, %v4269_v22  ;;  %v4290_v63 = vadd.f32 %v4276_v46, %v4235_v10  ;;  %v4185_v15 = vadd.f32 %v4171_v1, %v4130_v57 }
0x1d04   :  { %v4292_v61 = vadd.f32 %v4278_v62, %v4237_v53 }
0x1d05   :  { %v4240_v41 = vadd.f32 %v4226_v58, %v4185_v15 }
0x1d08   :  { %v4271_v60 = vpop.permute.xlu1 %4270 }
0x1d09   :  { %v4279_v38 = vsel %vm1932_vm7, %v4269_v22, %v4271_v60  ;;  %v4280_v24 = vsel %vm1932_vm7, %v4271_v60, %v4273_v54  ;;  %v4234_v22 = vadd.f32 %v7878_v11, %v7864_v32 }
0x1d0a   :  { %v4275_v45 = vpop.permute.xlu0 %4274  ;;  %v4293_v5 = vadd.f32 %v4279_v38, %v4238_v50  ;;  %v4294_v37 = vadd.f32 %v4280_v24, %v4239_v9 }
0x1d0b   :  { %v4281_v16 = vsel %vm1932_vm7, %v4273_v54, %v4275_v45  ;;  %v4289_v56 = vadd.f32 %v7904_v28, %v4234_v22 }
0x1d0c   :  { %v4295_v8 = vadd.f32 %v4281_v16, %v4240_v41 }
0x1d10   :  { %v4301_v13 = vpop.permute.xlu1 %4300 }
0x1d11   :  { %v4304_v33 = vadd.f32 %v4301_v13, %v4290_v63  ;;  %v4306_v18 = vadd.f32 %v4301_v13, %v4292_v61  ;;  %v4305_v3 = vadd.f32 %v4301_v13, %v4291_v34  ;;  %v4307_v36 = vadd.f32 %v4301_v13, %v4293_v5 }
0x1d12   :  { %v4309_v20 = vadd.f32 %v4301_v13, %v4295_v8  ;;  %v4308_v44 = vadd.f32 %v4301_v13, %v4294_v37  ;;  %v4303_v19 = vadd.f32 %v4301_v13, %v4289_v56 }
0x1d13   :  { %v4311_v35 = vmax.f32 %v4304_v33, 0.0  ;;  %v4313_v30 = vmax.f32 %v4306_v18, 0.0  ;;  %v4312_v6 = vmax.f32 %v4305_v3, 0.0  ;;  %v4314_v23 = vmax.f32 %v4307_v36, 0.0 }
0x1d14   :  { %v4316_v40 = vmax.f32 %v4309_v20, 0.0  ;;  %v4315_v4 = vmax.f32 %v4308_v44, 0.0  ;;  %v4310_v14 = vmax.f32 %v4303_v19, 0.0 }
0x1d15   :  { %4326 = vrot.lane.b32.xlu2 %v4311_v35, %s4472_s6  ;;  %4330 = vrot.lane.b32.xlu1 %v4313_v30, %s4472_s6 }
0x1d16   :  { %4328 = vrot.lane.b32.xlu0 %v4312_v6, %s4472_s6 }
0x1d1d   :  { %4332 = vrot.lane.b32.xlu2 %v4314_v23, %s4472_s6  ;;  %4336 = vrot.lane.b32.xlu1 %v4316_v40, %s4472_s6 }
0x1d1e   :  { %4334 = vrot.lane.b32.xlu0 %v4315_v4, %s4472_s6 }
0x1d25   :  { %4324 = vrot.lane.b32.xlu2 %v4310_v14, %s4472_s6 }
0x1d6f   :  { %v4327_v42 = vpop.permute.xlu2 %4326 }
0x1d77   :  { %v4333_v60 = vpop.permute.xlu2 %4332 }
0x1d7f   :  { %v4325_v48 = vpop.permute.xlu2 %4324 }
0x1d80   :  { %v4338_v17 = vsel %vm2172_vm9, %v4325_v48, %v4327_v42 }
0x1d81   :  { %v4350_v46 = vsel %vm6352_vm11, %v4338_v17, 0.0 }
0x1d87   :  { %v4331_v12 = vpop.permute.xlu1 %4330 }
0x1d88   :  { %v4341_v32 = vsel %vm2172_vm9, %v4331_v12, %v4333_v60  ;;  %v4329_v11 = vpop.permute.xlu0 %4328 }
0x1d89   :  { %v4353_v51 = vsel %vm6367_vm14, %v4341_v32, 0.0  ;;  %v4339_v47 = vsel %vm2172_vm9, %v4327_v42, %v4329_v11  ;;  %v4340_v52 = vsel %vm2172_vm9, %v4329_v11, %v4331_v12 }
0x1d8a   :  { %v4363_v21 = vrot.slane %v4353_v51, 4  ;;  %v4351_v25 = vsel %vm6348_vm10, %v4339_v47, 0.0  ;;  %v4352_v39 = vsel %vm6371_vm15, %v4340_v52, 0.0 }
0x1d8b   :  { %v4362_v55 = vrot.slane %v4351_v25, 4 }
0x1d8c   :  { %v4366_v0 = vsel %vm2200_vm12, %v4352_v39, %v4363_v21 }
0x1d8d   :  { %v4365_v62 = vsel %vm2200_vm12, %v4350_v46, %v4362_v55  ;;  %4372 = vst [vmem:[%s8009_s4 + $0x8] sm:$0xff] %v4366_v0 }
0x1d8e   :  { %4371 = vst [vmem:[%s8009_s4] sm:$0xff] %v4365_v62 }
0x1d8f   :  { %v4337_v1 = vpop.permute.xlu1 %4336 }
0x1d90   :  { %v4335_v10 = vpop.permute.xlu0 %4334 }
0x1d91   :  { %v4342_v29 = vsel %vm2172_vm9, %v4333_v60, %v4335_v10  ;;  %v4343_v53 = vsel %vm2172_vm9, %v4335_v10, %v4337_v1 }
0x1d92   :  { %v4355_v57 = vsel %vm6363_vm13, %v4343_v53, 0.0  ;;  %v4354_v63 = vsel %vm6375_vm8, %v4342_v29, 0.0 }
0x1d93   :  { %v4364_v26 = vrot.slane %v4355_v57, 4 }
0x1d95   :  { %v4367_v34 = vsel %vm2200_vm12, %v4354_v63, %v4364_v26 }
0x1d96   :  { %4373 = vst [vmem:[%s8009_s4 + $0x10] sm:$0xff] %v4367_v34 }

</bundles_post_ra>
